<compile_context>
chip_gen: v7x
topology: tpu7x:2x2x1
jax: 0.10.0
libtpu: 0.0.40
codegen_flags: <defaults>
</compile_context>

<pallas_src>
import functools

import jax
import jax.numpy as jnp
from jax import lax
from jax.experimental import pallas as pl
from jax.experimental.pallas import tpu as pltpu


def basic_block_kernel(x_ref, w1_ref, s1_ref, b1_ref, w2_ref, s2_ref, b2_ref,
                       o_ref, xpad_ref, hpad_ref, *, F, H, W, Cin, Cout):
    """One grid step: F frames, fully fused conv-bn-relu-conv-bn-add-relu."""
    # ---- zero only the halo borders of the two padded scratches.  Interiors
    # are fully overwritten every frame; borders never change, but each
    # TensorCore has its own scratch under megacore, so we cheaply re-zero them
    # every grid step instead of gating on pl.program_id(0) == 0 (which only
    # core 0 would ever execute).
    for ref, c in ((xpad_ref, Cin), (hpad_ref, Cout)):
        ref[0:1, :, :] = jnp.zeros((1, W + 2, c), jnp.bfloat16)
        ref[H + 1:H + 2, :, :] = jnp.zeros((1, W + 2, c), jnp.bfloat16)
        ref[1:H + 1, 0:1, :] = jnp.zeros((H, 1, c), jnp.bfloat16)
        ref[1:H + 1, W + 1:W + 2, :] = jnp.zeros((H, 1, c), jnp.bfloat16)

    s1 = s1_ref[...]          # (1, Cout) f32, broadcast row (cheap, stays 1 vreg)
    b1 = b1_ref[...]
    s2 = s2_ref[...]
    b2 = b2_ref[...]

    def conv3x3(pad_ref, w_ref, cin):
        # 3x3 "SAME" conv as 3 fat matmuls: per kh, concatenate the 3 kw-shifted
        # windows along channels (K = 3*cin) against the pre-concatenated weight.
        acc = jnp.zeros((H * W, Cout), jnp.float32)
        for dh in range(3):
            patch = jnp.concatenate(
                [pad_ref[dh:dh + H, dw:dw + W, :] for dw in range(3)], axis=-1)
            acc = acc + jnp.dot(patch.reshape(H * W, 3 * cin), w_ref[dh],
                                preferred_element_type=jnp.float32)
        return acc

    def frame_body(f, carry):
        # ---- conv1 + bn1 + relu ----
        xpad_ref[1:H + 1, 1:W + 1, :] = x_ref[f]           # bf16 frame -> halo buf
        h1 = conv3x3(xpad_ref, w1_ref, Cin)                # f32 accumulation
        h1 = jnp.maximum(h1 * s1 + b1, 0.0)
        # ---- conv2 + bn2 ----
        hpad_ref[1:H + 1, 1:W + 1, :] = (
            h1.reshape(H, W, Cout).astype(jnp.bfloat16))
        out = conv3x3(hpad_ref, w2_ref, Cout)
        out = out * s2 + b2
        # ---- residual add (stride=1, downsample=None) + relu ----
        identity = x_ref[f].reshape(H * W, Cin).astype(jnp.float32)
        out = jnp.maximum(out + identity, 0.0)
        o_ref[f] = out.reshape(H, W, Cout).astype(o_ref.dtype)
        return carry

    # Sequential per-frame loop bounds live ranges to ~one frame of vregs.
    lax.fori_loop(0, F, frame_body, 0)


def _choose_frames_per_block(num_frames, frame_bytes, budget_bytes=4 << 20):
    """Largest divisor of num_frames whose block fits the budget, preferring an
    even grid length >= 2 (keeps both TensorCores busy on multi-core chips and
    stays far under the 64 MiB v7x VMEM with double-buffering)."""
    best = 1
    for f in range(1, num_frames + 1):
        if num_frames % f or f * frame_bytes > budget_bytes:
            continue
        steps = num_frames // f
        if steps >= 2 and steps % 2 == 0:
            best = f
    return best


def basic_block_forward(x_ncdhw, params):
    """x_ncdhw: (N, C, D, H, W) float32.  Returns (N, C, D, H, W) float32."""
    N, C, D, H, W = x_ncdhw.shape
    Cout = params["w1_hwio"].shape[-1]
    assert C == Cout, "stride=1 / downsample=None requires inplanes == planes"
    B = N * D

    # NCDHW -> frame-major channels-last; bf16 cast fused into this relayout op.
    xf = (jnp.transpose(x_ncdhw, (0, 2, 3, 4, 1))
          .reshape(B, H, W, C).astype(jnp.bfloat16))

    # Pre-concatenate the kw taps in the wrapper: (kh, kw, Cin, Cout) ->
    # (kh, kw*Cin, Cout), matching the in-kernel channel concat order.
    w1 = params["w1_hwio"].astype(jnp.bfloat16).reshape(3, 3 * C, Cout)
    w2 = params["w2_hwio"].astype(jnp.bfloat16).reshape(3, 3 * Cout, Cout)
    s1 = params["bn1_scale"].reshape(1, Cout).astype(jnp.float32)
    b1 = params["bn1_bias"].reshape(1, Cout).astype(jnp.float32)
    s2 = params["bn2_scale"].reshape(1, Cout).astype(jnp.float32)
    b2 = params["bn2_bias"].reshape(1, Cout).astype(jnp.float32)

    # Frames per grid step (bf16 input block + f32 output block per frame).
    frame_bytes = H * W * C * 2 + H * W * Cout * 4
    F = _choose_frames_per_block(B, frame_bytes)

    kernel = functools.partial(basic_block_kernel,
                               F=F, H=H, W=W, Cin=C, Cout=Cout)

    out = pl.pallas_call(
        kernel,
        out_shape=jax.ShapeDtypeStruct((B, H, W, Cout), jnp.float32),
        grid_spec=pltpu.PrefetchScalarGridSpec(
            num_scalar_prefetch=0,
            grid=(B // F,),
            in_specs=[
                pl.BlockSpec((F, H, W, C), lambda b: (b, 0, 0, 0)),      # x (bf16)
                pl.BlockSpec((3, 3 * C, Cout), lambda b: (0, 0, 0)),     # w1 folded
                pl.BlockSpec((1, Cout), lambda b: (0, 0)),               # bn1 scale
                pl.BlockSpec((1, Cout), lambda b: (0, 0)),               # bn1 bias
                pl.BlockSpec((3, 3 * Cout, Cout), lambda b: (0, 0, 0)),  # w2 folded
                pl.BlockSpec((1, Cout), lambda b: (0, 0)),               # bn2 scale
                pl.BlockSpec((1, Cout), lambda b: (0, 0)),               # bn2 bias
            ],
            out_specs=pl.BlockSpec((F, H, W, Cout), lambda b: (b, 0, 0, 0)),
            scratch_shapes=[
                pltpu.VMEM((H + 2, W + 2, C), jnp.bfloat16),     # padded input frame
                pltpu.VMEM((H + 2, W + 2, Cout), jnp.bfloat16),  # padded conv1 output
            ],
        ),
        compiler_params=pltpu.CompilerParams(
            dimension_semantics=("parallel",),
            vmem_limit_bytes=48 * 1024 * 1024),  # headroom; <= v7x 64 MiB physical
    )(xf, w1, s1, b1, w2, s2, b2)

    # (N*D, H, W, C) -> NCDHW
    return out.reshape(N, D, H, W, Cout).transpose(0, 4, 1, 2, 3)


def make_params(key, inplanes, planes, eps=1e-3):
    """Deterministic parameters matching BasicBlock(inplanes, planes, stride=1)."""
    ks = jax.random.split(key, 8)
    # PyTorch Conv3d weight layout: (out, in, 1, kh, kw), bias=False.
    w1_pt = 0.1 * jax.random.normal(ks[0], (planes, inplanes, 1, 3, 3), jnp.float32)
    w2_pt = 0.1 * jax.random.normal(ks[1], (planes, planes, 1, 3, 3), jnp.float32)
    g1 = 1.0 + 0.1 * jax.random.normal(ks[2], (planes,), jnp.float32)
    be1 = 0.1 * jax.random.normal(ks[3], (planes,), jnp.float32)
    g2 = 1.0 + 0.1 * jax.random.normal(ks[4], (planes,), jnp.float32)
    be2 = 0.1 * jax.random.normal(ks[5], (planes,), jnp.float32)
    rm1 = 0.05 * jax.random.normal(ks[6], (planes,), jnp.float32)
    rv1 = 0.9 + 0.1 * jax.random.uniform(ks[7], (planes,), jnp.float32)
    rm2 = jnp.zeros((planes,), jnp.float32)
    rv2 = jnp.ones((planes,), jnp.float32)

    # TODO(synk): training-mode BatchNorm (batch statistics + running-stat update)
    # is not expressed here; BN is folded in inference mode: y = x*scale + bias.
    s1 = g1 / jnp.sqrt(rv1 + eps)
    b1 = be1 - rm1 * s1
    s2 = g2 / jnp.sqrt(rv2 + eps)
    b2 = be2 - rm2 * s2

    # Conv weights to HWIO for the kernel: (kh, kw, Cin, Cout)
    w1_hwio = jnp.transpose(w1_pt[:, :, 0], (2, 3, 1, 0))
    w2_hwio = jnp.transpose(w2_pt[:, :, 0], (2, 3, 1, 0))
    return {
        "w1_hwio": w1_hwio, "w2_hwio": w2_hwio,
        "bn1_scale": s1, "bn1_bias": b1,
        "bn2_scale": s2, "bn2_bias": b2,
    }


def reference_forward(x_ncdhw, params):
    """Pure-JAX reference with the same bf16 operand quantization as the kernel
    (matmul operands bf16, accumulation/BN/residual f32)."""
    N, C, D, H, W = x_ncdhw.shape
    xq = (jnp.transpose(x_ncdhw, (0, 2, 3, 4, 1)).reshape(N * D, H, W, C)
          .astype(jnp.bfloat16).astype(jnp.float32))
    w1 = params["w1_hwio"].astype(jnp.bfloat16).astype(jnp.float32)
    w2 = params["w2_hwio"].astype(jnp.bfloat16).astype(jnp.float32)
    dn = ("NHWC", "HWIO", "NHWC")
    y = lax.conv_general_dilated(xq, w1, (1, 1), "SAME", dimension_numbers=dn,
                                 precision=lax.Precision.HIGHEST)
    y = jnp.maximum(y * params["bn1_scale"] + params["bn1_bias"], 0.0)
    y = y.astype(jnp.bfloat16).astype(jnp.float32)   # kernel feeds conv2 bf16
    y = lax.conv_general_dilated(y, w2, (1, 1), "SAME", dimension_numbers=dn,
                                 precision=lax.Precision.HIGHEST)
    y = y * params["bn2_scale"] + params["bn2_bias"]
    y = jnp.maximum(y + xq, 0.0)
    return y.reshape(N, D, H, W, C).transpose(0, 4, 1, 2, 3)


if __name__ == "__main__":
    # Small but representative shapes: NCDHW, inplanes == planes (= ResNet-18
    # layer1 channel count), stride=1, downsample=None.
    N, C, D, H, W = 2, 64, 4, 16, 16
    key = jax.random.PRNGKey(0)
    kx, kp = jax.random.split(key)
    x = jax.random.normal(kx, (N, C, D, H, W), jnp.float32)
    params = make_params(kp, inplanes=C, planes=C)

    out = jax.block_until_ready(jax.jit(basic_block_forward)(x, params))
    ref = jax.block_until_ready(reference_forward(x, params))

    assert out.shape == (N, C, D, H, W)
    err = float(jnp.max(jnp.abs(out - ref)))
    assert err < 1e-2, f"max abs err {err}"
    print("KERNEL_OK")
</pallas_src>

<mosaic_0001>
module attributes {stable_mosaic.version = 11 : i64} {
  func.func @basic_block_kernel(%arg0: i32, %arg1: memref<4x16x16x64xbf16, #tpu.memory_space<vmem>>, %arg2: memref<3x192x64xbf16, #tpu.memory_space<vmem>>, %arg3: memref<1x64xf32, #tpu.memory_space<vmem>>, %arg4: memref<1x64xf32, #tpu.memory_space<vmem>>, %arg5: memref<3x192x64xbf16, #tpu.memory_space<vmem>>, %arg6: memref<1x64xf32, #tpu.memory_space<vmem>>, %arg7: memref<1x64xf32, #tpu.memory_space<vmem>>, %arg8: memref<4x16x16x64xf32, #tpu.memory_space<vmem>>, %arg9: memref<18x18x64xbf16, #tpu.memory_space<vmem>>, %arg10: memref<18x18x64xbf16, #tpu.memory_space<vmem>>) attributes {dimension_semantics = [#tpu.dimension_semantics<parallel>], iteration_bounds = array<i64: 2>, scalar_prefetch = 0 : i64, scratch_operands = 2 : i64, tpu.core_type = #tpu.core_type<tc>, window_params = [{transform_indices = @transform_0, window_bounds = array<i64: 4, 16, 16, 64>}, {pipeline_mode = #tpu.pipeline_mode<synchronous>, transform_indices = @transform_1, window_bounds = array<i64: 3, 192, 64>}, {pipeline_mode = #tpu.pipeline_mode<synchronous>, transform_indices = @transform_2, window_bounds = array<i64: 1, 64>}, {pipeline_mode = #tpu.pipeline_mode<synchronous>, transform_indices = @transform_3, window_bounds = array<i64: 1, 64>}, {pipeline_mode = #tpu.pipeline_mode<synchronous>, transform_indices = @transform_4, window_bounds = array<i64: 3, 192, 64>}, {pipeline_mode = #tpu.pipeline_mode<synchronous>, transform_indices = @transform_5, window_bounds = array<i64: 1, 64>}, {pipeline_mode = #tpu.pipeline_mode<synchronous>, transform_indices = @transform_6, window_bounds = array<i64: 1, 64>}, {transform_indices = @transform_7, window_bounds = array<i64: 4, 16, 16, 64>}]} {
    %cst = arith.constant 0.000000e+00 : bf16
    %0 = vector.broadcast %cst : bf16 to vector<1x18x64xbf16>
    %c0 = arith.constant 0 : index
    %c0_0 = arith.constant 0 : index
    %c0_1 = arith.constant 0 : index
    %1 = vector.load %arg9[%c0, %c0_0, %c0_1] : memref<18x18x64xbf16, #tpu.memory_space<vmem>>, vector<1x18x64xbf16>
    tpu.vector_store %arg9[%c0, %c0_0, %c0_1], %0 {strides = array<i32>} : memref<18x18x64xbf16, #tpu.memory_space<vmem>>, vector<1x18x64xbf16>,
    %cst_2 = arith.constant 0.000000e+00 : bf16
    %2 = vector.broadcast %cst_2 : bf16 to vector<1x18x64xbf16>
    %c17 = arith.constant 17 : index
    %c0_3 = arith.constant 0 : index
    %c0_4 = arith.constant 0 : index
    %3 = vector.load %arg9[%c17, %c0_3, %c0_4] : memref<18x18x64xbf16, #tpu.memory_space<vmem>>, vector<1x18x64xbf16>
    tpu.vector_store %arg9[%c17, %c0_3, %c0_4], %2 {strides = array<i32>} : memref<18x18x64xbf16, #tpu.memory_space<vmem>>, vector<1x18x64xbf16>,
    %cst_5 = arith.constant 0.000000e+00 : bf16
    %4 = vector.broadcast %cst_5 : bf16 to vector<16x1x64xbf16>
    %c1 = arith.constant 1 : index
    %c0_6 = arith.constant 0 : index
    %c0_7 = arith.constant 0 : index
    %5 = vector.load %arg9[%c1, %c0_6, %c0_7] : memref<18x18x64xbf16, #tpu.memory_space<vmem>>, vector<16x1x64xbf16>
    tpu.vector_store %arg9[%c1, %c0_6, %c0_7], %4 {strides = array<i32>} : memref<18x18x64xbf16, #tpu.memory_space<vmem>>, vector<16x1x64xbf16>,
    %cst_8 = arith.constant 0.000000e+00 : bf16
    %6 = vector.broadcast %cst_8 : bf16 to vector<16x1x64xbf16>
    %c1_9 = arith.constant 1 : index
    %c17_10 = arith.constant 17 : index
    %c0_11 = arith.constant 0 : index
    %7 = vector.load %arg9[%c1_9, %c17_10, %c0_11] : memref<18x18x64xbf16, #tpu.memory_space<vmem>>, vector<16x1x64xbf16>
    tpu.vector_store %arg9[%c1_9, %c17_10, %c0_11], %6 {strides = array<i32>} : memref<18x18x64xbf16, #tpu.memory_space<vmem>>, vector<16x1x64xbf16>,
    %cst_12 = arith.constant 0.000000e+00 : bf16
    %8 = vector.broadcast %cst_12 : bf16 to vector<1x18x64xbf16>
    %c0_13 = arith.constant 0 : index
    %c0_14 = arith.constant 0 : index
    %c0_15 = arith.constant 0 : index
    %9 = vector.load %arg10[%c0_13, %c0_14, %c0_15] : memref<18x18x64xbf16, #tpu.memory_space<vmem>>, vector<1x18x64xbf16>
    tpu.vector_store %arg10[%c0_13, %c0_14, %c0_15], %8 {strides = array<i32>} : memref<18x18x64xbf16, #tpu.memory_space<vmem>>, vector<1x18x64xbf16>,
    %cst_16 = arith.constant 0.000000e+00 : bf16
    %10 = vector.broadcast %cst_16 : bf16 to vector<1x18x64xbf16>
    %c17_17 = arith.constant 17 : index
    %c0_18 = arith.constant 0 : index
    %c0_19 = arith.constant 0 : index
    %11 = vector.load %arg10[%c17_17, %c0_18, %c0_19] : memref<18x18x64xbf16, #tpu.memory_space<vmem>>, vector<1x18x64xbf16>
    tpu.vector_store %arg10[%c17_17, %c0_18, %c0_19], %10 {strides = array<i32>} : memref<18x18x64xbf16, #tpu.memory_space<vmem>>, vector<1x18x64xbf16>,
    %cst_20 = arith.constant 0.000000e+00 : bf16
    %12 = vector.broadcast %cst_20 : bf16 to vector<16x1x64xbf16>
    %c1_21 = arith.constant 1 : index
    %c0_22 = arith.constant 0 : index
    %c0_23 = arith.constant 0 : index
    %13 = vector.load %arg10[%c1_21, %c0_22, %c0_23] : memref<18x18x64xbf16, #tpu.memory_space<vmem>>, vector<16x1x64xbf16>
    tpu.vector_store %arg10[%c1_21, %c0_22, %c0_23], %12 {strides = array<i32>} : memref<18x18x64xbf16, #tpu.memory_space<vmem>>, vector<16x1x64xbf16>,
    %cst_24 = arith.constant 0.000000e+00 : bf16
    %14 = vector.broadcast %cst_24 : bf16 to vector<16x1x64xbf16>
    %c1_25 = arith.constant 1 : index
    %c17_26 = arith.constant 17 : index
    %c0_27 = arith.constant 0 : index
    %15 = vector.load %arg10[%c1_25, %c17_26, %c0_27] : memref<18x18x64xbf16, #tpu.memory_space<vmem>>, vector<16x1x64xbf16>
    tpu.vector_store %arg10[%c1_25, %c17_26, %c0_27], %14 {strides = array<i32>} : memref<18x18x64xbf16, #tpu.memory_space<vmem>>, vector<16x1x64xbf16>,
    %c0_28 = arith.constant 0 : index
    %c0_29 = arith.constant 0 : index
    %16 = vector.load %arg3[%c0_28, %c0_29] : memref<1x64xf32, #tpu.memory_space<vmem>>, vector<1x64xf32>
    %c0_30 = arith.constant 0 : index
    %c0_31 = arith.constant 0 : index
    %17 = vector.load %arg4[%c0_30, %c0_31] : memref<1x64xf32, #tpu.memory_space<vmem>>, vector<1x64xf32>
    %c0_32 = arith.constant 0 : index
    %c0_33 = arith.constant 0 : index
    %18 = vector.load %arg6[%c0_32, %c0_33] : memref<1x64xf32, #tpu.memory_space<vmem>>, vector<1x64xf32>
    %c0_34 = arith.constant 0 : index
    %c0_35 = arith.constant 0 : index
    %19 = vector.load %arg7[%c0_34, %c0_35] : memref<1x64xf32, #tpu.memory_space<vmem>>, vector<1x64xf32>
    %c0_i32 = arith.constant 0 : i32
    %c4_i32 = arith.constant 4 : i32
    %20 = arith.addi %c0_i32, %c4_i32 : i32
    %c1_i32 = arith.constant 1 : i32
    scf.for %arg11 = %c0_i32 to %20 step %c1_i32  : i32 {
      %21 = arith.index_cast %arg11 : i32 to index
      %c0_37 = arith.constant 0 : index
      %c0_38 = arith.constant 0 : index
      %c0_39 = arith.constant 0 : index
      %22 = vector.load %arg1[%21, %c0_37, %c0_38, %c0_39] : memref<4x16x16x64xbf16, #tpu.memory_space<vmem>>, vector<1x16x16x64xbf16>
      %23 = vector.shape_cast %22 : vector<1x16x16x64xbf16> to vector<16x16x64xbf16>
      %c1_40 = arith.constant 1 : index
      %c1_41 = arith.constant 1 : index
      %c0_42 = arith.constant 0 : index
      %24 = vector.load %arg9[%c1_40, %c1_41, %c0_42] : memref<18x18x64xbf16, #tpu.memory_space<vmem>>, vector<16x16x64xbf16>
      tpu.vector_store %arg9[%c1_40, %c1_41, %c0_42], %23 {strides = array<i32>} : memref<18x18x64xbf16, #tpu.memory_space<vmem>>, vector<16x16x64xbf16>,
      %cst_43 = arith.constant 0.000000e+00 : f32
      %25 = vector.broadcast %cst_43 : f32 to vector<256x64xf32>
      %c0_44 = arith.constant 0 : index
      %c0_45 = arith.constant 0 : index
      %c0_46 = arith.constant 0 : index
      %26 = vector.load %arg9[%c0_44, %c0_45, %c0_46] : memref<18x18x64xbf16, #tpu.memory_space<vmem>>, vector<16x16x64xbf16>
      %c0_47 = arith.constant 0 : index
      %c1_48 = arith.constant 1 : index
      %c0_49 = arith.constant 0 : index
      %27 = vector.load %arg9[%c0_47, %c1_48, %c0_49] : memref<18x18x64xbf16, #tpu.memory_space<vmem>>, vector<16x16x64xbf16>
      %c0_50 = arith.constant 0 : index
      %c2 = arith.constant 2 : index
      %c0_51 = arith.constant 0 : index
      %28 = vector.load %arg9[%c0_50, %c2, %c0_51] : memref<18x18x64xbf16, #tpu.memory_space<vmem>>, vector<16x16x64xbf16>
      %29 = tpu.concatenate %26, %27, %28 in 2 : vector<16x16x64xbf16>, vector<16x16x64xbf16>, vector<16x16x64xbf16> -> vector<16x16x192xbf16>
      %30 = vector.shape_cast %29 : vector<16x16x192xbf16> to vector<256x192xbf16>
      %c0_52 = arith.constant 0 : index
      %c0_53 = arith.constant 0 : index
      %c0_54 = arith.constant 0 : index
      %31 = vector.load %arg2[%c0_52, %c0_53, %c0_54] : memref<3x192x64xbf16, #tpu.memory_space<vmem>>, vector<1x192x64xbf16>
      %32 = vector.shape_cast %31 : vector<1x192x64xbf16> to vector<192x64xbf16>
      %cst_55 = arith.constant dense<0.000000e+00> : vector<256x64xf32>
      %33 = tpu.matmul %30, %32, %cst_55 {dimension_numbers = #tpu.dot_dimension_numbers<[1], [0], [0], [1], [0, 0, 1, 1], [], []>} : vector<256x192xbf16>, vector<192x64xbf16>, vector<256x64xf32> -> vector<256x64xf32>
      %34 = arith.addf %25, %33 : vector<256x64xf32>
      %c1_56 = arith.constant 1 : index
      %c0_57 = arith.constant 0 : index
      %c0_58 = arith.constant 0 : index
      %35 = vector.load %arg9[%c1_56, %c0_57, %c0_58] : memref<18x18x64xbf16, #tpu.memory_space<vmem>>, vector<16x16x64xbf16>
      %c1_59 = arith.constant 1 : index
      %c1_60 = arith.constant 1 : index
      %c0_61 = arith.constant 0 : index
      %36 = vector.load %arg9[%c1_59, %c1_60, %c0_61] : memref<18x18x64xbf16, #tpu.memory_space<vmem>>, vector<16x16x64xbf16>
      %c1_62 = arith.constant 1 : index
      %c2_63 = arith.constant 2 : index
      %c0_64 = arith.constant 0 : index
      %37 = vector.load %arg9[%c1_62, %c2_63, %c0_64] : memref<18x18x64xbf16, #tpu.memory_space<vmem>>, vector<16x16x64xbf16>
      %38 = tpu.concatenate %35, %36, %37 in 2 : vector<16x16x64xbf16>, vector<16x16x64xbf16>, vector<16x16x64xbf16> -> vector<16x16x192xbf16>
      %39 = vector.shape_cast %38 : vector<16x16x192xbf16> to vector<256x192xbf16>
      %c1_65 = arith.constant 1 : index
      %c0_66 = arith.constant 0 : index
      %c0_67 = arith.constant 0 : index
      %40 = vector.load %arg2[%c1_65, %c0_66, %c0_67] : memref<3x192x64xbf16, #tpu.memory_space<vmem>>, vector<1x192x64xbf16>
      %41 = vector.shape_cast %40 : vector<1x192x64xbf16> to vector<192x64xbf16>
      %cst_68 = arith.constant dense<0.000000e+00> : vector<256x64xf32>
      %42 = tpu.matmul %39, %41, %cst_68 {dimension_numbers = #tpu.dot_dimension_numbers<[1], [0], [0], [1], [0, 0, 1, 1], [], []>} : vector<256x192xbf16>, vector<192x64xbf16>, vector<256x64xf32> -> vector<256x64xf32>
      %43 = arith.addf %34, %42 : vector<256x64xf32>
      %c2_69 = arith.constant 2 : index
      %c0_70 = arith.constant 0 : index
      %c0_71 = arith.constant 0 : index
      %44 = vector.load %arg9[%c2_69, %c0_70, %c0_71] : memref<18x18x64xbf16, #tpu.memory_space<vmem>>, vector<16x16x64xbf16>
      %c2_72 = arith.constant 2 : index
      %c1_73 = arith.constant 1 : index
      %c0_74 = arith.constant 0 : index
      %45 = vector.load %arg9[%c2_72, %c1_73, %c0_74] : memref<18x18x64xbf16, #tpu.memory_space<vmem>>, vector<16x16x64xbf16>
      %c2_75 = arith.constant 2 : index
      %c2_76 = arith.constant 2 : index
      %c0_77 = arith.constant 0 : index
      %46 = vector.load %arg9[%c2_75, %c2_76, %c0_77] : memref<18x18x64xbf16, #tpu.memory_space<vmem>>, vector<16x16x64xbf16>
      %47 = tpu.concatenate %44, %45, %46 in 2 : vector<16x16x64xbf16>, vector<16x16x64xbf16>, vector<16x16x64xbf16> -> vector<16x16x192xbf16>
      %48 = vector.shape_cast %47 : vector<16x16x192xbf16> to vector<256x192xbf16>
      %c2_78 = arith.constant 2 : index
      %c0_79 = arith.constant 0 : index
      %c0_80 = arith.constant 0 : index
      %49 = vector.load %arg2[%c2_78, %c0_79, %c0_80] : memref<3x192x64xbf16, #tpu.memory_space<vmem>>, vector<1x192x64xbf16>
      %50 = vector.shape_cast %49 : vector<1x192x64xbf16> to vector<192x64xbf16>
      %cst_81 = arith.constant dense<0.000000e+00> : vector<256x64xf32>
      %51 = tpu.matmul %48, %50, %cst_81 {dimension_numbers = #tpu.dot_dimension_numbers<[1], [0], [0], [1], [0, 0, 1, 1], [], []>} : vector<256x192xbf16>, vector<192x64xbf16>, vector<256x64xf32> -> vector<256x64xf32>
      %52 = arith.addf %43, %51 : vector<256x64xf32>
      %53 = vector.broadcast %16 : vector<1x64xf32> to vector<256x64xf32>
      %54 = arith.mulf %52, %53 : vector<256x64xf32>
      %55 = vector.broadcast %17 : vector<1x64xf32> to vector<256x64xf32>
      %56 = arith.addf %54, %55 : vector<256x64xf32>
      %cst_82 = arith.constant 0.000000e+00 : f32
      %57 = vector.broadcast %cst_82 : f32 to vector<256x64xf32>
      %58 = arith.maximumf %56, %57 : vector<256x64xf32>
      %59 = vector.shape_cast %58 : vector<256x64xf32> to vector<16x16x64xf32>
      %60 = arith.truncf %59 : vector<16x16x64xf32> to vector<16x16x64xbf16>
      %c1_83 = arith.constant 1 : index
      %c1_84 = arith.constant 1 : index
      %c0_85 = arith.constant 0 : index
      %61 = vector.load %arg10[%c1_83, %c1_84, %c0_85] : memref<18x18x64xbf16, #tpu.memory_space<vmem>>, vector<16x16x64xbf16>
      tpu.vector_store %arg10[%c1_83, %c1_84, %c0_85], %60 {strides = array<i32>} : memref<18x18x64xbf16, #tpu.memory_space<vmem>>, vector<16x16x64xbf16>,
      %cst_86 = arith.constant 0.000000e+00 : f32
      %62 = vector.broadcast %cst_86 : f32 to vector<256x64xf32>
      %c0_87 = arith.constant 0 : index
      %c0_88 = arith.constant 0 : index
      %c0_89 = arith.constant 0 : index
      %63 = vector.load %arg10[%c0_87, %c0_88, %c0_89] : memref<18x18x64xbf16, #tpu.memory_space<vmem>>, vector<16x16x64xbf16>
      %c0_90 = arith.constant 0 : index
      %c1_91 = arith.constant 1 : index
      %c0_92 = arith.constant 0 : index
      %64 = vector.load %arg10[%c0_90, %c1_91, %c0_92] : memref<18x18x64xbf16, #tpu.memory_space<vmem>>, vector<16x16x64xbf16>
      %c0_93 = arith.constant 0 : index
      %c2_94 = arith.constant 2 : index
      %c0_95 = arith.constant 0 : index
      %65 = vector.load %arg10[%c0_93, %c2_94, %c0_95] : memref<18x18x64xbf16, #tpu.memory_space<vmem>>, vector<16x16x64xbf16>
      %66 = tpu.concatenate %63, %64, %65 in 2 : vector<16x16x64xbf16>, vector<16x16x64xbf16>, vector<16x16x64xbf16> -> vector<16x16x192xbf16>
      %67 = vector.shape_cast %66 : vector<16x16x192xbf16> to vector<256x192xbf16>
      %c0_96 = arith.constant 0 : index
      %c0_97 = arith.constant 0 : index
      %c0_98 = arith.constant 0 : index
      %68 = vector.load %arg5[%c0_96, %c0_97, %c0_98] : memref<3x192x64xbf16, #tpu.memory_space<vmem>>, vector<1x192x64xbf16>
      %69 = vector.shape_cast %68 : vector<1x192x64xbf16> to vector<192x64xbf16>
      %cst_99 = arith.constant dense<0.000000e+00> : vector<256x64xf32>
      %70 = tpu.matmul %67, %69, %cst_99 {dimension_numbers = #tpu.dot_dimension_numbers<[1], [0], [0], [1], [0, 0, 1, 1], [], []>} : vector<256x192xbf16>, vector<192x64xbf16>, vector<256x64xf32> -> vector<256x64xf32>
      %71 = arith.addf %62, %70 : vector<256x64xf32>
      %c1_100 = arith.constant 1 : index
      %c0_101 = arith.constant 0 : index
      %c0_102 = arith.constant 0 : index
      %72 = vector.load %arg10[%c1_100, %c0_101, %c0_102] : memref<18x18x64xbf16, #tpu.memory_space<vmem>>, vector<16x16x64xbf16>
      %c1_103 = arith.constant 1 : index
      %c1_104 = arith.constant 1 : index
      %c0_105 = arith.constant 0 : index
      %73 = vector.load %arg10[%c1_103, %c1_104, %c0_105] : memref<18x18x64xbf16, #tpu.memory_space<vmem>>, vector<16x16x64xbf16>
      %c1_106 = arith.constant 1 : index
      %c2_107 = arith.constant 2 : index
      %c0_108 = arith.constant 0 : index
      %74 = vector.load %arg10[%c1_106, %c2_107, %c0_108] : memref<18x18x64xbf16, #tpu.memory_space<vmem>>, vector<16x16x64xbf16>
      %75 = tpu.concatenate %72, %73, %74 in 2 : vector<16x16x64xbf16>, vector<16x16x64xbf16>, vector<16x16x64xbf16> -> vector<16x16x192xbf16>
      %76 = vector.shape_cast %75 : vector<16x16x192xbf16> to vector<256x192xbf16>
      %c1_109 = arith.constant 1 : index
      %c0_110 = arith.constant 0 : index
      %c0_111 = arith.constant 0 : index
      %77 = vector.load %arg5[%c1_109, %c0_110, %c0_111] : memref<3x192x64xbf16, #tpu.memory_space<vmem>>, vector<1x192x64xbf16>
      %78 = vector.shape_cast %77 : vector<1x192x64xbf16> to vector<192x64xbf16>
      %cst_112 = arith.constant dense<0.000000e+00> : vector<256x64xf32>
      %79 = tpu.matmul %76, %78, %cst_112 {dimension_numbers = #tpu.dot_dimension_numbers<[1], [0], [0], [1], [0, 0, 1, 1], [], []>} : vector<256x192xbf16>, vector<192x64xbf16>, vector<256x64xf32> -> vector<256x64xf32>
      %80 = arith.addf %71, %79 : vector<256x64xf32>
      %c2_113 = arith.constant 2 : index
      %c0_114 = arith.constant 0 : index
      %c0_115 = arith.constant 0 : index
      %81 = vector.load %arg10[%c2_113, %c0_114, %c0_115] : memref<18x18x64xbf16, #tpu.memory_space<vmem>>, vector<16x16x64xbf16>
      %c2_116 = arith.constant 2 : index
      %c1_117 = arith.constant 1 : index
      %c0_118 = arith.constant 0 : index
      %82 = vector.load %arg10[%c2_116, %c1_117, %c0_118] : memref<18x18x64xbf16, #tpu.memory_space<vmem>>, vector<16x16x64xbf16>
      %c2_119 = arith.constant 2 : index
      %c2_120 = arith.constant 2 : index
      %c0_121 = arith.constant 0 : index
      %83 = vector.load %arg10[%c2_119, %c2_120, %c0_121] : memref<18x18x64xbf16, #tpu.memory_space<vmem>>, vector<16x16x64xbf16>
      %84 = tpu.concatenate %81, %82, %83 in 2 : vector<16x16x64xbf16>, vector<16x16x64xbf16>, vector<16x16x64xbf16> -> vector<16x16x192xbf16>
      %85 = vector.shape_cast %84 : vector<16x16x192xbf16> to vector<256x192xbf16>
      %c2_122 = arith.constant 2 : index
      %c0_123 = arith.constant 0 : index
      %c0_124 = arith.constant 0 : index
      %86 = vector.load %arg5[%c2_122, %c0_123, %c0_124] : memref<3x192x64xbf16, #tpu.memory_space<vmem>>, vector<1x192x64xbf16>
      %87 = vector.shape_cast %86 : vector<1x192x64xbf16> to vector<192x64xbf16>
      %cst_125 = arith.constant dense<0.000000e+00> : vector<256x64xf32>
      %88 = tpu.matmul %85, %87, %cst_125 {dimension_numbers = #tpu.dot_dimension_numbers<[1], [0], [0], [1], [0, 0, 1, 1], [], []>} : vector<256x192xbf16>, vector<192x64xbf16>, vector<256x64xf32> -> vector<256x64xf32>
      %89 = arith.addf %80, %88 : vector<256x64xf32>
      %90 = vector.broadcast %18 : vector<1x64xf32> to vector<256x64xf32>
      %91 = arith.mulf %89, %90 : vector<256x64xf32>
      %92 = vector.broadcast %19 : vector<1x64xf32> to vector<256x64xf32>
      %93 = arith.addf %91, %92 : vector<256x64xf32>
      %94 = arith.index_cast %arg11 : i32 to index
      %c0_126 = arith.constant 0 : index
      %c0_127 = arith.constant 0 : index
      %c0_128 = arith.constant 0 : index
      %95 = vector.load %arg1[%94, %c0_126, %c0_127, %c0_128] : memref<4x16x16x64xbf16, #tpu.memory_space<vmem>>, vector<1x16x16x64xbf16>
      %96 = vector.shape_cast %95 : vector<1x16x16x64xbf16> to vector<16x16x64xbf16>
      %97 = vector.shape_cast %96 : vector<16x16x64xbf16> to vector<256x64xbf16>
      %98 = arith.extf %97 : vector<256x64xbf16> to vector<256x64xf32>
      %99 = arith.addf %93, %98 : vector<256x64xf32>
      %cst_129 = arith.constant 0.000000e+00 : f32
      %100 = vector.broadcast %cst_129 : f32 to vector<256x64xf32>
      %101 = arith.maximumf %99, %100 : vector<256x64xf32>
      %102 = vector.shape_cast %101 : vector<256x64xf32> to vector<16x16x64xf32>
      %103 = arith.index_cast %arg11 : i32 to index
      %c0_130 = arith.constant 0 : index
      %c0_131 = arith.constant 0 : index
      %c0_132 = arith.constant 0 : index
      %104 = vector.load %arg8[%103, %c0_130, %c0_131, %c0_132] : memref<4x16x16x64xf32, #tpu.memory_space<vmem>>, vector<1x16x16x64xf32>
      %105 = vector.shape_cast %104 : vector<1x16x16x64xf32> to vector<16x16x64xf32>
      %106 = vector.shape_cast %102 : vector<16x16x64xf32> to vector<1x16x16x64xf32>
      tpu.vector_store %arg8[%103, %c0_130, %c0_131, %c0_132], %106 {strides = array<i32>} : memref<4x16x16x64xf32, #tpu.memory_space<vmem>>, vector<1x16x16x64xf32>,
    }
    %c4_i32_36 = arith.constant 4 : i32
    return
  }
  func.func @transform_0(%arg0: i32) -> (i32, i32, i32, i32) {
    %c0_i32 = arith.constant 0 : i32
    %c0_i32_0 = arith.constant 0 : i32
    %c0_i32_1 = arith.constant 0 : i32
    %c0_i32_2 = arith.constant 0 : i32
    return %arg0, %c0_i32, %c0_i32_0, %c0_i32_1 : i32, i32, i32, i32
  }
  func.func @transform_1(%arg0: i32) -> (i32, i32, i32) {
    %c0_i32 = arith.constant 0 : i32
    %c0_i32_0 = arith.constant 0 : i32
    %c0_i32_1 = arith.constant 0 : i32
    %c0_i32_2 = arith.constant 0 : i32
    return %c0_i32, %c0_i32_0, %c0_i32_1 : i32, i32, i32
  }
  func.func @transform_2(%arg0: i32) -> (i32, i32) {
    %c0_i32 = arith.constant 0 : i32
    %c0_i32_0 = arith.constant 0 : i32
    %c0_i32_1 = arith.constant 0 : i32
    return %c0_i32, %c0_i32_0 : i32, i32
  }
  func.func @transform_3(%arg0: i32) -> (i32, i32) {
    %c0_i32 = arith.constant 0 : i32
    %c0_i32_0 = arith.constant 0 : i32
    %c0_i32_1 = arith.constant 0 : i32
    return %c0_i32, %c0_i32_0 : i32, i32
  }
  func.func @transform_4(%arg0: i32) -> (i32, i32, i32) {
    %c0_i32 = arith.constant 0 : i32
    %c0_i32_0 = arith.constant 0 : i32
    %c0_i32_1 = arith.constant 0 : i32
    %c0_i32_2 = arith.constant 0 : i32
    return %c0_i32, %c0_i32_0, %c0_i32_1 : i32, i32, i32
  }
  func.func @transform_5(%arg0: i32) -> (i32, i32) {
    %c0_i32 = arith.constant 0 : i32
    %c0_i32_0 = arith.constant 0 : i32
    %c0_i32_1 = arith.constant 0 : i32
    return %c0_i32, %c0_i32_0 : i32, i32
  }
  func.func @transform_6(%arg0: i32) -> (i32, i32) {
    %c0_i32 = arith.constant 0 : i32
    %c0_i32_0 = arith.constant 0 : i32
    %c0_i32_1 = arith.constant 0 : i32
    return %c0_i32, %c0_i32_0 : i32, i32
  }
  func.func @transform_7(%arg0: i32) -> (i32, i32, i32, i32) {
    %c0_i32 = arith.constant 0 : i32
    %c0_i32_0 = arith.constant 0 : i32
    %c0_i32_1 = arith.constant 0 : i32
    %c0_i32_2 = arith.constant 0 : i32
    return %arg0, %c0_i32, %c0_i32_0, %c0_i32_1 : i32, i32, i32, i32
  }
}

</mosaic_0001>

<bundles_post_ra>
// kernel: basic_block_forward.1
= control target key start
LH: loop header
LB: loop body
LE: loop exit
PB: predicated region body
PF: predicated region fallthrough
CT: control target
= control target key end

     0   :  { %12 = vsyncpa [#allocation5], 0  ;;  %s11389_s0 = inlined_call_operand.vmem [shape: bf16[8,16,16,64], index: 0, kind: input, shape index: {}]   ;;  %s11390_s1 = inlined_call_operand.vmem [shape: bf16[3,192,64], index: 1, kind: input, shape index: {}]   ;;  %s11391_s2 = inlined_call_operand.vmem [shape: f32[1,64], index: 2, kind: input, shape index: {}]   ;;  %s11392_s3 = inlined_call_operand.vmem [shape: f32[1,64], index: 3, kind: input, shape index: {}]   ;;  %s11393_s4 = inlined_call_operand.vmem [shape: bf16[3,192,64], index: 4, kind: input, shape index: {}]   ;;  %s11394_s5 = inlined_call_operand.vmem [shape: f32[1,64], index: 5, kind: input, shape index: {}]   ;;  %s11395_s6 = inlined_call_operand.vmem [shape: f32[1,64], index: 6, kind: input, shape index: {}]   ;;  %s11396_s7 = inlined_call_operand.hbm [shape: f32[8,16,16,64], index: 7, kind: output, shape index: {}]  }
   0x1   :  { %14 = vsyncpa [#allocation5 + $0x1], 0  ;;  %s8776_s24 = smov 0   ;;  %s8778_s25 = smov 0  }
   0x2   :  { %s8780_s26 = smov 0   ;;  %s8782_s27 = smov 0  }
   0x3 LB: > { %s8797_s28 = sadd.s32 4294967295, %s8724_s27   ;;  %s7203_s29 = sadd.s32 4294967294, %s8724_s27   ;;  %s8724_s27 = sphi %s8782_s27, %s11616_s27   ;;  %s8720_s26 = sphi %s8780_s26, %s11615_s26   ;;  %s8716_s25 = sphi %s8778_s25, %s11614_s25   ;;  %s8712_s24 = sphi %s8776_s24, %s11613_s24  }
   0x4   : > { %s8801_s30 = sadd.s32 1, %s8724_s27   ;;  %s179_s8 = sadd.s32 1, %s8720_s26 }
   0x5   : > { %s176_s9 = ssub.s32 %s8724_s27, %s8801_s30  ;;  %p189_p0 = scmp.ne.s32.totalorder %s8720_s26, %s8716_s25 }
   0x6   : > { %p177_p1 = scmp.eq.s32.totalorder %s176_s9, 0  ;;  %p190_p2 = scmp.eq.s32.totalorder %s8797_s28, 1 }
   0x7   : > { %p195_p3 = scmp.ne.s32.totalorder %s8716_s25, %s8712_s24  ;;  %p196_p4 = scmp.eq.s32.totalorder %s7203_s29, 1 }
   0x8   : > { %s8812_s10 = scalar_select %p177_p1, %s8720_s26, %s179_s8  }
   0x9   : > { %p8814_p5 = por %p190_p2, %p189_p0  ;;  %p8818_p6 = por %p196_p4, %p195_p3 }
   0xa   : > { %p7206_p7 = scmp.ge.s32.totalorder %s8724_s27, 1  ;;  %p242_p8 = scmp.lt.s32.totalorder %s8724_s27, 3 }
   0xc   : > { %p243_p9 = pnand %p7206_p7, %p242_p8 }
   0xe   : > { %246 = sbr.rel (%p243_p9) target bundleno = 1473 (0x5c1), region = 48 }
  0x15   : > { %s272_s13 = sand.u32 1, %s8716_s25   ;;  %s7208_s14 = sshll.u32 %s8797_s28, 2  ;;  %vm284_vm0 = vcmask 519168   ;;  %v8829_v0 = vld [vmem:[%s11391_s2] ss:$0 sm:$0xff]  ;;  %v8730_v1 = vmov 0  }
  0x16   : > { %11471 = vst [vmem:[#allocation7_spill] sm:$0xff] %v8829_v0  ;;  %s8833_s17 = sshll.u32 %s272_s13, 10  ;;  %p8835_p10 = scmp.lt.s32.totalorder %s7208_s14, 7  ;;  %285 = vst.msk [vmem:[#allocation2] sm:$0xf] %vm284_vm0, %v8730_v1  ;;  %vm287_vm1 = vcmask 516096  }
  0x17   : > { %286 = vst.msk [vmem:[#allocation2 + $0x4] sm:$0xf] %vm284_vm0, %v8730_v1  ;;  %290 = vst.msk [vmem:[#allocation2 + $0xcc] sm:$0xf] %vm284_vm0, %v8730_v1  ;;  %v8850_v2 = vld [vmem:[%s11392_s3] ss:$0 sm:$0xff] }
  0x18   : > { %291 = vst.msk [vmem:[#allocation2 + $0xd0] sm:$0xf] %vm284_vm0, %v8730_v1  ;;  %395 = vst.msk [vmem:[#allocation3] sm:$0xf] %vm284_vm0, %v8730_v1  ;;  %v8855_v3 = vld [vmem:[%s11394_s5] ss:$0 sm:$0xff] }
  0x19   : > { %396 = vst.msk [vmem:[#allocation3 + $0x4] sm:$0xf] %vm284_vm0, %v8730_v1  ;;  %399 = vst.msk [vmem:[#allocation3 + $0xcc] sm:$0xf] %vm284_vm0, %v8730_v1  ;;  %v8860_v4 = vld [vmem:[%s11395_s6] ss:$0 sm:$0xff] }
  0x1a   : > { %400 = vst.msk [vmem:[#allocation3 + $0xd0] sm:$0xf] %vm284_vm0, %v8730_v1  ;;  %11473 = vst [vmem:[#allocation8_spill] sm:$0xff] %v8850_v2  ;;  %vm295_vm2 = vsmask.f32 256  ;;  %s11618_s14 = smov (!%p8835_p10, %s7208_s14), 7 }
  0x1b   : > { %11474 = vst [vmem:[#allocation9_spill] sm:$0xff] %v8855_v3  ;;  %11475 = vst [vmem:[#allocation10_spill] sm:$0xff] %v8860_v4  ;;  %v11476_v5 = vmov 0  ;;  %vm345_vm4 = vsmask.f32 7938  ;;  %s7808_s8 = sshll.u32 %s11618_s14, 7 }
  0x1c   : > { %288 = vst.msk [vmem:[#allocation2 + $0x8] sm:$0x1] %vm287_vm1, %v8730_v1  ;;  %vm8867_vm3 = vmand %vm287_vm1, %vm295_vm2  ;;  %v297_v6 = vld [vmem:[#allocation2 + $0xc] sm:$0x1]  ;;  %v300_v8 = vld [vmem:[#allocation2 + $0x18] sm:$0x1]  ;;  %s8883_s16 = scalar_lea.vmem %s11389_s0, %s7808_s8 }
  0x1d   : > { %v11477_v5 = vsel %vm8867_vm3, 4294967295, %v11476_v5  ;;  %292 = vst.msk [vmem:[#allocation2 + $0xd4] sm:$0x1] %vm287_vm1, %v8730_v1  ;;  %397 = vst.msk [vmem:[#allocation3 + $0x8] sm:$0x1] %vm287_vm1, %v8730_v1  ;;  %v298_v7 = vsel %vm8867_vm3, 0, %v297_v6 }
  0x1e   : > { %11478 = vst [vmem:[#allocation11_spill] sm:$0xff] %v11477_v5  ;;  %401 = vst.msk [vmem:[#allocation3 + $0xd4] sm:$0x1] %vm287_vm1, %v8730_v1  ;;  %v303_v9 = vld [vmem:[#allocation2 + $0x24] sm:$0x1]  ;;  %v301_v10 = vsel %vm8867_vm3, 0, %v300_v8 }
  0x1f   : > { %299 = vst [vmem:[#allocation2 + $0xc] sm:$0x1] %v298_v7  ;;  %v304_v11 = vsel %vm8867_vm3, 0, %v303_v9  ;;  %v306_v12 = vld [vmem:[#allocation2 + $0x30] sm:$0x1]  ;;  %vm8901_vm5 = vmand %vm287_vm1, %vm345_vm4  ;;  %s274_s14 = scalar_lea.vmem [#allocation4], %s8833_s17 }
  0x20   : > { %302 = vst [vmem:[#allocation2 + $0x18] sm:$0x1] %v301_v10  ;;  %305 = vst [vmem:[#allocation2 + $0x24] sm:$0x1] %v304_v11  ;;  %v307_v13 = vsel %vm8867_vm3, 0, %v306_v12  ;;  %s9014_s18 = smov 0  }
  0x21   : > { %v309_v14 = vld [vmem:[#allocation2 + $0x3c] sm:$0x1]  ;;  %v312_v15 = vld [vmem:[#allocation2 + $0x48] sm:$0x1]  ;;  %308 = vst [vmem:[#allocation2 + $0x30] sm:$0x1] %v307_v13 }
  0x22   : > { %v310_v16 = vsel %vm8867_vm3, 0, %v309_v14  ;;  %v313_v17 = vsel %vm8867_vm3, 0, %v312_v15  ;;  %v315_v18 = vld [vmem:[#allocation2 + $0x54] sm:$0x1]  ;;  %v318_v19 = vld [vmem:[#allocation2 + $0x60] sm:$0x1] }
  0x23   : > { %311 = vst [vmem:[#allocation2 + $0x3c] sm:$0x1] %v310_v16  ;;  %314 = vst [vmem:[#allocation2 + $0x48] sm:$0x1] %v313_v17  ;;  %v316_v20 = vsel %vm8867_vm3, 0, %v315_v18  ;;  %v319_v21 = vsel %vm8867_vm3, 0, %v318_v19 }
  0x24   : > { %v321_v22 = vld [vmem:[#allocation2 + $0x6c] sm:$0x1]  ;;  %v324_v23 = vld [vmem:[#allocation2 + $0x78] sm:$0x1]  ;;  %317 = vst [vmem:[#allocation2 + $0x54] sm:$0x1] %v316_v20 }
  0x25   : > { %320 = vst [vmem:[#allocation2 + $0x60] sm:$0x1] %v319_v21  ;;  %v322_v24 = vsel %vm8867_vm3, 0, %v321_v22  ;;  %v325_v25 = vsel %vm8867_vm3, 0, %v324_v23  ;;  %v327_v26 = vld [vmem:[#allocation2 + $0x84] sm:$0x1] }
  0x26   : > { %v330_v27 = vld [vmem:[#allocation2 + $0x90] sm:$0x1]  ;;  %323 = vst [vmem:[#allocation2 + $0x6c] sm:$0x1] %v322_v24  ;;  %326 = vst [vmem:[#allocation2 + $0x78] sm:$0x1] %v325_v25 }
  0x27   : > { %v328_v29 = vsel %vm8867_vm3, 0, %v327_v26  ;;  %v331_v30 = vsel %vm8867_vm3, 0, %v330_v27  ;;  %v333_v31 = vld [vmem:[#allocation2 + $0x9c] sm:$0x1]  ;;  %v336_v32 = vld [vmem:[#allocation2 + $0xa8] sm:$0x1] }
  0x28   : > { %329 = vst [vmem:[#allocation2 + $0x84] sm:$0x1] %v328_v29  ;;  %332 = vst [vmem:[#allocation2 + $0x90] sm:$0x1] %v331_v30  ;;  %v334_v33 = vsel %vm8867_vm3, 0, %v333_v31  ;;  %v337_v34 = vsel %vm8867_vm3, 0, %v336_v32 }
  0x29   : > { %v339_v35 = vld [vmem:[#allocation2 + $0xb4] sm:$0x1]  ;;  %v342_v36 = vld [vmem:[#allocation2 + $0xc0] sm:$0x1]  ;;  %335 = vst [vmem:[#allocation2 + $0x9c] sm:$0x1] %v334_v33 }
  0x2a   : > { %338 = vst [vmem:[#allocation2 + $0xa8] sm:$0x1] %v337_v34  ;;  %v340_v37 = vsel %vm8867_vm3, 0, %v339_v35  ;;  %v343_v38 = vsel %vm8867_vm3, 0, %v342_v36  ;;  %v347_v39 = vld [vmem:[#allocation2 + $0x14] sm:$0x1] }
  0x2b   : > { %v350_v40 = vld [vmem:[#allocation2 + $0x20] sm:$0x1]  ;;  %341 = vst [vmem:[#allocation2 + $0xb4] sm:$0x1] %v340_v37  ;;  %344 = vst [vmem:[#allocation2 + $0xc0] sm:$0x1] %v343_v38 }
  0x2c   : > { %v348_v41 = vsel %vm8901_vm5, 0, %v347_v39  ;;  %v351_v42 = vsel %vm8901_vm5, 0, %v350_v40  ;;  %v353_v43 = vld [vmem:[#allocation2 + $0x2c] sm:$0x1]  ;;  %v356_v44 = vld [vmem:[#allocation2 + $0x38] sm:$0x1] }
  0x2d   : > { %349 = vst [vmem:[#allocation2 + $0x14] sm:$0x1] %v348_v41  ;;  %352 = vst [vmem:[#allocation2 + $0x20] sm:$0x1] %v351_v42  ;;  %v354_v45 = vsel %vm8901_vm5, 0, %v353_v43  ;;  %v357_v46 = vsel %vm8901_vm5, 0, %v356_v44 }
  0x2e   : > { %v359_v47 = vld [vmem:[#allocation2 + $0x44] sm:$0x1]  ;;  %v362_v48 = vld [vmem:[#allocation2 + $0x50] sm:$0x1]  ;;  %355 = vst [vmem:[#allocation2 + $0x2c] sm:$0x1] %v354_v45 }
  0x2f   : > { %358 = vst [vmem:[#allocation2 + $0x38] sm:$0x1] %v357_v46  ;;  %v360_v49 = vsel %vm8901_vm5, 0, %v359_v47  ;;  %v363_v50 = vsel %vm8901_vm5, 0, %v362_v48  ;;  %v365_v51 = vld [vmem:[#allocation2 + $0x5c] sm:$0x1] }
  0x30   : > { %v368_v52 = vld [vmem:[#allocation2 + $0x68] sm:$0x1]  ;;  %361 = vst [vmem:[#allocation2 + $0x44] sm:$0x1] %v360_v49  ;;  %364 = vst [vmem:[#allocation2 + $0x50] sm:$0x1] %v363_v50 }
  0x31   : > { %v366_v53 = vsel %vm8901_vm5, 0, %v365_v51  ;;  %v369_v54 = vsel %vm8901_vm5, 0, %v368_v52  ;;  %v371_v55 = vld [vmem:[#allocation2 + $0x74] sm:$0x1]  ;;  %v374_v56 = vld [vmem:[#allocation2 + $0x80] sm:$0x1] }
  0x32   : > { %367 = vst [vmem:[#allocation2 + $0x5c] sm:$0x1] %v366_v53  ;;  %370 = vst [vmem:[#allocation2 + $0x68] sm:$0x1] %v369_v54  ;;  %v372_v57 = vsel %vm8901_vm5, 0, %v371_v55  ;;  %v375_v58 = vsel %vm8901_vm5, 0, %v374_v56 }
  0x33   : > { %v377_v59 = vld [vmem:[#allocation2 + $0x8c] sm:$0x1]  ;;  %v380_v60 = vld [vmem:[#allocation2 + $0x98] sm:$0x1]  ;;  %373 = vst [vmem:[#allocation2 + $0x74] sm:$0x1] %v372_v57 }
  0x34   : > { %376 = vst [vmem:[#allocation2 + $0x80] sm:$0x1] %v375_v58  ;;  %v378_v61 = vsel %vm8901_vm5, 0, %v377_v59  ;;  %v381_v62 = vsel %vm8901_vm5, 0, %v380_v60  ;;  %v383_v63 = vld [vmem:[#allocation2 + $0xa4] sm:$0x1] }
  0x35   : > { %v386_v1 = vld [vmem:[#allocation2 + $0xb0] sm:$0x1]  ;;  %379 = vst [vmem:[#allocation2 + $0x8c] sm:$0x1] %v378_v61  ;;  %382 = vst [vmem:[#allocation2 + $0x98] sm:$0x1] %v381_v62 }
  0x36   : > { %v384_v6 = vsel %vm8901_vm5, 0, %v383_v63  ;;  %v387_v7 = vsel %vm8901_vm5, 0, %v386_v1  ;;  %v389_v8 = vld [vmem:[#allocation2 + $0xbc] sm:$0x1]  ;;  %v392_v9 = vld [vmem:[#allocation2 + $0xc8] sm:$0x1] }
  0x37   : > { %385 = vst [vmem:[#allocation2 + $0xa4] sm:$0x1] %v384_v6  ;;  %388 = vst [vmem:[#allocation2 + $0xb0] sm:$0x1] %v387_v7  ;;  %v390_v10 = vsel %vm8901_vm5, 0, %v389_v8  ;;  %v393_v11 = vsel %vm8901_vm5, 0, %v392_v9 }
  0x38   : > { %v403_v12 = vld [vmem:[#allocation3 + $0xc] sm:$0x1]  ;;  %v406_v13 = vld [vmem:[#allocation3 + $0x18] sm:$0x1]  ;;  %391 = vst [vmem:[#allocation2 + $0xbc] sm:$0x1] %v390_v10 }
  0x39   : > { %394 = vst [vmem:[#allocation2 + $0xc8] sm:$0x1] %v393_v11  ;;  %v404_v14 = vsel %vm8867_vm3, 0, %v403_v12  ;;  %v407_v15 = vsel %vm8867_vm3, 0, %v406_v13  ;;  %v409_v16 = vld [vmem:[#allocation3 + $0x24] sm:$0x1] }
  0x3a   : > { %v412_v17 = vld [vmem:[#allocation3 + $0x30] sm:$0x1]  ;;  %405 = vst [vmem:[#allocation3 + $0xc] sm:$0x1] %v404_v14  ;;  %408 = vst [vmem:[#allocation3 + $0x18] sm:$0x1] %v407_v15 }
  0x3b   : > { %v410_v18 = vsel %vm8867_vm3, 0, %v409_v16  ;;  %v413_v19 = vsel %vm8867_vm3, 0, %v412_v17  ;;  %v415_v20 = vld [vmem:[#allocation3 + $0x3c] sm:$0x1]  ;;  %v418_v21 = vld [vmem:[#allocation3 + $0x48] sm:$0x1] }
  0x3c   : > { %411 = vst [vmem:[#allocation3 + $0x24] sm:$0x1] %v410_v18  ;;  %414 = vst [vmem:[#allocation3 + $0x30] sm:$0x1] %v413_v19  ;;  %v416_v22 = vsel %vm8867_vm3, 0, %v415_v20  ;;  %v419_v23 = vsel %vm8867_vm3, 0, %v418_v21 }
  0x3d   : > { %v421_v24 = vld [vmem:[#allocation3 + $0x54] sm:$0x1]  ;;  %v424_v25 = vld [vmem:[#allocation3 + $0x60] sm:$0x1]  ;;  %417 = vst [vmem:[#allocation3 + $0x3c] sm:$0x1] %v416_v22 }
  0x3e   : > { %420 = vst [vmem:[#allocation3 + $0x48] sm:$0x1] %v419_v23  ;;  %v422_v26 = vsel %vm8867_vm3, 0, %v421_v24  ;;  %v425_v27 = vsel %vm8867_vm3, 0, %v424_v25  ;;  %v427_v29 = vld [vmem:[#allocation3 + $0x6c] sm:$0x1] }
  0x3f   : > { %v430_v30 = vld [vmem:[#allocation3 + $0x78] sm:$0x1]  ;;  %423 = vst [vmem:[#allocation3 + $0x54] sm:$0x1] %v422_v26  ;;  %426 = vst [vmem:[#allocation3 + $0x60] sm:$0x1] %v425_v27 }
  0x40   : > { %v428_v31 = vsel %vm8867_vm3, 0, %v427_v29  ;;  %v431_v32 = vsel %vm8867_vm3, 0, %v430_v30  ;;  %v433_v33 = vld [vmem:[#allocation3 + $0x84] sm:$0x1]  ;;  %v436_v34 = vld [vmem:[#allocation3 + $0x90] sm:$0x1] }
  0x41   : > { %429 = vst [vmem:[#allocation3 + $0x6c] sm:$0x1] %v428_v31  ;;  %432 = vst [vmem:[#allocation3 + $0x78] sm:$0x1] %v431_v32  ;;  %v434_v35 = vsel %vm8867_vm3, 0, %v433_v33  ;;  %v437_v36 = vsel %vm8867_vm3, 0, %v436_v34 }
  0x42   : > { %v439_v37 = vld [vmem:[#allocation3 + $0x9c] sm:$0x1]  ;;  %v442_v38 = vld [vmem:[#allocation3 + $0xa8] sm:$0x1]  ;;  %435 = vst [vmem:[#allocation3 + $0x84] sm:$0x1] %v434_v35 }
  0x43   : > { %438 = vst [vmem:[#allocation3 + $0x90] sm:$0x1] %v437_v36  ;;  %v440_v39 = vsel %vm8867_vm3, 0, %v439_v37  ;;  %v443_v40 = vsel %vm8867_vm3, 0, %v442_v38  ;;  %v445_v41 = vld [vmem:[#allocation3 + $0xb4] sm:$0x1] }
  0x44   : > { %v448_v42 = vld [vmem:[#allocation3 + $0xc0] sm:$0x1]  ;;  %441 = vst [vmem:[#allocation3 + $0x9c] sm:$0x1] %v440_v39  ;;  %444 = vst [vmem:[#allocation3 + $0xa8] sm:$0x1] %v443_v40 }
  0x45   : > { %v446_v43 = vsel %vm8867_vm3, 0, %v445_v41  ;;  %v449_v44 = vsel %vm8867_vm3, 0, %v448_v42  ;;  %v451_v45 = vld [vmem:[#allocation3 + $0x14] sm:$0x1]  ;;  %v454_v46 = vld [vmem:[#allocation3 + $0x20] sm:$0x1] }
  0x46   : > { %447 = vst [vmem:[#allocation3 + $0xb4] sm:$0x1] %v446_v43  ;;  %450 = vst [vmem:[#allocation3 + $0xc0] sm:$0x1] %v449_v44  ;;  %v452_v47 = vsel %vm8901_vm5, 0, %v451_v45  ;;  %v455_v48 = vsel %vm8901_vm5, 0, %v454_v46 }
  0x47   : > { %v457_v49 = vld [vmem:[#allocation3 + $0x2c] sm:$0x1]  ;;  %v460_v50 = vld [vmem:[#allocation3 + $0x38] sm:$0x1]  ;;  %453 = vst [vmem:[#allocation3 + $0x14] sm:$0x1] %v452_v47 }
  0x48   : > { %456 = vst [vmem:[#allocation3 + $0x20] sm:$0x1] %v455_v48  ;;  %v458_v51 = vsel %vm8901_vm5, 0, %v457_v49  ;;  %v461_v52 = vsel %vm8901_vm5, 0, %v460_v50  ;;  %v463_v53 = vld [vmem:[#allocation3 + $0x44] sm:$0x1] }
  0x49   : > { %v466_v54 = vld [vmem:[#allocation3 + $0x50] sm:$0x1]  ;;  %459 = vst [vmem:[#allocation3 + $0x2c] sm:$0x1] %v458_v51  ;;  %462 = vst [vmem:[#allocation3 + $0x38] sm:$0x1] %v461_v52 }
  0x4a   : > { %v464_v55 = vsel %vm8901_vm5, 0, %v463_v53  ;;  %v467_v56 = vsel %vm8901_vm5, 0, %v466_v54  ;;  %v469_v57 = vld [vmem:[#allocation3 + $0x5c] sm:$0x1]  ;;  %v472_v58 = vld [vmem:[#allocation3 + $0x68] sm:$0x1] }
  0x4b   : > { %465 = vst [vmem:[#allocation3 + $0x44] sm:$0x1] %v464_v55  ;;  %468 = vst [vmem:[#allocation3 + $0x50] sm:$0x1] %v467_v56  ;;  %v470_v59 = vsel %vm8901_vm5, 0, %v469_v57  ;;  %v473_v60 = vsel %vm8901_vm5, 0, %v472_v58 }
  0x4c   : > { %v475_v61 = vld [vmem:[#allocation3 + $0x74] sm:$0x1]  ;;  %v478_v62 = vld [vmem:[#allocation3 + $0x80] sm:$0x1]  ;;  %471 = vst [vmem:[#allocation3 + $0x5c] sm:$0x1] %v470_v59 }
  0x4d   : > { %474 = vst [vmem:[#allocation3 + $0x68] sm:$0x1] %v473_v60  ;;  %v476_v63 = vsel %vm8901_vm5, 0, %v475_v61  ;;  %v479_v1 = vsel %vm8901_vm5, 0, %v478_v62  ;;  %v481_v6 = vld [vmem:[#allocation3 + $0x8c] sm:$0x1] }
  0x4e   : > { %v484_v7 = vld [vmem:[#allocation3 + $0x98] sm:$0x1]  ;;  %477 = vst [vmem:[#allocation3 + $0x74] sm:$0x1] %v476_v63  ;;  %480 = vst [vmem:[#allocation3 + $0x80] sm:$0x1] %v479_v1 }
  0x4f   : > { %v482_v8 = vsel %vm8901_vm5, 0, %v481_v6  ;;  %v485_v9 = vsel %vm8901_vm5, 0, %v484_v7  ;;  %v487_v10 = vld [vmem:[#allocation3 + $0xa4] sm:$0x1]  ;;  %v490_v11 = vld [vmem:[#allocation3 + $0xb0] sm:$0x1] }
  0x50   : > { %483 = vst [vmem:[#allocation3 + $0x8c] sm:$0x1] %v482_v8  ;;  %486 = vst [vmem:[#allocation3 + $0x98] sm:$0x1] %v485_v9  ;;  %v488_v12 = vsel %vm8901_vm5, 0, %v487_v10  ;;  %v491_v13 = vsel %vm8901_vm5, 0, %v490_v11 }
  0x51   : > { %v493_v14 = vld [vmem:[#allocation3 + $0xbc] sm:$0x1]  ;;  %v496_v15 = vld [vmem:[#allocation3 + $0xc8] sm:$0x1]  ;;  %489 = vst [vmem:[#allocation3 + $0xa4] sm:$0x1] %v488_v12 }
  0x52   : > { %492 = vst [vmem:[#allocation3 + $0xb0] sm:$0x1] %v491_v13  ;;  %v494_v16 = vsel %vm8901_vm5, 0, %v493_v14  ;;  %v497_v17 = vsel %vm8901_vm5, 0, %v496_v15 }
  0x53   : > { %495 = vst [vmem:[#allocation3 + $0xbc] sm:$0x1] %v494_v16  ;;  %498 = vst [vmem:[#allocation3 + $0xc8] sm:$0x1] %v497_v17 }
  0x54 LB: >> { %s7809_s19 = sshll.u32 %s8728_s18, 7  ;;  %v11397_v18 = vmov 0   ;;  %v8249_v28 = vld [vmem:[%s11390_s1 + $0x60] sm:$0xff]   ;;  %vm544_vm6 = vsmask.f32 4368  ;;  %vm9036_vm7 = vmand %vm284_vm0, %vm345_vm4  ;;  %v11482_v36 = vmov 0  ;;  %s8728_s18 = sphi %s9014_s18, %s508_s18  }
  0x55   : >> { %2272 = vmatprep.subr.bf16.mxu0 %v11397_v18  ;;  %5538 = vmatprep.subr.bf16.mxu1 %v11397_v18  ;;  %s9026_s22 = scalar_lea.vmem %s8883_s16, %s7809_s19  ;;  %v868_v27 = vld [vmem:[#allocation2 + $0xc] sm:$0xf]  ;;  %v11483_v36 = vsel %vm9036_vm7, 4294967295, %v11482_v36  ;;  %vm9043_vm8 = vmor %vm295_vm2, %vm544_vm6  ;;  %v11485_v40 = vmov 0  ;;  %v872_v41 = vld [vmem:[#allocation2 + $0x14] sm:$0x1] }
  0x56   : >> { %v512_v19 = vld [vmem:[%s9026_s22] sm:$0xf]  ;;  %v513_v20 = vld [vmem:[%s9026_s22 + $0x4] sm:$0xf]  ;;  %v514_v21 = vld [vmem:[%s9026_s22 + $0x8] sm:$0xf]  ;;  %2273 = vmatpush1.bf16.msra.mxu0 %v8249_v28 }
  0x57   : >> { %v547_v22 = vshrl.u32 %v512_v19, 16  ;;  %v550_v23 = vshll.u32 %v512_v19, 16  ;;  %v555_v24 = vshrl.u32 %v513_v20, 16  ;;  %v558_v25 = vshll.u32 %v513_v20, 16  ;;  %v515_v26 = vld [vmem:[%s9026_s22 + $0xc] sm:$0xf]  ;;  %2274 = vmatprep.subr.bf16.mxu0 %v11397_v18 }
  0x58   : >> { %v564_v29 = vshrl.u32 %v514_v21, 16  ;;  %v567_v30 = vshll.u32 %v514_v21, 16  ;;  %v572_v31 = vshrl.u32 %v515_v26, 16  ;;  %v575_v32 = vshll.u32 %v515_v26, 16  ;;  %v516_v33 = vld [vmem:[%s9026_s22 + $0x10] sm:$0xf] }
  0x59   : >> { %v549_v34 = vrot.slane %v547_v22, 7  ;;  %v557_v35 = vrot.slane %v555_v24, 7  ;;  %11484 = vst [vmem:[#allocation12_spill] sm:$0xff] %v11483_v36  ;;  %v517_v37 = vld [vmem:[%s9026_s22 + $0x14] sm:$0xf]  ;;  %v581_v38 = vshrl.u32 %v516_v33, 16 }
  0x5a   : >> { %v584_v39 = vshll.u32 %v516_v33, 16  ;;  %v11486_v40 = vsel %vm9043_vm8, 4294967295, %v11485_v40  ;;  %v566_v42 = vrot.slane %v564_v29, 7  ;;  %v574_v43 = vrot.slane %v572_v31, 7  ;;  %v875_v50 = vld [vmem:[#allocation2 + $0x18] sm:$0xf] }
  0x5b   : >> { %11487 = vst [vmem:[#allocation13_spill] sm:$0xff] %v11486_v40  ;;  %v589_v44 = vshrl.u32 %v517_v37, 16  ;;  %v592_v45 = vshll.u32 %v517_v37, 16  ;;  %v552_v46 = vor.u32 %v550_v23, %v549_v34  ;;  %v553_v47 = vrot.slane %v549_v34, 4  ;;  %v879_v51 = vld [vmem:[#allocation2 + $0x20] sm:$0x1] }
  0x5c   : >> { %v560_v48 = vor.u32 %v558_v25, %v557_v35  ;;  %v562_v49 = vrot.slane %v557_v35, 4  ;;  %v569_v52 = vor.u32 %v567_v30, %v566_v42  ;;  %v570_v53 = vrot.slane %v566_v42, 4  ;;  %v518_v56 = vld [vmem:[%s9026_s22 + $0x18] sm:$0xf]  ;;  %v882_v61 = vld [vmem:[#allocation2 + $0x24] sm:$0xf] }
  0x5d   : >> { %v577_v54 = vor.u32 %v575_v32, %v574_v43  ;;  %v579_v55 = vrot.slane %v574_v43, 4  ;;  %v869_v58 = vsel %vm9036_vm7, %v552_v46, %v868_v27  ;;  %v583_v60 = vrot.slane %v581_v38, 7  ;;  %v519_v62 = vld [vmem:[%s9026_s22 + $0x1c] sm:$0xf]  ;;  %v8250_v63 = vld [vmem:[%s11390_s1 + $0x68] sm:$0xff]   ;;  %v8253_v16 = vld [vmem:[%s11390_s1 + $0x70] sm:$0xff]  }
  0x5e   : >> { %v561_v57 = vsel %vm9043_vm8, %v553_v47, %v560_v48  ;;  %v873_v59 = vsel %vm8867_vm3, %v562_v49, %v872_v41  ;;  %870 = vst [vmem:[#allocation2 + $0xc] sm:$0xf] %v869_v58  ;;  %v876_v6 = vsel %vm9036_vm7, %v569_v52, %v875_v50  ;;  %v591_v8 = vrot.slane %v589_v44, 7  ;;  %v886_v9 = vld [vmem:[#allocation2 + $0x2c] sm:$0x1]  ;;  %2275 = vmatpush1.bf16.msra.mxu0 %v8250_v63  ;;  %v8257_v50 = vld [vmem:[%s11390_s1 + $0x80] sm:$0xff]  }
  0x5f   : >> { %871 = vst.msk [vmem:[#allocation2 + $0x10] sm:$0xf] %vm284_vm0, %v561_v57  ;;  %874 = vst [vmem:[#allocation2 + $0x14] sm:$0x1] %v873_v59  ;;  %v578_v1 = vsel %vm9043_vm8, %v570_v53, %v577_v54  ;;  %v880_v7 = vsel %vm8867_vm3, %v579_v55, %v879_v51  ;;  %v520_v10 = vld [vmem:[%s9026_s22 + $0x20] sm:$0xf]  ;;  %v586_v11 = vor.u32 %v584_v39, %v583_v60  ;;  %2276 = vmatprep.subr.bf16.mxu0 %v11397_v18 }
  0x60   : >> { %877 = vst [vmem:[#allocation2 + $0x18] sm:$0xf] %v876_v6  ;;  %878 = vst.msk [vmem:[#allocation2 + $0x1c] sm:$0xf] %vm284_vm0, %v578_v1  ;;  %v587_v12 = vrot.slane %v583_v60, 4  ;;  %v598_v13 = vshrl.u32 %v518_v56, 16  ;;  %v594_v17 = vor.u32 %v592_v45, %v591_v8 }
  0x61   : >> { %881 = vst [vmem:[#allocation2 + $0x20] sm:$0x1] %v880_v7  ;;  %v601_v14 = vshll.u32 %v518_v56, 16  ;;  %v521_v15 = vld [vmem:[%s9026_s22 + $0x24] sm:$0xf]  ;;  %v596_v28 = vrot.slane %v591_v8, 4  ;;  %v883_v21 = vsel %vm9036_vm7, %v586_v11, %v882_v61 }
  0x62   : >> { %v606_v19 = vshrl.u32 %v519_v62, 16  ;;  %v609_v20 = vshll.u32 %v519_v62, 16  ;;  %v600_v22 = vrot.slane %v598_v13, 7  ;;  %v615_v23 = vshrl.u32 %v520_v10, 16  ;;  %v9075_v25 = vld [vmem:[%s9026_s22 + $0x28] sm:$0xf]  ;;  %2277 = vmatpush1.bf16.msra.mxu0 %v8253_v16 }
  0x63   : >> { %v618_v24 = vshll.u32 %v520_v10, 16  ;;  %v595_v26 = vsel %vm9043_vm8, %v587_v12, %v594_v17  ;;  %884 = vst [vmem:[#allocation2 + $0x24] sm:$0xf] %v883_v21  ;;  %v887_v27 = vsel %vm8867_vm3, %v596_v28, %v886_v9  ;;  %v889_v30 = vld [vmem:[#allocation2 + $0x30] sm:$0xf]  ;;  %v623_v32 = vshrl.u32 %v521_v15, 16  ;;  %2278 = vmatprep.subr.bf16.mxu0 %v11397_v18 }
  0x64   : >> { %v608_v29 = vrot.slane %v606_v19, 7  ;;  %v893_v31 = vld [vmem:[#allocation2 + $0x38] sm:$0x1]  ;;  %vm1172_vm9 = vsmask.f32 7424  ;;  %v603_v33 = vor.u32 %v601_v14, %v600_v22  ;;  %v604_v34 = vrot.slane %v600_v22, 4 }
  0x65   : >> { %885 = vst.msk [vmem:[#allocation2 + $0x28] sm:$0xf] %vm284_vm0, %v595_v26  ;;  %888 = vst [vmem:[#allocation2 + $0x2c] sm:$0x1] %v887_v27  ;;  %v617_v35 = vrot.slane %v615_v23, 7  ;;  %v626_v37 = vshll.u32 %v521_v15, 16 }
  0x66   : >> { %v896_v38 = vld [vmem:[#allocation2 + $0x3c] sm:$0xf]  ;;  %v611_v41 = vor.u32 %v609_v20, %v608_v29  ;;  %v613_v42 = vrot.slane %v608_v29, 4  ;;  %v625_v43 = vrot.slane %v623_v32, 7  ;;  %v900_v44 = vld [vmem:[#allocation2 + $0x44] sm:$0x1]  ;;  %v890_v48 = vsel %vm9036_vm7, %v603_v33, %v889_v30 }
  0x67   : >> { %v8254_v39 = vld [vmem:[%s11390_s1 + $0x78] sm:$0xff]   ;;  %v632_v45 = vshrl.u32 %v9075_v25, 16  ;;  %v1567_v46 = vld [vmem:[#allocation2 + $0xc] sm:$0xf]  ;;  %v9087_v47 = vld [vmem:[#allocation2 + $0x10] sm:$0xf]  ;;  %v620_v49 = vor.u32 %v618_v24, %v617_v35 }
  0x68   : >> { %v9095_v51 = vcombine.low %v1567_v46, %v9087_v47  ;;  %v9097_v52 = vld [vmem:[#allocation2 + $0x14] ss:$0 sps:$4 sm:$0x11]   ;;  %v1569_v53 = vld [vmem:[#allocation2 + $0x18] sm:$0xf]  ;;  %v612_v54 = vsel %vm9043_vm8, %v604_v34, %v611_v41  ;;  %v894_v55 = vsel %vm8867_vm3, %v613_v42, %v893_v31  ;;  %v621_v56 = vrot.slane %v617_v35, 4  ;;  %2279 = vmatpush1.bf16.msra.mxu0 %v8254_v39 }
  0x69   : >> { %891 = vst [vmem:[#allocation2 + $0x30] sm:$0xf] %v890_v48  ;;  %v1570_v57 = vld [vmem:[#allocation2 + $0x1c] sm:$0xf]  ;;  %892 = vst.msk [vmem:[#allocation2 + $0x34] sm:$0xf] %vm284_vm0, %v612_v54  ;;  %v628_v58 = vor.u32 %v626_v37, %v625_v43  ;;  %v897_v60 = vsel %vm9036_vm7, %v620_v49, %v896_v38  ;;  %2280 = vmatprep.subr.bf16.mxu0 %v11397_v18 }
  0x6a   : >> { %895 = vst [vmem:[#allocation2 + $0x38] sm:$0x1] %v894_v55  ;;  %v630_v59 = vrot.slane %v625_v43, 4  ;;  %v523_v61 = vld [vmem:[%s9026_s22 + $0x2c] sm:$0xf]  ;;  %v9107_v62 = vrot.slane %v632_v45, 7  ;;  %v9112_v7 = vcombine.low %v1569_v53, %v1570_v57 }
  0x6b   : >> { %v1760_v63 = vshrl.u32 %v9095_v51, 16  ;;  %v1762_v1 = vshll.u32 %v9095_v51, 16  ;;  %v1767_v6 = vshll.u32 %v9097_v52, 16  ;;  %v8234_v8 = vld [vmem:[#allocation2 + $0x20] ss:$0 sps:$4 sm:$0x11]   ;;  %v629_v10 = vsel %vm9043_vm8, %v621_v56, %v628_v58 }
  0x6c   : >> { %898 = vst [vmem:[#allocation2 + $0x3c] sm:$0xf] %v897_v60  ;;  %v1571_v9 = vld [vmem:[#allocation2 + $0x24] sm:$0xf]  ;;  %v901_v11 = vsel %vm8867_vm3, %v630_v59, %v900_v44  ;;  %v635_v12 = vshll.u32 %v9075_v25, 16  ;;  %v638_v13 = vrot.slane %v9107_v62, 4  ;;  %2281 = vmatpush1.bf16.msra.mxu0 %v8257_v50 }
  0x6d   : >> { %v903_v14 = vld [vmem:[#allocation2 + $0x48] sm:$0xf]  ;;  %v1764_v16 = vrot.slane %v1762_v1, 1  ;;  %v1769_v17 = vrot.slane %v1767_v6, 1  ;;  %v1772_v28 = vshrl.u32 %v9112_v7, 16  ;;  %v1774_v19 = vshll.u32 %v9112_v7, 16  ;;  %2282 = vmatprep.subr.bf16.mxu0 %v11397_v18 }
  0x6e   : >> { %v8258_v15 = vld [vmem:[%s11390_s1 + $0x88] sm:$0xff]   ;;  %899 = vst.msk [vmem:[#allocation2 + $0x40] sm:$0xf] %vm284_vm0, %v629_v10  ;;  %902 = vst [vmem:[#allocation2 + $0x44] sm:$0x1] %v901_v11  ;;  %v1779_v21 = vshll.u32 %v8234_v8, 16  ;;  %v637_v24 = vor.u32 %v635_v12, %v9107_v62 }
  0x6f   : >> { %v1572_v20 = vld [vmem:[#allocation2 + $0x28] sm:$0xf]  ;;  %v8236_v23 = vld [vmem:[#allocation2 + $0x2c] ss:$0 sps:$4 sm:$0x11]   ;;  %v1765_v25 = vor.u32 %v1764_v16, %v1760_v63  ;;  %v1776_v26 = vrot.slane %v1774_v19, 1 }
  0x70   : >> { %v9127_v22 = vcombine.low %v1571_v9, %v1572_v20  ;;  %v640_v27 = vshrl.u32 %v523_v61, 16  ;;  %v643_v29 = vshll.u32 %v523_v61, 16  ;;  %v524_v30 = vld [vmem:[%s9026_s22 + $0x30] sm:$0xf]  ;;  %v1781_v31 = vrot.slane %v1779_v21, 1  ;;  %s8732_s15 = smov 64   ;;  %2283 = vmatpush1.bf16.msra.mxu0 %v8258_v15 }
  0x71   : >> { %v1791_v34 = vshll.u32 %v8236_v23, 16  ;;  %v1573_v35 = vld [vmem:[#allocation2 + $0x30] sm:$0xf]  ;;  %v1770_v38 = vsel %vm1172_vm9, %v1765_v25, %v1769_v17  ;;  %v1777_v39 = vor.u32 %v1776_v26, %v1772_v28  ;;  %v1574_v41 = vld [vmem:[#allocation2 + $0x34] sm:$0xf]  ;;  %v904_v43 = vsel %vm9036_vm7, %v637_v24, %v903_v14  ;;  %2284 = vmatprep.subr.bf16.mxu0 %v11397_v18  ;;  %s7801_s21 = sshll.u32 %s8728_s18, 8 }
  0x72   : >> { %v1784_v32 = vshrl.u32 %v9127_v22, 16  ;;  %v1786_v33 = vshll.u32 %v9127_v22, 16  ;;  %v907_v37 = vld [vmem:[#allocation2 + $0x50] sm:$0x1]  ;;  %v642_v42 = vrot.slane %v640_v27, 7  ;;  %1951 = vrot.lane.b32.xlu0 %v1770_v38, %s8732_s15  ;;  %v9141_v48 = vcombine.low %v1573_v35, %v1574_v41  ;;  %v8265_v38 = vld [vmem:[%s11390_s1 + $0xa0] sm:$0xff]   ;;  %s11192_s23 = scalar_lea.vmem %s274_s14, %s7801_s21 [#allocation4] }
  0x73   : >> { %v8261_v44 = vld [vmem:[%s11390_s1 + $0x90] sm:$0xff]   ;;  %v1793_v46 = vrot.slane %v1791_v34, 1  ;;  %v9143_v49 = vld [vmem:[#allocation2 + $0x38] ss:$0 sps:$4 sm:$0x11]   ;;  %v649_v50 = vshrl.u32 %v524_v30, 16  ;;  %v1782_v53 = vsel %vm1172_vm9, %v1777_v39, %v1781_v31 }
  0x74   : >> { %v1788_v45 = vrot.slane %v1786_v33, 1  ;;  %905 = vst [vmem:[#allocation2 + $0x48] sm:$0xf] %v904_v43  ;;  %v1575_v54 = vld [vmem:[#allocation2 + $0x3c] sm:$0xf]  ;;  %v645_v55 = vor.u32 %v643_v29, %v642_v42  ;;  %v647_v56 = vrot.slane %v642_v42, 4  ;;  %2285 = vmatpush1.bf16.msra.mxu0 %v8261_v44 }
  0x75   : >> { %v525_v57 = vld [vmem:[%s9026_s22 + $0x34] sm:$0xf]  ;;  %v652_v58 = vshll.u32 %v524_v30, 16  ;;  %v1796_v60 = vshrl.u32 %v9141_v48, 16  ;;  %v1798_v61 = vshll.u32 %v9141_v48, 16  ;;  %v1803_v62 = vshll.u32 %v9143_v49, 16  ;;  %2286 = vmatprep.subr.bf16.mxu0 %v11397_v18 }
  0x76   : >> { %v1789_v59 = vor.u32 %v1788_v45, %v1784_v32  ;;  %v1576_v63 = vld [vmem:[#allocation2 + $0x40] sm:$0xf]  ;;  %v910_v1 = vld [vmem:[#allocation2 + $0x54] sm:$0xf]  ;;  %v646_v9 = vsel %vm9043_vm8, %v638_v13, %v645_v55  ;;  %v908_v10 = vsel %vm8867_vm3, %v647_v56, %v907_v37  ;;  %v651_v11 = vrot.slane %v649_v50, 7  ;;  %1953 = vrot.lane.b32.xlu0 %v1782_v53, %s8732_s15  ;;  %v8262_v13 = vld [vmem:[%s11390_s1 + $0x98] sm:$0xff]  }
  0x77   : >> { %v9151_v6 = vcombine.low %v1575_v54, %v1576_v63  ;;  %v9153_v8 = vld [vmem:[#allocation2 + $0x44] ss:$0 sps:$4 sm:$0x11]   ;;  %v1800_v14 = vrot.slane %v1798_v61, 1  ;;  %v1805_v15 = vrot.slane %v1803_v62, 1  ;;  %v657_v16 = vshrl.u32 %v525_v57, 16 }
  0x78   : >> { %v1794_v12 = vsel %vm1172_vm9, %v1789_v59, %v1793_v46  ;;  %906 = vst.msk [vmem:[#allocation2 + $0x4c] sm:$0xf] %vm284_vm0, %v646_v9  ;;  %909 = vst [vmem:[#allocation2 + $0x50] sm:$0x1] %v908_v10  ;;  %v526_v17 = vld [vmem:[%s9026_s22 + $0x38] sm:$0xf]  ;;  %v654_v21 = vor.u32 %v652_v58, %v651_v11  ;;  %2287 = vmatpush1.bf16.msra.mxu0 %v8262_v13 }
  0x79   : >> { %1955 = vrot.lane.b32.xlu1 %v1794_v12, %s8732_s15  ;;  %v1808_v28 = vshrl.u32 %v9151_v6, 16  ;;  %v1810_v19 = vshll.u32 %v9151_v6, 16  ;;  %v1815_v20 = vshll.u32 %v9153_v8, 16  ;;  %v914_v23 = vld [vmem:[#allocation2 + $0x5c] sm:$0x1]  ;;  %v1801_v25 = vor.u32 %v1800_v14, %v1796_v60  ;;  %2288 = vmatprep.subr.bf16.mxu0 %v11397_v18  ;;  %v8266_v60 = vld [vmem:[%s11390_s1 + $0xa8] sm:$0xff]  }
  0x7a   : >> { %v527_v24 = vld [vmem:[%s9026_s22 + $0x3c] sm:$0xf]  ;;  %v655_v26 = vrot.slane %v651_v11, 4  ;;  %v659_v27 = vrot.slane %v657_v16, 7  ;;  %v660_v29 = vshll.u32 %v525_v57, 16  ;;  %v911_v34 = vsel %vm9036_vm7, %v654_v21, %v910_v1  ;;  %s508_s18 = sadd.s32 1, %s8728_s18  }
  0x7b   : >> { %v528_v30 = vld [vmem:[%s9026_s22 + $0x40] sm:$0xf]  ;;  %v1812_v31 = vrot.slane %v1810_v19, 1  ;;  %v1817_v32 = vrot.slane %v1815_v20, 1  ;;  %v1577_v33 = vld [vmem:[#allocation2 + $0x48] sm:$0xf]  ;;  %v1806_v39 = vsel %vm1172_vm9, %v1801_v25, %v1805_v15 }
  0x7c   : >> { %v666_v35 = vshrl.u32 %v526_v17, 16  ;;  %v9176_v37 = vld [vmem:[%s9026_s22 + $0x44] sm:$0xf]  ;;  %v662_v41 = vor.u32 %v660_v29, %v659_v27  ;;  %v664_v42 = vrot.slane %v659_v27, 4  ;;  %912 = vst [vmem:[#allocation2 + $0x54] sm:$0xf] %v911_v34  ;;  %2289 = vmatpush1.bf16.msra.mxu0 %v8265_v38 }
  0x7d   : >> { %v669_v43 = vshll.u32 %v526_v17, 16  ;;  %v917_v44 = vld [vmem:[#allocation2 + $0x60] sm:$0xf]  ;;  %1957 = vrot.lane.b32.xlu1 %v1806_v39, %s8732_s15  ;;  %v1813_v45 = vor.u32 %v1812_v31, %v1808_v28  ;;  %v674_v50 = vshrl.u32 %v527_v24, 16  ;;  %v677_v53 = vshll.u32 %v527_v24, 16  ;;  %2290 = vmatprep.subr.bf16.mxu0 %v11397_v18  ;;  %v8269_v39 = vld [vmem:[%s11390_s1 + $0xb0] sm:$0xff]  }
  0x7e   : >> { %v668_v46 = vrot.slane %v666_v35, 7  ;;  %v663_v54 = vsel %vm9043_vm8, %v655_v26, %v662_v41  ;;  %v915_v55 = vsel %vm8867_vm3, %v664_v42, %v914_v23  ;;  %v921_v56 = vld [vmem:[#allocation2 + $0x68] sm:$0x1]  ;;  %v683_v57 = vshrl.u32 %v528_v30, 16  ;;  %v924_v28 = vld [vmem:[#allocation2 + $0x6c] sm:$0xf] }
  0x7f   : >> { %v686_v58 = vshll.u32 %v528_v30, 16  ;;  %v530_v59 = vld [vmem:[%s9026_s22 + $0x48] sm:$0xf]  ;;  %v1818_v61 = vsel %vm1172_vm9, %v1813_v45, %v1817_v32  ;;  %v1578_v62 = vld [vmem:[#allocation2 + $0x4c] sm:$0xf]  ;;  %v676_v9 = vrot.slane %v674_v50, 7 }
  0x80   : >> { %913 = vst.msk [vmem:[#allocation2 + $0x58] sm:$0xf] %vm284_vm0, %v663_v54  ;;  %916 = vst [vmem:[#allocation2 + $0x5c] sm:$0x1] %v915_v55  ;;  %v671_v63 = vor.u32 %v669_v43, %v668_v46  ;;  %v672_v1 = vrot.slane %v668_v46, 4  ;;  %1959 = vrot.lane.b32.xlu0 %v1818_v61, %s8732_s15  ;;  %v9195_v10 = vcombine.low %v1577_v33, %v1578_v62  ;;  %v685_v12 = vrot.slane %v683_v57, 7 }
  0x81   : >> { %v8242_v11 = vld [vmem:[#allocation2 + $0x50] ss:$0 sps:$4 sm:$0x11]   ;;  %v691_v14 = vshrl.u32 %v9176_v37, 16  ;;  %v694_v15 = vshll.u32 %v9176_v37, 16  ;;  %v679_v16 = vor.u32 %v677_v53, %v676_v9  ;;  %v681_v17 = vrot.slane %v676_v9, 4  ;;  %2291 = vmatpush1.bf16.msra.mxu0 %v8266_v60 }
  0x82   : >> { %v918_v13 = vsel %vm9036_vm7, %v671_v63, %v917_v44  ;;  %v700_v19 = vshrl.u32 %v530_v59, 16  ;;  %v1820_v20 = vshrl.u32 %v9195_v10, 16  ;;  %v1822_v21 = vshll.u32 %v9195_v10, 16  ;;  %v928_v25 = vld [vmem:[#allocation2 + $0x74] sm:$0x1]  ;;  %2292 = vmatprep.subr.bf16.mxu0 %v11397_v18  ;;  %p505_p11 = scmp.ge.s32.totalorder %s508_s18, 4  }
  0x83   : >> { %v1827_v23 = vshll.u32 %v8242_v11, 16  ;;  %919 = vst [vmem:[#allocation2 + $0x60] sm:$0xf] %v918_v13  ;;  %v688_v24 = vor.u32 %v686_v58, %v685_v12  ;;  %v531_v26 = vld [vmem:[%s9026_s22 + $0x4c] sm:$0xf]  ;;  %v680_v29 = vsel %vm9043_vm8, %v672_v1, %v679_v16  ;;  %v922_v30 = vsel %vm8867_vm3, %v681_v17, %v921_v56  ;;  %v8270_v58 = vld [vmem:[%s11390_s1 + $0xb8] sm:$0xff]  }
  0x84   : >> { %v1579_v27 = vld [vmem:[#allocation2 + $0x54] sm:$0xf]  ;;  %v689_v31 = vrot.slane %v685_v12, 4  ;;  %v693_v32 = vrot.slane %v691_v14, 7  ;;  %v1824_v33 = vrot.slane %v1822_v21, 1  ;;  %v702_v37 = vrot.slane %v700_v19, 7 }
  0x85   : >> { %v1829_v34 = vrot.slane %v1827_v23, 1  ;;  %920 = vst.msk [vmem:[#allocation2 + $0x64] sm:$0xf] %vm284_vm0, %v680_v29  ;;  %923 = vst [vmem:[#allocation2 + $0x68] sm:$0x1] %v922_v30  ;;  %v925_v35 = vsel %vm9036_vm7, %v688_v24, %v924_v28  ;;  %v703_v43 = vshll.u32 %v530_v59, 16  ;;  %2293 = vmatpush1.bf16.msra.mxu0 %v8269_v39 }
  0x86   : >> { %v931_v38 = vld [vmem:[#allocation2 + $0x78] sm:$0xf]  ;;  %v696_v41 = vor.u32 %v694_v15, %v693_v32  ;;  %v698_v42 = vrot.slane %v693_v32, 4  ;;  %926 = vst [vmem:[#allocation2 + $0x6c] sm:$0xf] %v925_v35  ;;  %v708_v44 = vshrl.u32 %v531_v26, 16  ;;  %v1825_v45 = vor.u32 %v1824_v33, %v1820_v20  ;;  %2294 = vmatprep.subr.bf16.mxu0 %v11397_v18 }
  0x87   : >> { %v1580_v46 = vld [vmem:[#allocation2 + $0x58] sm:$0xf]  ;;  %v711_v50 = vshll.u32 %v531_v26, 16  ;;  %v8244_v54 = vld [vmem:[#allocation2 + $0x5c] ss:$0 sps:$4 sm:$0x11]   ;;  %v705_v57 = vor.u32 %v703_v43, %v702_v37 }
  0x88   : >> { %v9216_v53 = vcombine.low %v1579_v27, %v1580_v46  ;;  %v697_v55 = vsel %vm9043_vm8, %v689_v31, %v696_v41  ;;  %v929_v56 = vsel %vm8867_vm3, %v698_v42, %v928_v25  ;;  %v1830_v59 = vsel %vm1172_vm9, %v1825_v45, %v1829_v34  ;;  %v935_v62 = vld [vmem:[#allocation2 + $0x80] sm:$0x1]  ;;  %v532_v63 = vld [vmem:[%s9026_s22 + $0x50] sm:$0xf]  ;;  %v533_v17 = vld [vmem:[%s9026_s22 + $0x54] sm:$0xf] }
  0x89   : >> { %927 = vst.msk [vmem:[#allocation2 + $0x70] sm:$0xf] %vm284_vm0, %v697_v55  ;;  %930 = vst [vmem:[#allocation2 + $0x74] sm:$0x1] %v929_v56  ;;  %v706_v60 = vrot.slane %v702_v37, 4  ;;  %v710_v61 = vrot.slane %v708_v44, 7  ;;  %1961 = vrot.lane.b32.xlu1 %v1830_v59, %s8732_s15  ;;  %v932_v14 = vsel %vm9036_vm7, %v705_v57, %v931_v38  ;;  %2295 = vmatpush1.bf16.msra.mxu0 %v8270_v58 }
  0x8a   : >> { %v1832_v1 = vshrl.u32 %v9216_v53, 16  ;;  %v1834_v9 = vshll.u32 %v9216_v53, 16  ;;  %v1839_v11 = vshll.u32 %v8244_v54, 16  ;;  %v1581_v12 = vld [vmem:[#allocation2 + $0x60] sm:$0xf]  ;;  %v717_v13 = vshrl.u32 %v532_v63, 16  ;;  %2553 = vmatprep.subr.bf16.mxu0 %v11397_v18 }
  0x8b   : >> { %v713_v15 = vor.u32 %v711_v50, %v710_v61  ;;  %v715_v16 = vrot.slane %v710_v61, 4  ;;  %933 = vst [vmem:[#allocation2 + $0x78] sm:$0xf] %v932_v14  ;;  %v720_v28 = vshll.u32 %v532_v63, 16  ;;  %v938_v29 = vld [vmem:[#allocation2 + $0x84] sm:$0xf] }
  0x8c   : >> { %v1836_v19 = vrot.slane %v1834_v9, 1  ;;  %v1841_v20 = vrot.slane %v1839_v11, 1  ;;  %v1582_v21 = vld [vmem:[#allocation2 + $0x64] sm:$0xf]  ;;  %v719_v27 = vrot.slane %v717_v13, 7  ;;  %v725_v32 = vshrl.u32 %v533_v17, 16 }
  0x8d   : >> { %v9235_v23 = vcombine.low %v1581_v12, %v1582_v21  ;;  %v8246_v24 = vld [vmem:[#allocation2 + $0x68] ss:$0 sps:$4 sm:$0x11]   ;;  %v714_v25 = vsel %vm9043_vm8, %v706_v60, %v713_v15  ;;  %v936_v26 = vsel %vm8867_vm3, %v715_v16, %v935_v62  ;;  %v1583_v31 = vld [vmem:[#allocation2 + $0x6c] sm:$0xf]  ;;  %v728_v33 = vshll.u32 %v533_v17, 16 }
  0x8e   : >> { %v1837_v30 = vor.u32 %v1836_v19, %v1832_v1  ;;  %934 = vst.msk [vmem:[#allocation2 + $0x7c] sm:$0xf] %vm284_vm0, %v714_v25  ;;  %937 = vst [vmem:[#allocation2 + $0x80] sm:$0x1] %v936_v26  ;;  %v1851_v37 = vshll.u32 %v8246_v24, 16  ;;  %v722_v38 = vor.u32 %v720_v28, %v719_v27  ;;  %v723_v43 = vrot.slane %v719_v27, 4 }
  0x8f   : >> { %v1844_v34 = vshrl.u32 %v9235_v23, 16  ;;  %v1846_v35 = vshll.u32 %v9235_v23, 16  ;;  %v942_v39 = vld [vmem:[#allocation2 + $0x8c] sm:$0x1]  ;;  %v727_v44 = vrot.slane %v725_v32, 7  ;;  %vm1445_vm10 = vcmask 1046528  }
  0x90   : >> { %v1842_v41 = vsel %vm1172_vm9, %v1837_v30, %v1841_v20  ;;  %v9246_v42 = vld [vmem:[#allocation2 + $0x70] sm:$0xf]  ;;  %v1853_v46 = vrot.slane %v1851_v37, 1  ;;  %v9252_v54 = vld [vmem:[#allocation2 + $0x74] ss:$0 sps:$4 sm:$0x11]   ;;  %v939_v55 = vsel %vm9036_vm7, %v722_v38, %v938_v29 }
  0x91   : >> { %1963 = vrot.lane.b32.xlu0 %v1842_v41, %s8732_s15  ;;  %v1848_v45 = vrot.slane %v1846_v35, 1  ;;  %v9250_v50 = vcombine.low %v1583_v31, %v9246_v42  ;;  %v730_v57 = vor.u32 %v728_v33, %v727_v44  ;;  %v732_v58 = vrot.slane %v727_v44, 4  ;;  %940 = vst [vmem:[#allocation2 + $0x84] sm:$0xf] %v939_v55  ;;  %v534_v9 = vld [vmem:[%s9026_s22 + $0x58] sm:$0xf] }
  0x92   : >> { %v1585_v56 = vld [vmem:[#allocation2 + $0x78] sm:$0xf]  ;;  %v1863_v62 = vshll.u32 %v9252_v54, 16  ;;  %v535_v11 = vld [vmem:[%s9026_s22 + $0x5c] sm:$0xf]  ;;  %v734_v28 = vshrl.u32 %v534_v9, 16 }
  0x93   : >> { %v1849_v59 = vor.u32 %v1848_v45, %v1844_v34  ;;  %v1856_v60 = vshrl.u32 %v9250_v50, 16  ;;  %v1858_v61 = vshll.u32 %v9250_v50, 16  ;;  %v731_v63 = vsel %vm9043_vm8, %v723_v43, %v730_v57  ;;  %v945_v25 = vld [vmem:[#allocation2 + $0x90] sm:$0xf]  ;;  %v949_v31 = vld [vmem:[#allocation2 + $0x98] sm:$0x1] }
  0x94   : >> { %v943_v1 = vsel %vm8867_vm3, %v732_v58, %v942_v39  ;;  %v1865_v15 = vrot.slane %v1863_v62, 1  ;;  %941 = vst.msk [vmem:[#allocation2 + $0x88] sm:$0xf] %vm284_vm0, %v731_v63  ;;  %v737_v19 = vshll.u32 %v534_v9, 16  ;;  %v742_v20 = vshrl.u32 %v535_v11, 16  ;;  %s7132_s9 = sshll.u32 (%p505_p11), %s274_s14, 4  ;;  %s11344_s9 = int_to_ptr.vmem [resolvable:$true] %s7132_s9 }
  0x95   : >> { %v1854_v12 = vsel %vm1172_vm9, %v1849_v59, %v1853_v46  ;;  %v1860_v14 = vrot.slane %v1858_v61, 1  ;;  %v1586_v16 = vld [vmem:[#allocation2 + $0x7c] sm:$0xf]  ;;  %944 = vst [vmem:[#allocation2 + $0x8c] sm:$0x1] %v943_v1  ;;  %v745_v24 = vshll.u32 %v535_v11, 16 }
  0x96   : >> { %1965 = vrot.lane.b32.xlu1 %v1854_v12, %s8732_s15  ;;  %v9268_v17 = vcombine.low %v1585_v56, %v1586_v16  ;;  %v8252_v13 = vld [vmem:[#allocation2 + $0x80] ss:$0 sps:$4 sm:$0x11]   ;;  %v736_v30 = vrot.slane %v734_v28, 7  ;;  %v744_v34 = vrot.slane %v742_v20, 7  ;;  %vm1494_vm11 = vcmask 523264  }
  0x97   : >> { %v1861_v21 = vor.u32 %v1860_v14, %v1856_v60  ;;  %v1875_v29 = vshll.u32 %v8252_v13, 16  ;;  %v536_v44 = vld [vmem:[%s9026_s22 + $0x60] sm:$0xf]  ;;  %v537_v45 = vld [vmem:[%s9026_s22 + $0x64] sm:$0xf]  ;;  %s11348_s18 = scalar_lea.sflag (%p505_p11), [#allocation5], %s272_s13 }
  0x98   : >> { %v1868_v26 = vshrl.u32 %v9268_v17, 16  ;;  %v1870_v27 = vshll.u32 %v9268_v17, 16  ;;  %v1587_v33 = vld [vmem:[#allocation2 + $0x84] sm:$0xf]  ;;  %v739_v38 = vor.u32 %v737_v19, %v736_v30  ;;  %v740_v39 = vrot.slane %v736_v30, 4  ;;  %s8658_s16 = scalar_lea.vmem (%p505_p11), %s11344_s9, 16384 }
  0x99   : >> { %v1866_v32 = vsel %vm1172_vm9, %v1861_v21, %v1865_v15  ;;  %v1877_v37 = vrot.slane %v1875_v29, 1  ;;  %v747_v41 = vor.u32 %v745_v24, %v744_v34  ;;  %v749_v43 = vrot.slane %v744_v34, 4  ;;  %v952_v1 = vld [vmem:[#allocation2 + $0x9c] sm:$0xf]  ;;  %v956_v14 = vld [vmem:[#allocation2 + $0xa4] sm:$0x1]  ;;  %p8659_p12 = scmp.ne.s32.totalorder (%p505_p11), %s11344_s9, %s8658_s16 }
  0x9a   : >> { %1967 = vrot.lane.b32.xlu0 %v1866_v32, %s8732_s15  ;;  %v1872_v35 = vrot.slane %v1870_v27, 1  ;;  %v946_v56 = vsel %vm9036_vm7, %v739_v38, %v945_v25  ;;  %v751_v57 = vshrl.u32 %v536_v44, 16  ;;  %v754_v58 = vshll.u32 %v536_v44, 16  ;;  %v538_v27 = vld [vmem:[%s9026_s22 + $0x68] sm:$0xf] }
  0x9b   : >> { %v9276_v55 = vld [vmem:[#allocation2 + $0x88] sm:$0xf]  ;;  %v748_v61 = vsel %vm9043_vm8, %v740_v39, %v747_v41  ;;  %947 = vst [vmem:[#allocation2 + $0x90] sm:$0xf] %v946_v56  ;;  %v950_v62 = vsel %vm8867_vm3, %v749_v43, %v949_v31  ;;  %v759_v63 = vshrl.u32 %v537_v45, 16  ;;  %v762_v12 = vshll.u32 %v537_v45, 16  ;;  %p8660_p13 = pnand (%p505_p11), %p8659_p12, %p8814_p5 }
  0x9c   : >> { %v1873_v46 = vor.u32 %v1872_v35, %v1868_v26  ;;  %v9281_v59 = vcombine.low %v1587_v33, %v9276_v55  ;;  %v9283_v60 = vld [vmem:[#allocation2 + $0x8c] ss:$0 sps:$4 sm:$0x11]   ;;  %948 = vst.msk [vmem:[#allocation2 + $0x94] sm:$0xf] %vm284_vm0, %v748_v61  ;;  %v753_v11 = vrot.slane %v751_v57, 7 }
  0x9d   : >> { %951 = vst [vmem:[#allocation2 + $0x98] sm:$0x1] %v950_v62  ;;  %v1887_v13 = vshll.u32 %v9283_v60, 16  ;;  %v761_v28 = vrot.slane %v759_v63, 7  ;;  %v539_v30 = vld [vmem:[%s9026_s22 + $0x6c] sm:$0xf]  ;;  %p8661_p0 = pneg (%p505_p11), %p8660_p13 }
  0x9e   : >> { %11488 = vst [vmem:[#allocation14_spill] sm:$0xff] %v9281_v59  ;;  %v1878_v9 = vsel %vm1172_vm9, %v1873_v46, %v1877_v37  ;;  %v1880_v15 = vshrl.u32 %v9281_v59, 16  ;;  %v1882_v16 = vshll.u32 %v9281_v59, 16  ;;  %v756_v19 = vor.u32 %v754_v58, %v753_v11  ;;  %v959_v38 = vld [vmem:[#allocation2 + $0xa8] sm:$0xf] }
  0x9f   : >> { %1969 = vrot.lane.b32.xlu1 %v1878_v9, %s8732_s15  ;;  %v757_v20 = vrot.slane %v753_v11, 4  ;;  %v1889_v24 = vrot.slane %v1887_v13, 1  ;;  %v764_v25 = vor.u32 %v762_v12, %v761_v28  ;;  %v766_v26 = vrot.slane %v761_v28, 4  ;;  %v963_v44 = vld [vmem:[#allocation2 + $0xb0] sm:$0x1] }
  0xa0   : >> { %v1884_v21 = vrot.slane %v1882_v16, 1  ;;  %v953_v29 = vsel %vm9036_vm7, %v756_v19, %v952_v1  ;;  %v768_v31 = vshrl.u32 %v538_v27, 16  ;;  %v771_v32 = vshll.u32 %v538_v27, 16  ;;  %v540_v9 = vld [vmem:[%s9026_s22 + $0x70] sm:$0xf] }
  0xa1   : >> { %v765_v34 = vsel %vm9043_vm8, %v757_v20, %v764_v25  ;;  %954 = vst [vmem:[#allocation2 + $0x9c] sm:$0xf] %v953_v29  ;;  %v957_v35 = vsel %vm8867_vm3, %v766_v26, %v956_v14  ;;  %v776_v37 = vshrl.u32 %v539_v30, 16  ;;  %v779_v43 = vshll.u32 %v539_v30, 16  ;;  %v541_v16 = vld [vmem:[%s9026_s22 + $0x74] sm:$0xf] }
  0xa2   : >> { %v1885_v33 = vor.u32 %v1884_v21, %v1880_v15  ;;  %v1589_v39 = vld [vmem:[#allocation2 + $0x90] sm:$0xf]  ;;  %955 = vst.msk [vmem:[#allocation2 + $0xa0] sm:$0xf] %vm284_vm0, %v765_v34  ;;  %958 = vst [vmem:[#allocation2 + $0xa4] sm:$0x1] %v957_v35 }
  0xa3   : >> { %v770_v41 = vrot.slane %v768_v31, 7  ;;  %v9305_v46 = vld [vmem:[#allocation2 + $0x94] sm:$0xf]  ;;  %v778_v56 = vrot.slane %v776_v37, 7  ;;  %v785_v19 = vshrl.u32 %v540_v9, 16  ;;  %v788_v20 = vshll.u32 %v540_v9, 16 }
  0xa4   : >> { %v1890_v45 = vsel %vm1172_vm9, %v1885_v33, %v1889_v24  ;;  %v9309_v57 = vcombine.low %v1589_v39, %v9305_v46  ;;  %v9311_v58 = vld [vmem:[#allocation2 + $0x98] ss:$0 sps:$4 sm:$0x11]   ;;  %v793_v26 = vshrl.u32 %v541_v16, 16  ;;  %v966_v27 = vld [vmem:[#allocation2 + $0xb4] sm:$0xf] }
  0xa5   : >> { %1971 = vrot.lane.b32.xlu0 %v1890_v45, %s8732_s15  ;;  %v773_v61 = vor.u32 %v771_v32, %v770_v41  ;;  %v774_v62 = vrot.slane %v770_v41, 4  ;;  %v781_v63 = vor.u32 %v779_v43, %v778_v56  ;;  %v783_v1 = vrot.slane %v778_v56, 4  ;;  %v970_v37 = vld [vmem:[#allocation2 + $0xbc] sm:$0x1]  ;;  %v986_v3 = vld [vmem:[#allocation2 + $0x24] sm:$0xf] }
  0xa6   : >> { %11489 = vst [vmem:[#allocation15_spill] sm:$0xff] %v9309_v57  ;;  %v1892_v11 = vshrl.u32 %v9309_v57, 16  ;;  %v1894_v12 = vshll.u32 %v9309_v57, 16  ;;  %v1899_v14 = vshll.u32 %v9311_v58, 16  ;;  %v787_v30 = vrot.slane %v785_v19, 7 }
  0xa7   : >> { %v960_v15 = vsel %vm9036_vm7, %v773_v61, %v959_v38  ;;  %v782_v13 = vsel %vm9043_vm8, %v774_v62, %v781_v63  ;;  %v964_v28 = vsel %vm8867_vm3, %v783_v1, %v963_v44  ;;  %v796_v31 = vshll.u32 %v541_v16, 16  ;;  %v1615_v38 = vld [vmem:[#allocation2 + $0xc] sm:$0xe]  ;;  %v542_v63 = vld [vmem:[%s9026_s22 + $0x78] sm:$0xf] }
  0xa8   : >> { %961 = vst [vmem:[#allocation2 + $0xa8] sm:$0xf] %v960_v15  ;;  %v1896_v21 = vrot.slane %v1894_v12, 1  ;;  %v1901_v24 = vrot.slane %v1899_v14, 1  ;;  %v1591_v25 = vld [vmem:[#allocation2 + $0x9c] sm:$0xf]  ;;  %v790_v39 = vor.u32 %v788_v20, %v787_v30  ;;  %v7293_v43 = vcombine.low %v1615_v38, %v9087_v47 }
  0xa9   : >> { %962 = vst.msk [vmem:[#allocation2 + $0xac] sm:$0xf] %vm284_vm0, %v782_v13  ;;  %965 = vst [vmem:[#allocation2 + $0xb0] sm:$0x1] %v964_v28  ;;  %v9325_v29 = vld [vmem:[#allocation2 + $0xa0] sm:$0xf] }
  0xaa   : >> { %v1897_v32 = vor.u32 %v1896_v21, %v1892_v11  ;;  %v9328_v33 = vcombine.low %v1591_v25, %v9325_v29  ;;  %v9330_v34 = vld [vmem:[#allocation2 + $0xa4] ss:$0 sps:$4 sm:$0x11]   ;;  %v795_v35 = vrot.slane %v793_v26, 7  ;;  %v791_v41 = vrot.slane %v787_v30, 4 }
  0xab   : >> { %v2032_v44 = vrot.slane %v9097_v52, 1  ;;  %v1911_v62 = vshll.u32 %v9330_v34, 16  ;;  %v967_v11 = vsel %vm9036_vm7, %v790_v39, %v966_v27  ;;  %v2031_v12 = vrot.slane %v7293_v43, 1  ;;  %v543_v47 = vld [vmem:[%s9026_s22 + $0x7c] sm:$0xf] }
  0xac   : >> { %11490 = vst [vmem:[#allocation16_spill] sm:$0xff] %v9328_v33  ;;  %v1902_v45 = vsel %vm1172_vm9, %v1897_v32, %v1901_v24  ;;  %v1904_v56 = vshrl.u32 %v9328_v33, 16  ;;  %v1906_v61 = vshll.u32 %v9328_v33, 16  ;;  %v798_v1 = vor.u32 %v796_v31, %v795_v35  ;;  %968 = vst [vmem:[#allocation2 + $0xb4] sm:$0xf] %v967_v11 }
  0xad   : >> { %1973 = vrot.lane.b32.xlu1 %v1902_v45, %s8732_s15  ;;  %v800_v9 = vrot.slane %v795_v35, 4  ;;  %v1913_v52 = vrot.slane %v1911_v62, 1  ;;  %v802_v16 = vshrl.u32 %v542_v63, 16  ;;  %v805_v13 = vshll.u32 %v542_v63, 16  ;;  %v973_v35 = vld [vmem:[#allocation2 + $0xc0] sm:$0xf] }
  0xae   : >> { %v1908_v14 = vrot.slane %v1906_v61, 1  ;;  %v799_v19 = vsel %vm9043_vm8, %v791_v41, %v798_v1  ;;  %v2033_v21 = vsel %vm1445_vm10, %v2031_v12, %v2032_v44  ;;  %v810_v24 = vshrl.u32 %v543_v47, 16  ;;  %v977_v38 = vld [vmem:[#allocation2 + $0xc8] sm:$0x1]  ;;  %v980_v62 = vld [vmem:[#allocation2] sm:$0xf] }
  0xaf   : >> { %v1593_v15 = vld [vmem:[#allocation2 + $0xa8] sm:$0xf]  ;;  %v971_v20 = vsel %vm8867_vm3, %v800_v9, %v970_v37  ;;  %969 = vst.msk [vmem:[#allocation2 + $0xb8] sm:$0xf] %vm284_vm0, %v799_v19  ;;  %7345 = vmatprep.mubr.msk.bf16.mxu0 %vm1494_vm11, %v2033_v21  ;;  %v804_v30 = vrot.slane %v802_v16, 7  ;;  %v813_v31 = vshll.u32 %v543_v47, 16 }
  0xb0   : >> { %v9343_v28 = vld [vmem:[#allocation2 + $0xac] sm:$0xf]  ;;  %v1909_v25 = vor.u32 %v1908_v14, %v1904_v56  ;;  %v9353_v27 = vld [vmem:[#allocation2 + $0xb0] ss:$0 sps:$4 sm:$0x11]   ;;  %v812_v32 = vrot.slane %v810_v24, 7 }
  0xb1   : >> { %v9351_v26 = vcombine.low %v1593_v15, %v9343_v28  ;;  %972 = vst [vmem:[#allocation2 + $0xbc] sm:$0x1] %v971_v20  ;;  %v1923_v43 = vshll.u32 %v9353_v27, 16  ;;  %v807_v44 = vor.u32 %v805_v13, %v804_v30  ;;  %v808_v45 = vrot.slane %v804_v30, 4  ;;  %v9362_v9 = vld [vmem:[#allocation2 + $0x4] sm:$0xf] }
  0xb2   : >> { %v1914_v37 = vsel %vm1172_vm9, %v1909_v25, %v1913_v52  ;;  %v815_v56 = vor.u32 %v813_v31, %v812_v32  ;;  %v817_v61 = vrot.slane %v812_v32, 4  ;;  %v9371_v52 = vcombine.low %v980_v62, %v9362_v9  ;;  %v9373_v15 = vld [vmem:[#allocation2 + $0x8] ss:$0 sps:$4 sm:$0x11]   ;;  %v982_v13 = vld [vmem:[#allocation2 + $0xc] sm:$0xf] }
  0xb3   : >> { %11491 = vst [vmem:[#allocation17_spill] sm:$0xff] %v9351_v26  ;;  %v1916_v39 = vshrl.u32 %v9351_v26, 16  ;;  %v1918_v41 = vshll.u32 %v9351_v26, 16  ;;  %1975 = vrot.lane.b32.xlu0 %v1914_v37, %s8732_s15  ;;  %v1925_v1 = vrot.slane %v1923_v43, 1  ;;  %v1595_v11 = vld [vmem:[#allocation2 + $0xb4] sm:$0xf]  ;;  %v974_v47 = vsel %vm9036_vm7, %v807_v44, %v973_v35 }
  0xb4   : >> { %v816_v12 = vsel %vm9043_vm8, %v808_v45, %v815_v56  ;;  %v978_v14 = vsel %vm8867_vm3, %v817_v61, %v977_v38  ;;  %11492 = vst [vmem:[#allocation18_spill] sm:$0xff] %v9371_v52  ;;  %975 = vst [vmem:[#allocation2 + $0xc0] sm:$0xf] %v974_v47  ;;  %v1176_v20 = vshll.u32 %v9371_v52, 16  ;;  %v1181_v30 = vshll.u32 %v9373_v15, 16 }
  0xb5   : >> { %v1920_v63 = vrot.slane %v1918_v41, 1  ;;  %976 = vst.msk [vmem:[#allocation2 + $0xc4] sm:$0xf] %vm284_vm0, %v816_v12  ;;  %979 = vst [vmem:[#allocation2 + $0xc8] sm:$0x1] %v978_v14  ;;  %v1174_v32 = vshrl.u32 %v9371_v52, 16 }
  0xb6   : >> { %v9376_v19 = vld [vmem:[#allocation2 + $0xb8] sm:$0xf]  ;;  %v9386_v31 = vld [vmem:[#allocation2 + $0x10] sm:$0xf]  ;;  %v1178_v41 = vrot.slane %v1176_v20, 1  ;;  %v1183_v61 = vrot.slane %v1181_v30, 1 }
  0xb7   : >> { %v1921_v16 = vor.u32 %v1920_v63, %v1916_v39  ;;  %v9381_v24 = vcombine.low %v1595_v11, %v9376_v19  ;;  %v9391_v35 = vcombine.low %v982_v13, %v9386_v31  ;;  %v9396_v43 = vld [vmem:[#allocation2 + $0x14] ss:$0 sps:$4 sm:$0x11]   ;;  %v9424_v5 = vld [vmem:[#allocation2 + $0x28] sm:$0xf] }
  0xb8   : >> { %v9383_v25 = vld [vmem:[#allocation2 + $0xbc] ss:$0 sps:$4 sm:$0x11]   ;;  %v1179_v47 = vor.u32 %v1178_v41, %v1174_v32  ;;  %v1193_v20 = vshll.u32 %v9396_v43, 16  ;;  %v9449_v0 = vld [vmem:[#allocation2 + $0x40] sm:$0xf] }
  0xb9   : >> { %v1926_v21 = vsel %vm1172_vm9, %v1921_v16, %v1925_v1  ;;  %11493 = vst [vmem:[#allocation19_spill] sm:$0xff] %v9381_v24  ;;  %11494 = vst [vmem:[#allocation20_spill] sm:$0xff] %v9391_v35  ;;  %v1928_v38 = vshrl.u32 %v9381_v24, 16  ;;  %v1930_v37 = vshll.u32 %v9381_v24, 16  ;;  %v1935_v39 = vshll.u32 %v9383_v25, 16 }
  0xba   : >> { %1977 = vrot.lane.b32.xlu1 %v1926_v21, %s8732_s15  ;;  %v1188_v44 = vshll.u32 %v9391_v35, 16  ;;  %v1186_v14 = vshrl.u32 %v9391_v35, 16  ;;  %v984_v16 = vld [vmem:[#allocation2 + $0x18] sm:$0xf]  ;;  %v9408_v21 = vld [vmem:[#allocation2 + $0x1c] sm:$0xf] }
  0xbb   : >> { %v1932_v45 = vrot.slane %v1930_v37, 1  ;;  %v1937_v56 = vrot.slane %v1935_v39, 1  ;;  %v1597_v62 = vld [vmem:[#allocation2 + $0xc0] sm:$0xf]  ;;  %v9418_v32 = vcombine.low %v984_v16, %v9408_v21  ;;  %v1195_v36 = vrot.slane %v1193_v20, 1 }
  0xbc   : >> { %v9399_v63 = vld [vmem:[#allocation2 + $0xc4] sm:$0xf]  ;;  %v9404_v12 = vld [vmem:[#allocation2 + $0xc8] ss:$0 sps:$4 sm:$0x11]   ;;  %v1190_v13 = vrot.slane %v1188_v44, 1  ;;  %v9427_v16 = vcombine.low %v986_v3, %v9424_v5 }
  0xbd   : >> { %v1933_v1 = vor.u32 %v1932_v45, %v1928_v38  ;;  %v9402_v11 = vcombine.low %v1597_v62, %v9399_v63  ;;  %v1947_v39 = vshll.u32 %v9404_v12, 16  ;;  %v9414_v45 = vld [vmem:[#allocation2 + $0x20] ss:$0 sps:$4 sm:$0x11]   ;;  %11496 = vst [vmem:[#allocation22_spill] sm:$0xff] %v9418_v32  ;;  %v1184_v62 = vsel %vm1172_vm9, %v1179_v47, %v1183_v61 }
  0xbe   : >> { %v1205_v18 = vshll.u32 %v9414_v45, 16  ;;  %v1200_v4 = vshll.u32 %v9418_v32, 16  ;;  %11497 = vst [vmem:[#allocation23_spill] sm:$0xff] %v9427_v16  ;;  %v9430_v61 = vld [vmem:[#allocation2 + $0x2c] ss:$0 sps:$4 sm:$0x11]  }
  0xbf   : >> { %11495 = vst [vmem:[#allocation21_spill] sm:$0xff] %v9402_v11  ;;  %v1938_v30 = vsel %vm1172_vm9, %v1933_v1, %v1937_v56  ;;  %v1940_v37 = vshrl.u32 %v9402_v11, 16  ;;  %v1942_v38 = vshll.u32 %v9402_v11, 16  ;;  %v1949_v44 = vrot.slane %v1947_v39, 1  ;;  %v988_v39 = vld [vmem:[#allocation2 + $0x30] sm:$0xf] }
  0xc0   : >> { %1979 = vrot.lane.b32.xlu0 %v1938_v30, %s8732_s15  ;;  %v1191_v56 = vor.u32 %v1190_v13, %v1186_v14  ;;  %v1198_v1 = vshrl.u32 %v9418_v32, 16  ;;  %v1207_v30 = vrot.slane %v1205_v18, 1  ;;  %v1210_v14 = vshrl.u32 %v9427_v16, 16  ;;  %v9437_v20 = vld [vmem:[#allocation2 + $0x34] sm:$0xf] }
  0xc1   : >> { %v1944_v41 = vrot.slane %v1942_v38, 1  ;;  %v1202_v38 = vrot.slane %v1200_v4, 1  ;;  %v1212_v13 = vshll.u32 %v9427_v16, 16  ;;  %v1217_v18 = vshll.u32 %v9430_v61, 16  ;;  %v992_v52 = vld [vmem:[#allocation2 + $0x48] sm:$0xf] }
  0xc2   : >> { %v1196_v3 = vsel %vm1172_vm9, %v1191_v56, %v1195_v36  ;;  %v9441_v4 = vcombine.low %v988_v39, %v9437_v20  ;;  %v9455_v16 = vld [vmem:[#allocation2 + $0x2c] ss:$0 sps:$4 sm:$0x11]   ;;  %v1623_v26 = vld [vmem:[#allocation2 + $0x6c] sm:$0xe] }
  0xc3   : >> { %v1945_v40 = vor.u32 %v1944_v41, %v1940_v37  ;;  %v1203_v37 = vor.u32 %v1202_v38, %v1198_v1  ;;  %v1214_v41 = vrot.slane %v1212_v13, 1  ;;  %v1219_v1 = vrot.slane %v1217_v18, 1  ;;  %v990_v38 = vld [vmem:[#allocation2 + $0x3c] sm:$0xf]  ;;  %v1617_v18 = vld [vmem:[#allocation2 + $0x24] sm:$0xe] }
  0xc4   : >> { %1365 = vrot.lane.b32.xlu0 %v1184_v62, %s8732_s15  ;;  %11498 = vst [vmem:[#allocation24_spill] sm:$0xff] %v9441_v4  ;;  %v9443_v62 = vld [vmem:[#allocation2 + $0x38] ss:$0 sps:$4 sm:$0x11]   ;;  %v1222_v56 = vshrl.u32 %v9441_v4, 16  ;;  %v1224_v13 = vshll.u32 %v9441_v4, 16 }
  0xc5   : >> { %v1950_v47 = vsel %vm1172_vm9, %v1945_v40, %v1949_v44  ;;  %v1616_v40 = vld [vmem:[#allocation2 + $0x18] sm:$0xe]  ;;  %v9445_v44 = vld [vmem:[#allocation2 + $0x20] ss:$0 sps:$4 sm:$0x11]   ;;  %v1215_v36 = vor.u32 %v1214_v41, %v1210_v14  ;;  %v1229_v39 = vshll.u32 %v9443_v62, 16 }
  0xc6   : >> { %1981 = vrot.lane.b32.xlu1 %v1950_v47, %s8732_s15  ;;  %v1208_v47 = vsel %vm1172_vm9, %v1203_v37, %v1207_v30  ;;  %v9460_v30 = vcombine.low %v990_v38, %v9449_v0  ;;  %v9462_v37 = vld [vmem:[#allocation2 + $0x44] ss:$0 sps:$4 sm:$0x11]   ;;  %v1226_v41 = vrot.slane %v1224_v13, 1  ;;  %v993_v24 = vld [vmem:[#allocation2 + $0x4c] sm:$0xf] }
  0xc7   : >> { %v1220_v14 = vsel %vm1172_vm9, %v1215_v36, %v1219_v1  ;;  %v1241_v32 = vshll.u32 %v9462_v37, 16  ;;  %v9470_v36 = vcombine.low %v992_v52, %v993_v24  ;;  %v8294_v13 = vld [vmem:[#allocation2 + $0x50] ss:$0 sps:$4 sm:$0x11]   ;;  %v8569_v2 = vld [vmem:[#allocation2 + $0x28] sm:$0xf] }
  0xc8   : >> { %1369 = vrot.lane.b32.xlu0 %v1208_v47, %s8732_s15  ;;  %11499 = vst [vmem:[#allocation25_spill] sm:$0xff] %v9460_v30  ;;  %v1231_v47 = vrot.slane %v1229_v39, 1  ;;  %v1234_v4 = vshrl.u32 %v9460_v30, 16  ;;  %v1236_v35 = vshll.u32 %v9460_v30, 16  ;;  %v1227_v38 = vor.u32 %v1226_v41, %v1222_v56  ;;  %v994_v24 = vld [vmem:[#allocation2 + $0x54] sm:$0xf] }
  0xc9   : >> { %v1243_v1 = vrot.slane %v1241_v32, 1  ;;  %v7301_v39 = vcombine.low %v1623_v26, %v9246_v42  ;;  %v7295_v57 = vcombine.low %v1617_v18, %v8569_v2  ;;  %v1253_v52 = vshll.u32 %v8294_v13, 16  ;;  %v995_v26 = vld [vmem:[#allocation2 + $0x58] sm:$0xf]  ;;  %v996_v13 = vld [vmem:[#allocation2 + $0x60] sm:$0xf] }
  0xca   : >> { %1367 = vrot.lane.b32.xlu1 %v1196_v3, %s8732_s15  ;;  %v8568_v3 = vld [vmem:[#allocation2 + $0x1c] sm:$0xf]  ;;  %v1238_v33 = vrot.slane %v1236_v35, 1  ;;  %v1232_v59 = vsel %vm1172_vm9, %v1227_v38, %v1231_v47  ;;  %v1248_v35 = vshll.u32 %v9470_v36, 16  ;;  %v9482_v47 = vcombine.low %v994_v24, %v995_v26 }
  0xcb   : >> { %v7294_v11 = vcombine.low %v1616_v40, %v8568_v3  ;;  %v2056_v40 = vrot.slane %v9252_v54, 1  ;;  %v2055_v42 = vrot.slane %v7301_v39, 1  ;;  %v1255_v41 = vrot.slane %v1253_v52, 1  ;;  %v8297_v54 = vld [vmem:[#allocation2 + $0x5c] ss:$0 sps:$4 sm:$0x11]  }
  0xcc   : >> { %1373 = vrot.lane.b32.xlu0 %v1232_v59, %s8732_s15  ;;  %v1239_v56 = vor.u32 %v1238_v33, %v1234_v4  ;;  %v1250_v18 = vrot.slane %v1248_v35, 1  ;;  %v9484_v3 = vrot.slane %v7295_v57, 1  ;;  %v2062_v33 = vrot.slane %v9283_v60, 1  ;;  %v997_v39 = vld [vmem:[#allocation2 + $0x64] sm:$0xf] }
  0xcd   : >> { %v9479_v32 = vrot.slane %v7294_v11, 1  ;;  %v9488_v59 = vsel %vm1445_vm10, %v2055_v42, %v2056_v40  ;;  %v1258_v4 = vshrl.u32 %v9482_v47, 16  ;;  %v1260_v38 = vshll.u32 %v9482_v47, 16  ;;  %v8300_v26 = vld [vmem:[#allocation2 + $0x68] ss:$0 sps:$4 sm:$0x11]  }
  0xce   : >> { %1371 = vrot.lane.b32.xlu1 %v1220_v14, %s8732_s15  ;;  %v1246_v14 = vshrl.u32 %v9470_v36, 16  ;;  %v1244_v2 = vsel %vm1172_vm9, %v1239_v56, %v1243_v1  ;;  %v1265_v1 = vshll.u32 %v8297_v54, 16  ;;  %v1625_v56 = vld [vmem:[#allocation2 + $0x84] sm:$0xe]  ;;  %v9494_v24 = vcombine.low %v996_v13, %v997_v39  ;;  %v998_v40 = vld [vmem:[#allocation2 + $0x6c] sm:$0xf] }
  0xcf   : >> { %v1262_v57 = vrot.slane %v1260_v38, 1  ;;  %v7303_v60 = vcombine.low %v1625_v56, %v9276_v55  ;;  %v2065_v42 = vrot.slane %v9311_v58, 1  ;;  %v8302_v13 = vld [vmem:[#allocation2 + $0x74] ss:$0 sps:$4 sm:$0x11]  }
  0xd0   : >> { %v1251_v11 = vor.u32 %v1250_v18, %v1246_v14  ;;  %v1267_v52 = vrot.slane %v1265_v1, 1  ;;  %11500 = vst [vmem:[#allocation26_spill] sm:$0xff] %v9494_v24  ;;  %v999_v14 = vld [vmem:[#allocation2 + $0x70] sm:$0xf]  ;;  %v1270_v54 = vshrl.u32 %v9494_v24, 16 }
  0xd1   : >> { %v1263_v18 = vor.u32 %v1262_v57, %v1258_v4  ;;  %v2061_v38 = vrot.slane %v7303_v60, 1  ;;  %v9502_v1 = vcombine.low %v998_v40, %v999_v14  ;;  %v1626_v56 = vld [vmem:[#allocation2 + $0x90] sm:$0xe]  ;;  %v1289_v57 = vshll.u32 %v8302_v13, 16  ;;  %v1001_v14 = vld [vmem:[#allocation2 + $0x7c] sm:$0xf] }
  0xd2   : >> { %1375 = vrot.lane.b32.xlu1 %v1244_v2, %s8732_s15  ;;  %v1256_v35 = vsel %vm1172_vm9, %v1251_v11, %v1255_v41  ;;  %v2068_v2 = vrot.slane %v9330_v34, 1  ;;  %v1272_v41 = vshll.u32 %v9494_v24, 16  ;;  %v1277_v11 = vshll.u32 %v8300_v26, 16  ;;  %v1000_v26 = vld [vmem:[#allocation2 + $0x78] sm:$0xf] }
  0xd3   : >> { %1377 = vrot.lane.b32.xlu0 %v1256_v35, %s8732_s15  ;;  %v1268_v39 = vsel %vm1172_vm9, %v1263_v18, %v1267_v52  ;;  %v9507_v58 = vsel %vm1445_vm10, %v2061_v38, %v2062_v33  ;;  %v1282_v34 = vshrl.u32 %v9502_v1, 16  ;;  %v1284_v4 = vshll.u32 %v9502_v1, 16  ;;  %v1627_v30 = vld [vmem:[#allocation2 + $0x9c] sm:$0xe] }
  0xd4   : >> { %v1274_v35 = vrot.slane %v1272_v41, 1  ;;  %v1279_v55 = vrot.slane %v1277_v11, 1  ;;  %v7304_v40 = vcombine.low %v1626_v56, %v9305_v46  ;;  %v1291_v18 = vrot.slane %v1289_v57, 1  ;;  %v8305_v11 = vld [vmem:[#allocation2 + $0x80] ss:$0 sps:$4 sm:$0x11]  }
  0xd5   : >> { %v1286_v52 = vrot.slane %v1284_v4, 1  ;;  %v9512_v41 = vcombine.low %v1000_v26, %v1001_v14  ;;  %v2071_v24 = vrot.slane %v9353_v27, 1  ;;  %v1002_v56 = vld [vmem:[#allocation2 + $0x84] sm:$0xf]  ;;  %v1003_v26 = vld [vmem:[#allocation2 + $0x88] sm:$0xf] }
  0xd6   : >> { %1379 = vrot.lane.b32.xlu1 %v1268_v39, %s8732_s15  ;;  %v1275_v60 = vor.u32 %v1274_v35, %v1270_v54  ;;  %v7305_v39 = vcombine.low %v1627_v30, %v9325_v29  ;;  %v2064_v38 = vrot.slane %v7304_v40, 1  ;;  %v1301_v35 = vshll.u32 %v8305_v11, 16  ;;  %v1618_v40 = vld [vmem:[#allocation2 + $0x30] sm:$0xe] }
  0xd7   : >> { %v1287_v13 = vor.u32 %v1286_v52, %v1282_v34  ;;  %v1294_v54 = vshrl.u32 %v9512_v41, 16  ;;  %v1296_v46 = vshll.u32 %v9512_v41, 16  ;;  %v2074_v29 = vrot.slane %v9383_v25, 1  ;;  %v8308_v34 = vld [vmem:[#allocation2 + $0x8c] ss:$0 sps:$4 sm:$0x11]  }
  0xd8   : >> { %v1280_v33 = vsel %vm1172_vm9, %v1275_v60, %v1279_v55  ;;  %v9521_v4 = vsel %vm1445_vm10, %v2064_v38, %v2065_v42  ;;  %v2067_v57 = vrot.slane %v7305_v39, 1  ;;  %v1303_v27 = vrot.slane %v1301_v35, 1  ;;  %v1628_v52 = vld [vmem:[#allocation2 + $0xa8] sm:$0xe]  ;;  %v8273_v42 = vld [vmem:[%s11390_s1] sm:$0xff]  }
  0xd9   : >> { %1381 = vrot.lane.b32.xlu0 %v1280_v33, %s8732_s15  ;;  %v1292_v30 = vsel %vm1172_vm9, %v1287_v13, %v1291_v18  ;;  %v1298_v55 = vrot.slane %v1296_v46, 1  ;;  %v9525_v60 = vcombine.low %v1002_v56, %v1003_v26  ;;  %v1313_v39 = vshll.u32 %v8308_v34, 16  ;;  %v1004_v33 = vld [vmem:[#allocation2 + $0x90] sm:$0xf]  ;;  %v1005_v35 = vld [vmem:[#allocation2 + $0x94] sm:$0xf] }
  0xda   : >> { %1383 = vrot.lane.b32.xlu1 %v1292_v30, %s8732_s15  ;;  %v9529_v14 = vsel %vm1445_vm10, %v2067_v57, %v2068_v2  ;;  %v11501_v13 = vrot.slane %v9445_v44, 1  ;;  %v7306_v2 = vcombine.low %v1628_v52, %v9343_v28  ;;  %v1629_v56 = vld [vmem:[#allocation2 + $0xb4] sm:$0xe]  ;;  %v8311_v34 = vld [vmem:[#allocation2 + $0x98] ss:$0 sps:$4 sm:$0x11]  }
  0xdb   : >> { %v1299_v11 = vor.u32 %v1298_v55, %v1294_v54  ;;  %v1306_v25 = vshrl.u32 %v9525_v60, 16  ;;  %v1308_v18 = vshll.u32 %v9525_v60, 16  ;;  %v8276_v54 = vld [vmem:[%s11390_s1 + $0x8] sm:$0xff]   ;;  %v1315_v55 = vrot.slane %v1313_v39, 1  ;;  %v1006_v52 = vld [vmem:[#allocation2 + $0x9c] sm:$0xf] }
  0xdc   : >> { %v2036_v46 = vsel %vm1445_vm10, %v9479_v32, %v11501_v13  ;;  %v2070_v44 = vrot.slane %v7306_v2, 1  ;;  %v9548_v32 = vcombine.low %v1004_v33, %v1005_v35  ;;  %v7307_v28 = vcombine.low %v1629_v56, %v9376_v19  ;;  %v1007_v13 = vld [vmem:[#allocation2 + $0xa0] sm:$0xf] }
  0xdd   : >> { %v1304_v26 = vsel %vm1172_vm9, %v1299_v11, %v1303_v27  ;;  %v1310_v30 = vrot.slane %v1308_v18, 1  ;;  %v1325_v18 = vshll.u32 %v8311_v34, 16  ;;  %v9553_v39 = vcombine.low %v1006_v52, %v1007_v13  ;;  %v1630_v56 = vld [vmem:[#allocation2 + $0xc0] sm:$0xe] }
  0xde   : >> { %1385 = vrot.lane.b32.xlu0 %v1304_v26, %s8732_s15  ;;  %11502 = vst [vmem:[#allocation27_spill] sm:$0xff] %v9548_v32  ;;  %v11504_v2 = vmov 0   ;;  %v9557_v33 = vsel %vm1445_vm10, %v2070_v44, %v2071_v24  ;;  %v1318_v19 = vshrl.u32 %v9548_v32, 16  ;;  %v1008_v44 = vld [vmem:[#allocation2 + $0xa8] sm:$0xf] }
  0xdf   : >> { %v1311_v11 = vor.u32 %v1310_v30, %v1306_v25  ;;  %11503 = vst [vmem:[#allocation28_spill] sm:$0xff] %v9553_v39  ;;  %v1330_v35 = vshrl.u32 %v9553_v39, 16  ;;  %v1332_v34 = vshll.u32 %v9553_v39, 16 }
  0xe1   : >> { %v1316_v25 = vsel %vm1172_vm9, %v1311_v11, %v1315_v55  ;;  %v7308_v55 = vcombine.low %v1630_v56, %v9399_v63  ;;  %v8317_v11 = vld [vmem:[#allocation2 + $0xb0] ss:$0 sps:$4 sm:$0x11]   ;;  %v1334_v39 = vrot.slane %v1332_v34, 1 }
  0xe2   : >> { %1387 = vrot.lane.b32.xlu1 %v1316_v25, %s8732_s15  ;;  %v1349_v56 = vshll.u32 %v8317_v11, 16  ;;  %v8571_v11 = vld [vmem:[#allocation2 + $0x40] sm:$0xf] }
  0xe4   : >> { %v1952_v38 = vpop.permute.xlu0 %1951 }
  0xe5   : >> { %v2080_v57 = vsel %vm1494_vm11, %v9095_v51, %v1952_v38  ;;  %v2077_v51 = vrot.slane %v9404_v12, 1  ;;  %v8570_v38 = vld [vmem:[#allocation2 + $0x34] sm:$0xf]  ;;  %v1320_v12 = vshll.u32 %v9548_v32, 16  ;;  %v1028_v32 = vld [vmem:[#allocation2] sm:$0xe] }
  0xe6   : >> { %2305 = vmatmul.mubr.bf16.vlgmr.msra.gmra.mrb[0].mxu0 %v2080_v57  ;;  %v7296_v27 = vcombine.low %v1618_v40, %v8570_v38  ;;  %v8313_v57 = vld [vmem:[#allocation2 + $0xa4] ss:$0 sps:$4 sm:$0x11]   ;;  %v8281_v40 = vld [vmem:[%s11390_s1 + $0x10] sm:$0xff]  }
  0xe7   : >> { %2554 = vmatpush1.bf16.msra.mxu0 %v8273_v42  ;;  %7346 = vmatprep.mubr.msk.bf16.mxu0 %vm1494_vm11, %v2036_v46  ;;  %v2073_v42 = vrot.slane %v7307_v28, 1  ;;  %v1327_v46 = vrot.slane %v1325_v18, 1  ;;  %v1322_v30 = vrot.slane %v1320_v12, 1  ;;  %v1009_v28 = vld [vmem:[#allocation2 + $0xac] sm:$0xf]  ;;  %v1337_v13 = vshll.u32 %v8313_v57, 16 }
  0xe8   : >> { %v1954_v26 = vpop.permute.xlu0 %1953  ;;  %2555 = vmatprep.subr.bf16.mxu0 %v11504_v2  ;;  %v9574_v38 = vcombine.low %v1008_v44, %v1009_v28  ;;  %v11505_v18 = vrot.slane %v9455_v16, 1  ;;  %v2040_v12 = vrot.slane %v7296_v27, 1  ;;  %v1447_v27 = vrot.slane %v9373_v15, 1 }
  0xe9   : >> { %v9568_v24 = vsel %vm1445_vm10, %v2073_v42, %v2074_v29  ;;  %v2083_v52 = vsel %vm1494_vm11, %v9112_v7, %v1954_v26  ;;  %v1619_v42 = vld [vmem:[#allocation2 + $0x3c] sm:$0xe]  ;;  %v1323_v25 = vor.u32 %v1322_v30, %v1318_v19  ;;  %v1339_v63 = vrot.slane %v1337_v13, 1  ;;  %v1010_v19 = vld [vmem:[#allocation2 + $0xb4] sm:$0xf] }
  0xea   : >> { %v2039_v29 = vsel %vm1445_vm10, %v9484_v3, %v11505_v18  ;;  %v8284_v7 = vld [vmem:[%s11390_s1 + $0x18] sm:$0xff]   ;;  %v1342_v57 = vshrl.u32 %v9574_v38, 16  ;;  %v1344_v16 = vshll.u32 %v9574_v38, 16  ;;  %v1335_v26 = vor.u32 %v1334_v39, %v1330_v35  ;;  %v1029_v35 = vld [vmem:[#allocation2 + $0xc] sm:$0xe] }
  0xeb   : >> { %2556 = vmatpush1.bf16.msra.mxu0 %v8276_v54  ;;  %v2076_v54 = vrot.slane %v7308_v55, 1  ;;  %v1328_v3 = vsel %vm1172_vm9, %v1323_v25, %v1327_v46  ;;  %v1011_v30 = vld [vmem:[#allocation2 + $0xb8] sm:$0xf]  ;;  %v1956_v34 = vpop.permute.xlu1 %1955  ;;  %v7245_v13 = vcombine.low %v1028_v32, %v9362_v9  ;;  %v11506_v39 = vrot.slane %v9143_v49, 1  ;;  %v8287_v9 = vld [vmem:[%s11390_s1 + $0x20] sm:$0xff]  }
  0xec   : >> { %2557 = vmatprep.subr.bf16.mxu0 %v11504_v2  ;;  %v1346_v28 = vrot.slane %v1344_v16, 1  ;;  %v9593_v55 = vcombine.low %v1010_v19, %v1011_v30  ;;  %1389 = vrot.lane.b32.xlu0 %v1328_v3, %s8732_s15  ;;  %v1340_v15 = vsel %vm1172_vm9, %v1335_v26, %v1339_v63  ;;  %v7297_v18 = vcombine.low %v1619_v42, %v8571_v11  ;;  %v2716_v42 = vld [vmem:[#allocation2 + $0x1c] sm:$0xf]  ;;  %v8325_v26 = vld [vmem:[#allocation2 + $0x20] ss:$0 sps:$4 sm:$0x11]  }
  0xed   : >> { %v9590_v44 = vsel %vm1445_vm10, %v2076_v54, %v2077_v51  ;;  %v2042_v46 = vsel %vm1445_vm10, %v2040_v12, %v11506_v39  ;;  %v1450_v51 = vrot.slane %v9396_v43, 1  ;;  %1391 = vrot.lane.b32.xlu1 %v1340_v15, %s8732_s15  ;;  %v1446_v32 = vrot.slane %v7245_v13, 1  ;;  %v2715_v12 = vld [vmem:[#allocation2 + $0x18] sm:$0xf]  ;;  %v1620_v13 = vld [vmem:[#allocation2 + $0x48] sm:$0xe] }
  0xee   : >> { %2313 = vmatmul.mubr.bf16.gmra.mrb[4].mxu0 %v2083_v52  ;;  %v8321_v52 = vld [vmem:[#allocation2 + $0xbc] ss:$0 sps:$4 sm:$0x11]   ;;  %v1347_v49 = vor.u32 %v1346_v28, %v1342_v57  ;;  %v2086_v25 = vsel %vm1494_vm11, %v9127_v22, %v1956_v34  ;;  %v1356_v63 = vshll.u32 %v9593_v55, 16  ;;  %v7246_v43 = vcombine.low %v1029_v35, %v9386_v31  ;;  %v2717_v34 = vld [vmem:[#allocation2 + $0x24] sm:$0xf] }
  0xef   : >> { %7347 = vmatprep.mubr.msk.bf16.mxu0 %vm1494_vm11, %v2039_v29  ;;  %2558 = vmatpush1.bf16.msra.mxu0 %v8281_v40  ;;  %v1351_v40 = vrot.slane %v1349_v56, 1  ;;  %v1354_v29 = vshrl.u32 %v9593_v55, 16  ;;  %v1361_v54 = vshll.u32 %v8321_v52, 16  ;;  %v9613_v3 = vsel %vm1445_vm10, %v1446_v32, %v1447_v27  ;;  %v1030_v56 = vld [vmem:[#allocation2 + $0x18] sm:$0xe]  ;;  %v8292_v27 = vld [vmem:[%s11390_s1 + $0x28] sm:$0xff]  }
  0xf0   : >> { %2559 = vmatprep.subr.bf16.mxu0 %v11504_v2  ;;  %v9615_v57 = vcombine.low %v2715_v12, %v2716_v42  ;;  %v1453_v19 = vrot.slane %v9414_v45, 1  ;;  %v1358_v22 = vrot.slane %v1356_v63, 1  ;;  %v1449_v31 = vrot.slane %v7246_v43, 1  ;;  %v2718_v15 = vld [vmem:[#allocation2 + $0x28] sm:$0xf]  ;;  %v1958_v12 = vpop.permute.xlu1 %1957 }
  0xf1   : >> { %v1352_v16 = vsel %vm1172_vm9, %v1347_v49, %v1351_v40  ;;  %v1363_v30 = vrot.slane %v1361_v54, 1  ;;  %v2043_v28 = vrot.slane %v7297_v18, 1  ;;  %v2915_v39 = vshll.u32 %v8325_v26, 16  ;;  %v8328_v18 = vld [vmem:[#allocation2 + $0x2c] ss:$0 sps:$4 sm:$0x11]  }
  0xf2   : >> { %1393 = vrot.lane.b32.xlu0 %v1352_v16, %s8732_s15  ;;  %v2908_v52 = vshrl.u32 %v9615_v57, 16  ;;  %v2910_v45 = vshll.u32 %v9615_v57, 16  ;;  %v1359_v40 = vor.u32 %v1358_v22, %v1354_v29  ;;  %v9627_v35 = vsel %vm1445_vm10, %v1449_v31, %v1450_v51  ;;  %v1031_v54 = vld [vmem:[#allocation2 + $0x24] sm:$0xe]  ;;  %v2719_v16 = vld [vmem:[#allocation2 + $0x30] sm:$0xf] }
  0xf3   : >> { %2560 = vmatpush1.bf16.msra.mxu0 %v8284_v7  ;;  %v7247_v7 = vcombine.low %v1030_v56, %v9408_v21  ;;  %v9629_v21 = vcombine.low %v2717_v34, %v2718_v15  ;;  %v2917_v32 = vrot.slane %v2915_v39, 1  ;;  %v1456_v42 = vrot.slane %v9430_v61, 1  ;;  %v2720_v26 = vld [vmem:[#allocation2 + $0x34] sm:$0xf]  ;;  %v8572_v56 = vld [vmem:[#allocation2 + $0x4c] sm:$0xf] }
  0xf4   : >> { %2561 = vmatprep.subr.bf16.mxu0 %v11504_v2  ;;  %v2912_v49 = vrot.slane %v2910_v45, 1  ;;  %v1364_v63 = vsel %vm1172_vm9, %v1359_v40, %v1363_v30  ;;  %v7298_v22 = vcombine.low %v1620_v13, %v8572_v56  ;;  %v8573_v30 = vld [vmem:[#allocation2 + $0x50] ss:$0 sps:$4 sm:$0x11]   ;;  %v2089_v34 = vsel %vm1494_vm11, %v9141_v48, %v1958_v12  ;;  %v1621_v40 = vld [vmem:[#allocation2 + $0x54] sm:$0xe] }
  0xf5   : >> { %v1452_v11 = vrot.slane %v7247_v7, 1  ;;  %v2920_v51 = vshrl.u32 %v9629_v21, 16  ;;  %v2922_v29 = vshll.u32 %v9629_v21, 16  ;;  %1395 = vrot.lane.b32.xlu1 %v1364_v63, %s8732_s15  ;;  %v9642_v7 = vcombine.low %v2719_v16, %v2720_v26  ;;  %v8332_v39 = vld [vmem:[#allocation2 + $0x38] ss:$0 sps:$4 sm:$0x11]  }
  0xf6   : >> { %2321 = vmatmul.mubr.bf16.gmra.mrb[8].mxu0 %v2086_v25  ;;  %v2913_v43 = vor.u32 %v2912_v49, %v2908_v52  ;;  %v8295_v52 = vld [vmem:[%s11390_s1 + $0x30] sm:$0xff]   ;;  %v11507_v13 = vrot.slane %v9153_v8, 1  ;;  %v8298_v49 = vld [vmem:[%s11390_s1 + $0x38] sm:$0xff]   ;;  %v2046_v12 = vrot.slane %v7298_v22, 1  ;;  %v9672_v26 = vld [vmem:[#allocation2 + $0x40] sm:$0xf] }
  0xf7   : >> { %7348 = vmatprep.mubr.msk.bf16.mxu0 %vm1494_vm11, %v2042_v46  ;;  %2562 = vmatpush1.bf16.msra.mxu0 %v8287_v9  ;;  %v9635_v25 = vsel %vm1445_vm10, %v1452_v11, %v1453_v19  ;;  %v2927_v46 = vshll.u32 %v8328_v18, 16  ;;  %v7248_v9 = vcombine.low %v1031_v54, %v9424_v5  ;;  %v2047_v19 = vrot.slane %v8573_v30, 1  ;;  %v9653_v11 = vld [vmem:[#allocation2 + $0x5c] ss:$0 sps:$4 sm:$0x11]   ;;  %v8303_v30 = vld [vmem:[%s11390_s1 + $0x40] sm:$0xff]  }
  0xf8   : >> { %2563 = vmatprep.subr.bf16.mxu0 %v11504_v2  ;;  %v2924_v31 = vrot.slane %v2922_v29, 1  ;;  %v2918_v5 = vsel %vm1172_vm9, %v2913_v43, %v2917_v32  ;;  %v2045_v15 = vsel %vm1445_vm10, %v2043_v28, %v11507_v13  ;;  %v2050_v18 = vrot.slane %v9653_v11, 1  ;;  %v1032_v54 = vld [vmem:[#allocation2 + $0x30] sm:$0xe]  ;;  %v2721_v16 = vld [vmem:[#allocation2 + $0x3c] sm:$0xf] }
  0xf9   : >> { %v2929_v61 = vrot.slane %v2927_v46, 1  ;;  %v1455_v45 = vrot.slane %v7248_v9, 1  ;;  %3099 = vrot.lane.b32.xlu0 %v2918_v5, %s8732_s15  ;;  %v2932_v28 = vshrl.u32 %v9642_v7, 16  ;;  %v2939_v32 = vshll.u32 %v8332_v39, 16  ;;  %v1960_v9 = vpop.permute.xlu0 %1959  ;;  %v8575_v56 = vld [vmem:[#allocation2 + $0x58] sm:$0xf] }
  0xfa   : >> { %v2925_v48 = vor.u32 %v2924_v31, %v2920_v51  ;;  %v7249_v43 = vcombine.low %v1032_v54, %v9437_v20  ;;  %v1459_v46 = vrot.slane %v9443_v62, 1  ;;  %v7299_v22 = vcombine.low %v1621_v40, %v8575_v56  ;;  %v9687_v5 = vld [vmem:[#allocation2 + $0x44] ss:$0 sps:$4 sm:$0x11]   ;;  %v8306_v13 = vld [vmem:[%s11390_s1 + $0x48] sm:$0xff]   ;;  %v8309_v54 = vld [vmem:[%s11390_s1 + $0x50] sm:$0xff]  }
  0xfb   : >> { %2564 = vmatpush1.bf16.msra.mxu0 %v8292_v27  ;;  %v2934_v27 = vshll.u32 %v9642_v7, 16  ;;  %v9663_v8 = vsel %vm1445_vm10, %v1455_v45, %v1456_v42  ;;  %v2941_v51 = vrot.slane %v2939_v32, 1  ;;  %v9678_v20 = vcombine.low %v2721_v16, %v9672_v26  ;;  %v9716_v16 = vld [vmem:[#allocation2 + $0x50] ss:$0 sps:$4 sm:$0x11]   ;;  %v8314_v11 = vld [vmem:[%s11390_s1 + $0x58] sm:$0xff]  }
  0xfc   : >> { %2565 = vmatprep.subr.bf16.mxu0 %v11504_v2  ;;  %v2930_v63 = vsel %vm1172_vm9, %v2925_v48, %v2929_v61  ;;  %v1458_v31 = vrot.slane %v7249_v43, 1  ;;  %v2048_v45 = vsel %vm1445_vm10, %v2046_v12, %v2047_v19  ;;  %v2049_v39 = vrot.slane %v7299_v22, 1  ;;  %v1622_v48 = vld [vmem:[#allocation2 + $0x60] sm:$0xe]  ;;  %v1962_v12 = vpop.permute.xlu1 %1961 }
  0xfd   : >> { %v2936_v29 = vrot.slane %v2934_v27, 1  ;;  %3101 = vrot.lane.b32.xlu1 %v2930_v63, %s8732_s15  ;;  %v2946_v61 = vshll.u32 %v9678_v20, 16  ;;  %v2951_v40 = vshll.u32 %v9687_v5, 16  ;;  %v1033_v27 = vld [vmem:[#allocation2 + $0x3c] sm:$0xe]  ;;  %v1462_v32 = vrot.slane %v9462_v37, 1 }
  0xfe   : >> { %2329 = vmatmul.mubr.bf16.gmra.mrb[12].mxu0 %v2089_v34  ;;  %v2092_v34 = vsel %vm1494_vm11, %v9151_v6, %v1960_v9  ;;  %v2944_v6 = vshrl.u32 %v9678_v20, 16  ;;  %v2723_v63 = vld [vmem:[#allocation2 + $0x48] sm:$0xf]  ;;  %v8576_v9 = vld [vmem:[#allocation2 + $0x64] sm:$0xf]  ;;  %v2095_v37 = vsel %vm1494_vm11, %v9195_v10, %v1962_v12  ;;  %v2051_v22 = vsel %vm1445_vm10, %v2049_v39, %v2050_v18 }
  0xff   : >> { %7349 = vmatprep.mubr.msk.bf16.mxu0 %vm1494_vm11, %v2045_v15  ;;  %2566 = vmatpush1.bf16.msra.mxu0 %v8295_v52  ;;  %v2937_v42 = vor.u32 %v2936_v29, %v2932_v28  ;;  %v9685_v52 = vsel %vm1445_vm10, %v1458_v31, %v1459_v46  ;;  %v2948_v15 = vrot.slane %v2946_v61, 1  ;;  %v2953_v19 = vrot.slane %v2951_v40, 1  ;;  %v9701_v29 = vld [vmem:[#allocation2 + $0x4c] sm:$0xf] }
 0x100   : >> { %2567 = vmatprep.subr.bf16.mxu0 %v11504_v2  ;;  %v7250_v28 = vcombine.low %v1033_v27, %v9449_v0  ;;  %v9708_v46 = vcombine.low %v2723_v63, %v9701_v29  ;;  %v7300_v0 = vcombine.low %v1622_v48, %v8576_v9  ;;  %v9739_v27 = vld [vmem:[#allocation2 + $0x5c] ss:$0 sps:$4 sm:$0x11]   ;;  %v1624_v63 = vld [vmem:[#allocation2 + $0x78] sm:$0xe] }
 0x101   : >> { %v2942_v62 = vsel %vm1172_vm9, %v2937_v42, %v2941_v51  ;;  %v2975_v12 = vshll.u32 %v9739_v27, 16  ;;  %v9747_v9 = vld [vmem:[#allocation2 + $0x64] sm:$0xf] }
 0x102   : >> { %3103 = vrot.lane.b32.xlu0 %v2942_v62, %s8732_s15  ;;  %v1461_v43 = vrot.slane %v7250_v28, 1  ;;  %v2958_v56 = vshll.u32 %v9708_v46, 16  ;;  %v2963_v62 = vshll.u32 %v9716_v16, 16  ;;  %v2052_v10 = vrot.slane %v7300_v0, 1 }
 0x103   : >> { %2568 = vmatpush1.bf16.msra.mxu0 %v8298_v49  ;;  %v2949_v49 = vor.u32 %v2948_v15, %v2944_v6  ;;  %v1964_v39 = vpop.permute.xlu0 %1963  ;;  %v9730_v6 = vld [vmem:[#allocation2 + $0x58] sm:$0xf] }
 0x104   : >> { %2569 = vmatprep.subr.bf16.mxu0 %v11504_v2  ;;  %v9714_v42 = vsel %vm1445_vm10, %v1461_v43, %v1462_v32  ;;  %v2960_v31 = vrot.slane %v2958_v56, 1  ;;  %v2965_v18 = vrot.slane %v2963_v62, 1  ;;  %v2098_v48 = vsel %vm1494_vm11, %v9216_v53, %v1964_v39  ;;  %v2727_v43 = vld [vmem:[#allocation2 + $0x60] sm:$0xf] }
 0x105   : >> { %v2954_v51 = vsel %vm1172_vm9, %v2949_v49, %v2953_v19  ;;  %v2977_v53 = vrot.slane %v2975_v12, 1 }
 0x106   : >> { %2337 = vmatmul.mubr.bf16.gmra.mrb[16].mxu0 %v2092_v34  ;;  %3105 = vrot.lane.b32.xlu1 %v2954_v51, %s8732_s15  ;;  %v8577_v34 = vld [vmem:[#allocation2 + $0x68] ss:$0 sps:$4 sm:$0x11]  }
 0x107   : >> { %7350 = vmatprep.mubr.msk.bf16.mxu0 %vm1494_vm11, %v2048_v45  ;;  %2570 = vmatpush1.bf16.msra.mxu0 %v8303_v30  ;;  %v2956_v30 = vshrl.u32 %v9708_v46, 16  ;;  %v2053_v61 = vrot.slane %v8577_v34, 1 }
 0x108   : >> { %2571 = vmatprep.subr.bf16.mxu0 %v11504_v2  ;;  %v1966_v51 = vpop.permute.xlu1 %1965 }
 0x109   : >> { %v2961_v45 = vor.u32 %v2960_v31, %v2956_v30  ;;  %v2054_v19 = vsel %vm1445_vm10, %v2052_v10, %v2053_v61  ;;  %v2101_v56 = vsel %vm1494_vm11, %v9235_v23, %v1966_v51  ;;  %v9756_v31 = vld [vmem:[#allocation2 + $0x68] ss:$0 sps:$4 sm:$0x11]  }
 0x10a   : >> { %v2987_v61 = vshll.u32 %v9756_v31, 16 }
 0x10b   : >> { %2572 = vmatpush1.bf16.msra.mxu0 %v8306_v13  ;;  %v2725_v13 = vld [vmem:[#allocation2 + $0x54] sm:$0xf]  ;;  %v2966_v15 = vsel %vm1172_vm9, %v2961_v45, %v2965_v18 }
 0x10c   : >> { %2573 = vmatprep.subr.bf16.mxu0 %v11504_v2  ;;  %v9734_v40 = vcombine.low %v2725_v13, %v9730_v6  ;;  %3107 = vrot.lane.b32.xlu0 %v2966_v15, %s8732_s15  ;;  %v2989_v23 = vrot.slane %v2987_v61, 1  ;;  %v1968_v13 = vpop.permute.xlu0 %1967  ;;  %v2729_v15 = vld [vmem:[#allocation2 + $0x6c] sm:$0xf] }
 0x10e   : >> { %2345 = vmatmul.mubr.bf16.gmra.mrb[20].mxu0 %v2095_v37  ;;  %v2970_v49 = vshll.u32 %v9734_v40, 16  ;;  %v2968_v28 = vshrl.u32 %v9734_v40, 16  ;;  %v9751_v37 = vcombine.low %v2727_v43, %v9747_v9 }
 0x10f   : >> { %7351 = vmatprep.mubr.msk.bf16.mxu0 %vm1494_vm11, %v2051_v22  ;;  %2574 = vmatpush1.bf16.msra.mxu0 %v8309_v54  ;;  %v8578_v22 = vld [vmem:[#allocation2 + $0x7c] sm:$0xf] }
 0x110   : >> { %2575 = vmatprep.subr.bf16.mxu0 %v11504_v2  ;;  %v2972_v32 = vrot.slane %v2970_v49, 1  ;;  %v7302_v30 = vcombine.low %v1624_v63, %v8578_v22  ;;  %v2982_v62 = vshll.u32 %v9751_v37, 16  ;;  %v2980_v10 = vshrl.u32 %v9751_v37, 16  ;;  %v9779_v22 = vld [vmem:[#allocation2 + $0x7c] sm:$0xf] }
 0x112   : >> { %v2973_v54 = vor.u32 %v2972_v32, %v2968_v28  ;;  %v2984_v34 = vrot.slane %v2982_v62, 1  ;;  %v2058_v18 = vrot.slane %v7302_v30, 1  ;;  %v2104_v28 = vsel %vm1494_vm11, %v9250_v50, %v1968_v13  ;;  %v9772_v32 = vld [vmem:[#allocation2 + $0x74] ss:$0 sps:$4 sm:$0x11]  }
 0x113   : >> { %2576 = vmatpush1.bf16.msra.mxu0 %v8314_v11  ;;  %v8579_v11 = vld [vmem:[#allocation2 + $0x80] ss:$0 sps:$4 sm:$0x11]   ;;  %v2733_v13 = vld [vmem:[#allocation2 + $0x84] sm:$0xf] }
 0x114   : >> { %3420 = vmatprep.subr.bf16.mxu0 %v11504_v2  ;;  %v2978_v0 = vsel %vm1172_vm9, %v2973_v54, %v2977_v53  ;;  %v2059_v45 = vrot.slane %v8579_v11, 1  ;;  %v2985_v39 = vor.u32 %v2984_v34, %v2980_v10  ;;  %v2999_v53 = vshll.u32 %v9772_v32, 16  ;;  %v9788_v10 = vld [vmem:[#allocation2 + $0x80] ss:$0 sps:$4 sm:$0x11]  }
 0x115   : >> { %3109 = vrot.lane.b32.xlu1 %v2978_v0, %s8732_s15  ;;  %v1970_v0 = vpop.permute.xlu1 %1969 }
 0x116   : >> { %2353 = vmatmul.mubr.bf16.gmra.mrb[24].mxu0 %v2098_v48  ;;  %v9763_v48 = vld [vmem:[#allocation2 + $0x70] sm:$0xf]  ;;  %v2990_v49 = vsel %vm1172_vm9, %v2985_v39, %v2989_v23  ;;  %v2060_v12 = vsel %vm1445_vm10, %v2058_v18, %v2059_v45  ;;  %v3001_v43 = vrot.slane %v2999_v53, 1  ;;  %v2107_v62 = vsel %vm1494_vm11, %v9268_v17, %v1970_v0 }
 0x117   : >> { %7352 = vmatprep.mubr.msk.bf16.mxu0 %vm1494_vm11, %v2054_v19  ;;  %v9767_v19 = vcombine.low %v2729_v15, %v9763_v48  ;;  %3111 = vrot.lane.b32.xlu0 %v2990_v49, %s8732_s15  ;;  %v3011_v45 = vshll.u32 %v9788_v10, 16  ;;  %v1972_v23 = vpop.permute.xlu0 %1971  ;;  %v9795_v15 = vld [vmem:[#allocation2 + $0x88] sm:$0xf] }
 0x118   : >> { %v9799_v49 = vcombine.low %v2733_v13, %v9795_v15 }
 0x119   : >> { %v2992_v63 = vshrl.u32 %v9767_v19, 16  ;;  %v3013_v39 = vrot.slane %v3011_v45, 1  ;;  %v9820_v45 = vld [vmem:[#allocation2 + $0x98] ss:$0 sps:$4 sm:$0x11]  }
 0x11e   : >> { %2361 = vmatmul.mubr.bf16.gmra.mrb[28].mxu0 %v2101_v56  ;;  %v2731_v56 = vld [vmem:[#allocation2 + $0x78] sm:$0xf] }
 0x11f   : >> { %7353 = vmatprep.mubr.msk.bf16.mxu0 %vm1494_vm11, %v9488_v59  ;;  %v2994_v59 = vshll.u32 %v9767_v19, 16  ;;  %v9783_v30 = vcombine.low %v2731_v56, %v9779_v22  ;;  %v1974_v0 = vpop.permute.xlu1 %1973  ;;  %v2735_v56 = vld [vmem:[#allocation2 + $0x90] sm:$0xf] }
 0x121   : >> { %v2996_v54 = vrot.slane %v2994_v59, 1  ;;  %v3006_v34 = vshll.u32 %v9783_v30, 16  ;;  %v3004_v61 = vshrl.u32 %v9783_v30, 16 }
 0x123   : >> { %v2997_v51 = vor.u32 %v2996_v54, %v2992_v63  ;;  %v3008_v11 = vrot.slane %v3006_v34, 1  ;;  %v3016_v63 = vshrl.u32 %v9799_v49, 16 }
 0x125   : >> { %v3002_v50 = vsel %vm1172_vm9, %v2997_v51, %v3001_v43  ;;  %v3009_v18 = vor.u32 %v3008_v11, %v3004_v61  ;;  %v11509_v61 = vld [vmem:[#allocation15_spill] sm:$0xff] }
 0x126   : >> { %2369 = vmatmul.mubr.bf16.gmra.mrb[32].mxu0 %v2104_v28  ;;  %3113 = vrot.lane.b32.xlu1 %v3002_v50, %s8732_s15  ;;  %v11508_v28 = vld [vmem:[#allocation14_spill] sm:$0xff]  ;;  %v9811_v50 = vld [vmem:[#allocation2 + $0x94] sm:$0xf]  ;;  %v2113_v11 = vsel %vm1494_vm11, %v11509_v61, %v1974_v0 }
 0x127   : >> { %7354 = vmatprep.mubr.msk.bf16.mxu0 %vm1494_vm11, %v2060_v12  ;;  %v3014_v17 = vsel %vm1172_vm9, %v3009_v18, %v3013_v39  ;;  %v2110_v59 = vsel %vm1494_vm11, %v11508_v28, %v1972_v23  ;;  %v9804_v12 = vld [vmem:[#allocation2 + $0x8c] ss:$0 sps:$4 sm:$0x11]   ;;  %v9815_v34 = vcombine.low %v2735_v56, %v9811_v50  ;;  %v3035_v23 = vshll.u32 %v9820_v45, 16  ;;  %v1976_v28 = vpop.permute.xlu0 %1975 }
 0x128   : >> { %3115 = vrot.lane.b32.xlu0 %v3014_v17, %s8732_s15  ;;  %v3023_v53 = vshll.u32 %v9804_v12, 16 }
 0x129   : >> { %v3028_v18 = vshrl.u32 %v9815_v34, 16  ;;  %v3037_v17 = vrot.slane %v3035_v23, 1 }
 0x12a   : >> { %v3025_v43 = vrot.slane %v3023_v53, 1  ;;  %v11510_v53 = vld [vmem:[#allocation16_spill] sm:$0xff] }
 0x12e   : >> { %2377 = vmatmul.mubr.bf16.gmra.mrb[36].mxu0 %v2107_v62 }
 0x12f   : >> { %7355 = vmatprep.mubr.msk.bf16.mxu0 %vm1494_vm11, %v9507_v58  ;;  %v3018_v58 = vshll.u32 %v9799_v49, 16 }
 0x131   : >> { %v3020_v54 = vrot.slane %v3018_v58, 1  ;;  %v9827_v58 = vld [vmem:[#allocation2 + $0xa0] sm:$0xf] }
 0x133   : >> { %v3021_v51 = vor.u32 %v3020_v54, %v3016_v63 }
 0x135   : >> { %v3026_v62 = vsel %vm1172_vm9, %v3021_v51, %v3025_v43  ;;  %v2116_v51 = vsel %vm1494_vm11, %v11510_v53, %v1976_v28  ;;  %v9836_v43 = vld [vmem:[#allocation2 + $0xa4] ss:$0 sps:$4 sm:$0x11]  }
 0x136   : >> { %2385 = vmatmul.mubr.bf16.gmra.mrb[40].mxu0 %v2110_v59  ;;  %3117 = vrot.lane.b32.xlu1 %v3026_v62, %s8732_s15  ;;  %v2737_v59 = vld [vmem:[#allocation2 + $0x9c] sm:$0xf]  ;;  %v3047_v62 = vshll.u32 %v9836_v43, 16 }
 0x137   : >> { %7356 = vmatprep.mubr.msk.bf16.mxu0 %vm1494_vm11, %v9521_v4  ;;  %v3030_v4 = vshll.u32 %v9815_v34, 16  ;;  %v9831_v54 = vcombine.low %v2737_v59, %v9827_v58  ;;  %v9852_v59 = vld [vmem:[#allocation2 + $0xb0] ss:$0 sps:$4 sm:$0x11]  }
 0x139   : >> { %v3032_v39 = vrot.slane %v3030_v4, 1  ;;  %v3040_v0 = vshrl.u32 %v9831_v54, 16  ;;  %v1978_v4 = vpop.permute.xlu1 %1977 }
 0x13b   : >> { %v3033_v13 = vor.u32 %v3032_v39, %v3028_v18  ;;  %v2739_v18 = vld [vmem:[#allocation2 + $0xa8] sm:$0xf]  ;;  %v9843_v39 = vld [vmem:[#allocation2 + $0xac] sm:$0xf] }
 0x13d   : >> { %v3038_v63 = vsel %vm1172_vm9, %v3033_v13, %v3037_v17  ;;  %v9847_v13 = vcombine.low %v2739_v18, %v9843_v39  ;;  %v11511_v17 = vld [vmem:[#allocation17_spill] sm:$0xff]  ;;  %v11513_v18 = vld [vmem:[#allocation19_spill] sm:$0xff] }
 0x13e   : >> { %2393 = vmatmul.mubr.bf16.gmra.mrb[44].mxu0 %v2113_v11  ;;  %3119 = vrot.lane.b32.xlu0 %v3038_v63, %s8732_s15  ;;  %v3049_v11 = vrot.slane %v3047_v62, 1  ;;  %v2119_v28 = vsel %vm1494_vm11, %v11511_v17, %v1978_v4  ;;  %v2741_v62 = vld [vmem:[#allocation2 + $0xb4] sm:$0xf]  ;;  %v9868_v17 = vld [vmem:[#allocation2 + $0xbc] ss:$0 sps:$4 sm:$0x11]  }
 0x13f   : >> { %7357 = vmatprep.mubr.msk.bf16.mxu0 %vm1494_vm11, %v9529_v14  ;;  %v3042_v14 = vshll.u32 %v9831_v54, 16  ;;  %v3052_v63 = vshrl.u32 %v9847_v13, 16 }
 0x141   : >> { %v3044_v56 = vrot.slane %v3042_v14, 1 }
 0x143   : >> { %v3045_v61 = vor.u32 %v3044_v56, %v3040_v0  ;;  %v1980_v56 = vpop.permute.xlu0 %1979 }
 0x145   : >> { %v3050_v23 = vsel %vm1172_vm9, %v3045_v61, %v3049_v11  ;;  %v9859_v61 = vld [vmem:[#allocation2 + $0xb8] sm:$0xf] }
 0x146   : >> { %2401 = vmatmul.mubr.bf16.gmra.mrb[48].mxu0 %v2116_v51  ;;  %3121 = vrot.lane.b32.xlu1 %v3050_v23, %s8732_s15  ;;  %v3059_v51 = vshll.u32 %v9852_v59, 16  ;;  %v9863_v4 = vcombine.low %v2741_v62, %v9859_v61  ;;  %v2122_v23 = vsel %vm1494_vm11, %v11513_v18, %v1980_v56  ;;  %v9875_v62 = vld [vmem:[#allocation2 + $0xc4] sm:$0xf] }
 0x147   : >> { %7358 = vmatprep.mubr.msk.bf16.mxu0 %vm1494_vm11, %v9557_v33  ;;  %v3054_v33 = vshll.u32 %v9847_v13, 16  ;;  %v11515_v18 = vld [vmem:[#allocation21_spill] sm:$0xff] }
 0x148   : >> { %v3061_v0 = vrot.slane %v3059_v51, 1  ;;  %11512 = vst [vmem:[#allocation14_spill] sm:$0xff] %v9863_v4 }
 0x149   : >> { %v3056_v53 = vrot.slane %v3054_v33, 1 }
 0x14b   : >> { %v3057_v14 = vor.u32 %v3056_v53, %v3052_v63  ;;  %v3071_v63 = vshll.u32 %v9868_v17, 16 }
 0x14d   : >> { %v3062_v11 = vsel %vm1172_vm9, %v3057_v14, %v3061_v0  ;;  %v3073_v51 = vrot.slane %v3071_v63, 1  ;;  %v1982_v14 = vpop.permute.xlu1 %1981  ;;  %v2743_v0 = vld [vmem:[#allocation2 + $0xc0] sm:$0xf] }
 0x14e   : >> { %2409 = vmatmul.mubr.bf16.gmra.mrb[52].mxu0 %v2119_v28  ;;  %3123 = vrot.lane.b32.xlu0 %v3062_v11, %s8732_s15  ;;  %v3064_v28 = vshrl.u32 %v9863_v4, 16  ;;  %v9879_v11 = vcombine.low %v2743_v0, %v9875_v62  ;;  %v1366_v0 = vpop.permute.xlu0 %1365 }
 0x14f   : >> { %7359 = vmatprep.mubr.msk.bf16.mxu0 %vm1494_vm11, %v9568_v24  ;;  %v3066_v24 = vshll.u32 %v9863_v4, 16  ;;  %v9891_v4 = vld [vmem:[#allocation2 + $0xd0] sm:$0xf] }
 0x150   : >> { %11514 = vst [vmem:[#allocation15_spill] sm:$0xff] %v9879_v11 }
 0x151   : >> { %v3068_v33 = vrot.slane %v3066_v24, 1  ;;  %v2125_v24 = vsel %vm1494_vm11, %v11515_v18, %v1982_v14 }
 0x153   : >> { %v3069_v53 = vor.u32 %v3068_v33, %v3064_v28  ;;  %v3076_v28 = vshrl.u32 %v9879_v11, 16 }
 0x155   : >> { %v3074_v56 = vsel %vm1172_vm9, %v3069_v53, %v3073_v51 }
 0x156   : >> { %2417 = vmatmul.mubr.bf16.gmra.mrb[56].mxu0 %v2122_v23  ;;  %3125 = vrot.lane.b32.xlu1 %v3074_v56, %s8732_s15  ;;  %v9884_v23 = vld [vmem:[#allocation2 + $0xc8] ss:$0 sps:$4 sm:$0x11]   ;;  %v2745_v56 = vld [vmem:[#allocation2 + $0xcc] sm:$0xf] }
 0x157   : >> { %7360 = vmatprep.mubr.msk.bf16.mxu0 %vm1494_vm11, %v9590_v44  ;;  %v3078_v44 = vshll.u32 %v9879_v11, 16  ;;  %v3083_v63 = vshll.u32 %v9884_v23, 16  ;;  %v9895_v18 = vcombine.low %v2745_v56, %v9891_v4 }
 0x159   : >> { %v3080_v33 = vrot.slane %v3078_v44, 1  ;;  %v3085_v51 = vrot.slane %v3083_v63, 1  ;;  %v11516_v44 = vld [vmem:[#allocation18_spill] sm:$0xff] }
 0x15a   : >> { %v1496_v11 = vsel %vm1494_vm11, %v11516_v44, %v1366_v0 }
 0x15b   : >> { %v3081_v53 = vor.u32 %v3080_v33, %v3076_v28  ;;  %v3090_v28 = vshll.u32 %v9895_v18, 16  ;;  %v3088_v33 = vshrl.u32 %v9895_v18, 16 }
 0x15d   : >> { %v3086_v14 = vsel %vm1172_vm9, %v3081_v53, %v3085_v51  ;;  %v3092_v63 = vrot.slane %v3090_v28, 1  ;;  %v8323_v51 = vld [vmem:[%s11390_s1 + $0xc8] sm:$0xff]   ;;  %v11517_v28 = vld [vmem:[#allocation20_spill] sm:$0xff] }
 0x15e   : >> { %2425 = vmatmul.mubr.bf16.gmra.mrb[60].mxu0 %v2125_v24  ;;  %3127 = vrot.lane.b32.xlu0 %v3086_v14, %s8732_s15  ;;  %v9903_v24 = vld [vmem:[#allocation2 + $0xd4] ss:$0 sps:$4 sm:$0x11]   ;;  %v1368_v14 = vpop.permute.xlu1 %1367 }
 0x15f   : >> { %7373 = vmatprep.mubr.msk.bf16.mxu0 %vm1494_vm11, %v9613_v3  ;;  %v8319_v3 = vld [vmem:[%s11390_s1 + $0xc0] sm:$0xff]   ;;  %v3095_v53 = vshll.u32 %v9903_v24, 16  ;;  %v3093_v0 = vor.u32 %v3092_v63, %v3088_v33  ;;  %v1370_v33 = vpop.permute.xlu0 %1369  ;;  %v11518_v63 = vld [vmem:[#allocation22_spill] sm:$0xff] }
 0x161   : >> { %v3097_v56 = vrot.slane %v3095_v53, 1  ;;  %v1502_v53 = vsel %vm1494_vm11, %v11518_v63, %v1370_v33  ;;  %v8359_v33 = vld [vmem:[%s11390_s1 + $0x100] sm:$0xff]   ;;  %v8580_v63 = vld [vmem:[#allocation2 + $0x4c] sm:$0xf] }
 0x163   : >> { %v3098_v44 = vsel %vm1172_vm9, %v3093_v0, %v3097_v56  ;;  %v1372_v0 = vpop.permute.xlu1 %1371  ;;  %v11519_v56 = vld [vmem:[#allocation23_spill] sm:$0xff] }
 0x164   : >> { %3129 = vrot.lane.b32.xlu1 %v3098_v44, %s8732_s15  ;;  %v8349_v44 = vld [vmem:[%s11390_s1 + $0xf0] sm:$0xff]  }
 0x166   : >> { %2586 = vmatmul.mubr.bf16.vlgmr.msra.gmra.mrb[0].mxu0 %v1496_v11  ;;  %v1499_v11 = vsel %vm1494_vm11, %v11517_v28, %v1368_v14  ;;  %v1505_v14 = vsel %vm1494_vm11, %v11519_v56, %v1372_v0  ;;  %v1374_v28 = vpop.permute.xlu0 %1373  ;;  %v8581_v0 = vld [vmem:[#allocation2 + $0x50] ss:$0 sps:$4 sm:$0x11]  }
 0x167   : >> { %3421 = vmatpush1.bf16.msra.mxu0 %v8319_v3  ;;  %7374 = vmatprep.mubr.msk.bf16.mxu0 %vm1494_vm11, %v9627_v35  ;;  %v8329_v35 = vld [vmem:[%s11390_s1 + $0xd0] sm:$0xff]   ;;  %v8334_v3 = vld [vmem:[%s11390_s1 + $0xd8] sm:$0xff]   ;;  %v1465_v56 = vrot.slane %v8581_v0, 1 }
 0x168   : >> { %3422 = vmatprep.subr.bf16.mxu0 %v11504_v2 }
 0x16b   : >> { %3423 = vmatpush1.bf16.msra.mxu0 %v8323_v51  ;;  %v8338_v51 = vld [vmem:[%s11390_s1 + $0xe0] sm:$0xff]  }
 0x16c   : >> { %3424 = vmatprep.subr.bf16.mxu0 %v11504_v2 }
 0x16e   : >> { %2594 = vmatmul.mubr.bf16.gmra.mrb[4].mxu0 %v1499_v11  ;;  %v1034_v11 = vld [vmem:[#allocation2 + $0x48] sm:$0xe] }
 0x16f   : >> { %7375 = vmatprep.mubr.msk.bf16.mxu0 %vm1494_vm11, %v9635_v25  ;;  %3425 = vmatpush1.bf16.msra.mxu0 %v8329_v35  ;;  %v8344_v25 = vld [vmem:[%s11390_s1 + $0xe8] sm:$0xff]   ;;  %v11520_v35 = vld [vmem:[#allocation24_spill] sm:$0xff] }
 0x170   : >> { %3426 = vmatprep.subr.bf16.mxu0 %v11504_v2 }
 0x173   : >> { %3427 = vmatpush1.bf16.msra.mxu0 %v8334_v3  ;;  %v1508_v3 = vsel %vm1494_vm11, %v11520_v35, %v1374_v28 }
 0x174   : >> { %3428 = vmatprep.subr.bf16.mxu0 %v11504_v2 }
 0x176   : >> { %2602 = vmatmul.mubr.bf16.gmra.mrb[8].mxu0 %v1502_v53  ;;  %v7251_v53 = vcombine.low %v1034_v11, %v8580_v63  ;;  %v8582_v11 = vld [vmem:[#allocation2 + $0x58] sm:$0xf] }
 0x177   : >> { %7376 = vmatprep.mubr.msk.bf16.mxu0 %vm1494_vm11, %v9663_v8  ;;  %3429 = vmatpush1.bf16.msra.mxu0 %v8338_v51  ;;  %v8353_v8 = vld [vmem:[%s11390_s1 + $0xf8] sm:$0xff]   ;;  %v1376_v51 = vpop.permute.xlu1 %1375 }
 0x178   : >> { %3430 = vmatprep.subr.bf16.mxu0 %v11504_v2 }
 0x17b   : >> { %3431 = vmatpush1.bf16.msra.mxu0 %v8344_v25  ;;  %v1464_v25 = vrot.slane %v7251_v53, 1  ;;  %v8583_v53 = vld [vmem:[#allocation2 + $0x5c] ss:$0 sps:$4 sm:$0x11]  }
 0x17c   : >> { %3432 = vmatprep.subr.bf16.mxu0 %v11504_v2 }
 0x17d   : >> { %v1466_v28 = vsel %vm1445_vm10, %v1464_v25, %v1465_v56  ;;  %v8584_v56 = vld [vmem:[#allocation2 + $0x64] sm:$0xf] }
 0x17e   : >> { %2610 = vmatmul.mubr.bf16.gmra.mrb[12].mxu0 %v1505_v14  ;;  %v1035_v14 = vld [vmem:[#allocation2 + $0x54] sm:$0xe] }
 0x17f   : >> { %7377 = vmatprep.mubr.msk.bf16.mxu0 %vm1494_vm11, %v9685_v52  ;;  %3433 = vmatpush1.bf16.msra.mxu0 %v8349_v44  ;;  %v8364_v52 = vld [vmem:[%s11390_s1 + $0x108] sm:$0xff]   ;;  %v11521_v44 = vld [vmem:[#allocation25_spill] sm:$0xff]  ;;  %v7252_v35 = vcombine.low %v1035_v14, %v8582_v11 }
 0x180   : >> { %3434 = vmatprep.subr.bf16.mxu0 %v11504_v2  ;;  %v1037_v11 = vld [vmem:[#allocation2 + $0x6c] sm:$0xe] }
 0x181   : >> { %v1467_v63 = vrot.slane %v7252_v35, 1 }
 0x183   : >> { %3435 = vmatpush1.bf16.msra.mxu0 %v8353_v8  ;;  %v1511_v8 = vsel %vm1494_vm11, %v11521_v44, %v1376_v51  ;;  %v1036_v51 = vld [vmem:[#allocation2 + $0x60] sm:$0xe]  ;;  %v1380_v44 = vpop.permute.xlu1 %1379 }
 0x184   : >> { %3436 = vmatprep.subr.bf16.mxu0 %v11504_v2  ;;  %v7253_v14 = vcombine.low %v1036_v51, %v8584_v56  ;;  %v1517_v35 = vsel %vm1494_vm11, %v9482_v47, %v1380_v44  ;;  %v1038_v51 = vld [vmem:[#allocation2 + $0x78] sm:$0xe]  ;;  %v8589_v44 = vld [vmem:[#allocation2 + $0x80] ss:$0 sps:$4 sm:$0x11]  }
 0x186   : >> { %2618 = vmatmul.mubr.bf16.gmra.mrb[16].mxu0 %v1508_v3  ;;  %v8374_v3 = vld [vmem:[%s11390_s1 + $0x118] sm:$0xff]  }
 0x187   : >> { %7378 = vmatprep.mubr.msk.bf16.mxu0 %vm1494_vm11, %v9714_v42  ;;  %3437 = vmatpush1.bf16.msra.mxu0 %v8359_v33  ;;  %v8368_v42 = vld [vmem:[%s11390_s1 + $0x110] sm:$0xff]   ;;  %v1378_v33 = vpop.permute.xlu0 %1377  ;;  %v1384_v47 = vpop.permute.xlu1 %1383 }
 0x188   : >> { %3438 = vmatprep.subr.bf16.mxu0 %v11504_v2  ;;  %v1514_v25 = vsel %vm1494_vm11, %v9470_v36, %v1378_v33 }
 0x18b   : >> { %3439 = vmatpush1.bf16.msra.mxu0 %v8364_v52  ;;  %v1468_v52 = vrot.slane %v8583_v53, 1 }
 0x18c   : >> { %3440 = vmatprep.subr.bf16.mxu0 %v11504_v2 }
 0x18d   : >> { %v1469_v0 = vsel %vm1445_vm10, %v1467_v63, %v1468_v52  ;;  %v8587_v63 = vld [vmem:[#allocation2 + $0x74] ss:$0 sps:$4 sm:$0x11]  }
 0x18e   : >> { %2626 = vmatmul.mubr.bf16.gmra.mrb[20].mxu0 %v1511_v8  ;;  %v1470_v8 = vrot.slane %v7253_v14, 1  ;;  %v1474_v52 = vrot.slane %v8587_v63, 1  ;;  %v8588_v14 = vld [vmem:[#allocation2 + $0x7c] sm:$0xf] }
 0x18f   : >> { %7379 = vmatprep.mubr.msk.bf16.mxu0 %vm1494_vm11, %v1466_v28  ;;  %3441 = vmatpush1.bf16.msra.mxu0 %v8368_v42  ;;  %v8585_v42 = vld [vmem:[#allocation2 + $0x68] ss:$0 sps:$4 sm:$0x11]   ;;  %v8591_v63 = vld [vmem:[#allocation2 + $0x8c] ss:$0 sps:$4 sm:$0x11]  }
 0x190   : >> { %3442 = vmatprep.subr.bf16.mxu0 %v11504_v2  ;;  %v1471_v28 = vrot.slane %v8585_v42, 1  ;;  %v8586_v2 = vld [vmem:[#allocation2 + $0x70] sm:$0xf]  ;;  %v7255_v42 = vcombine.low %v1038_v51, %v8588_v14 }
 0x191   : >> { %v7254_v36 = vcombine.low %v1037_v11, %v8586_v2  ;;  %v1523_v11 = vsel %vm1494_vm11, %v9502_v1, %v1384_v47  ;;  %v1040_v51 = vld [vmem:[#allocation2 + $0x90] sm:$0xe]  ;;  %v1388_v1 = vpop.permute.xlu1 %1387  ;;  %v8593_v47 = vld [vmem:[#allocation2 + $0x98] ss:$0 sps:$4 sm:$0x11]  }
 0x192   : >> { %v1472_v53 = vsel %vm1445_vm10, %v1470_v8, %v1471_v28  ;;  %v1476_v2 = vrot.slane %v7255_v42, 1  ;;  %v1477_v8 = vrot.slane %v8589_v44, 1  ;;  %v1039_v28 = vld [vmem:[#allocation2 + $0x84] sm:$0xe]  ;;  %v1041_v44 = vld [vmem:[#allocation2 + $0x9c] sm:$0xe] }
 0x193   : >> { %3443 = vmatpush1.bf16.msra.mxu0 %v8374_v3  ;;  %v1382_v3 = vpop.permute.xlu0 %1381  ;;  %v1473_v33 = vrot.slane %v7254_v36, 1 }
 0x195   : >> { %v1475_v56 = vsel %vm1445_vm10, %v1473_v33, %v1474_v52  ;;  %v1480_v52 = vrot.slane %v8591_v63, 1  ;;  %v11523_v63 = vld [vmem:[#allocation27_spill] sm:$0xff] }
 0x196   : >> { %2634 = vmatmul.mubr.bf16.gmra.mrb[24].mxu0 %v1514_v25  ;;  %v11522_v25 = vld [vmem:[#allocation26_spill] sm:$0xff] }
 0x197   : >> { %7380 = vmatprep.mubr.msk.bf16.mxu0 %vm1494_vm11, %v1469_v0  ;;  %v1520_v0 = vsel %vm1494_vm11, %v11522_v25, %v1382_v3  ;;  %v1386_v3 = vpop.permute.xlu0 %1385 }
 0x198   : >> { %v1526_v25 = vsel %vm1494_vm11, %v9512_v41, %v1386_v3 }
 0x19b   : >> { %v1390_v41 = vpop.permute.xlu0 %1389 }
 0x19e   : >> { %2642 = vmatmul.mubr.bf16.gmra.mrb[28].mxu0 %v1517_v35  ;;  %v1478_v35 = vsel %vm1445_vm10, %v1476_v2, %v1477_v8  ;;  %v1483_v2 = vrot.slane %v8593_v47, 1  ;;  %v1529_v8 = vsel %vm1494_vm11, %v9525_v60, %v1388_v1  ;;  %v1392_v60 = vpop.permute.xlu1 %1391  ;;  %v11524_v47 = vld [vmem:[#allocation28_spill] sm:$0xff] }
 0x19f   : >> { %7381 = vmatprep.mubr.msk.bf16.mxu0 %vm1494_vm11, %v1472_v53  ;;  %v8590_v53 = vld [vmem:[#allocation2 + $0x88] sm:$0xf] }
 0x1a0   : >> { %v7256_v36 = vcombine.low %v1039_v28, %v8590_v53 }
 0x1a2   : >> { %v1479_v33 = vrot.slane %v7256_v36, 1  ;;  %v8595_v36 = vld [vmem:[#allocation2 + $0xa4] ss:$0 sps:$4 sm:$0x11]  }
 0x1a3   : >> { %v1486_v3 = vrot.slane %v8595_v36, 1  ;;  %v2763_v36 = vld [vmem:[#allocation2 + $0x18] sm:$0xe] }
 0x1a6   : >> { %2650 = vmatmul.mubr.bf16.gmra.mrb[32].mxu0 %v1520_v0  ;;  %v1481_v0 = vsel %vm1445_vm10, %v1479_v33, %v1480_v52  ;;  %v1042_v33 = vld [vmem:[#allocation2 + $0xa8] sm:$0xe]  ;;  %v1532_v52 = vsel %vm1494_vm11, %v11523_v63, %v1390_v41  ;;  %v8599_v41 = vld [vmem:[#allocation2 + $0xbc] ss:$0 sps:$4 sm:$0x11]  }
 0x1a7   : >> { %7382 = vmatprep.mubr.msk.bf16.mxu0 %vm1494_vm11, %v1475_v56  ;;  %v8592_v56 = vld [vmem:[#allocation2 + $0x94] sm:$0xf]  ;;  %v8600_v63 = vld [vmem:[#allocation2 + $0x1c] sm:$0xf] }
 0x1a8   : >> { %v7257_v14 = vcombine.low %v1040_v51, %v8592_v56 }
 0x1aa   : >> { %v1482_v42 = vrot.slane %v7257_v14, 1  ;;  %v8597_v14 = vld [vmem:[#allocation2 + $0xb0] ss:$0 sps:$4 sm:$0x11]  }
 0x1ab   : >> { %v1489_v1 = vrot.slane %v8597_v14, 1 }
 0x1ac   : >> { %v1484_v28 = vsel %vm1445_vm10, %v1482_v42, %v1483_v2  ;;  %v1043_v42 = vld [vmem:[#allocation2 + $0xb4] sm:$0xe]  ;;  %v1535_v2 = vsel %vm1494_vm11, %v11524_v47, %v1392_v60 }
 0x1ae   : >> { %2658 = vmatmul.mubr.bf16.gmra.mrb[36].mxu0 %v1523_v11  ;;  %v8594_v11 = vld [vmem:[#allocation2 + $0xa0] sm:$0xf] }
 0x1af   : >> { %7383 = vmatprep.mubr.msk.bf16.mxu0 %vm1494_vm11, %v1478_v35  ;;  %v7258_v35 = vcombine.low %v1041_v44, %v8594_v11  ;;  %v1394_v11 = vpop.permute.xlu0 %1393 }
 0x1b1   : >> { %v1485_v53 = vrot.slane %v7258_v35, 1 }
 0x1b3   : >> { %v1487_v51 = vsel %vm1445_vm10, %v1485_v53, %v1486_v3  ;;  %v1492_v53 = vrot.slane %v8599_v41, 1  ;;  %v1538_v3 = vsel %vm1494_vm11, %v9574_v38, %v1394_v11  ;;  %v3100_v38 = vpop.permute.xlu0 %3099  ;;  %v8604_v41 = vld [vmem:[#allocation2 + $0x34] sm:$0xf] }
 0x1b4   : >> { %v3228_v11 = vsel %vm1494_vm11, %v9615_v57, %v3100_v38  ;;  %v2768_v38 = vld [vmem:[#allocation2 + $0x54] sm:$0xe] }
 0x1b6   : >> { %2666 = vmatmul.mubr.bf16.gmra.mrb[40].mxu0 %v1526_v25  ;;  %v8596_v25 = vld [vmem:[#allocation2 + $0xac] sm:$0xf] }
 0x1b7   : >> { %7384 = vmatprep.mubr.msk.bf16.mxu0 %vm1494_vm11, %v1481_v0  ;;  %v7259_v0 = vcombine.low %v1042_v33, %v8596_v25  ;;  %v3104_v57 = vpop.permute.xlu0 %3103 }
 0x1b9   : >> { %v1488_v56 = vrot.slane %v7259_v0, 1  ;;  %v8601_v0 = vld [vmem:[#allocation2 + $0x20] ss:$0 sps:$4 sm:$0x11]  }
 0x1ba   : >> { %v3180_v60 = vrot.slane %v8601_v0, 1 }
 0x1bb   : >> { %v1490_v44 = vsel %vm1445_vm10, %v1488_v56, %v1489_v1  ;;  %v2764_v56 = vld [vmem:[#allocation2 + $0x24] sm:$0xe] }
 0x1be   : >> { %2674 = vmatmul.mubr.bf16.gmra.mrb[44].mxu0 %v1529_v8  ;;  %v8598_v8 = vld [vmem:[#allocation2 + $0xb8] sm:$0xf] }
 0x1bf   : >> { %7385 = vmatprep.mubr.msk.bf16.mxu0 %vm1494_vm11, %v1484_v28  ;;  %v7260_v28 = vcombine.low %v1043_v42, %v8598_v8  ;;  %v8602_v42 = vld [vmem:[#allocation2 + $0x28] sm:$0xf] }
 0x1c0   : >> { %v7422_v47 = vcombine.low %v2764_v56, %v8602_v42  ;;  %v2767_v56 = vld [vmem:[#allocation2 + $0x48] sm:$0xe] }
 0x1c1   : >> { %v1491_v35 = vrot.slane %v7260_v28, 1  ;;  %v2765_v28 = vld [vmem:[#allocation2 + $0x30] sm:$0xe]  ;;  %v7425_v42 = vcombine.low %v2767_v56, %v9701_v29 }
 0x1c2   : >> { %v2773_v56 = vld [vmem:[#allocation2 + $0x90] sm:$0xe] }
 0x1c3   : >> { %v1493_v33 = vsel %vm1445_vm10, %v1491_v35, %v1492_v53  ;;  %v7423_v53 = vcombine.low %v2765_v28, %v8604_v41  ;;  %v2769_v28 = vld [vmem:[#allocation2 + $0x60] sm:$0xe]  ;;  %v3198_v41 = vrot.slane %v9756_v31, 1 }
 0x1c6   : >> { %2682 = vmatmul.mubr.bf16.gmra.mrb[48].mxu0 %v1532_v52  ;;  %v7421_v52 = vcombine.low %v2763_v36, %v8600_v63  ;;  %v3185_v36 = vrot.slane %v7423_v53, 1  ;;  %v2766_v63 = vld [vmem:[#allocation2 + $0x3c] sm:$0xe]  ;;  %v2770_v53 = vld [vmem:[#allocation2 + $0x6c] sm:$0xe] }
 0x1c7   : >> { %7386 = vmatprep.mubr.msk.bf16.mxu0 %vm1494_vm11, %v1487_v51  ;;  %v1396_v51 = vpop.permute.xlu1 %1395 }
 0x1c8   : >> { %v3179_v25 = vrot.slane %v7421_v52, 1  ;;  %v1541_v14 = vsel %vm1494_vm11, %v9593_v55, %v1396_v51 }
 0x1ca   : >> { %v3181_v1 = vsel %vm1445_vm10, %v3179_v25, %v3180_v60  ;;  %v7424_v25 = vcombine.low %v2766_v63, %v9672_v26  ;;  %v3189_v60 = vrot.slane %v9687_v5, 1  ;;  %v3191_v26 = vrot.slane %v7425_v42, 1 }
 0x1cb   : >> { %v3102_v55 = vpop.permute.xlu1 %3101  ;;  %v3210_v42 = vrot.slane %v9820_v45, 1 }
 0x1cc   : >> { %v3231_v52 = vsel %vm1494_vm11, %v9629_v21, %v3102_v55  ;;  %v3188_v0 = vrot.slane %v7424_v25, 1  ;;  %v2772_v25 = vld [vmem:[#allocation2 + $0x84] sm:$0xe] }
 0x1ce   : >> { %2690 = vmatmul.mubr.bf16.gmra.mrb[52].mxu0 %v1535_v2  ;;  %v3182_v2 = vrot.slane %v7422_v47, 1  ;;  %v3192_v47 = vrot.slane %v9716_v16, 1 }
 0x1cf   : >> { %7387 = vmatprep.mubr.msk.bf16.mxu0 %vm1494_vm11, %v1490_v44  ;;  %v8603_v44 = vld [vmem:[#allocation2 + $0x2c] ss:$0 sps:$4 sm:$0x11]   ;;  %v3106_v21 = vpop.permute.xlu1 %3105 }
 0x1d0   : >> { %v3183_v8 = vrot.slane %v8603_v44, 1  ;;  %v3193_v5 = vsel %vm1445_vm10, %v3191_v26, %v3192_v47  ;;  %v7426_v44 = vcombine.low %v2768_v38, %v9730_v6  ;;  %v3213_v38 = vrot.slane %v9836_v43, 1 }
 0x1d2   : >> { %v3184_v35 = vsel %vm1445_vm10, %v3182_v2, %v3183_v8  ;;  %v3237_v2 = vsel %vm1494_vm11, %v9678_v20, %v3106_v21  ;;  %v3194_v29 = vrot.slane %v7426_v44, 1  ;;  %v3195_v8 = vrot.slane %v9739_v27, 1  ;;  %v2774_v21 = vld [vmem:[#allocation2 + $0x9c] sm:$0xe] }
 0x1d3   : >> { %v3110_v20 = vpop.permute.xlu1 %3109  ;;  %v7432_v47 = vcombine.low %v2774_v21, %v9827_v58 }
 0x1d4   : >> { %v3196_v16 = vsel %vm1445_vm10, %v3194_v29, %v3195_v8  ;;  %v3243_v55 = vsel %vm1494_vm11, %v9734_v40, %v3110_v20  ;;  %v2776_v29 = vld [vmem:[#allocation2 + $0xb4] sm:$0xe] }
 0x1d6   : >> { %2698 = vmatmul.mubr.bf16.gmra.mrb[56].mxu0 %v1538_v3  ;;  %v8605_v3 = vld [vmem:[#allocation2 + $0x38] ss:$0 sps:$4 sm:$0x11]  }
 0x1d7   : >> { %7388 = vmatprep.mubr.msk.bf16.mxu0 %vm1494_vm11, %v1493_v33  ;;  %v3186_v33 = vrot.slane %v8605_v3, 1  ;;  %v3201_v3 = vrot.slane %v9772_v32, 1  ;;  %v3114_v40 = vpop.permute.xlu1 %3113 }
 0x1d9   : >> { %v3187_v51 = vsel %vm1445_vm10, %v3185_v36, %v3186_v33  ;;  %v7428_v36 = vcombine.low %v2770_v53, %v9763_v48  ;;  %v2771_v33 = vld [vmem:[#allocation2 + $0x78] sm:$0xe]  ;;  %v11525_v53 = vld [vmem:[#allocation14_spill] sm:$0xff] }
 0x1de   : >> { %2706 = vmatmul.mubr.bf16.gmra.mrb[60].mxu0 %v1541_v14  ;;  %v3234_v14 = vsel %vm1494_vm11, %v9642_v7, %v3104_v57  ;;  %v3108_v7 = vpop.permute.xlu0 %3107  ;;  %v3249_v57 = vsel %vm1494_vm11, %v9767_v19, %v3114_v40  ;;  %v3118_v19 = vpop.permute.xlu1 %3117  ;;  %v8424_v40 = vld [vmem:[%s11393_s4 + $0x88] sm:$0xff]  }
 0x1df   : >> { %7473 = vmatprep.mubr.msk.bf16.mxu0 %vm1494_vm11, %v3181_v1  ;;  %v3190_v1 = vsel %vm1445_vm10, %v3188_v0, %v3189_v60  ;;  %v7430_v0 = vcombine.low %v2772_v25, %v9795_v15  ;;  %v3207_v60 = vrot.slane %v9804_v12, 1  ;;  %v3255_v26 = vsel %vm1494_vm11, %v9799_v49, %v3118_v19 }
 0x1e2   : >> { %v3122_v49 = vpop.permute.xlu1 %3121 }
 0x1e3   : >> { %v3261_v8 = vsel %vm1494_vm11, %v9831_v54, %v3122_v49  ;;  %v4137_v49 = vld [vmem:[#allocation3 + $0xc] sm:$0xf] }
 0x1e6   : >> { %3453 = vmatmul.mubr.bf16.vlgmr.msra.gmra.mrb[0].mxu0 %v3228_v11  ;;  %v3240_v11 = vsel %vm1494_vm11, %v9708_v46, %v3108_v7  ;;  %v3112_v46 = vpop.permute.xlu0 %3111  ;;  %v3216_v7 = vrot.slane %v9852_v59, 1  ;;  %v3126_v54 = vpop.permute.xlu1 %3125 }
 0x1e7   : >> { %7474 = vmatprep.mubr.msk.bf16.mxu0 %vm1494_vm11, %v3184_v35  ;;  %v7427_v35 = vcombine.low %v2769_v28, %v9747_v9  ;;  %v3200_v9 = vrot.slane %v7428_v36, 1  ;;  %v3246_v63 = vsel %vm1494_vm11, %v9751_v37, %v3112_v46  ;;  %v7434_v28 = vcombine.low %v2776_v29, %v9859_v61  ;;  %v11526_v46 = vld [vmem:[#allocation15_spill] sm:$0xff] }
 0x1e8   : >> { %v3225_v36 = vrot.slane %v9903_v24, 1  ;;  %v8416_v24 = vld [vmem:[%s11393_s4 + $0x68] sm:$0xff]  }
 0x1e9   : >> { %v3197_v6 = vrot.slane %v7427_v35, 1  ;;  %v3202_v31 = vsel %vm1445_vm10, %v3200_v9, %v3201_v3 }
 0x1ea   : >> { %v3116_v37 = vpop.permute.xlu0 %3115  ;;  %v3130_v3 = vpop.permute.xlu1 %3129 }
 0x1eb   : >> { %v3199_v27 = vsel %vm1445_vm10, %v3197_v6, %v3198_v41  ;;  %v3222_v6 = vrot.slane %v9884_v23, 1  ;;  %v2778_v41 = vld [vmem:[#allocation2 + $0xcc] sm:$0xe] }
 0x1ee   : >> { %3461 = vmatmul.mubr.bf16.gmra.mrb[4].mxu0 %v3231_v52  ;;  %v7429_v52 = vcombine.low %v2771_v33, %v9779_v22  ;;  %v3206_v22 = vrot.slane %v7430_v0, 1  ;;  %v3273_v33 = vsel %vm1494_vm11, %v9895_v18, %v3130_v3  ;;  %v8420_v18 = vld [vmem:[%s11393_s4 + $0x78] sm:$0xff]   ;;  %v8427_v0 = vld [vmem:[%s11393_s4 + $0x90] sm:$0xff]  }
 0x1ef   : >> { %7475 = vmatprep.mubr.msk.bf16.mxu0 %vm1494_vm11, %v3187_v51  ;;  %v3204_v51 = vrot.slane %v9788_v10, 1 }
 0x1f0   : >> { %v3203_v48 = vrot.slane %v7429_v52, 1  ;;  %v3208_v10 = vsel %vm1445_vm10, %v3206_v22, %v3207_v60  ;;  %v8423_v52 = vld [vmem:[%s11393_s4 + $0x80] sm:$0xff]  }
 0x1f2   : >> { %v3205_v32 = vsel %vm1445_vm10, %v3203_v48, %v3204_v51  ;;  %v11528_v51 = vld [vmem:[#allocation7_spill] sm:$0xff] }
 0x1f6   : >> { %3469 = vmatmul.mubr.bf16.gmra.mrb[8].mxu0 %v3234_v14  ;;  %v3252_v14 = vsel %vm1494_vm11, %v9783_v30, %v3116_v37  ;;  %v3120_v30 = vpop.permute.xlu0 %3119  ;;  %v11529_v37 = vld [vmem:[#allocation8_spill] sm:$0xff] }
 0x1f7   : >> { %7476 = vmatprep.mubr.msk.bf16.mxu0 %vm1494_vm11, %v3190_v1  ;;  %v7431_v1 = vcombine.low %v2773_v56, %v9811_v50  ;;  %v3212_v50 = vrot.slane %v7432_v47, 1 }
 0x1f9   : >> { %v3209_v15 = vrot.slane %v7431_v1, 1  ;;  %v3214_v45 = vsel %vm1445_vm10, %v3212_v50, %v3213_v38  ;;  %v8428_v1 = vld [vmem:[%s11393_s4 + $0x98] sm:$0xff]   ;;  %v8431_v50 = vld [vmem:[%s11393_s4 + $0xa0] sm:$0xff]  }
 0x1fb   : >> { %v3211_v12 = vsel %vm1445_vm10, %v3209_v15, %v3210_v42 }
 0x1fe   : >> { %3477 = vmatmul.mubr.bf16.gmra.mrb[12].mxu0 %v3237_v2  ;;  %v2775_v2 = vld [vmem:[#allocation2 + $0xa8] sm:$0xe] }
 0x1ff   : >> { %7477 = vmatprep.mubr.msk.bf16.mxu0 %vm1494_vm11, %v3193_v5  ;;  %v3258_v5 = vsel %vm1494_vm11, %v9815_v34, %v3120_v30  ;;  %v7433_v44 = vcombine.low %v2775_v2, %v9843_v39  ;;  %v3124_v34 = vpop.permute.xlu0 %3123  ;;  %v3218_v39 = vrot.slane %v7434_v28, 1 }
 0x200   : >> { %v3264_v35 = vsel %vm1494_vm11, %v9847_v13, %v3124_v34 }
 0x201   : >> { %v3215_v58 = vrot.slane %v7433_v44, 1 }
 0x203   : >> { %v3217_v43 = vsel %vm1445_vm10, %v3215_v58, %v3216_v7  ;;  %v3128_v13 = vpop.permute.xlu0 %3127  ;;  %v8432_v7 = vld [vmem:[%s11393_s4 + $0xa8] sm:$0xff]  }
 0x204   : >> { %v3270_v9 = vsel %vm1494_vm11, %v11526_v46, %v3128_v13 }
 0x206   : >> { %3485 = vmatmul.mubr.bf16.gmra.mrb[16].mxu0 %v3240_v11  ;;  %v3219_v11 = vrot.slane %v9868_v17, 1 }
 0x207   : >> { %7478 = vmatprep.mubr.msk.bf16.mxu0 %vm1494_vm11, %v3196_v16  ;;  %v2777_v16 = vld [vmem:[#allocation2 + $0xc0] sm:$0xe] }
 0x208   : >> { %v3220_v59 = vsel %vm1445_vm10, %v3218_v39, %v3219_v11  ;;  %v7435_v20 = vcombine.low %v2777_v16, %v9875_v62  ;;  %v4141_v39 = vld [vmem:[#allocation3 + $0x14] sm:$0x1] }
 0x20a   : >> { %v3221_v61 = vrot.slane %v7435_v20, 1 }
 0x20c   : >> { %v3223_v17 = vsel %vm1445_vm10, %v3221_v61, %v3222_v6 }
 0x20e   : >> { %3493 = vmatmul.mubr.bf16.gmra.mrb[20].mxu0 %v3243_v55  ;;  %v3267_v55 = vsel %vm1494_vm11, %v11525_v53, %v3126_v54 }
 0x20f   : >> { %7479 = vmatprep.mubr.msk.bf16.mxu0 %vm1494_vm11, %v3199_v27  ;;  %v7436_v27 = vcombine.low %v2778_v41, %v9891_v4  ;;  %v8415_v4 = vld [vmem:[%s11393_s4 + $0x60] sm:$0xff]   ;;  %v8435_v41 = vld [vmem:[%s11393_s4 + $0xb0] sm:$0xff]  }
 0x210   : >> { %5539 = vmatpush1.bf16.msra.mxu1 %v8415_v4 }
 0x211   : >> { %v3224_v62 = vrot.slane %v7436_v27, 1 }
 0x213   : >> { %v3226_v23 = vsel %vm1445_vm10, %v3224_v62, %v3225_v36 }
 0x216   : >> { %3501 = vmatmul.mubr.bf16.gmra.mrb[24].mxu0 %v3246_v63  ;;  %v11527_v63 = vmov 0  }
 0x217   : >> { %7480 = vmatprep.mubr.msk.bf16.mxu0 %vm1494_vm11, %v3202_v31  ;;  %5540 = vmatprep.subr.bf16.mxu1 %v11527_v63  ;;  %v8419_v31 = vld [vmem:[%s11393_s4 + $0x70] sm:$0xff]  }
 0x218   : >> { %5541 = vmatpush1.bf16.msra.mxu1 %v8416_v24  ;;  %v4144_v24 = vld [vmem:[#allocation3 + $0x18] sm:$0xf] }
 0x219   : >> { %5542 = vmatprep.subr.bf16.mxu1 %v11527_v63 }
 0x21c   : >> { %5543 = vmatpush1.bf16.msra.mxu1 %v8419_v31 }
 0x21d   : >> { %5544 = vmatprep.subr.bf16.mxu1 %v11527_v63 }
 0x21e   : >> { %3509 = vmatmul.mubr.bf16.gmra.mrb[28].mxu0 %v3249_v57 }
 0x21f   : >> { %7481 = vmatprep.mubr.msk.bf16.mxu0 %vm1494_vm11, %v3205_v32 }
 0x220   : >> { %5545 = vmatpush1.bf16.msra.mxu1 %v8420_v18 }
 0x221   : >> { %5546 = vmatprep.subr.bf16.mxu1 %v11527_v63 }
 0x224   : >> { %5547 = vmatpush1.bf16.msra.mxu1 %v8423_v52  ;;  %v8436_v52 = vld [vmem:[%s11393_s4 + $0xb8] sm:$0xff]  }
 0x225   : >> { %5548 = vmatprep.subr.bf16.mxu1 %v11527_v63 }
 0x226   : >> { %3517 = vmatmul.mubr.bf16.gmra.mrb[32].mxu0 %v3252_v14 }
 0x227   : >> { %7482 = vmatprep.mubr.msk.bf16.mxu0 %vm1494_vm11, %v3208_v10 }
 0x228   : >> { %5549 = vmatpush1.bf16.msra.mxu1 %v8424_v40 }
 0x229   : >> { %5550 = vmatprep.subr.bf16.mxu1 %v11527_v63 }
 0x22c   : >> { %5551 = vmatpush1.bf16.msra.mxu1 %v8427_v0 }
 0x22d   : >> { %5552 = vmatprep.subr.bf16.mxu1 %v11527_v63 }
 0x22e   : >> { %3525 = vmatmul.mubr.bf16.gmra.mrb[36].mxu0 %v3255_v26 }
 0x22f   : >> { %7483 = vmatprep.mubr.msk.bf16.mxu0 %vm1494_vm11, %v3211_v12 }
 0x230   : >> { %5553 = vmatpush1.bf16.msra.mxu1 %v8428_v1 }
 0x231   : >> { %5554 = vmatprep.subr.bf16.mxu1 %v11527_v63 }
 0x234   : >> { %5555 = vmatpush1.bf16.msra.mxu1 %v8431_v50 }
 0x235   : >> { %5556 = vmatprep.subr.bf16.mxu1 %v11527_v63 }
 0x236   : >> { %3533 = vmatmul.mubr.bf16.gmra.mrb[40].mxu0 %v3258_v5 }
 0x237   : >> { %7484 = vmatprep.mubr.msk.bf16.mxu0 %vm1494_vm11, %v3214_v45 }
 0x238   : >> { %5557 = vmatpush1.bf16.msra.mxu1 %v8432_v7 }
 0x239   : >> { %5558 = vmatprep.subr.bf16.mxu1 %v11527_v63 }
 0x23c   : >> { %5559 = vmatpush1.bf16.msra.mxu1 %v8435_v41 }
 0x23d   : >> { %5560 = vmatprep.subr.bf16.mxu1 %v11527_v63 }
 0x23e   : >> { %3541 = vmatmul.mubr.bf16.gmra.mrb[44].mxu0 %v3261_v8 }
 0x23f   : >> { %7485 = vmatprep.mubr.msk.bf16.mxu0 %vm1494_vm11, %v3217_v43 }
 0x240   : >> { %5561 = vmatpush1.bf16.msra.mxu1 %v8436_v52 }
 0x241   : >> { %5819 = vmatprep.subr.bf16.mxu1 %v11527_v63 }
 0x246   : >> { %3549 = vmatmul.mubr.bf16.gmra.mrb[48].mxu0 %v3264_v35 }
 0x247   : >> { %7486 = vmatprep.mubr.msk.bf16.mxu0 %vm1494_vm11, %v3220_v59 }
 0x24e   : >> { %3557 = vmatmul.mubr.bf16.gmra.mrb[52].mxu0 %v3267_v55 }
 0x24f   : >> { %7487 = vmatprep.mubr.msk.bf16.mxu0 %vm1494_vm11, %v3223_v17 }
 0x256   : >> { %3565 = vmatmul.mubr.bf16.gmra.mrb[56].mxu0 %v3270_v9 }
 0x257   : >> { %7488 = vmatprep.mubr.msk.bf16.mxu0 %vm1494_vm11, %v3226_v23 }
 0x25e   : >> { %3573 = vmatmul.mubr.bf16.gmra.mrb[60].mxu0 %v3273_v33 }
 0x2b9   : >> { %v3454_v48 = vpop.f32.mrb[0].mxu0 }
 0x2ba   : >> { %v3619_v25 = vmul.f32 %v11528_v51, %v3454_v48  ;;  %v3456_v57 = vpop.f32.mrb[1].mxu0 }
 0x2bb   : >> { %v3457_v32 = vpop.f32.mrb[2].mxu0 }
 0x2bc   : >> { %v3657_v22 = vadd.f32 %v11529_v37, %v3619_v25  ;;  %v3620_v60 = vmul.f32 %v11528_v51, %v3457_v32  ;;  %v3459_v56 = vpop.f32.mrb[3].mxu0 }
 0x2be   : >> { %v3689_v14 = vmax.f32 %v3657_v22, 0.0  ;;  %v3658_v10 = vadd.f32 %v11529_v37, %v3620_v60  ;;  %v4148_v22 = vld [vmem:[#allocation3 + $0x20] sm:$0x1] }
 0x2c0   : >> { %v7810_v19 = vpack.c.bf16 %v3689_v14, %v3689_v14  ;;  %v3690_v15 = vmax.f32 %v3658_v10, 0.0 }
 0x2c1   : >> { %v3462_v42 = vpop.f32.mrb[4].mxu0 }
 0x2c2   : >> { %v3818_v21 = vshrl.u32 %v7810_v19, 16  ;;  %v7811_v26 = vpack.c.bf16 %v3690_v15, %v3690_v15  ;;  %v3621_v12 = vmul.f32 %v11528_v51, %v3462_v42  ;;  %v3464_v47 = vpop.f32.mrb[5].mxu0  ;;  %v3821_v2 = vshll.u32 %v7810_v19, 16 }
 0x2c3   : >> { %v3465_v30 = vpop.f32.mrb[6].mxu0 }
 0x2c4   : >> { %v3820_v38 = vrot.slane %v3818_v21, 7  ;;  %v3826_v5 = vshrl.u32 %v7811_v26, 16  ;;  %v3659_v45 = vadd.f32 %v11529_v37, %v3621_v12  ;;  %v3467_v44 = vpop.f32.mrb[7].mxu0  ;;  %v3622_v58 = vmul.f32 %v11528_v51, %v3465_v30 }
 0x2c5   : >> { %v3829_v43 = vshll.u32 %v7811_v26, 16 }
 0x2c6   : >> { %v3823_v29 = vor.u32 %v3821_v2, %v3820_v38  ;;  %v3828_v8 = vrot.slane %v3826_v5, 7  ;;  %v3691_v28 = vmax.f32 %v3659_v45, 0.0  ;;  %v3824_v34 = vrot.slane %v3820_v38, 4 }
 0x2c7   : >> { %v3660_v11 = vadd.f32 %v11529_v37, %v3622_v58 }
 0x2c8   : >> { %v4138_v35 = vsel %vm9036_vm7, %v3823_v29, %v4137_v49  ;;  %v3831_v59 = vor.u32 %v3829_v43, %v3828_v8  ;;  %v3833_v20 = vrot.slane %v3828_v8, 4  ;;  %v7812_v54 = vpack.c.bf16 %v3691_v28, %v3691_v28 }
 0x2c9   : >> { %4139 = vst [vmem:[#allocation3 + $0xc] sm:$0xf] %v4138_v35  ;;  %v3692_v61 = vmax.f32 %v3660_v11, 0.0  ;;  %v3470_v6 = vpop.f32.mrb[8].mxu0 }
 0x2ca   : >> { %v3832_v55 = vsel %vm9043_vm8, %v3824_v34, %v3831_v59  ;;  %v4142_v27 = vsel %vm8867_vm3, %v3833_v20, %v4141_v39  ;;  %v3835_v13 = vshrl.u32 %v7812_v54, 16  ;;  %v3472_v62 = vpop.f32.mrb[9].mxu0  ;;  %v3623_v46 = vmul.f32 %v11528_v51, %v3470_v6  ;;  %v4151_v39 = vld [vmem:[#allocation3 + $0x24] sm:$0xf]  ;;  %v4155_v6 = vld [vmem:[#allocation3 + $0x2c] sm:$0x1] }
 0x2cb   : >> { %4140 = vst.msk [vmem:[#allocation3 + $0x10] sm:$0xf] %vm284_vm0, %v3832_v55  ;;  %4143 = vst [vmem:[#allocation3 + $0x14] sm:$0x1] %v4142_v27  ;;  %v7813_v36 = vpack.c.bf16 %v3692_v61, %v3692_v61  ;;  %v3473_v9 = vpop.f32.mrb[10].mxu0  ;;  %v3838_v3 = vshll.u32 %v7812_v54, 16 }
 0x2cc   : >> { %v3837_v23 = vrot.slane %v3835_v13, 7  ;;  %v3624_v33 = vmul.f32 %v11528_v51, %v3473_v9  ;;  %v3475_v4 = vpop.f32.mrb[11].mxu0  ;;  %v3661_v18 = vadd.f32 %v11529_v37, %v3623_v46 }
 0x2cd   : >> { %v3843_v31 = vshrl.u32 %v7813_v36, 16  ;;  %v3846_v57 = vshll.u32 %v7813_v36, 16 }
 0x2ce   : >> { %v3840_v40 = vor.u32 %v3838_v3, %v3837_v23  ;;  %v3662_v48 = vadd.f32 %v11529_v37, %v3624_v33  ;;  %v3693_v32 = vmax.f32 %v3661_v18, 0.0  ;;  %v3841_v56 = vrot.slane %v3837_v23, 4 }
 0x2cf   : >> { %v3845_v25 = vrot.slane %v3843_v31, 7 }
 0x2d0   : >> { %v4145_v0 = vsel %vm9036_vm7, %v3840_v40, %v4144_v24  ;;  %v3694_v60 = vmax.f32 %v3662_v48, 0.0  ;;  %v7814_v1 = vpack.c.bf16 %v3693_v32, %v3693_v32  ;;  %v4833_v26 = vld [vmem:[#allocation3 + $0xc] sm:$0xf] }
 0x2d1   : >> { %4146 = vst [vmem:[#allocation3 + $0x18] sm:$0xf] %v4145_v0  ;;  %v3848_v14 = vor.u32 %v3846_v57, %v3845_v25  ;;  %v3850_v10 = vrot.slane %v3845_v25, 4  ;;  %v3478_v19 = vpop.f32.mrb[12].mxu0  ;;  %v4881_v29 = vld [vmem:[#allocation3 + $0xc] sm:$0xe] }
 0x2d2   : >> { %v7815_v15 = vpack.c.bf16 %v3694_v60, %v3694_v60  ;;  %v3625_v42 = vmul.f32 %v11528_v51, %v3478_v19  ;;  %v3480_v21 = vpop.f32.mrb[13].mxu0  ;;  %v4834_v12 = vld [vmem:[#allocation3 + $0x10] sm:$0xf]  ;;  %v3852_v50 = vshrl.u32 %v7814_v1, 16  ;;  %v3855_v38 = vshll.u32 %v7814_v1, 16 }
 0x2d3   : >> { %v3849_v47 = vsel %vm9043_vm8, %v3841_v56, %v3848_v14  ;;  %v4149_v30 = vsel %vm8867_vm3, %v3850_v10, %v4148_v22  ;;  %v3481_v2 = vpop.f32.mrb[14].mxu0  ;;  %v8397_v5 = vld [vmem:[#allocation3 + $0x14] ss:$0 sps:$4 sm:$0x11]   ;;  %v10181_v43 = vcombine.low %v4833_v26, %v4834_v12  ;;  %v7603_v28 = vcombine.low %v4881_v29, %v4834_v12  ;;  %v4158_v19 = vld [vmem:[#allocation3 + $0x30] sm:$0xf] }
 0x2d4   : >> { %4147 = vst.msk [vmem:[#allocation3 + $0x1c] sm:$0xf] %vm284_vm0, %v3849_v47  ;;  %4150 = vst [vmem:[#allocation3 + $0x20] sm:$0x1] %v4149_v30  ;;  %v3860_v45 = vshrl.u32 %v7815_v15, 16  ;;  %v3863_v44 = vshll.u32 %v7815_v15, 16  ;;  %v3663_v49 = vadd.f32 %v11529_v37, %v3625_v42  ;;  %v3626_v58 = vmul.f32 %v11528_v51, %v3481_v2 }
 0x2d5   : >> { %v3483_v7 = vpop.f32.mrb[15].mxu0  ;;  %v3854_v8 = vrot.slane %v3852_v50, 7  ;;  %v5298_v34 = vrot.slane %v8397_v5, 1  ;;  %v5033_v20 = vshll.u32 %v8397_v5, 16  ;;  %v5297_v41 = vrot.slane %v7603_v28, 1 }
 0x2d6   : >> { %v3862_v11 = vrot.slane %v3860_v45, 7  ;;  %v3695_v35 = vmax.f32 %v3663_v49, 0.0  ;;  %v3664_v59 = vadd.f32 %v11529_v37, %v3626_v58  ;;  %v5026_v23 = vshrl.u32 %v10181_v43, 16  ;;  %v4162_v2 = vld [vmem:[#allocation3 + $0x38] sm:$0x1] }
 0x2d7   : >> { %v3857_v54 = vor.u32 %v3855_v38, %v3854_v8  ;;  %v3858_v61 = vrot.slane %v3854_v8, 4  ;;  %v5299_v46 = vsel %vm1445_vm10, %v5297_v41, %v5298_v34  ;;  %v5028_v3 = vshll.u32 %v10181_v43, 16 }
 0x2d8   : >> { %v3865_v55 = vor.u32 %v3863_v44, %v3862_v11  ;;  %v3867_v27 = vrot.slane %v3862_v11, 4  ;;  %v7816_v13 = vpack.c.bf16 %v3695_v35, %v3695_v35  ;;  %v3696_v62 = vmax.f32 %v3664_v59, 0.0  ;;  %v4835_v33 = vld [vmem:[#allocation3 + $0x18] sm:$0xf]  ;;  %7655 = vmatprep.mubr.msk.bf16.mxu1 %vm1494_vm11, %v5299_v46 }
 0x2d9   : >> { %v4152_v36 = vsel %vm9036_vm7, %v3857_v54, %v4151_v39  ;;  %v3486_v9 = vpop.f32.mrb[16].mxu0  ;;  %v5035_v52 = vrot.slane %v5033_v20, 1  ;;  %v4882_v40 = vld [vmem:[#allocation3 + $0x18] sm:$0xe]  ;;  %v5030_v32 = vrot.slane %v5028_v3, 1 }
 0x2da   : >> { %4153 = vst [vmem:[#allocation3 + $0x24] sm:$0xf] %v4152_v36  ;;  %v3866_v4 = vsel %vm9043_vm8, %v3858_v61, %v3865_v55  ;;  %v4156_v24 = vsel %vm8867_vm3, %v3867_v27, %v4155_v6  ;;  %v3869_v31 = vshrl.u32 %v7816_v13, 16  ;;  %v3488_v18 = vpop.f32.mrb[17].mxu0  ;;  %v7817_v48 = vpack.c.bf16 %v3696_v62, %v3696_v62  ;;  %v4165_v36 = vld [vmem:[#allocation3 + $0x3c] sm:$0xf] }
 0x2db   : >> { %4154 = vst.msk [vmem:[#allocation3 + $0x28] sm:$0xf] %vm284_vm0, %v3866_v4  ;;  %4157 = vst [vmem:[#allocation3 + $0x2c] sm:$0x1] %v4156_v24  ;;  %v3627_v25 = vmul.f32 %v11528_v51, %v3486_v9  ;;  %v3489_v57 = vpop.f32.mrb[18].mxu0  ;;  %v3872_v60 = vshll.u32 %v7816_v13, 16  ;;  %v5031_v21 = vor.u32 %v5030_v32, %v5026_v23 }
 0x2dc   : >> { %v4836_v0 = vld [vmem:[#allocation3 + $0x1c] sm:$0xf]  ;;  %v3871_v22 = vrot.slane %v3869_v31, 7  ;;  %v3628_v56 = vmul.f32 %v11528_v51, %v3489_v57  ;;  %v3491_v14 = vpop.f32.mrb[19].mxu0  ;;  %v3877_v15 = vshrl.u32 %v7817_v48, 16  ;;  %v3880_v30 = vshll.u32 %v7817_v48, 16 }
 0x2dd   : >> { %v10197_v10 = vcombine.low %v4835_v33, %v4836_v0  ;;  %v10199_v1 = vld [vmem:[#allocation3 + $0x20] ss:$0 sps:$4 sm:$0x11]   ;;  %v3665_v42 = vadd.f32 %v11529_v37, %v3627_v25  ;;  %v7604_v26 = vcombine.low %v4882_v40, %v4836_v0  ;;  %v5036_v45 = vsel %vm1172_vm9, %v5031_v21, %v5035_v52 }
 0x2de   : >> { %v3874_v12 = vor.u32 %v3872_v60, %v3871_v22  ;;  %v3875_v47 = vrot.slane %v3871_v22, 4  ;;  %v3666_v50 = vadd.f32 %v11529_v37, %v3628_v56  ;;  %v3879_v38 = vrot.slane %v3877_v15, 7  ;;  %5217 = vrot.lane.b32.xlu0 %v5036_v45, %s8732_s15  ;;  %v4169_v22 = vld [vmem:[#allocation3 + $0x44] sm:$0x1] }
 0x2df   : >> { %v3697_v5 = vmax.f32 %v3665_v42, 0.0  ;;  %v5040_v44 = vshll.u32 %v10197_v10, 16  ;;  %v5038_v7 = vshrl.u32 %v10197_v10, 16  ;;  %v5045_v29 = vshll.u32 %v10199_v1, 16 }
 0x2e0   : >> { %v4159_v49 = vsel %vm9036_vm7, %v3874_v12, %v4158_v19  ;;  %v3698_v58 = vmax.f32 %v3666_v50, 0.0  ;;  %v3882_v8 = vor.u32 %v3880_v30, %v3879_v38  ;;  %v3884_v28 = vrot.slane %v3879_v38, 4 }
 0x2e1   : >> { %4160 = vst [vmem:[#allocation3 + $0x30] sm:$0xf] %v4159_v49  ;;  %v7818_v34 = vpack.c.bf16 %v3697_v5, %v3697_v5  ;;  %v3494_v39 = vpop.f32.mrb[20].mxu0  ;;  %v5042_v11 = vrot.slane %v5040_v44, 1  ;;  %v5300_v61 = vrot.slane %v7604_v26, 1  ;;  %v5047_v13 = vrot.slane %v5045_v29, 1 }
 0x2e2   : >> { %v7819_v35 = vpack.c.bf16 %v3698_v58, %v3698_v58  ;;  %v3629_v59 = vmul.f32 %v11528_v51, %v3494_v39  ;;  %v3496_v20 = vpop.f32.mrb[21].mxu0  ;;  %v4838_v54 = vld [vmem:[#allocation3 + $0x28] sm:$0xf]  ;;  %v3883_v6 = vsel %vm9043_vm8, %v3875_v47, %v3882_v8  ;;  %v4163_v41 = vsel %vm8867_vm3, %v3884_v28, %v4162_v2  ;;  %v4837_v33 = vld [vmem:[#allocation3 + $0x24] sm:$0xf] }
 0x2e3   : >> { %v3886_v55 = vshrl.u32 %v7818_v34, 16  ;;  %v3497_v27 = vpop.f32.mrb[22].mxu0  ;;  %4161 = vst.msk [vmem:[#allocation3 + $0x34] sm:$0xf] %vm284_vm0, %v3883_v6  ;;  %4164 = vst [vmem:[#allocation3 + $0x38] sm:$0x1] %v4163_v41  ;;  %v5043_v31 = vor.u32 %v5042_v11, %v5038_v7  ;;  %v10218_v18 = vcombine.low %v4837_v33, %v4838_v54 }
 0x2e4   : >> { %v3889_v62 = vshll.u32 %v7818_v34, 16  ;;  %v3894_v46 = vshrl.u32 %v7819_v35, 16  ;;  %v3667_v9 = vadd.f32 %v11529_v37, %v3629_v59  ;;  %v3630_v23 = vmul.f32 %v11528_v51, %v3497_v27  ;;  %v3499_v3 = vpop.f32.mrb[23].mxu0  ;;  %v8402_v52 = vld [vmem:[#allocation3 + $0x2c] ss:$0 sps:$4 sm:$0x11]  }
 0x2e5   : >> { %v3888_v4 = vrot.slane %v3886_v55, 7  ;;  %v3897_v24 = vshll.u32 %v7819_v35, 16  ;;  %v5301_v57 = vrot.slane %v10199_v1, 1  ;;  %v5048_v60 = vsel %vm1172_vm9, %v5043_v31, %v5047_v13  ;;  %v4172_v35 = vld [vmem:[#allocation3 + $0x48] sm:$0xf] }
 0x2e6   : >> { %v3896_v40 = vrot.slane %v3894_v46, 7  ;;  %v3699_v48 = vmax.f32 %v3667_v9, 0.0  ;;  %v3668_v25 = vadd.f32 %v11529_v37, %v3630_v23  ;;  %5219 = vrot.lane.b32.xlu1 %v5048_v60, %s8732_s15  ;;  %v5052_v26 = vshll.u32 %v10218_v18, 16  ;;  %v4176_v23 = vld [vmem:[#allocation3 + $0x50] sm:$0x1] }
 0x2e7   : >> { %v3891_v32 = vor.u32 %v3889_v62, %v3888_v4  ;;  %v3892_v0 = vrot.slane %v3888_v4, 4  ;;  %v5057_v12 = vshll.u32 %v8402_v52, 16  ;;  %v10228_v1 = vsel %vm1445_vm10, %v5300_v61, %v5301_v57  ;;  %v4255_v53 = vld [vmem:[#allocation3 + $0x24] sm:$0xf] }
 0x2e8   : >> { %v3899_v56 = vor.u32 %v3897_v24, %v3896_v40  ;;  %v3901_v14 = vrot.slane %v3896_v40, 4  ;;  %v7820_v19 = vpack.c.bf16 %v3699_v48, %v3699_v48  ;;  %v3700_v15 = vmax.f32 %v3668_v25, 0.0  ;;  %v4839_v5 = vld [vmem:[#allocation3 + $0x30] sm:$0xf] }
 0x2e9   : >> { %v4166_v42 = vsel %vm9036_vm7, %v3891_v32, %v4165_v36  ;;  %v3502_v21 = vpop.f32.mrb[24].mxu0  ;;  %v5050_v2 = vshrl.u32 %v10218_v18, 16  ;;  %v5054_v58 = vrot.slane %v5052_v26, 1  ;;  %v5059_v61 = vrot.slane %v5057_v12, 1 }
 0x2ea   : >> { %4167 = vst [vmem:[#allocation3 + $0x3c] sm:$0xf] %v4166_v42  ;;  %v3900_v47 = vsel %vm9043_vm8, %v3892_v0, %v3899_v56  ;;  %v4170_v30 = vsel %vm8867_vm3, %v3901_v14, %v4169_v22  ;;  %v3903_v50 = vshrl.u32 %v7820_v19, 16  ;;  %v3504_v38 = vpop.f32.mrb[25].mxu0  ;;  %v7821_v45 = vpack.c.bf16 %v3700_v15, %v3700_v15  ;;  %v4840_v7 = vld [vmem:[#allocation3 + $0x34] sm:$0xf] }
 0x2eb   : >> { %4168 = vst.msk [vmem:[#allocation3 + $0x40] sm:$0xf] %vm284_vm0, %v3900_v47  ;;  %4171 = vst [vmem:[#allocation3 + $0x44] sm:$0x1] %v4170_v30  ;;  %v3631_v44 = vmul.f32 %v11528_v51, %v3502_v21  ;;  %v3505_v49 = vpop.f32.mrb[26].mxu0  ;;  %v3906_v8 = vshll.u32 %v7820_v19, 16  ;;  %v10238_v39 = vcombine.low %v4839_v5, %v4840_v7  ;;  %v5055_v54 = vor.u32 %v5054_v58, %v5050_v2 }
 0x2ec   : >> { %v3905_v29 = vrot.slane %v3903_v50, 7  ;;  %v3632_v28 = vmul.f32 %v11528_v51, %v3505_v49  ;;  %v3507_v34 = vpop.f32.mrb[27].mxu0  ;;  %v8404_v11 = vld [vmem:[#allocation3 + $0x38] ss:$0 sps:$4 sm:$0x11]   ;;  %v3911_v59 = vshrl.u32 %v7821_v45, 16 }
 0x2ed   : >> { %v3669_v20 = vadd.f32 %v11529_v37, %v3631_v44  ;;  %v3914_v41 = vshll.u32 %v7821_v45, 16  ;;  %v5060_v62 = vsel %vm1172_vm9, %v5055_v54, %v5059_v61  ;;  %v5064_v36 = vshll.u32 %v10238_v39, 16  ;;  %v4179_v5 = vld [vmem:[#allocation3 + $0x54] sm:$0xf] }
 0x2ee   : >> { %v3908_v6 = vor.u32 %v3906_v8, %v3905_v29  ;;  %v3670_v55 = vadd.f32 %v11529_v37, %v3632_v28  ;;  %v3913_v27 = vrot.slane %v3911_v59, 7  ;;  %v3909_v46 = vrot.slane %v3905_v29, 4  ;;  %5221 = vrot.lane.b32.xlu0 %v5060_v62, %s8732_s15  ;;  %v4183_v8 = vld [vmem:[#allocation3 + $0x5c] sm:$0x1] }
 0x2ef   : >> { %v3701_v13 = vmax.f32 %v3669_v20, 0.0  ;;  %v5069_v33 = vshll.u32 %v8404_v11, 16  ;;  %v5066_v40 = vrot.slane %v5064_v36, 1  ;;  %v5062_v32 = vshrl.u32 %v10238_v39, 16 }
 0x2f0   : >> { %v4173_v9 = vsel %vm9036_vm7, %v3908_v6, %v4172_v35  ;;  %v3702_v3 = vmax.f32 %v3670_v55, 0.0  ;;  %v3916_v4 = vor.u32 %v3914_v41, %v3913_v27  ;;  %v3918_v24 = vrot.slane %v3913_v27, 4 }
 0x2f1   : >> { %4174 = vst [vmem:[#allocation3 + $0x48] sm:$0xf] %v4173_v9  ;;  %v7822_v31 = vpack.c.bf16 %v3701_v13, %v3701_v13  ;;  %v3510_v52 = vpop.f32.mrb[28].mxu0  ;;  %v5071_v19 = vrot.slane %v5069_v33, 1  ;;  %v4841_v47 = vld [vmem:[#allocation3 + $0x3c] sm:$0xf]  ;;  %v5067_v50 = vor.u32 %v5066_v40, %v5062_v32 }
 0x2f2   : >> { %v7823_v48 = vpack.c.bf16 %v3702_v3, %v3702_v3  ;;  %v3633_v25 = vmul.f32 %v11528_v51, %v3510_v52  ;;  %v3512_v57 = vpop.f32.mrb[29].mxu0  ;;  %v4842_v0 = vld [vmem:[#allocation3 + $0x40] sm:$0xf]  ;;  %v3917_v22 = vsel %vm9043_vm8, %v3909_v46, %v3916_v4  ;;  %v4177_v60 = vsel %vm8867_vm3, %v3918_v24, %v4176_v23  ;;  %v8406_v2 = vld [vmem:[#allocation3 + $0x44] ss:$0 sps:$4 sm:$0x11]  }
 0x2f3   : >> { %v3920_v56 = vshrl.u32 %v7822_v31, 16  ;;  %v3513_v14 = vpop.f32.mrb[30].mxu0  ;;  %4175 = vst.msk [vmem:[#allocation3 + $0x4c] sm:$0xf] %vm284_vm0, %v3917_v22  ;;  %4178 = vst [vmem:[#allocation3 + $0x50] sm:$0x1] %v4177_v60  ;;  %v10256_v38 = vcombine.low %v4841_v47, %v4842_v0  ;;  %v5072_v28 = vsel %vm1172_vm9, %v5067_v50, %v5071_v19 }
 0x2f4   : >> { %v3923_v15 = vshll.u32 %v7822_v31, 16  ;;  %v3928_v42 = vshrl.u32 %v7823_v48, 16  ;;  %v3671_v21 = vadd.f32 %v11529_v37, %v3633_v25  ;;  %v3634_v26 = vmul.f32 %v11528_v51, %v3513_v14  ;;  %v3515_v12 = vpop.f32.mrb[31].mxu0  ;;  %5223 = vrot.lane.b32.xlu1 %v5072_v28, %s8732_s15  ;;  %v4186_v25 = vld [vmem:[#allocation3 + $0x60] sm:$0xf] }
 0x2f5   : >> { %v3922_v30 = vrot.slane %v3920_v56, 7  ;;  %v3931_v44 = vshll.u32 %v7823_v48, 16  ;;  %v5076_v61 = vshll.u32 %v10256_v38, 16  ;;  %v5081_v6 = vshll.u32 %v8406_v2, 16  ;;  %v4190_v47 = vld [vmem:[#allocation3 + $0x68] sm:$0x1] }
 0x2f6   : >> { %v3930_v45 = vrot.slane %v3928_v42, 7  ;;  %v3703_v49 = vmax.f32 %v3671_v21, 0.0  ;;  %v3672_v58 = vadd.f32 %v11529_v37, %v3634_v26  ;;  %v5074_v62 = vshrl.u32 %v10256_v38, 16 }
 0x2f7   : >> { %v3925_v7 = vor.u32 %v3923_v15, %v3922_v30  ;;  %v3926_v29 = vrot.slane %v3922_v30, 4  ;;  %v5078_v3 = vrot.slane %v5076_v61, 1  ;;  %v5083_v22 = vrot.slane %v5081_v6, 1 }
 0x2f8   : >> { %v3933_v34 = vor.u32 %v3931_v44, %v3930_v45  ;;  %v3935_v11 = vrot.slane %v3930_v45, 4  ;;  %v7824_v35 = vpack.c.bf16 %v3703_v49, %v3703_v49  ;;  %v3704_v59 = vmax.f32 %v3672_v58, 0.0  ;;  %v4843_v36 = vld [vmem:[#allocation3 + $0x48] sm:$0xf] }
 0x2f9   : >> { %v4180_v20 = vsel %vm9036_vm7, %v3925_v7, %v4179_v5  ;;  %v3518_v54 = vpop.f32.mrb[32].mxu0  ;;  %v5079_v0 = vor.u32 %v5078_v3, %v5074_v62 }
 0x2fa   : >> { %4181 = vst [vmem:[#allocation3 + $0x54] sm:$0xf] %v4180_v20  ;;  %v3934_v41 = vsel %vm9043_vm8, %v3926_v29, %v3933_v34  ;;  %v4184_v55 = vsel %vm8867_vm3, %v3935_v11, %v4183_v8  ;;  %v3937_v27 = vshrl.u32 %v7824_v35, 16  ;;  %v3520_v13 = vpop.f32.mrb[33].mxu0  ;;  %v7825_v46 = vpack.c.bf16 %v3704_v59, %v3704_v59  ;;  %v4844_v33 = vld [vmem:[#allocation3 + $0x4c] sm:$0xf] }
 0x2fb   : >> { %4182 = vst.msk [vmem:[#allocation3 + $0x58] sm:$0xf] %vm284_vm0, %v3934_v41  ;;  %4185 = vst [vmem:[#allocation3 + $0x5c] sm:$0x1] %v4184_v55  ;;  %v3635_v9 = vmul.f32 %v11528_v51, %v3518_v54  ;;  %v3521_v23 = vpop.f32.mrb[34].mxu0  ;;  %v3940_v24 = vshll.u32 %v7824_v35, 16  ;;  %v10272_v40 = vcombine.low %v4843_v36, %v4844_v33  ;;  %v5084_v42 = vsel %vm1172_vm9, %v5079_v0, %v5083_v22 }
 0x2fc   : >> { %v3939_v4 = vrot.slane %v3937_v27, 7  ;;  %v3636_v31 = vmul.f32 %v11528_v51, %v3521_v23  ;;  %v3523_v52 = vpop.f32.mrb[35].mxu0  ;;  %v8408_v48 = vld [vmem:[#allocation3 + $0x50] ss:$0 sps:$4 sm:$0x11]   ;;  %v3945_v57 = vshrl.u32 %v7825_v46, 16  ;;  %5225 = vrot.lane.b32.xlu0 %v5084_v42, %s8732_s15 }
 0x2fd   : >> { %v3673_v32 = vadd.f32 %v11529_v37, %v3635_v9  ;;  %v3948_v56 = vshll.u32 %v7825_v46, 16  ;;  %v5088_v21 = vshll.u32 %v10272_v40, 16  ;;  %v5093_v50 = vshll.u32 %v8408_v48, 16  ;;  %v4193_v9 = vld [vmem:[#allocation3 + $0x6c] sm:$0xf] }
 0x2fe   : >> { %v3942_v60 = vor.u32 %v3940_v24, %v3939_v4  ;;  %v3674_v14 = vadd.f32 %v11529_v37, %v3636_v31  ;;  %v3947_v19 = vrot.slane %v3945_v57, 7  ;;  %v3943_v26 = vrot.slane %v3939_v4, 4  ;;  %v4197_v52 = vld [vmem:[#allocation3 + $0x74] sm:$0x1] }
 0x2ff   : >> { %v3705_v15 = vmax.f32 %v3673_v32, 0.0  ;;  %v5090_v49 = vrot.slane %v5088_v21, 1  ;;  %v5086_v8 = vshrl.u32 %v10272_v40, 16  ;;  %v5095_v20 = vrot.slane %v5093_v50, 1 }
 0x300   : >> { %v4187_v12 = vsel %vm9036_vm7, %v3942_v60, %v4186_v25  ;;  %v3706_v30 = vmax.f32 %v3674_v14, 0.0  ;;  %v3950_v2 = vor.u32 %v3948_v56, %v3947_v19  ;;  %v3952_v5 = vrot.slane %v3947_v19, 4 }
 0x301   : >> { %4188 = vst [vmem:[#allocation3 + $0x60] sm:$0xf] %v4187_v12  ;;  %v7826_v45 = vpack.c.bf16 %v3705_v15, %v3705_v15  ;;  %v3526_v44 = vpop.f32.mrb[36].mxu0  ;;  %v4845_v27 = vld [vmem:[#allocation3 + $0x54] sm:$0xf]  ;;  %v5091_v62 = vor.u32 %v5090_v49, %v5086_v8 }
 0x302   : >> { %v7827_v58 = vpack.c.bf16 %v3706_v30, %v3706_v30  ;;  %v3637_v7 = vmul.f32 %v11528_v51, %v3526_v44  ;;  %v3528_v29 = vpop.f32.mrb[37].mxu0  ;;  %v4846_v28 = vld [vmem:[#allocation3 + $0x58] sm:$0xf]  ;;  %v3951_v34 = vsel %vm9043_vm8, %v3943_v26, %v3950_v2  ;;  %v4191_v11 = vsel %vm8867_vm3, %v3952_v5, %v4190_v47  ;;  %v8410_v46 = vld [vmem:[#allocation3 + $0x5c] ss:$0 sps:$4 sm:$0x11]  }
 0x303   : >> { %v3954_v35 = vshrl.u32 %v7826_v45, 16  ;;  %v3529_v59 = vpop.f32.mrb[38].mxu0  ;;  %4189 = vst.msk [vmem:[#allocation3 + $0x64] sm:$0xf] %vm284_vm0, %v3951_v34  ;;  %4192 = vst [vmem:[#allocation3 + $0x68] sm:$0x1] %v4191_v11  ;;  %v10290_v36 = vcombine.low %v4845_v27, %v4846_v28  ;;  %v5096_v48 = vsel %vm1172_vm9, %v5091_v62, %v5095_v20 }
 0x304   : >> { %v3957_v54 = vshll.u32 %v7826_v45, 16  ;;  %v3962_v61 = vshrl.u32 %v7827_v58, 16  ;;  %v3675_v6 = vadd.f32 %v11529_v37, %v3637_v7  ;;  %v3638_v41 = vmul.f32 %v11528_v51, %v3529_v59  ;;  %v3531_v55 = vpop.f32.mrb[39].mxu0  ;;  %5227 = vrot.lane.b32.xlu1 %v5096_v48, %s8732_s15  ;;  %v4200_v8 = vld [vmem:[#allocation3 + $0x78] sm:$0xf] }
 0x305   : >> { %v3956_v13 = vrot.slane %v3954_v35, 7  ;;  %v3965_v3 = vshll.u32 %v7827_v58, 16  ;;  %v5100_v56 = vshll.u32 %v10290_v36, 16  ;;  %v5105_v14 = vshll.u32 %v8410_v46, 16  ;;  %v4204_v62 = vld [vmem:[#allocation3 + $0x80] sm:$0x1] }
 0x306   : >> { %v3964_v23 = vrot.slane %v3962_v61, 7  ;;  %v3707_v33 = vmax.f32 %v3675_v6, 0.0  ;;  %v3676_v4 = vadd.f32 %v11529_v37, %v3638_v41  ;;  %v5098_v26 = vshrl.u32 %v10290_v36, 16 }
 0x307   : >> { %v3959_v24 = vor.u32 %v3957_v54, %v3956_v13  ;;  %v3960_v31 = vrot.slane %v3956_v13, 4  ;;  %v5102_v2 = vrot.slane %v5100_v56, 1  ;;  %v5107_v35 = vrot.slane %v5105_v14, 1 }
 0x308   : >> { %v3967_v25 = vor.u32 %v3965_v3, %v3964_v23  ;;  %v3969_v57 = vrot.slane %v3964_v23, 4  ;;  %v7828_v32 = vpack.c.bf16 %v3707_v33, %v3707_v33  ;;  %v3708_v0 = vmax.f32 %v3676_v4, 0.0  ;;  %v4847_v12 = vld [vmem:[#allocation3 + $0x60] sm:$0xf] }
 0x309   : >> { %v4194_v22 = vsel %vm9036_vm7, %v3959_v24, %v4193_v9  ;;  %v3534_v60 = vpop.f32.mrb[40].mxu0  ;;  %v5103_v11 = vor.u32 %v5102_v2, %v5098_v26  ;;  %v4207_v2 = vld [vmem:[#allocation3 + $0x84] sm:$0xf] }
 0x30a   : >> { %4195 = vst [vmem:[#allocation3 + $0x6c] sm:$0xf] %v4194_v22  ;;  %v3968_v19 = vsel %vm9043_vm8, %v3960_v31, %v3967_v25  ;;  %v4198_v15 = vsel %vm8867_vm3, %v3969_v57, %v4197_v52  ;;  %v3971_v42 = vshrl.u32 %v7828_v32, 16  ;;  %v3536_v21 = vpop.f32.mrb[41].mxu0  ;;  %v7829_v47 = vpack.c.bf16 %v3708_v0, %v3708_v0  ;;  %v4848_v5 = vld [vmem:[#allocation3 + $0x64] sm:$0xf] }
 0x30b   : >> { %4196 = vst.msk [vmem:[#allocation3 + $0x70] sm:$0xf] %vm284_vm0, %v3968_v19  ;;  %4199 = vst [vmem:[#allocation3 + $0x74] sm:$0x1] %v4198_v15  ;;  %v3639_v30 = vmul.f32 %v11528_v51, %v3534_v60  ;;  %v3537_v50 = vpop.f32.mrb[42].mxu0  ;;  %v3974_v44 = vshll.u32 %v7828_v32, 16  ;;  %v10306_v7 = vcombine.low %v4847_v12, %v4848_v5  ;;  %v5108_v41 = vsel %vm1172_vm9, %v5103_v11, %v5107_v35 }
 0x30c   : >> { %v3973_v45 = vrot.slane %v3971_v42, 7  ;;  %v3640_v49 = vmul.f32 %v11528_v51, %v3537_v50  ;;  %v3539_v58 = vpop.f32.mrb[43].mxu0  ;;  %v8412_v29 = vld [vmem:[#allocation3 + $0x68] ss:$0 sps:$4 sm:$0x11]   ;;  %v3979_v28 = vshrl.u32 %v7829_v47, 16  ;;  %5229 = vrot.lane.b32.xlu0 %v5108_v41, %s8732_s15 }
 0x30d   : >> { %v3677_v34 = vadd.f32 %v11529_v37, %v3639_v30  ;;  %v3982_v20 = vshll.u32 %v7829_v47, 16  ;;  %v5112_v55 = vshll.u32 %v10306_v7, 16  ;;  %v5117_v9 = vshll.u32 %v8412_v29, 16 }
 0x30e   : >> { %v3976_v59 = vor.u32 %v3974_v44, %v3973_v45  ;;  %v3678_v54 = vadd.f32 %v11529_v37, %v3640_v49  ;;  %v3981_v61 = vrot.slane %v3979_v28, 7  ;;  %v3977_v27 = vrot.slane %v3973_v45, 4 }
 0x30f   : >> { %v3709_v6 = vmax.f32 %v3677_v34, 0.0  ;;  %v5114_v24 = vrot.slane %v5112_v55, 1  ;;  %v5110_v25 = vshrl.u32 %v10306_v7, 16  ;;  %v5119_v56 = vrot.slane %v5117_v9, 1 }
 0x310   : >> { %v4201_v13 = vsel %vm9036_vm7, %v3976_v59, %v4200_v8  ;;  %v3710_v46 = vmax.f32 %v3678_v54, 0.0  ;;  %v3984_v23 = vor.u32 %v3982_v20, %v3981_v61  ;;  %v3986_v3 = vrot.slane %v3981_v61, 4  ;;  %v4211_v8 = vld [vmem:[#allocation3 + $0x8c] sm:$0x1] }
 0x311   : >> { %4202 = vst [vmem:[#allocation3 + $0x78] sm:$0xf] %v4201_v13  ;;  %v7830_v33 = vpack.c.bf16 %v3709_v6, %v3709_v6  ;;  %v3542_v4 = vpop.f32.mrb[44].mxu0  ;;  %v4849_v26 = vld [vmem:[#allocation3 + $0x6c] sm:$0xf]  ;;  %v5115_v47 = vor.u32 %v5114_v24, %v5110_v25 }
 0x312   : >> { %v7831_v31 = vpack.c.bf16 %v3710_v46, %v3710_v46  ;;  %v3641_v52 = vmul.f32 %v11528_v51, %v3542_v4  ;;  %v3544_v48 = vpop.f32.mrb[45].mxu0  ;;  %v4850_v57 = vld [vmem:[#allocation3 + $0x70] sm:$0xf]  ;;  %v3985_v32 = vsel %vm9043_vm8, %v3977_v27, %v3984_v23  ;;  %v4205_v0 = vsel %vm8867_vm3, %v3986_v3, %v4204_v62  ;;  %v8414_v50 = vld [vmem:[#allocation3 + $0x74] ss:$0 sps:$4 sm:$0x11]  }
 0x313   : >> { %v3988_v22 = vshrl.u32 %v7830_v33, 16  ;;  %v3545_v60 = vpop.f32.mrb[46].mxu0  ;;  %4203 = vst.msk [vmem:[#allocation3 + $0x7c] sm:$0xf] %vm284_vm0, %v3985_v32  ;;  %4206 = vst [vmem:[#allocation3 + $0x80] sm:$0x1] %v4205_v0  ;;  %v10324_v30 = vcombine.low %v4849_v26, %v4850_v57  ;;  %v5120_v28 = vsel %vm1172_vm9, %v5115_v47, %v5119_v56 }
 0x314   : >> { %v3991_v14 = vshll.u32 %v7830_v33, 16  ;;  %v3996_v19 = vshrl.u32 %v7831_v31, 16  ;;  %v3679_v15 = vadd.f32 %v11529_v37, %v3641_v52  ;;  %v3642_v42 = vmul.f32 %v11528_v51, %v3545_v60  ;;  %v3547_v21 = vpop.f32.mrb[47].mxu0  ;;  %5231 = vrot.lane.b32.xlu1 %v5120_v28, %s8732_s15  ;;  %v4214_v32 = vld [vmem:[#allocation3 + $0x90] sm:$0xf] }
 0x315   : >> { %v3990_v12 = vrot.slane %v3988_v22, 7  ;;  %v3999_v45 = vshll.u32 %v7831_v31, 16  ;;  %v5122_v61 = vshrl.u32 %v10324_v30, 16  ;;  %v5124_v6 = vshll.u32 %v10324_v30, 16 }
 0x316   : >> { %v3998_v5 = vrot.slane %v3996_v19, 7  ;;  %v3711_v44 = vmax.f32 %v3679_v15, 0.0  ;;  %v3680_v49 = vadd.f32 %v11529_v37, %v3642_v42  ;;  %v5129_v41 = vshll.u32 %v8414_v50, 16  ;;  %v4249_v42 = vld [vmem:[#allocation3] sm:$0xf] }
 0x317   : >> { %v3993_v58 = vor.u32 %v3991_v14, %v3990_v12  ;;  %v3994_v29 = vrot.slane %v3990_v12, 4  ;;  %v5126_v33 = vrot.slane %v5124_v6, 1  ;;  %v4250_v50 = vld [vmem:[#allocation3 + $0x4] sm:$0xf] }
 0x318   : >> { %v4001_v34 = vor.u32 %v3999_v45, %v3998_v5  ;;  %v4003_v11 = vrot.slane %v3998_v5, 4  ;;  %v7832_v35 = vpack.c.bf16 %v3711_v44, %v3711_v44  ;;  %v3712_v59 = vmax.f32 %v3680_v49, 0.0  ;;  %v4851_v46 = vld [vmem:[#allocation3 + $0x78] sm:$0xf] }
 0x319   : >> { %v4208_v20 = vsel %vm9036_vm7, %v3993_v58, %v4207_v2  ;;  %v3550_v54 = vpop.f32.mrb[48].mxu0  ;;  %v5127_v60 = vor.u32 %v5126_v33, %v5122_v61  ;;  %v5131_v56 = vrot.slane %v5129_v41, 1  ;;  %v4218_v45 = vld [vmem:[#allocation3 + $0x98] sm:$0x1]  ;;  %v10351_v61 = vcombine.low %v4249_v42, %v4250_v50 }
 0x31a   : >> { %4209 = vst [vmem:[#allocation3 + $0x84] sm:$0xf] %v4208_v20  ;;  %v4002_v55 = vsel %vm9043_vm8, %v3994_v29, %v4001_v34  ;;  %v4212_v27 = vsel %vm8867_vm3, %v4003_v11, %v4211_v8  ;;  %v4005_v13 = vshrl.u32 %v7832_v35, 16  ;;  %v3552_v62 = vpop.f32.mrb[49].mxu0  ;;  %v7833_v9 = vpack.c.bf16 %v3712_v59, %v3712_v59  ;;  %v4852_v4 = vld [vmem:[#allocation3 + $0x7c] sm:$0xf] }
 0x31b   : >> { %4210 = vst.msk [vmem:[#allocation3 + $0x88] sm:$0xf] %vm284_vm0, %v4002_v55  ;;  %4213 = vst [vmem:[#allocation3 + $0x8c] sm:$0x1] %v4212_v27  ;;  %v3643_v23 = vmul.f32 %v11528_v51, %v3550_v54  ;;  %v3553_v3 = vpop.f32.mrb[50].mxu0  ;;  %v4008_v31 = vshll.u32 %v7832_v35, 16  ;;  %v10340_v25 = vcombine.low %v4851_v46, %v4852_v4  ;;  %v5132_v12 = vsel %vm1172_vm9, %v5127_v60, %v5131_v56 }
 0x31c   : >> { %v4007_v24 = vrot.slane %v4005_v13, 7  ;;  %v3644_v52 = vmul.f32 %v11528_v51, %v3553_v3  ;;  %v3555_v48 = vpop.f32.mrb[51].mxu0  ;;  %v8418_v57 = vld [vmem:[#allocation3 + $0x80] ss:$0 sps:$4 sm:$0x11]   ;;  %v4013_v0 = vshrl.u32 %v7833_v9, 16  ;;  %5233 = vrot.lane.b32.xlu0 %v5132_v12, %s8732_s15 }
 0x31d   : >> { %v3681_v22 = vadd.f32 %v11529_v37, %v3643_v23  ;;  %v4016_v19 = vshll.u32 %v7833_v9, 16  ;;  %v5136_v47 = vshll.u32 %v10340_v25, 16  ;;  %v5141_v49 = vshll.u32 %v8418_v57, 16  ;;  %11533 = vst [vmem:[#allocation16_spill] sm:$0xff] %v10351_v61  ;;  %v4221_v48 = vld [vmem:[#allocation3 + $0x9c] sm:$0xf] }
 0x31e   : >> { %v4010_v14 = vor.u32 %v4008_v31, %v4007_v24  ;;  %v3682_v15 = vadd.f32 %v11529_v37, %v3644_v52  ;;  %v4015_v21 = vrot.slane %v4013_v0, 7  ;;  %v4011_v2 = vrot.slane %v4007_v24, 4 }
 0x31f   : >> { %v3713_v26 = vmax.f32 %v3681_v22, 0.0  ;;  %v5138_v34 = vrot.slane %v5136_v47, 1  ;;  %v5134_v20 = vshrl.u32 %v10340_v25, 16  ;;  %v5143_v13 = vrot.slane %v5141_v49, 1 }
 0x320   : >> { %v4215_v5 = vsel %vm9036_vm7, %v4010_v14, %v4214_v32  ;;  %v3714_v44 = vmax.f32 %v3682_v15, 0.0  ;;  %v4018_v58 = vor.u32 %v4016_v19, %v4015_v21  ;;  %v4020_v29 = vrot.slane %v4015_v21, 4  ;;  %v4225_v14 = vld [vmem:[#allocation3 + $0xa4] sm:$0x1] }
 0x321   : >> { %4216 = vst [vmem:[#allocation3 + $0x90] sm:$0xf] %v4215_v5  ;;  %v7834_v8 = vpack.c.bf16 %v3713_v26, %v3713_v26  ;;  %v3558_v28 = vpop.f32.mrb[52].mxu0  ;;  %v4853_v33 = vld [vmem:[#allocation3 + $0x84] sm:$0xf]  ;;  %v5139_v24 = vor.u32 %v5138_v34, %v5134_v20  ;;  %v4444_v15 = vshll.u32 %v10351_v61, 16 }
 0x322   : >> { %v7835_v11 = vpack.c.bf16 %v3714_v44, %v3714_v44  ;;  %v3645_v35 = vmul.f32 %v11528_v51, %v3558_v28  ;;  %v3560_v59 = vpop.f32.mrb[53].mxu0  ;;  %v4854_v54 = vld [vmem:[#allocation3 + $0x88] sm:$0xf]  ;;  %v4019_v6 = vsel %vm9043_vm8, %v4011_v2, %v4018_v58  ;;  %v4219_v41 = vsel %vm8867_vm3, %v4020_v29, %v4218_v45  ;;  %v8422_v52 = vld [vmem:[#allocation3 + $0x8c] ss:$0 sps:$4 sm:$0x11]  }
 0x323   : >> { %v4022_v55 = vshrl.u32 %v7834_v8, 16  ;;  %v3561_v27 = vpop.f32.mrb[54].mxu0  ;;  %4217 = vst.msk [vmem:[#allocation3 + $0x94] sm:$0xf] %vm284_vm0, %v4019_v6  ;;  %4220 = vst [vmem:[#allocation3 + $0x98] sm:$0x1] %v4219_v41  ;;  %v10360_v31 = vcombine.low %v4853_v33, %v4854_v54  ;;  %v5144_v19 = vsel %vm1172_vm9, %v5139_v24, %v5143_v13 }
 0x324   : >> { %v4025_v62 = vshll.u32 %v7834_v8, 16  ;;  %v4030_v46 = vshrl.u32 %v7835_v11, 16  ;;  %v3683_v9 = vadd.f32 %v11529_v37, %v3645_v35  ;;  %v3646_v23 = vmul.f32 %v11528_v51, %v3561_v27  ;;  %v3563_v3 = vpop.f32.mrb[55].mxu0  ;;  %5235 = vrot.lane.b32.xlu1 %v5144_v19, %s8732_s15  ;;  %v10366_v47 = vld [vmem:[#allocation3 + $0x8] ss:$0 sps:$4 sm:$0x11]  }
 0x325   : >> { %v4024_v4 = vrot.slane %v4022_v55, 7  ;;  %11534 = vst [vmem:[#allocation17_spill] sm:$0xff] %v10360_v31  ;;  %v4033_v32 = vshll.u32 %v7835_v11, 16  ;;  %v5148_v5 = vshll.u32 %v10360_v31, 16  ;;  %v5153_v45 = vshll.u32 %v8422_v52, 16 }
 0x326   : >> { %v4032_v57 = vrot.slane %v4030_v46, 7  ;;  %v3715_v0 = vmax.f32 %v3683_v9, 0.0  ;;  %v3684_v22 = vadd.f32 %v11529_v37, %v3646_v23  ;;  %v4442_v44 = vshrl.u32 %v10351_v61, 16  ;;  %v4228_v46 = vld [vmem:[#allocation3 + $0xa8] sm:$0xf] }
 0x327   : >> { %v4027_v60 = vor.u32 %v4025_v62, %v4024_v4  ;;  %v4028_v56 = vrot.slane %v4024_v4, 4  ;;  %v5146_v28 = vshrl.u32 %v10360_v31, 16  ;;  %v5150_v20 = vrot.slane %v5148_v5, 1  ;;  %v4254_v5 = vld [vmem:[#allocation3 + $0x1c] sm:$0xf] }
 0x328   : >> { %v4035_v42 = vor.u32 %v4033_v32, %v4032_v57  ;;  %v4037_v21 = vrot.slane %v4032_v57, 4  ;;  %v7836_v26 = vpack.c.bf16 %v3715_v0, %v3715_v0  ;;  %v3716_v12 = vmax.f32 %v3684_v22, 0.0  ;;  %v4855_v34 = vld [vmem:[#allocation3 + $0x90] sm:$0xf] }
 0x329   : >> { %v4222_v50 = vsel %vm9036_vm7, %v4027_v60, %v4221_v48  ;;  %v3566_v2 = vpop.f32.mrb[56].mxu0  ;;  %v5151_v3 = vor.u32 %v5150_v20, %v5146_v28  ;;  %v5155_v33 = vrot.slane %v5153_v45, 1  ;;  %v4449_v48 = vshll.u32 %v10366_v47, 16  ;;  %v4232_v32 = vld [vmem:[#allocation3 + $0xb0] sm:$0x1] }
 0x32a   : >> { %4223 = vst [vmem:[#allocation3 + $0x9c] sm:$0xf] %v4222_v50  ;;  %v4036_v49 = vsel %vm9043_vm8, %v4028_v56, %v4035_v42  ;;  %v4226_v58 = vsel %vm8867_vm3, %v4037_v21, %v4225_v14  ;;  %v4039_v29 = vshrl.u32 %v7836_v26, 16  ;;  %v3568_v8 = vpop.f32.mrb[57].mxu0  ;;  %v7837_v11 = vpack.c.bf16 %v3716_v12, %v3716_v12  ;;  %v4856_v54 = vld [vmem:[#allocation3 + $0x94] sm:$0xf] }
 0x32b   : >> { %4224 = vst.msk [vmem:[#allocation3 + $0xa0] sm:$0xf] %vm284_vm0, %v4036_v49  ;;  %4227 = vst [vmem:[#allocation3 + $0xa4] sm:$0x1] %v4226_v58  ;;  %v3647_v35 = vmul.f32 %v11528_v51, %v3566_v2  ;;  %v3569_v59 = vpop.f32.mrb[58].mxu0  ;;  %v4042_v41 = vshll.u32 %v7836_v26, 16  ;;  %v10380_v13 = vcombine.low %v4855_v34, %v4856_v54  ;;  %v5156_v22 = vsel %vm1172_vm9, %v5151_v3, %v5155_v33 }
 0x32c   : >> { %v4041_v6 = vrot.slane %v4039_v29, 7  ;;  %v3648_v55 = vmul.f32 %v11528_v51, %v3569_v59  ;;  %v3571_v27 = vpop.f32.mrb[59].mxu0  ;;  %v8426_v62 = vld [vmem:[#allocation3 + $0x98] ss:$0 sps:$4 sm:$0x11]   ;;  %v4047_v9 = vshrl.u32 %v7837_v11, 16  ;;  %5237 = vrot.lane.b32.xlu0 %v5156_v22, %s8732_s15 }
 0x32d   : >> { %11535 = vst [vmem:[#allocation19_spill] sm:$0xff] %v10380_v13  ;;  %v3685_v23 = vadd.f32 %v11529_v37, %v3647_v35  ;;  %v4050_v24 = vshll.u32 %v7837_v11, 16  ;;  %v5160_v60 = vshll.u32 %v10380_v13, 16  ;;  %v5165_v42 = vshll.u32 %v8426_v62, 16  ;;  %v4253_v20 = vld [vmem:[#allocation3 + $0x18] sm:$0xf] }
 0x32e   : >> { %v4044_v4 = vor.u32 %v4042_v41, %v4041_v6  ;;  %v3686_v52 = vadd.f32 %v11529_v37, %v3648_v55  ;;  %v4049_v57 = vrot.slane %v4047_v9, 7  ;;  %v4045_v56 = vrot.slane %v4041_v6, 4  ;;  %v4235_v6 = vld [vmem:[#allocation3 + $0xb4] sm:$0xf]  ;;  %v4265_v47 = vld [vmem:[#allocation3 + $0x60] sm:$0xf] }
 0x32f   : >> { %v3717_v0 = vmax.f32 %v3685_v23, 0.0  ;;  %v5162_v2 = vrot.slane %v5160_v60, 1  ;;  %v5158_v29 = vshrl.u32 %v10380_v13, 16  ;;  %v5167_v59 = vrot.slane %v5165_v42, 1  ;;  %v4252_v42 = vld [vmem:[#allocation3 + $0x10] sm:$0xf] }
 0x330   : >> { %v4229_v14 = vsel %vm9036_vm7, %v4044_v4, %v4228_v46  ;;  %v3718_v19 = vmax.f32 %v3686_v52, 0.0  ;;  %v4052_v21 = vor.u32 %v4050_v24, %v4049_v57  ;;  %v4054_v26 = vrot.slane %v4049_v57, 4  ;;  %v4239_v57 = vld [vmem:[#allocation3 + $0xbc] sm:$0x1] }
 0x331   : >> { %4230 = vst [vmem:[#allocation3 + $0xa8] sm:$0xf] %v4229_v14  ;;  %v7838_v12 = vpack.c.bf16 %v3717_v0, %v3717_v0  ;;  %v3574_v50 = vpop.f32.mrb[60].mxu0  ;;  %v4857_v46 = vld [vmem:[#allocation3 + $0x9c] sm:$0xf]  ;;  %v5163_v23 = vor.u32 %v5162_v2, %v5158_v29  ;;  %v10401_v4 = vcombine.low %v4253_v20, %v4254_v5  ;;  %v10407_v14 = vrot.slane %v4444_v15, 1 }
 0x332   : >> { %v7839_v45 = vpack.c.bf16 %v3718_v19, %v3718_v19  ;;  %v3649_v49 = vmul.f32 %v11528_v51, %v3574_v50  ;;  %v3576_v58 = vpop.f32.mrb[61].mxu0  ;;  %v4858_v8 = vld [vmem:[#allocation3 + $0xa0] sm:$0xf]  ;;  %v4053_v28 = vsel %vm9043_vm8, %v4045_v56, %v4052_v21  ;;  %v4233_v34 = vsel %vm8867_vm3, %v4054_v26, %v4232_v32  ;;  %v8430_v33 = vld [vmem:[#allocation3 + $0xa4] ss:$0 sps:$4 sm:$0x11]  }
 0x333   : >> { %v4056_v11 = vshrl.u32 %v7838_v12, 16  ;;  %v3577_v35 = vpop.f32.mrb[62].mxu0  ;;  %4231 = vst.msk [vmem:[#allocation3 + $0xac] sm:$0xf] %vm284_vm0, %v4053_v28  ;;  %4234 = vst [vmem:[#allocation3 + $0xb0] sm:$0x1] %v4233_v34  ;;  %v10399_v3 = vcombine.low %v4857_v46, %v4858_v8  ;;  %v5168_v56 = vsel %vm1172_vm9, %v5163_v23, %v5167_v59 }
 0x334   : >> { %v4059_v54 = vshll.u32 %v7838_v12, 16  ;;  %v4064_v41 = vshrl.u32 %v7839_v45, 16  ;;  %v3687_v55 = vadd.f32 %v11529_v37, %v3649_v49  ;;  %v3650_v27 = vmul.f32 %v11528_v51, %v3577_v35  ;;  %v3579_v62 = vpop.f32.mrb[63].mxu0  ;;  %11537 = vst [vmem:[#allocation18_spill] sm:$0xff] %v10401_v4  ;;  %v4258_v19 = vld [vmem:[#allocation3 + $0x34] sm:$0xf]  ;;  %5239 = vrot.lane.b32.xlu1 %v5168_v56, %s8732_s15 }
 0x335   : >> { %v4058_v9 = vrot.slane %v4056_v11, 7  ;;  %11536 = vst [vmem:[#allocation21_spill] sm:$0xff] %v10399_v3  ;;  %v4067_v52 = vshll.u32 %v7839_v45, 16  ;;  %v10410_v2 = vld [vmem:[#allocation3 + $0x20] ss:$0 sps:$4 sm:$0x11]  }
 0x336   : >> { %v4066_v24 = vrot.slane %v4064_v41, 7  ;;  %v3719_v32 = vmax.f32 %v3687_v55, 0.0  ;;  %v3688_v0 = vadd.f32 %v11529_v37, %v3650_v27  ;;  %v4251_v5 = vld [vmem:[#allocation3 + $0xc] sm:$0xf]  ;;  %v5172_v49 = vshll.u32 %v10399_v3, 16 }
 0x337   : >> { %v4061_v22 = vor.u32 %v4059_v54, %v4058_v9  ;;  %v4062_v60 = vrot.slane %v4058_v9, 4  ;;  %v5177_v58 = vshll.u32 %v8430_v33, 16  ;;  %v4468_v15 = vshll.u32 %v10401_v4, 16  ;;  %v4257_v29 = vld [vmem:[#allocation3 + $0x30] sm:$0xf] }
 0x338   : >> { %v4069_v21 = vor.u32 %v4067_v52, %v4066_v24  ;;  %v4071_v26 = vrot.slane %v4066_v24, 4  ;;  %v7840_v12 = vpack.c.bf16 %v3719_v32, %v3719_v32  ;;  %v3720_v50 = vmax.f32 %v3688_v0, 0.0  ;;  %v4859_v11 = vld [vmem:[#allocation3 + $0xa8] sm:$0xf]  ;;  %v4242_v23 = vld [vmem:[#allocation3 + $0xc0] sm:$0xf] }
 0x339   : >> { %v4236_v45 = vsel %vm9036_vm7, %v4061_v22, %v4235_v6  ;;  %v10420_v35 = vcombine.low %v4257_v29, %v4258_v19  ;;  %v5170_v20 = vshrl.u32 %v10399_v3, 16  ;;  %v5174_v54 = vrot.slane %v5172_v49, 1  ;;  %v8449_v49 = vld [vmem:[#allocation3 + $0x14] ss:$0 sps:$4 sm:$0x11]  }
 0x33a   : >> { %4237 = vst [vmem:[#allocation3 + $0xb4] sm:$0xf] %v4236_v45  ;;  %v4070_v8 = vsel %vm9043_vm8, %v4062_v60, %v4069_v21  ;;  %v4240_v28 = vsel %vm8867_vm3, %v4071_v26, %v4239_v57  ;;  %v4073_v34 = vshrl.u32 %v7840_v12, 16  ;;  %v7841_v59 = vpack.c.bf16 %v3720_v50, %v3720_v50  ;;  %v4860_v6 = vld [vmem:[#allocation3 + $0xac] sm:$0xf] }
 0x33b   : >> { %11538 = vst [vmem:[#allocation20_spill] sm:$0xff] %v10420_v35  ;;  %4238 = vst.msk [vmem:[#allocation3 + $0xb8] sm:$0xf] %vm284_vm0, %v4070_v8  ;;  %v10424_v41 = vcombine.low %v4251_v5, %v4252_v42  ;;  %v4076_v27 = vshll.u32 %v7840_v12, 16  ;;  %v10426_v62 = vcombine.low %v4859_v11, %v4860_v6  ;;  %v4466_v9 = vshrl.u32 %v10401_v4, 16 }
 0x33c   : >> { %4241 = vst [vmem:[#allocation3 + $0xbc] sm:$0x1] %v4240_v28  ;;  %v4075_v55 = vrot.slane %v4073_v34, 7  ;;  %v8434_v46 = vld [vmem:[#allocation3 + $0xb0] ss:$0 sps:$4 sm:$0x11]   ;;  %v5175_v24 = vor.u32 %v5174_v54, %v5170_v20 }
 0x33d   : >> { %11539 = vst [vmem:[#allocation22_spill] sm:$0xff] %v10424_v41  ;;  %11540 = vst [vmem:[#allocation23_spill] sm:$0xff] %v10426_v62  ;;  %v4081_v33 = vshrl.u32 %v7841_v59, 16  ;;  %v5179_v52 = vrot.slane %v5177_v58, 1  ;;  %v4470_v57 = vrot.slane %v4468_v15, 1  ;;  %v5184_v0 = vshll.u32 %v10426_v62, 16 }
 0x33e   : >> { %v4078_v32 = vor.u32 %v4076_v27, %v4075_v55  ;;  %v4473_v22 = vshll.u32 %v10410_v2, 16  ;;  %v4492_v60 = vshll.u32 %v10420_v35, 16  ;;  %v4084_v19 = vshll.u32 %v7841_v59, 16  ;;  %v4246_v42 = vld [vmem:[#allocation3 + $0xc8] sm:$0x1] }
 0x33f   : >> { %v4083_v56 = vrot.slane %v4081_v33, 7  ;;  %v5180_v21 = vsel %vm1172_vm9, %v5175_v24, %v5179_v52  ;;  %v5189_v26 = vshll.u32 %v8434_v46, 16  ;;  %v5182_v50 = vshrl.u32 %v10426_v62, 16  ;;  %v8447_v45 = vld [vmem:[#allocation3 + $0x38] ss:$0 sps:$4 sm:$0x11]  }
 0x340   : >> { %v4243_v12 = vsel %vm9036_vm7, %v4078_v32, %v4242_v23  ;;  %5241 = vrot.lane.b32.xlu0 %v5180_v21, %s8732_s15  ;;  %v5186_v5 = vrot.slane %v5184_v0, 1  ;;  %v4456_v2 = vshll.u32 %v10424_v41, 16  ;;  %v4256_v58 = vld [vmem:[#allocation3 + $0x28] sm:$0xf]  ;;  %v4079_v15 = vrot.slane %v4075_v55, 4 }
 0x341   : >> { %4244 = vst [vmem:[#allocation3 + $0xc0] sm:$0xf] %v4243_v12  ;;  %v4086_v29 = vor.u32 %v4084_v19, %v4083_v56  ;;  %v4088_v8 = vrot.slane %v4083_v56, 4  ;;  %v5191_v28 = vrot.slane %v5189_v26, 1  ;;  %v4262_v34 = vld [vmem:[#allocation3 + $0x4c] sm:$0xf]  ;;  %v10451_v56 = vcombine.low %v4255_v53, %v4256_v58 }
 0x342   : >> { %v5187_v11 = vor.u32 %v5186_v5, %v5182_v50  ;;  %v4861_v59 = vld [vmem:[#allocation3 + $0xb4] sm:$0xf]  ;;  %v4862_v16 = vld [vmem:[#allocation3 + $0xb8] sm:$0xf]  ;;  %v4494_v46 = vrot.slane %v4492_v60, 1  ;;  %v4490_v33 = vshrl.u32 %v10420_v35, 16  ;;  %v4447_v60 = vor.u32 %v10407_v14, %v4442_v44 }
 0x343   : >> { %v4087_v20 = vsel %vm9043_vm8, %v4079_v15, %v4086_v29  ;;  %v4247_v54 = vsel %vm8867_vm3, %v4088_v8, %v4246_v42  ;;  %v10442_v6 = vcombine.low %v4861_v59, %v4862_v16  ;;  %v8438_v27 = vld [vmem:[#allocation3 + $0xbc] ss:$0 sps:$4 sm:$0x11]   ;;  %v4261_v23 = vld [vmem:[#allocation3 + $0x48] sm:$0xf]  ;;  %v4458_v24 = vrot.slane %v4456_v2, 1 }
 0x344   : >> { %4245 = vst.msk [vmem:[#allocation3 + $0xc4] sm:$0xf] %vm284_vm0, %v4087_v20  ;;  %4248 = vst [vmem:[#allocation3 + $0xc8] sm:$0x1] %v4247_v54  ;;  %v5192_v55 = vsel %vm1172_vm9, %v5187_v11, %v5191_v28  ;;  %v10447_v52 = vcombine.low %v4261_v23, %v4262_v34  ;;  %v5201_v32 = vshll.u32 %v8438_v27, 16  ;;  %v4497_v0 = vshll.u32 %v8447_v45, 16 }
 0x345   : >> { %11541 = vst [vmem:[#allocation24_spill] sm:$0xff] %v10442_v6  ;;  %5243 = vrot.lane.b32.xlu1 %v5192_v55, %s8732_s15  ;;  %v5196_v17 = vshll.u32 %v10442_v6, 16  ;;  %11543 = vst [vmem:[#allocation26_spill] sm:$0xff] %v10451_v56  ;;  %v4451_v19 = vrot.slane %v4449_v48, 1  ;;  %v4454_v42 = vshrl.u32 %v10424_v41, 16  ;;  %v4461_v21 = vshll.u32 %v8449_v49, 16 }
 0x346   : >> { %11542 = vst [vmem:[#allocation25_spill] sm:$0xff] %v10447_v52  ;;  %v8452_v26 = vld [vmem:[#allocation3 + $0x50] ss:$0 sps:$4 sm:$0x11]   ;;  %v5194_v12 = vshrl.u32 %v10442_v6, 16  ;;  %v4471_v5 = vor.u32 %v4470_v57, %v4466_v9  ;;  %v4495_v2 = vor.u32 %v4494_v46, %v4490_v33  ;;  %v4475_v29 = vrot.slane %v4473_v22, 1 }
 0x347   : >> { %v5198_v50 = vrot.slane %v5196_v17, 1  ;;  %v4883_v15 = vld [vmem:[#allocation3 + $0x24] sm:$0xe]  ;;  %v8454_v45 = vld [vmem:[#allocation3 + $0x2c] ss:$0 sps:$4 sm:$0x11]   ;;  %v4459_v8 = vor.u32 %v4458_v24, %v4454_v42  ;;  %v4452_v9 = vsel %vm1172_vm9, %v4447_v60, %v4451_v19 }
 0x348   : >> { %v4266_v58 = vld [vmem:[#allocation3 + $0x64] sm:$0xf]  ;;  %v8606_v28 = vld [vmem:[#allocation3 + $0x28] sm:$0xf]  ;;  %v4516_v44 = vshll.u32 %v10447_v52, 16  ;;  %v5203_v49 = vrot.slane %v5201_v32, 1  ;;  %v4476_v23 = vsel %vm1172_vm9, %v4471_v5, %v4475_v29 }
 0x349   : >> { %v7605_v34 = vcombine.low %v4883_v15, %v8606_v28  ;;  %v4259_v48 = vld [vmem:[#allocation3 + $0x3c] sm:$0xf]  ;;  %v4260_v14 = vld [vmem:[#allocation3 + $0x40] sm:$0xf]  ;;  %v5199_v11 = vor.u32 %v5198_v50, %v5194_v12  ;;  %v4499_v59 = vrot.slane %v4497_v0, 1  ;;  %v4480_v16 = vshll.u32 %v10451_v56, 16 }
 0x34a   : >> { %v4463_v57 = vrot.slane %v4461_v21, 1  ;;  %v4521_v20 = vshll.u32 %v8452_v26, 16  ;;  %v10463_v54 = vcombine.low %v4265_v47, %v4266_v58  ;;  %v4270_v22 = vld [vmem:[#allocation3 + $0x7c] sm:$0xf]  ;;  %v4264_v27 = vld [vmem:[#allocation3 + $0x58] sm:$0xf]  ;;  %v10474_v17 = vcombine.low %v4259_v48, %v4260_v14 }
 0x34b   : >> { %v5204_v46 = vsel %vm1172_vm9, %v5199_v11, %v5203_v49  ;;  %v4863_v55 = vld [vmem:[#allocation3 + $0xc0] sm:$0xf]  ;;  %v10467_v33 = vld [vmem:[#allocation3 + $0xc4] sm:$0xf]  ;;  %v10470_v24 = vsel %vm1172_vm9, %v4495_v2, %v4499_v59  ;;  %v4269_v32 = vld [vmem:[#allocation3 + $0x78] sm:$0xf] }
 0x34c   : >> { %11544 = vst [vmem:[#allocation27_spill] sm:$0xff] %v10463_v54  ;;  %v10472_v53 = vld [vmem:[#allocation3 + $0x68] ss:$0 sps:$4 sm:$0x11]   ;;  %11545 = vst [vmem:[#allocation28_spill] sm:$0xff] %v10474_v17  ;;  %5245 = vrot.lane.b32.xlu0 %v5204_v46, %s8732_s15  ;;  %v10478_v0 = vcombine.low %v4863_v55, %v10467_v33  ;;  %v10483_v19 = vsel %vm1172_vm9, %v4459_v8, %v4463_v57  ;;  %v5303_v42 = vrot.slane %v7605_v34, 1 }
 0x34d   : >> { %v10480_v60 = vld [vmem:[#allocation3 + $0xc8] ss:$0 sps:$4 sm:$0x11]   ;;  %v4518_v21 = vrot.slane %v4516_v44, 1  ;;  %v4263_v26 = vld [vmem:[#allocation3 + $0x54] sm:$0xf]  ;;  %v10489_v48 = vcombine.low %v4269_v32, %v4270_v22 }
 0x34e   : >> { %11546 = vst [vmem:[#allocation14_spill] sm:$0xff] %v10478_v0  ;;  %v8607_v12 = vld [vmem:[#allocation3 + $0x2c] ss:$0 sps:$4 sm:$0x11]   ;;  %v4514_v5 = vshrl.u32 %v10447_v52, 16  ;;  %v4482_v2 = vrot.slane %v4480_v16, 1  ;;  %v10493_v49 = vcombine.low %v4263_v26, %v4264_v27 }
 0x34f   : >> { %v5304_v50 = vrot.slane %v8607_v12, 1  ;;  %v4485_v15 = vshll.u32 %v8454_v45, 16  ;;  %v4884_v58 = vld [vmem:[#allocation3 + $0x30] sm:$0xe]  ;;  %v5208_v29 = vshll.u32 %v10478_v0, 16  ;;  %v5213_v28 = vshll.u32 %v10480_v60, 16 }
 0x350   : >> { %v4540_v47 = vshll.u32 %v10463_v54, 16  ;;  %11547 = vst [vmem:[#allocation15_spill] sm:$0xff] %v10489_v48  ;;  %v4274_v8 = vld [vmem:[#allocation3 + $0x94] sm:$0xf]  ;;  %v4523_v14 = vrot.slane %v4521_v20, 1  ;;  %v4478_v34 = vshrl.u32 %v10451_v56, 16  ;;  %4633 = vrot.lane.b32.xlu0 %v4452_v9, %s8732_s15  ;;  %v4519_v57 = vor.u32 %v4518_v21, %v4514_v5  ;;  %v5218_v26 = vpop.permute.xlu0 %5217 }
 0x351   : >> { %v8458_v44 = vld [vmem:[#allocation3 + $0x44] ss:$0 sps:$4 sm:$0x11]   ;;  %v4504_v11 = vshll.u32 %v10474_v17, 16  ;;  %11548 = vst [vmem:[#allocation12_spill] sm:$0xff] %v10493_v49  ;;  %v8439_v45 = vld [vmem:[%s11393_s4] sm:$0xff]   ;;  %v5346_v21 = vsel %vm1494_vm11, %v10181_v43, %v5218_v26 }
 0x352   : >> { %v5206_v59 = vshrl.u32 %v10478_v0, 16  ;;  %v5210_v16 = vrot.slane %v5208_v29, 1  ;;  %v8608_v22 = vld [vmem:[#allocation3 + $0x34] sm:$0xf]  ;;  %v4273_v20 = vld [vmem:[#allocation3 + $0x90] sm:$0xf]  ;;  %v4483_v55 = vor.u32 %v4482_v2, %v4478_v34  ;;  %5571 = vmatmul.mubr.bf16.vlgmr.msra.gmra.mrb[0].mxu1 %v5346_v21 }
 0x353   : >> { %v7606_v46 = vcombine.low %v4884_v58, %v8608_v22  ;;  %v4487_v32 = vrot.slane %v4485_v15, 1  ;;  %v4545_v12 = vshll.u32 %v10472_v53, 16  ;;  %v10501_v37 = vcombine.low %v4273_v20, %v4274_v8  ;;  %v10503_v27 = vld [vmem:[#allocation3 + $0x70] sm:$0xf]  ;;  %5820 = vmatpush1.bf16.msra.mxu1 %v8439_v45  ;;  %7656 = vmatprep.mubr.msk.bf16.mxu1 %vm1494_vm11, %v10228_v1  ;;  %v5982_v22 = vld [vmem:[#allocation3 + $0x1c] sm:$0xf] }
 0x354   : >> { %v5211_v51 = vor.u32 %v5210_v16, %v5206_v59  ;;  %v5215_v52 = vrot.slane %v5213_v28, 1  ;;  %v4542_v35 = vrot.slane %v4540_v47, 1  ;;  %v10505_v9 = vld [vmem:[#allocation3 + $0x80] ss:$0 sps:$4 sm:$0x11]   ;;  %v4564_v29 = vshll.u32 %v10489_v48, 16  ;;  %4637 = vrot.lane.b32.xlu0 %v4476_v23, %s8732_s15  ;;  %5821 = vmatprep.subr.bf16.mxu1 %v11527_v63 }
 0x355   : >> { %11549 = vst [vmem:[#allocation13_spill] sm:$0xff] %v10501_v37  ;;  %v8450_v5 = vld [vmem:[%s11393_s4 + $0x8] sm:$0xff]   ;;  %v4506_v53 = vrot.slane %v4504_v11, 1  ;;  %v4509_v2 = vshll.u32 %v8458_v44, 16  ;;  %v4528_v58 = vshll.u32 %v10493_v49, 16  ;;  %v5305_v47 = vsel %vm1445_vm10, %v5303_v42, %v5304_v50 }
 0x356   : >> { %v10513_v15 = vld [vmem:[#allocation3 + $0x5c] ss:$0 sps:$4 sm:$0x11]   ;;  %v5216_v28 = vsel %vm1172_vm9, %v5211_v51, %v5215_v52  ;;  %v4524_v8 = vsel %vm1172_vm9, %v4519_v57, %v4523_v14  ;;  %v4538_v43 = vshrl.u32 %v10463_v54, 16  ;;  %v4267_v59 = vld [vmem:[#allocation3 + $0x6c] sm:$0xf]  ;;  %v10526_v44 = vsel %vm1172_vm9, %v4483_v55, %v4487_v32 }
 0x357   : >> { %v10521_v34 = vld [vmem:[#allocation3 + $0x98] ss:$0 sps:$4 sm:$0x11]   ;;  %v4502_v23 = vshrl.u32 %v10474_v17, 16  ;;  %v4588_v51 = vshll.u32 %v10501_v37, 16  ;;  %v10531_v52 = vcombine.low %v4267_v59, %v10503_v27  ;;  %5247 = vrot.lane.b32.xlu1 %v5216_v28, %s8732_s15  ;;  %v5306_v11 = vrot.slane %v7606_v46, 1  ;;  %5822 = vmatpush1.bf16.msra.mxu1 %v8450_v5 }
 0x358   : >> { %v4278_v42 = vld [vmem:[#allocation3 + $0xac] sm:$0xf]  ;;  %v10533_v50 = vld [vmem:[#allocation3 + $0x88] sm:$0xf]  ;;  %v4543_v14 = vor.u32 %v4542_v35, %v4538_v43  ;;  %v4566_v16 = vrot.slane %v4564_v29, 1  ;;  %v4547_v20 = vrot.slane %v4545_v12, 1  ;;  %4641 = vrot.lane.b32.xlu0 %v10470_v24, %s8732_s15  ;;  %5823 = vmatprep.subr.bf16.mxu1 %v11527_v63 }
 0x359   : >> { %11550 = vst [vmem:[#allocation29_spill] sm:$0xff] %v10531_v52  ;;  %v8609_v1 = vld [vmem:[#allocation3 + $0x38] ss:$0 sps:$4 sm:$0x11]   ;;  %v4507_v55 = vor.u32 %v4506_v53, %v4502_v23  ;;  %v4511_v32 = vrot.slane %v4509_v2, 1  ;;  %v4530_v26 = vrot.slane %v4528_v58, 1  ;;  %v5220_v58 = vpop.permute.xlu1 %5219 }
 0x35a   : >> { %v5307_v45 = vrot.slane %v8609_v1, 1  ;;  %v10537_v57 = vld [vmem:[#allocation3 + $0x74] ss:$0 sps:$4 sm:$0x11]   ;;  %v4277_v21 = vld [vmem:[#allocation3 + $0xa8] sm:$0xf]  ;;  %v5349_v1 = vsel %vm1494_vm11, %v10197_v10, %v5220_v58 }
 0x35b   : >> { %v4562_v28 = vshrl.u32 %v10489_v48, 16  ;;  %v4569_v59 = vshll.u32 %v10505_v9, 16  ;;  %v4526_v35 = vshrl.u32 %v10493_v49, 16  ;;  %v10544_v46 = vcombine.low %v4277_v21, %v4278_v42  ;;  %v4271_v29 = vld [vmem:[#allocation3 + $0x84] sm:$0xf]  ;;  %v8463_v12 = vld [vmem:[%s11393_s4 + $0x10] sm:$0xff]   ;;  %4635 = vrot.lane.b32.xlu1 %v10483_v19, %s8732_s15  ;;  %5579 = vmatmul.mubr.bf16.gmra.mrb[4].mxu1 %v5349_v1 }
 0x35c   : >> { %v4533_v43 = vshll.u32 %v10513_v15, 16  ;;  %v4590_v53 = vrot.slane %v4588_v51, 1  ;;  %v4552_v2 = vshll.u32 %v10531_v52, 16  ;;  %v10552_v24 = vcombine.low %v4271_v29, %v10533_v50  ;;  %v4885_v51 = vld [vmem:[#allocation3 + $0x3c] sm:$0xe]  ;;  %4645 = vrot.lane.b32.xlu0 %v4524_v8, %s8732_s15  ;;  %7657 = vmatprep.mubr.msk.bf16.mxu1 %vm1494_vm11, %v5305_v47  ;;  %v8472_v58 = vld [vmem:[%s11393_s4 + $0x18] sm:$0xff]  }
 0x35d   : >> { %11551 = vst [vmem:[#allocation30_spill] sm:$0xff] %v10544_v46  ;;  %v4548_v9 = vsel %vm1172_vm9, %v4543_v14, %v4547_v20  ;;  %v10558_v5 = vsel %vm1445_vm10, %v5306_v11, %v5307_v45  ;;  %v4567_v15 = vor.u32 %v4566_v16, %v4562_v28  ;;  %v4593_v23 = vshll.u32 %v10521_v34, 16  ;;  %v5981_v42 = vld [vmem:[#allocation3 + $0x18] sm:$0xf]  ;;  %v10571_v11 = vld [vmem:[#allocation3 + $0xa0] sm:$0xf]  ;;  %5824 = vmatpush1.bf16.msra.mxu1 %v8463_v12 }
 0x35e   : >> { %11552 = vst [vmem:[#allocation31_spill] sm:$0xff] %v10552_v24  ;;  %v4531_v21 = vor.u32 %v4530_v26, %v4526_v35  ;;  %v4586_v29 = vshrl.u32 %v10501_v37, 16  ;;  %v10565_v48 = vld [vmem:[#allocation3 + $0xb0] ss:$0 sps:$4 sm:$0x11]   ;;  %v10569_v14 = vcombine.low %v5981_v42, %v5982_v22  ;;  %v4571_v34 = vrot.slane %v4569_v59, 1  ;;  %5825 = vmatprep.subr.bf16.mxu1 %v11527_v63 }
 0x35f   : >> { %v10567_v19 = vld [vmem:[#allocation3 + $0x8c] ss:$0 sps:$4 sm:$0x11]   ;;  %v4557_v45 = vshll.u32 %v10537_v57, 16  ;;  %v8610_v16 = vld [vmem:[#allocation3 + $0x40] sm:$0xf]  ;;  %4639 = vrot.lane.b32.xlu1 %v10526_v44, %s8732_s15 }
 0x360   : >> { %11553 = vst [vmem:[#allocation32_spill] sm:$0xff] %v10569_v14  ;;  %v7607_v20 = vcombine.low %v4885_v51, %v8610_v16  ;;  %v4612_v10 = vshll.u32 %v10544_v46, 16  ;;  %v4535_v26 = vrot.slane %v4533_v43, 1  ;;  %v4591_v28 = vor.u32 %v4590_v53, %v4586_v29  ;;  %v10581_v8 = vld [vmem:[#allocation3 + $0x20] ss:$0 sps:$4 sm:$0x11]   ;;  %4649 = vrot.lane.b32.xlu0 %v4548_v9, %s8732_s15  ;;  %v5222_v49 = vpop.permute.xlu0 %5221 }
 0x361   : >> { %v4554_v35 = vrot.slane %v4552_v2, 1  ;;  %v4576_v22 = vshll.u32 %v10552_v24, 16  ;;  %v4275_v59 = vld [vmem:[#allocation3 + $0x9c] sm:$0xf]  ;;  %v4512_v51 = vsel %vm1172_vm9, %v4507_v55, %v4511_v32  ;;  %v4572_v47 = vsel %vm1172_vm9, %v4567_v15, %v4571_v34  ;;  %v10596_v44 = vld [vmem:[#allocation3 + $0x34] sm:$0xf]  ;;  %5826 = vmatpush1.bf16.msra.mxu1 %v8472_v58 }
 0x362   : >> { %v4595_v43 = vrot.slane %v4593_v23, 1  ;;  %v8611_v12 = vld [vmem:[#allocation3 + $0x44] ss:$0 sps:$4 sm:$0x11]   ;;  %v4536_v42 = vsel %vm1172_vm9, %v4531_v21, %v4535_v26  ;;  %v4550_v1 = vshrl.u32 %v10531_v52, 16  ;;  %v6176_v29 = vshll.u32 %v10569_v14, 16  ;;  %5827 = vmatprep.subr.bf16.mxu1 %v11527_v63 }
 0x363   : >> { %v5310_v53 = vrot.slane %v8611_v12, 1  ;;  %v10588_v2 = vld [vmem:[#allocation3 + $0xa4] ss:$0 sps:$4 sm:$0x11]   ;;  %v10594_v16 = vcombine.low %v4275_v59, %v10571_v11  ;;  %v10598_v55 = vld [vmem:[#allocation3 + $0xb8] sm:$0xf]  ;;  %4643 = vrot.lane.b32.xlu1 %v4512_v51, %s8732_s15 }
 0x364   : >> { %v4559_v32 = vrot.slane %v4557_v45, 1  ;;  %v5309_v15 = vrot.slane %v7607_v20, 1  ;;  %v4614_v23 = vrot.slane %v4612_v10, 1  ;;  %v4617_v34 = vshll.u32 %v10565_v48, 16  ;;  %v5985_v12 = vld [vmem:[#allocation3 + $0x30] sm:$0xf]  ;;  %4653 = vrot.lane.b32.xlu0 %v4572_v47, %s8732_s15 }
 0x365   : >> { %11554 = vst [vmem:[#allocation33_spill] sm:$0xff] %v10594_v16  ;;  %v4596_v21 = vsel %vm1172_vm9, %v4591_v28, %v4595_v43  ;;  %v4555_v26 = vor.u32 %v4554_v35, %v4550_v1  ;;  %v4578_v37 = vrot.slane %v4576_v22, 1  ;;  %v4581_v52 = vshll.u32 %v10567_v19, 16  ;;  %v4279_v59 = vld [vmem:[#allocation3 + $0xb4] sm:$0xf]  ;;  %v8485_v54 = vld [vmem:[%s11393_s4 + $0x20] sm:$0xff]  }
 0x366   : >> { %v4610_v9 = vshrl.u32 %v10544_v46, 16  ;;  %v4574_v48 = vshrl.u32 %v10552_v24, 16  ;;  %v4886_v45 = vld [vmem:[#allocation3 + $0x48] sm:$0xe]  ;;  %v10611_v20 = vcombine.low %v5985_v12, %v10596_v44  ;;  %v10614_v10 = vcombine.low %v4279_v59, %v10598_v55  ;;  %v10616_v28 = vld [vmem:[#allocation3 + $0x4c] sm:$0xf]  ;;  %5828 = vmatpush1.bf16.msra.mxu1 %v8485_v54 }
 0x367   : >> { %v5352_v35 = vsel %vm1494_vm11, %v10218_v18, %v5222_v49  ;;  %v6178_v22 = vrot.slane %v6176_v29, 1  ;;  %v6181_v58 = vshll.u32 %v10581_v8, 16  ;;  %v4600_v51 = vshll.u32 %v10594_v16, 16  ;;  %v10623_v43 = vld [vmem:[#allocation3 + $0x28] sm:$0xf]  ;;  %4647 = vrot.lane.b32.xlu1 %v4536_v42, %s8732_s15  ;;  %5829 = vmatprep.subr.bf16.mxu1 %v11527_v63 }
 0x368   : >> { %11555 = vst [vmem:[#allocation34_spill] sm:$0xff] %v10611_v20  ;;  %11556 = vst [vmem:[#allocation35_spill] sm:$0xff] %v10614_v10  ;;  %5587 = vmatmul.mubr.bf16.gmra.mrb[8].mxu1 %v5352_v35  ;;  %v10627_v1 = vsel %vm1445_vm10, %v5309_v15, %v5310_v53  ;;  %v4615_v12 = vor.u32 %v4614_v23, %v4610_v9  ;;  %v4605_v59 = vshll.u32 %v10588_v2, 16  ;;  %v8612_v46 = vld [vmem:[#allocation3 + $0x4c] sm:$0xf]  ;;  %v4619_v49 = vrot.slane %v4617_v34, 1 }
 0x369   : >> { %v7608_v24 = vcombine.low %v4886_v45, %v8612_v46  ;;  %v10630_v17 = vld [vmem:[#allocation3 + $0x38] ss:$0 sps:$4 sm:$0x11]   ;;  %v5989_v18 = vld [vmem:[#allocation3 + $0x48] sm:$0xf]  ;;  %7658 = vmatprep.mubr.msk.bf16.mxu1 %vm1494_vm11, %v10558_v5  ;;  %v4579_v8 = vor.u32 %v4578_v37, %v4574_v48  ;;  %v6174_v29 = vshrl.u32 %v10569_v14, 16  ;;  %v4560_v54 = vsel %vm1172_vm9, %v4555_v26, %v4559_v32  ;;  %4657 = vrot.lane.b32.xlu0 %v4596_v21, %s8732_s15 }
 0x36a   : >> { %v10636_v47 = vcombine.low %v5989_v18, %v10616_v28  ;;  %v5983_v53 = vld [vmem:[#allocation3 + $0x24] sm:$0xf]  ;;  %v8498_v15 = vld [vmem:[%s11393_s4 + $0x28] sm:$0xff]   ;;  %v4583_v46 = vrot.slane %v4581_v52, 1  ;;  %v6200_v23 = vshll.u32 %v10611_v20, 16  ;;  %v4624_v5 = vshll.u32 %v10614_v10, 16 }
 0x36b   : >> { %v10644_v34 = vld [vmem:[#allocation3 + $0x50] ss:$0 sps:$4 sm:$0x11]   ;;  %v10647_v37 = vcombine.low %v5983_v53, %v10623_v43  ;;  %v10649_v9 = vld [vmem:[#allocation3 + $0x64] sm:$0xf]  ;;  %v6179_v48 = vor.u32 %v6178_v22, %v6174_v29  ;;  %v6183_v45 = vrot.slane %v6181_v58, 1  ;;  %v4620_v52 = vsel %vm1172_vm9, %v4615_v12, %v4619_v49  ;;  %5830 = vmatpush1.bf16.msra.mxu1 %v8498_v15  ;;  %v5224_v58 = vpop.permute.xlu1 %5223  ;;  %4651 = vrot.lane.b32.xlu1 %v4560_v54, %s8732_s15 }
 0x36c   : >> { %11557 = vst [vmem:[#allocation36_spill] sm:$0xff] %v10636_v47  ;;  %v4602_v35 = vrot.slane %v4600_v51, 1  ;;  %v10653_v42 = vld [vmem:[#allocation3 + $0xbc] ss:$0 sps:$4 sm:$0x11]   ;;  %v4598_v18 = vshrl.u32 %v10594_v16, 16  ;;  %v4584_v4 = vsel %vm1172_vm9, %v4579_v8, %v4583_v46  ;;  %5831 = vmatprep.subr.bf16.mxu1 %v11527_v63  ;;  %v5355_v49 = vsel %vm1494_vm11, %v10238_v39, %v5224_v58 }
 0x36d   : >> { %11558 = vst [vmem:[#allocation37_spill] sm:$0xff] %v10647_v37  ;;  %v4607_v14 = vrot.slane %v4605_v59, 1  ;;  %v5312_v53 = vrot.slane %v7608_v24, 1  ;;  %v5993_v56 = vld [vmem:[#allocation3 + $0x60] sm:$0xf]  ;;  %v6205_v32 = vshll.u32 %v10630_v17, 16  ;;  %v6184_v8 = vsel %vm1172_vm9, %v6179_v48, %v6183_v45  ;;  %4661 = vrot.lane.b32.xlu0 %v4620_v52, %s8732_s15 }
 0x36e   : >> { %v8613_v41 = vld [vmem:[#allocation3 + $0x50] ss:$0 sps:$4 sm:$0x11]   ;;  %v6224_v26 = vshll.u32 %v10636_v47, 16  ;;  %v10661_v22 = vld [vmem:[#allocation3 + $0x40] sm:$0xf]  ;;  %v10671_v59 = vcombine.low %v5993_v56, %v10649_v9  ;;  %v4603_v29 = vor.u32 %v4602_v35, %v4598_v18 }
 0x36f   : >> { %v5313_v61 = vrot.slane %v8613_v41, 1  ;;  %v8507_v21 = vld [vmem:[%s11393_s4 + $0x30] sm:$0xff]   ;;  %v6202_v24 = vrot.slane %v6200_v23, 1  ;;  %v4626_v51 = vrot.slane %v4624_v5, 1  ;;  %v6188_v41 = vshll.u32 %v10647_v37, 16  ;;  %4655 = vrot.lane.b32.xlu1 %v4584_v4, %s8732_s15 }
 0x370   : >> { %v10667_v12 = vld [vmem:[#allocation3 + $0x2c] ss:$0 sps:$4 sm:$0x11]   ;;  %11559 = vst [vmem:[#allocation38_spill] sm:$0xff] %v10671_v59  ;;  %v4629_v15 = vshll.u32 %v10653_v42, 16  ;;  %5595 = vmatmul.mubr.bf16.gmra.mrb[12].mxu1 %v5355_v49  ;;  %v6198_v5 = vshrl.u32 %v10611_v20, 16 }
 0x371   : >> { %v4887_v46 = vld [vmem:[#allocation3 + $0x54] sm:$0xe]  ;;  %v5987_v23 = vld [vmem:[#allocation3 + $0x3c] sm:$0xf]  ;;  %v4622_v56 = vshrl.u32 %v10614_v10, 16  ;;  %v6229_v54 = vshll.u32 %v10644_v34, 16  ;;  %7659 = vmatprep.mubr.msk.bf16.mxu1 %vm1494_vm11, %v10627_v1  ;;  %v5314_v48 = vsel %vm1445_vm10, %v5312_v53, %v5313_v61  ;;  %5832 = vmatpush1.bf16.msra.mxu1 %v8507_v21 }
 0x372   : >> { %v10683_v16 = vcombine.low %v5987_v23, %v10661_v22  ;;  %v10685_v39 = vld [vmem:[#allocation3 + $0x7c] sm:$0xf]  ;;  %v6207_v45 = vrot.slane %v6205_v32, 1  ;;  %v6226_v35 = vrot.slane %v6224_v26, 1  ;;  %v8614_v18 = vld [vmem:[#allocation3 + $0x58] sm:$0xf]  ;;  %v6203_v23 = vor.u32 %v6202_v24, %v6198_v5  ;;  %5833 = vmatprep.subr.bf16.mxu1 %v11527_v63  ;;  %6365 = vrot.lane.b32.xlu0 %v6184_v8, %s8732_s15 }
 0x373   : >> { %11561 = vst [vmem:[#allocation40_spill] sm:$0xff] %v10685_v39  ;;  %v7609_v52 = vcombine.low %v4887_v46, %v8614_v18  ;;  %v10690_v58 = vld [vmem:[#allocation3 + $0x68] ss:$0 sps:$4 sm:$0x11]   ;;  %v8510_v49 = vld [vmem:[%s11393_s4 + $0x38] sm:$0xff]   ;;  %v4627_v20 = vor.u32 %v4626_v51, %v4622_v56  ;;  %v6190_v10 = vrot.slane %v6188_v41, 1  ;;  %v4608_v32 = vsel %vm1172_vm9, %v4603_v29, %v4607_v14 }
 0x374   : >> { %11560 = vst [vmem:[#allocation39_spill] sm:$0xff] %v10683_v16  ;;  %v6248_v1 = vshll.u32 %v10671_v59, 16  ;;  %v10697_v0 = vld [vmem:[#allocation3 + $0x44] ss:$0 sps:$4 sm:$0x11]   ;;  %v4631_v26 = vrot.slane %v4629_v15, 1  ;;  %4659 = vrot.lane.b32.xlu1 %v4608_v32, %s8732_s15 }
 0x375   : >> { %v5997_v61 = vld [vmem:[#allocation3 + $0x78] sm:$0xf]  ;;  %v6222_v21 = vshrl.u32 %v10636_v47, 16  ;;  %v5991_v4 = vld [vmem:[#allocation3 + $0x54] sm:$0xf]  ;;  %v6231_v24 = vrot.slane %v6229_v54, 1  ;;  %5834 = vmatpush1.bf16.msra.mxu1 %v8510_v49  ;;  %v5226_v54 = vpop.permute.xlu0 %5225 }
 0x376   : >> { %v10699_v53 = vld [vmem:[#allocation3 + $0x58] sm:$0xf]  ;;  %v10705_v46 = vcombine.low %v5997_v61, %v10685_v39  ;;  %v6186_v51 = vshrl.u32 %v10647_v37, 16  ;;  %v6193_v41 = vshll.u32 %v10667_v12, 16  ;;  %v6212_v5 = vshll.u32 %v10683_v16, 16  ;;  %v8512_v8 = vld [vmem:[%s11393_s4 + $0x40] sm:$0xff]   ;;  %5835 = vmatprep.subr.bf16.mxu1 %v11527_v63 }
 0x377   : >> { %v10711_v56 = vld [vmem:[#allocation3 + $0x94] sm:$0xf]  ;;  %v6227_v18 = vor.u32 %v6226_v35, %v6222_v21  ;;  %v5315_v14 = vrot.slane %v7609_v52, 1  ;;  %v8615_v29 = vld [vmem:[#allocation3 + $0x5c] ss:$0 sps:$4 sm:$0x11]   ;;  %v10714_v47 = vcombine.low %v5991_v4, %v10699_v53  ;;  %v6208_v37 = vsel %vm1172_vm9, %v6203_v23, %v6207_v45 }
 0x378   : >> { %11562 = vst [vmem:[#allocation41_spill] sm:$0xff] %v10705_v46  ;;  %11563 = vst [vmem:[#allocation42_spill] sm:$0xff] %v10711_v56  ;;  %v5316_v15 = vrot.slane %v8615_v29, 1  ;;  %v10716_v61 = vld [vmem:[#allocation3 + $0x70] sm:$0xf]  ;;  %v4632_v35 = vsel %vm1172_vm9, %v4627_v20, %v4631_v26  ;;  %v6191_v52 = vor.u32 %v6190_v10, %v6186_v51  ;;  %v6250_v21 = vrot.slane %v6248_v1, 1  ;;  %6369 = vrot.lane.b32.xlu0 %v6208_v37, %s8732_s15 }
 0x379   : >> { %11564 = vst [vmem:[#allocation43_spill] sm:$0xff] %v10714_v47  ;;  %11565 = vst [vmem:[#allocation44_spill] sm:$0xff] %v10716_v61  ;;  %v10724_v29 = vld [vmem:[#allocation3 + $0x80] ss:$0 sps:$4 sm:$0x11]   ;;  %v5358_v49 = vsel %vm1494_vm11, %v10256_v38, %v5226_v54  ;;  %v6253_v6 = vshll.u32 %v10690_v58, 16  ;;  %v6232_v51 = vsel %vm1172_vm9, %v6227_v18, %v6231_v24  ;;  %5836 = vmatpush1.bf16.msra.mxu1 %v8512_v8  ;;  %4663 = vrot.lane.b32.xlu1 %v4632_v35, %s8732_s15 }
 0x37a   : >> { %11566 = vst [vmem:[#allocation45_spill] sm:$0xff] %v10724_v29  ;;  %v6001_v4 = vld [vmem:[#allocation3 + $0x90] sm:$0xf]  ;;  %v6272_v62 = vshll.u32 %v10705_v46, 16  ;;  %v5995_v45 = vld [vmem:[#allocation3 + $0x6c] sm:$0xf]  ;;  %5603 = vmatmul.mubr.bf16.gmra.mrb[16].mxu1 %v5358_v49  ;;  %5837 = vmatprep.subr.bf16.mxu1 %v11527_v63 }
 0x37b   : >> { %v10732_v32 = vcombine.low %v6001_v4, %v10711_v56  ;;  %v10734_v23 = vld [vmem:[#allocation3 + $0xac] sm:$0xf]  ;;  %v6246_v20 = vshrl.u32 %v10671_v59, 16  ;;  %v6214_v10 = vrot.slane %v6212_v5, 1  ;;  %v6217_v1 = vshll.u32 %v10697_v0, 16  ;;  %7660 = vmatprep.mubr.msk.bf16.mxu1 %vm1494_vm11, %v5314_v48  ;;  %v8514_v5 = vld [vmem:[%s11393_s4 + $0x48] sm:$0xff]  }
 0x37c   : >> { %11568 = vst [vmem:[#allocation47_spill] sm:$0xff] %v10734_v23  ;;  %v10739_v26 = vld [vmem:[#allocation3 + $0x5c] ss:$0 sps:$4 sm:$0x11]   ;;  %v10742_v38 = vcombine.low %v5995_v45, %v10716_v61  ;;  %v6195_v54 = vrot.slane %v6193_v41, 1  ;;  %v5317_v4 = vsel %vm1445_vm10, %v5315_v14, %v5316_v15  ;;  %v6236_v49 = vshll.u32 %v10714_v47, 16  ;;  %6373 = vrot.lane.b32.xlu0 %v6232_v51, %s8732_s15 }
 0x37d   : >> { %11567 = vst [vmem:[#allocation46_spill] sm:$0xff] %v10732_v32  ;;  %v6005_v37 = vld [vmem:[#allocation3 + $0xa8] sm:$0xf]  ;;  %v6251_v59 = vor.u32 %v6250_v21, %v6246_v20  ;;  %v6210_v45 = vshrl.u32 %v10683_v16, 16  ;;  %v6277_v48 = vshll.u32 %v10724_v29, 16  ;;  %v6255_v15 = vrot.slane %v6253_v6, 1  ;;  %5838 = vmatpush1.bf16.msra.mxu1 %v8514_v5 }
 0x37e   : >> { %11569 = vst [vmem:[#allocation48_spill] sm:$0xff] %v10742_v38  ;;  %v4888_v3 = vld [vmem:[#allocation3 + $0x60] sm:$0xe]  ;;  %v10754_v24 = vld [vmem:[#allocation3 + $0x98] ss:$0 sps:$4 sm:$0x11]   ;;  %v10757_v41 = vcombine.low %v6005_v37, %v10734_v23  ;;  %v6196_v14 = vsel %vm1172_vm9, %v6191_v52, %v6195_v54  ;;  %5839 = vmatprep.subr.bf16.mxu1 %v11527_v63 }
 0x37f   : >> { %v10759_v18 = vld [vmem:[#allocation3 + $0x88] sm:$0xf]  ;;  %v6274_v8 = vrot.slane %v6272_v62, 1  ;;  %v6296_v35 = vshll.u32 %v10732_v32, 16  ;;  %v5999_v21 = vld [vmem:[#allocation3 + $0x84] sm:$0xf]  ;;  %v6215_v20 = vor.u32 %v6214_v10, %v6210_v45  ;;  %6367 = vrot.lane.b32.xlu1 %v6196_v14, %s8732_s15  ;;  %v6256_v51 = vsel %vm1172_vm9, %v6251_v59, %v6255_v15 }
 0x380   : >> { %11570 = vst [vmem:[#allocation49_spill] sm:$0xff] %v10759_v18  ;;  %v6219_v16 = vrot.slane %v6217_v1, 1  ;;  %v6270_v13 = vshrl.u32 %v10705_v46, 16  ;;  %v10766_v31 = vld [vmem:[#allocation3 + $0x74] ss:$0 sps:$4 sm:$0x11]   ;;  %v10773_v54 = vcombine.low %v5999_v21, %v10759_v18  ;;  %v5228_v1 = vpop.permute.xlu1 %5227  ;;  %6377 = vrot.lane.b32.xlu0 %v6256_v51, %s8732_s15 }
 0x381   : >> { %v6260_v37 = vshll.u32 %v10742_v38, 16  ;;  %v10769_v23 = vld [vmem:[#allocation3 + $0xc4] sm:$0xf]  ;;  %v6238_v56 = vrot.slane %v6236_v49, 1  ;;  %v6241_v52 = vshll.u32 %v10739_v26, 16  ;;  %v8517_v10 = vld [vmem:[%s11393_s4 + $0x50] sm:$0xff]   ;;  %v5361_v5 = vsel %vm1494_vm11, %v10272_v40, %v5228_v1 }
 0x382   : >> { %11571 = vst [vmem:[#allocation50_spill] sm:$0xff] %v10769_v23  ;;  %v8616_v6 = vld [vmem:[#allocation3 + $0x64] sm:$0xf]  ;;  %v6009_v29 = vld [vmem:[#allocation3 + $0xc0] sm:$0xf]  ;;  %v6279_v45 = vrot.slane %v6277_v48, 1  ;;  %v6275_v21 = vor.u32 %v6274_v8, %v6270_v13  ;;  %5611 = vmatmul.mubr.bf16.gmra.mrb[20].mxu1 %v5361_v5  ;;  %v6220_v59 = vsel %vm1172_vm9, %v6215_v20, %v6219_v16 }
 0x383   : >> { %v7610_v62 = vcombine.low %v4888_v3, %v8616_v6  ;;  %v6234_v49 = vshrl.u32 %v10714_v47, 16  ;;  %v6320_v46 = vshll.u32 %v10757_v41, 16  ;;  %v10782_v3 = vld [vmem:[#allocation3 + $0xa0] sm:$0xf]  ;;  %v6298_v6 = vrot.slane %v6296_v35, 1  ;;  %7661 = vmatprep.mubr.msk.bf16.mxu1 %vm1494_vm11, %v5317_v4  ;;  %5840 = vmatpush1.bf16.msra.mxu1 %v8517_v10 }
 0x384   : >> { %v10787_v18 = vld [vmem:[#allocation3 + $0xb0] ss:$0 sps:$4 sm:$0x11]   ;;  %v10790_v14 = vcombine.low %v6009_v29, %v10769_v23  ;;  %v8617_v48 = vld [vmem:[#allocation3 + $0x68] ss:$0 sps:$4 sm:$0x11]   ;;  %6371 = vrot.lane.b32.xlu1 %v6220_v59, %s8732_s15  ;;  %5841 = vmatprep.subr.bf16.mxu1 %v11527_v63 }
 0x385   : >> { %v5319_v15 = vrot.slane %v8617_v48, 1  ;;  %v6301_v47 = vshll.u32 %v10754_v24, 16  ;;  %v6262_v39 = vrot.slane %v6260_v37, 1  ;;  %v6003_v61 = vld [vmem:[#allocation3 + $0x9c] sm:$0xf]  ;;  %v6239_v40 = vor.u32 %v6238_v56, %v6234_v49  ;;  %v8519_v16 = vld [vmem:[%s11393_s4 + $0x58] sm:$0xff]  }
 0x386   : >> { %v6294_v13 = vshrl.u32 %v10732_v32, 16  ;;  %v10797_v8 = vld [vmem:[#allocation3 + $0x8c] ss:$0 sps:$4 sm:$0x11]   ;;  %v6284_v29 = vshll.u32 %v10773_v54, 16  ;;  %v10801_v35 = vcombine.low %v6003_v61, %v10782_v3  ;;  %v5318_v20 = vrot.slane %v7610_v62, 1 }
 0x387   : >> { %v6258_v4 = vshrl.u32 %v10742_v38, 16  ;;  %v6265_v56 = vshll.u32 %v10766_v31, 16  ;;  %v6322_v37 = vrot.slane %v6320_v46, 1  ;;  %v10809_v1 = vld [vmem:[#allocation3 + $0xb8] sm:$0xf]  ;;  %v6280_v61 = vsel %vm1172_vm9, %v6275_v21, %v6279_v45  ;;  %5842 = vmatpush1.bf16.msra.mxu1 %v8519_v16  ;;  %v5230_v21 = vpop.permute.xlu0 %5229 }
 0x388   : >> { %v6243_v51 = vrot.slane %v6241_v52, 1  ;;  %v6299_v10 = vor.u32 %v6298_v6, %v6294_v13  ;;  %v10813_v49 = vld [vmem:[#allocation3 + $0xc8] ss:$0 sps:$4 sm:$0x11]   ;;  %v6344_v5 = vshll.u32 %v10790_v14, 16  ;;  %6381 = vrot.lane.b32.xlu0 %v6280_v61, %s8732_s15  ;;  %v6303_v62 = vrot.slane %v6301_v47, 1  ;;  %6686 = vmatprep.subr.bf16.mxu1 %v11527_v63 }
 0x389   : >> { %v6263_v59 = vor.u32 %v6262_v39, %v6258_v4  ;;  %v6318_v48 = vshrl.u32 %v10757_v41, 16  ;;  %v6325_v46 = vshll.u32 %v10787_v18, 16  ;;  %v6007_v32 = vld [vmem:[#allocation3 + $0xb4] sm:$0xf]  ;;  %v6286_v23 = vrot.slane %v6284_v29, 1 }
 0x38a   : >> { %v6244_v38 = vsel %vm1172_vm9, %v6239_v40, %v6243_v51  ;;  %v6308_v45 = vshll.u32 %v10801_v35, 16  ;;  %v10822_v52 = vcombine.low %v6007_v32, %v10809_v1  ;;  %v5320_v47 = vsel %vm1445_vm10, %v5318_v20, %v5319_v15  ;;  %v4889_v4 = vld [vmem:[#allocation3 + $0x6c] sm:$0xe]  ;;  %v10832_v61 = vld [vmem:[#allocation3 + $0xa4] ss:$0 sps:$4 sm:$0x11]  }
 0x38b   : >> { %6375 = vrot.lane.b32.xlu1 %v6244_v38, %s8732_s15  ;;  %v6267_v39 = vrot.slane %v6265_v56, 1  ;;  %v6323_v6 = vor.u32 %v6322_v37, %v6318_v48  ;;  %v6289_v13 = vshll.u32 %v10797_v8, 16  ;;  %v5364_v40 = vsel %vm1494_vm11, %v10290_v36, %v5230_v21  ;;  %v8618_v20 = vld [vmem:[#allocation3 + $0x70] sm:$0xf] }
 0x38c   : >> { %v6304_v29 = vsel %vm1172_vm9, %v6299_v10, %v6303_v62  ;;  %v6282_v32 = vshrl.u32 %v10773_v54, 16  ;;  %v6346_v16 = vrot.slane %v6344_v5, 1  ;;  %5619 = vmatmul.mubr.bf16.gmra.mrb[24].mxu1 %v5364_v40  ;;  %v6327_v15 = vrot.slane %v6325_v46, 1  ;;  %v4896_v62 = vld [vmem:[#allocation3 + $0xc0] sm:$0xe] }
 0x38d   : >> { %6385 = vrot.lane.b32.xlu0 %v6304_v29, %s8732_s15  ;;  %v6268_v38 = vsel %vm1172_vm9, %v6263_v59, %v6267_v39  ;;  %v7611_v56 = vcombine.low %v4889_v4, %v8618_v20  ;;  %v6349_v37 = vshll.u32 %v10813_v49, 16  ;;  %7662 = vmatprep.mubr.msk.bf16.mxu1 %vm1494_vm11, %v5320_v47  ;;  %v6342_v51 = vshrl.u32 %v10790_v14, 16  ;;  %v10842_v59 = vld [vmem:[#allocation3 + $0xbc] ss:$0 sps:$4 sm:$0x11]   ;;  %v5232_v20 = vpop.permute.xlu1 %5231 }
 0x38e   : >> { %v6287_v36 = vor.u32 %v6286_v23, %v6282_v32  ;;  %v6310_v10 = vrot.slane %v6308_v45, 1  ;;  %v6332_v5 = vshll.u32 %v10822_v52, 16  ;;  %v6328_v48 = vsel %vm1172_vm9, %v6323_v6, %v6327_v15  ;;  %v8619_v40 = vld [vmem:[#allocation3 + $0x74] ss:$0 sps:$4 sm:$0x11]  }
 0x38f   : >> { %6379 = vrot.lane.b32.xlu1 %v6268_v38, %s8732_s15  ;;  %v6291_v21 = vrot.slane %v6289_v13, 1  ;;  %v7618_v46 = vcombine.low %v4896_v62, %v10467_v33  ;;  %v6347_v39 = vor.u32 %v6346_v16, %v6342_v51  ;;  %v6306_v4 = vshrl.u32 %v10801_v35, 16 }
 0x390   : >> { %v6313_v23 = vshll.u32 %v10832_v61, 16  ;;  %v5343_v47 = vrot.slane %v10480_v60, 1  ;;  %v5321_v45 = vrot.slane %v7611_v56, 1  ;;  %v5322_v29 = vrot.slane %v8619_v40, 1  ;;  %v8622_v40 = vld [vmem:[#allocation3 + $0x88] sm:$0xf] }
 0x391   : >> { %6389 = vrot.lane.b32.xlu0 %v6328_v48, %s8732_s15  ;;  %v5342_v32 = vrot.slane %v7618_v46, 1  ;;  %v6292_v6 = vsel %vm1172_vm9, %v6287_v36, %v6291_v21  ;;  %v6351_v13 = vrot.slane %v6349_v37, 1  ;;  %v6311_v38 = vor.u32 %v6310_v10, %v6306_v4  ;;  %v4890_v36 = vld [vmem:[#allocation3 + $0x78] sm:$0xe]  ;;  %v8620_v10 = vld [vmem:[#allocation3 + $0x7c] sm:$0xf] }
 0x392   : >> { %v6334_v15 = vrot.slane %v6332_v5, 1  ;;  %v6337_v33 = vshll.u32 %v10842_v59, 16  ;;  %v5367_v60 = vsel %vm1494_vm11, %v10306_v7, %v5232_v20  ;;  %v6315_v51 = vrot.slane %v6313_v23, 1  ;;  %v4891_v46 = vld [vmem:[#allocation3 + $0x84] sm:$0xe] }
 0x393   : >> { %6383 = vrot.lane.b32.xlu1 %v6292_v6, %s8732_s15  ;;  %v10853_v16 = vsel %vm1445_vm10, %v5342_v32, %v5343_v47  ;;  %v6352_v56 = vsel %vm1172_vm9, %v6347_v39, %v6351_v13  ;;  %v6330_v62 = vshrl.u32 %v10822_v52, 16  ;;  %v5323_v37 = vsel %vm1445_vm10, %v5321_v45, %v5322_v29  ;;  %v4306_v39 = vld [vmem:[#allocation3 + $0x6c] sm:$0xe]  ;;  %v8621_v23 = vld [vmem:[#allocation3 + $0x80] ss:$0 sps:$4 sm:$0x11]   ;;  %v5234_v13 = vpop.permute.xlu0 %5233 }
 0x394   : >> { %5627 = vmatmul.mubr.bf16.gmra.mrb[28].mxu1 %v5367_v60  ;;  %v7612_v5 = vcombine.low %v4890_v36, %v8620_v10  ;;  %v6316_v48 = vsel %vm1172_vm9, %v6311_v38, %v6315_v51  ;;  %v6339_v7 = vrot.slane %v6337_v33, 1  ;;  %v5325_v47 = vrot.slane %v8621_v23, 1  ;;  %v4892_v33 = vld [vmem:[#allocation3 + $0x90] sm:$0xe] }
 0x395   : >> { %6393 = vrot.lane.b32.xlu0 %v6352_v56, %s8732_s15  ;;  %7663 = vmatprep.mubr.msk.bf16.mxu1 %vm1494_vm11, %v5323_v37  ;;  %v6335_v21 = vor.u32 %v6334_v15, %v6330_v62  ;;  %v7613_v32 = vcombine.low %v4891_v46, %v8622_v40  ;;  %v7564_v45 = vcombine.low %v4306_v39, %v10503_v27  ;;  %v4741_v6 = vrot.slane %v10537_v57, 1  ;;  %v4308_v15 = vld [vmem:[#allocation3 + $0x84] sm:$0xe]  ;;  %v8623_v62 = vld [vmem:[#allocation3 + $0x94] sm:$0xf] }
 0x396   : >> { %v5324_v4 = vrot.slane %v7612_v5, 1  ;;  %v5370_v20 = vsel %vm1494_vm11, %v10324_v30, %v5234_v13  ;;  %v7566_v60 = vcombine.low %v4308_v15, %v10533_v50  ;;  %v4747_v56 = vrot.slane %v10567_v19, 1  ;;  %v4310_v37 = vld [vmem:[#allocation3 + $0x9c] sm:$0xe]  ;;  %v4312_v19 = vld [vmem:[#allocation3 + $0xb4] sm:$0xe]  ;;  %v5236_v13 = vpop.permute.xlu1 %5235 }
 0x397   : >> { %6387 = vrot.lane.b32.xlu1 %v6316_v48, %s8732_s15  ;;  %v6340_v29 = vsel %vm1172_vm9, %v6335_v21, %v6339_v7  ;;  %v4740_v38 = vrot.slane %v7564_v45, 1  ;;  %v5327_v51 = vrot.slane %v7613_v32, 1  ;;  %v7614_v36 = vcombine.low %v4892_v33, %v8623_v62  ;;  %v8624_v10 = vld [vmem:[#allocation3 + $0x8c] ss:$0 sps:$4 sm:$0x11]  }
 0x398   : >> { %v5326_v27 = vsel %vm1445_vm10, %v5324_v4, %v5325_v47  ;;  %v5328_v5 = vrot.slane %v8624_v10, 1  ;;  %v4746_v30 = vrot.slane %v7566_v60, 1  ;;  %v7568_v48 = vcombine.low %v4310_v37, %v10571_v11  ;;  %v8625_v23 = vld [vmem:[#allocation3 + $0x98] ss:$0 sps:$4 sm:$0x11]  }
 0x399   : >> { %v10874_v57 = vsel %vm1445_vm10, %v4740_v38, %v4741_v6  ;;  %v4753_v50 = vrot.slane %v10588_v2, 1  ;;  %v7570_v21 = vcombine.low %v4312_v19, %v10598_v55  ;;  %v4759_v39 = vrot.slane %v10653_v42, 1  ;;  %v6030_v32 = vld [vmem:[#allocation3 + $0x24] sm:$0xe]  ;;  %v6031_v6 = vld [vmem:[#allocation3 + $0x30] sm:$0xe] }
 0x39a   : >> { %v10881_v7 = vsel %vm1445_vm10, %v4746_v30, %v4747_v56  ;;  %v4752_v46 = vrot.slane %v7568_v48, 1  ;;  %v5330_v4 = vrot.slane %v7614_v36, 1  ;;  %v5331_v47 = vrot.slane %v8625_v23, 1  ;;  %v10892_v38 = vld [vmem:[#allocation3 + $0xa0] sm:$0xf] }
 0x39b   : >> { %6391 = vrot.lane.b32.xlu1 %v6340_v29, %s8732_s15  ;;  %v4758_v40 = vrot.slane %v7570_v21, 1  ;;  %v5329_v45 = vsel %vm1445_vm10, %v5327_v51, %v5328_v5  ;;  %v10885_v29 = vld [vmem:[#allocation3 + $0x9c] sm:$0xe]  ;;  %v7732_v2 = vcombine.low %v6030_v32, %v10623_v43  ;;  %v6449_v55 = vrot.slane %v10667_v12, 1  ;;  %v6033_v51 = vld [vmem:[#allocation3 + $0x48] sm:$0xe] }
 0x39c   : >> { %5635 = vmatmul.mubr.bf16.gmra.mrb[32].mxu1 %v5370_v20  ;;  %v10888_v11 = vsel %vm1445_vm10, %v4752_v46, %v4753_v50  ;;  %v7615_v42 = vcombine.low %v10885_v29, %v10892_v38  ;;  %v7733_v20 = vcombine.low %v6031_v6, %v10596_v44  ;;  %v6452_v33 = vrot.slane %v10630_v17, 1  ;;  %v6032_v60 = vld [vmem:[#allocation3 + $0x3c] sm:$0xe]  ;;  %v6034_v10 = vld [vmem:[#allocation3 + $0x54] sm:$0xe]  ;;  %v11572_v46 = vld [vmem:[#allocation44_spill] sm:$0xff] }
 0x39d   : >> { %7664 = vmatprep.mubr.msk.bf16.mxu1 %vm1494_vm11, %v5326_v27  ;;  %v10897_v15 = vsel %vm1445_vm10, %v4758_v40, %v4759_v39  ;;  %v5373_v43 = vsel %vm1494_vm11, %v10340_v25, %v5236_v13  ;;  %v6448_v56 = vrot.slane %v7732_v2, 1  ;;  %v7734_v12 = vcombine.low %v6032_v60, %v10661_v22  ;;  %v6035_v5 = vld [vmem:[#allocation3 + $0x60] sm:$0xe]  ;;  %v6036_v50 = vld [vmem:[#allocation3 + $0x6c] sm:$0xe] }
 0x39e   : >> { %v6455_v27 = vrot.slane %v10697_v0, 1  ;;  %v5332_v62 = vsel %vm1445_vm10, %v5330_v4, %v5331_v47  ;;  %v6451_v36 = vrot.slane %v7733_v20, 1  ;;  %v7735_v37 = vcombine.low %v6033_v51, %v10616_v28  ;;  %v6037_v4 = vld [vmem:[#allocation3 + $0x78] sm:$0xe]  ;;  %v11573_v47 = vld [vmem:[#allocation40_spill] sm:$0xff]  ;;  %v11574_v32 = vld [vmem:[#allocation45_spill] sm:$0xff] }
 0x39f   : >> { %v6458_v44 = vrot.slane %v10644_v34, 1  ;;  %v10910_v17 = vsel %vm1445_vm10, %v6448_v56, %v6449_v55  ;;  %v6454_v25 = vrot.slane %v7734_v12, 1  ;;  %v7736_v22 = vcombine.low %v6034_v10, %v10699_v53  ;;  %v11575_v55 = vld [vmem:[#allocation49_spill] sm:$0xff]  ;;  %v6039_v20 = vld [vmem:[#allocation3 + $0x90] sm:$0xe] }
 0x3a0   : >> { %v6461_v0 = vrot.slane %v10739_v26, 1  ;;  %v10915_v30 = vsel %vm1445_vm10, %v6451_v36, %v6452_v33  ;;  %v6457_v48 = vrot.slane %v7735_v37, 1  ;;  %v7737_v28 = vcombine.low %v6035_v5, %v10649_v9  ;;  %v11577_v51 = vld [vmem:[#allocation17_spill] sm:$0xff]  ;;  %v11578_v5 = vld [vmem:[#allocation47_spill] sm:$0xff] }
 0x3a1   : >> { %v6464_v34 = vrot.slane %v10690_v58, 1  ;;  %v10920_v19 = vsel %vm1445_vm10, %v6454_v25, %v6455_v27  ;;  %v6460_v21 = vrot.slane %v7736_v22, 1  ;;  %v7738_v39 = vcombine.low %v6036_v50, %v11572_v46  ;;  %v6040_v27 = vld [vmem:[#allocation3 + $0x9c] sm:$0xe]  ;;  %v6041_v10 = vld [vmem:[#allocation3 + $0xa8] sm:$0xe] }
 0x3a2   : >> { %v6467_v53 = vrot.slane %v10766_v31, 1  ;;  %v10925_v26 = vsel %vm1445_vm10, %v6457_v48, %v6458_v44  ;;  %v6463_v23 = vrot.slane %v7737_v28, 1  ;;  %v7739_v40 = vcombine.low %v6037_v4, %v11573_v47  ;;  %v5238_v31 = vpop.permute.xlu0 %5237  ;;  %v6042_v48 = vld [vmem:[#allocation3 + $0xb4] sm:$0xe]  ;;  %v8628_v38 = vld [vmem:[#allocation3 + $0xac] sm:$0xf] }
 0x3a3   : >> { %v6470_v9 = vrot.slane %v11574_v32, 1  ;;  %v10930_v58 = vsel %vm1445_vm10, %v6460_v21, %v6461_v0  ;;  %v6466_v2 = vrot.slane %v7738_v39, 1  ;;  %v6473_v13 = vrot.slane %v10797_v8, 1  ;;  %v6043_v21 = vld [vmem:[#allocation3 + $0xc0] sm:$0xe] }
 0x3a4   : >> { %5643 = vmatmul.mubr.bf16.gmra.mrb[36].mxu1 %v5373_v43  ;;  %v10935_v33 = vsel %vm1445_vm10, %v6463_v23, %v6464_v34  ;;  %v6469_v60 = vrot.slane %v7739_v40, 1  ;;  %v11576_v43 = vld [vmem:[#allocation42_spill] sm:$0xff]  ;;  %v6476_v12 = vrot.slane %v10754_v24, 1  ;;  %v5376_v36 = vsel %vm1494_vm11, %v11577_v51, %v5238_v31  ;;  %v8630_v51 = vld [vmem:[#allocation3 + $0xb8] sm:$0xf] }
 0x3a5   : >> { %7665 = vmatprep.mubr.msk.bf16.mxu1 %vm1494_vm11, %v5329_v45  ;;  %v6038_v45 = vld [vmem:[#allocation3 + $0x84] sm:$0xe]  ;;  %v7741_v56 = vcombine.low %v6039_v20, %v11576_v43  ;;  %v10942_v37 = vsel %vm1445_vm10, %v6466_v2, %v6467_v53  ;;  %v7742_v8 = vcombine.low %v6040_v27, %v10782_v3  ;;  %v6479_v0 = vrot.slane %v10832_v61, 1  ;;  %v11579_v53 = vld [vmem:[#allocation50_spill] sm:$0xff]  ;;  %v11581_v43 = vld [vmem:[#allocation21_spill] sm:$0xff] }
 0x3a6   : >> { %v7740_v6 = vcombine.low %v6038_v45, %v11575_v55  ;;  %v10946_v25 = vsel %vm1445_vm10, %v6469_v60, %v6470_v9  ;;  %v7743_v24 = vcombine.low %v6041_v10, %v11578_v5  ;;  %v6482_v50 = vrot.slane %v10787_v18, 1  ;;  %v5240_v45 = vpop.permute.xlu1 %5239  ;;  %v11580_v55 = vld [vmem:[#allocation19_spill] sm:$0xff]  ;;  %v8629_v20 = vld [vmem:[#allocation3 + $0xb0] ss:$0 sps:$4 sm:$0x11]  }
 0x3a7   : >> { %v6475_v22 = vrot.slane %v7741_v56, 1  ;;  %v6478_v34 = vrot.slane %v7742_v8, 1  ;;  %v7744_v3 = vcombine.low %v6042_v48, %v10809_v1  ;;  %v6485_v61 = vrot.slane %v10842_v59, 1  ;;  %v8627_v1 = vld [vmem:[#allocation3 + $0xa4] ss:$0 sps:$4 sm:$0x11]  }
 0x3a8   : >> { %v6472_v44 = vrot.slane %v7740_v6, 1  ;;  %v6481_v39 = vrot.slane %v7743_v24, 1  ;;  %v7745_v4 = vcombine.low %v6043_v21, %v11579_v53  ;;  %v6488_v47 = vrot.slane %v10813_v49, 1  ;;  %v4894_v6 = vld [vmem:[#allocation3 + $0xa8] sm:$0xe] }
 0x3a9   : >> { %v10957_v46 = vsel %vm1445_vm10, %v6475_v22, %v6476_v12  ;;  %v10962_v23 = vsel %vm1445_vm10, %v6478_v34, %v6479_v0  ;;  %v5333_v18 = vrot.slane %v7615_v42, 1  ;;  %v5334_v40 = vrot.slane %v8627_v1, 1  ;;  %v4895_v12 = vld [vmem:[#allocation3 + $0xb4] sm:$0xe]  ;;  %v11582_v0 = vld [vmem:[#allocation23_spill] sm:$0xff] }
 0x3aa   : >> { %v10952_v28 = vsel %vm1445_vm10, %v6472_v44, %v6473_v13  ;;  %v10969_v32 = vsel %vm1445_vm10, %v6481_v39, %v6482_v50  ;;  %v6487_v9 = vrot.slane %v7745_v4, 1  ;;  %v5379_v49 = vsel %vm1494_vm11, %v11580_v55, %v5240_v45  ;;  %v8631_v10 = vld [vmem:[#allocation3 + $0xbc] ss:$0 sps:$4 sm:$0x11]   ;;  %v4297_v34 = vld [vmem:[#allocation3] sm:$0xe] }
 0x3ab   : >> { %v5335_v29 = vsel %vm1445_vm10, %v5333_v18, %v5334_v40  ;;  %v7616_v42 = vcombine.low %v4894_v6, %v8628_v38  ;;  %v5337_v31 = vrot.slane %v8629_v20, 1  ;;  %v5340_v22 = vrot.slane %v8631_v10, 1  ;;  %v11583_v50 = vld [vmem:[#allocation24_spill] sm:$0xff]  ;;  %v8633_v53 = vld [vmem:[#allocation3 + $0x8] ss:$0 sps:$4 sm:$0x11]  }
 0x3ac   : >> { %5651 = vmatmul.mubr.bf16.gmra.mrb[40].mxu1 %v5376_v36  ;;  %v10975_v2 = vsel %vm1445_vm10, %v6487_v9, %v6488_v47  ;;  %v7617_v36 = vcombine.low %v4895_v12, %v8630_v51  ;;  %v8632_v21 = vld [vmem:[#allocation3 + $0x4] sm:$0xf]  ;;  %v4714_v4 = vrot.slane %v8633_v53, 1  ;;  %v11584_v47 = vld [vmem:[#allocation14_spill] sm:$0xff]  ;;  %v4298_v40 = vld [vmem:[#allocation3 + $0xc] sm:$0xe] }
 0x3ad   : >> { %7666 = vmatprep.mubr.msk.bf16.mxu1 %vm1494_vm11, %v5332_v62  ;;  %v6484_v62 = vrot.slane %v7744_v3, 1  ;;  %v5336_v13 = vrot.slane %v7616_v42, 1  ;;  %v7555_v39 = vcombine.low %v4297_v34, %v8632_v21  ;;  %v8634_v9 = vld [vmem:[#allocation3 + $0x10] sm:$0xf]  ;;  %v8521_v42 = vld [vmem:[%s11393_s4 + $0xc0] sm:$0xff]  }
 0x3ae   : >> { %v5339_v8 = vrot.slane %v7617_v36, 1  ;;  %v7556_v45 = vcombine.low %v4298_v40, %v8634_v9  ;;  %v8635_v6 = vld [vmem:[#allocation3 + $0x14] ss:$0 sps:$4 sm:$0x11]   ;;  %v11007_v12 = vld [vmem:[#allocation3 + $0xd0] sm:$0xf] }
 0x3af   : >> { %v10972_v59 = vsel %vm1445_vm10, %v6484_v62, %v6485_v61  ;;  %v5338_v27 = vsel %vm1445_vm10, %v5336_v13, %v5337_v31  ;;  %v4713_v61 = vrot.slane %v7555_v39, 1  ;;  %v4299_v13 = vld [vmem:[#allocation3 + $0x18] sm:$0xe]  ;;  %v8636_v31 = vld [vmem:[#allocation3 + $0x1c] sm:$0xf] }
 0x3b0   : >> { %v5341_v24 = vsel %vm1445_vm10, %v5339_v8, %v5340_v22  ;;  %v11013_v51 = vld [vmem:[#allocation3 + $0xd4] ss:$0 sps:$4 sm:$0x11]   ;;  %v8637_v36 = vld [vmem:[#allocation3 + $0x20] ss:$0 sps:$4 sm:$0x11]  }
 0x3b1   : >> { %v4715_v1 = vsel %vm1445_vm10, %v4713_v61, %v4714_v4  ;;  %v4300_v21 = vld [vmem:[#allocation3 + $0x24] sm:$0xe]  ;;  %v8638_v61 = vld [vmem:[#allocation3 + $0x28] sm:$0xf] }
 0x3b2   : >> { %v5242_v60 = vpop.permute.xlu0 %5241  ;;  %v7558_v53 = vcombine.low %v4300_v21, %v8638_v61  ;;  %v8639_v40 = vld [vmem:[#allocation3 + $0x2c] ss:$0 sps:$4 sm:$0x11]  }
 0x3b3   : >> { %v5382_v56 = vsel %vm1494_vm11, %v11581_v43, %v5242_v60  ;;  %v7557_v60 = vcombine.low %v4299_v13, %v8636_v31  ;;  %v8524_v43 = vld [vmem:[%s11393_s4 + $0xc8] sm:$0xff]   ;;  %v4723_v9 = vrot.slane %v8639_v40, 1  ;;  %v8641_v31 = vld [vmem:[#allocation3 + $0x38] ss:$0 sps:$4 sm:$0x11]  }
 0x3b4   : >> { %5659 = vmatmul.mubr.bf16.gmra.mrb[44].mxu1 %v5379_v49  ;;  %v4716_v49 = vrot.slane %v7556_v45, 1  ;;  %v8531_v45 = vld [vmem:[%s11393_s4 + $0xe0] sm:$0xff]  }
 0x3b5   : >> { %7667 = vmatprep.mubr.msk.bf16.mxu1 %vm1494_vm11, %v5335_v29  ;;  %v4717_v29 = vrot.slane %v8635_v6, 1  ;;  %v4719_v10 = vrot.slane %v7557_v60, 1  ;;  %v4301_v6 = vld [vmem:[#allocation3 + $0x30] sm:$0xe]  ;;  %v4726_v60 = vrot.slane %v8641_v31, 1 }
 0x3b7   : >> { %v5244_v44 = vpop.permute.xlu1 %5243  ;;  %v4718_v20 = vsel %vm1445_vm10, %v4716_v49, %v4717_v29 }
 0x3b8   : >> { %v5385_v5 = vsel %vm1494_vm11, %v11582_v0, %v5244_v44  ;;  %v4720_v44 = vrot.slane %v8637_v36, 1 }
 0x3ba   : >> { %v4721_v39 = vsel %vm1445_vm10, %v4719_v10, %v4720_v44  ;;  %v4302_v44 = vld [vmem:[#allocation3 + $0x3c] sm:$0xe]  ;;  %v8642_v10 = vld [vmem:[#allocation3 + $0x40] sm:$0xf] }
 0x3bc   : >> { %5667 = vmatmul.mubr.bf16.gmra.mrb[48].mxu1 %v5382_v56  ;;  %v6011_v56 = vld [vmem:[#allocation3 + $0xcc] sm:$0xf] }
 0x3bd   : >> { %7668 = vmatprep.mubr.msk.bf16.mxu1 %vm1494_vm11, %v5338_v27  ;;  %v11011_v27 = vcombine.low %v6011_v56, %v11007_v12  ;;  %v11588_v56 = vld [vmem:[#allocation26_spill] sm:$0xff] }
 0x3be   : >> { %v5246_v48 = vpop.permute.xlu0 %5245 }
 0x3bf   : >> { %v5388_v3 = vsel %vm1494_vm11, %v11583_v50, %v5246_v48  ;;  %v6354_v22 = vshrl.u32 %v11011_v27, 16  ;;  %v6356_v0 = vshll.u32 %v11011_v27, 16  ;;  %v11586_v50 = vld [vmem:[#allocation22_spill] sm:$0xff] }
 0x3c1   : >> { %v6358_v48 = vrot.slane %v6356_v0, 1  ;;  %v8538_v0 = vld [vmem:[%s11393_s4 + $0xf8] sm:$0xff]  }
 0x3c2   : >> { %v4634_v55 = vpop.permute.xlu0 %4633 }
 0x3c3   : >> { %v6359_v4 = vor.u32 %v6358_v48, %v6354_v22  ;;  %v7560_v22 = vcombine.low %v4302_v44, %v8642_v10  ;;  %v8643_v48 = vld [vmem:[#allocation3 + $0x44] ss:$0 sps:$4 sm:$0x11]  }
 0x3c4   : >> { %5675 = vmatmul.mubr.bf16.gmra.mrb[52].mxu1 %v5385_v5  ;;  %v6361_v5 = vshll.u32 %v11013_v51, 16  ;;  %v8648_v44 = vld [vmem:[#allocation3 + $0x64] sm:$0xf] }
 0x3c5   : >> { %7669 = vmatprep.mubr.msk.bf16.mxu1 %vm1494_vm11, %v5341_v24  ;;  %v8526_v24 = vld [vmem:[%s11393_s4 + $0xd0] sm:$0xff]  }
 0x3c6   : >> { %v6363_v34 = vrot.slane %v6361_v5, 1 }
 0x3c9   : >> { %v5248_v62 = vpop.permute.xlu1 %5247 }
 0x3ca   : >> { %v5391_v18 = vsel %vm1494_vm11, %v11584_v47, %v5248_v62  ;;  %v8528_v62 = vld [vmem:[%s11393_s4 + $0xd8] sm:$0xff]   ;;  %v6364_v47 = vsel %vm1172_vm9, %v6359_v4, %v6363_v34  ;;  %v4729_v34 = vrot.slane %v8643_v48, 1 }
 0x3cb   : >> { %6395 = vrot.lane.b32.xlu1 %v6364_v47, %s8732_s15 }
 0x3cc   : >> { %5683 = vmatmul.mubr.bf16.gmra.mrb[56].mxu1 %v5388_v3 }
 0x3cd   : >> { %7670 = vmatprep.mubr.msk.bf16.mxu1 %vm1494_vm11, %v10853_v16  ;;  %v11585_v16 = vld [vmem:[#allocation16_spill] sm:$0xff]  ;;  %v4636_v8 = vpop.permute.xlu1 %4635 }
 0x3ce   : >> { %v4762_v38 = vsel %vm1494_vm11, %v11585_v16, %v4634_v55  ;;  %v4765_v3 = vsel %vm1494_vm11, %v11586_v50, %v4636_v8  ;;  %v11587_v55 = vld [vmem:[#allocation18_spill] sm:$0xff]  ;;  %v8540_v50 = vld [vmem:[%s11393_s4 + $0x100] sm:$0xff]  }
 0x3cf   : >> { %v8640_v16 = vld [vmem:[#allocation3 + $0x34] sm:$0xf] }
 0x3d1   : >> { %v4640_v13 = vpop.permute.xlu1 %4639 }
 0x3d2   : >> { %v4771_v36 = vsel %vm1494_vm11, %v11588_v56, %v4640_v13  ;;  %v4305_v56 = vld [vmem:[#allocation3 + $0x60] sm:$0xe] }
 0x3d4   : >> { %5691 = vmatmul.mubr.bf16.gmra.mrb[60].mxu1 %v5391_v18  ;;  %v4638_v18 = vpop.permute.xlu0 %4637 }
 0x3d5   : >> { %7683 = vmatprep.mubr.msk.bf16.mxu1 %vm1494_vm11, %v4715_v1  ;;  %v4722_v1 = vrot.slane %v7558_v53, 1  ;;  %v4768_v49 = vsel %vm1494_vm11, %v11587_v55, %v4638_v18  ;;  %v8644_v53 = vld [vmem:[#allocation3 + $0x4c] sm:$0xf]  ;;  %v4644_v47 = vpop.permute.xlu1 %4643 }
 0x3d7   : >> { %v4724_v29 = vsel %vm1445_vm10, %v4722_v1, %v4723_v9  ;;  %v8645_v1 = vld [vmem:[#allocation3 + $0x50] ss:$0 sps:$4 sm:$0x11]   ;;  %v8545_v9 = vld [vmem:[%s11393_s4 + $0x110] sm:$0xff]  }
 0x3d8   : >> { %v4642_v5 = vpop.permute.xlu0 %4641  ;;  %v4732_v40 = vrot.slane %v8645_v1, 1 }
 0x3d9   : >> { %v4648_v10 = vpop.permute.xlu1 %4647 }
 0x3dc   : >> { %5852 = vmatmul.mubr.bf16.vlgmr.msra.gmra.mrb[0].mxu1 %v4762_v38  ;;  %v7559_v38 = vcombine.low %v4301_v6, %v8640_v16 }
 0x3dd   : >> { %6687 = vmatpush1.bf16.msra.mxu1 %v8521_v42  ;;  %7684 = vmatprep.mubr.msk.bf16.mxu1 %vm1494_vm11, %v4718_v20  ;;  %v8533_v42 = vld [vmem:[%s11393_s4 + $0xe8] sm:$0xff]  }
 0x3de   : >> { %6688 = vmatprep.subr.bf16.mxu1 %v11527_v63  ;;  %v4725_v20 = vrot.slane %v7559_v38, 1  ;;  %v8547_v38 = vld [vmem:[%s11393_s4 + $0x118] sm:$0xff]  }
 0x3e0   : >> { %v4727_v8 = vsel %vm1445_vm10, %v4725_v20, %v4726_v60  ;;  %v8647_v20 = vld [vmem:[#allocation3 + $0x5c] ss:$0 sps:$4 sm:$0x11]   ;;  %v11591_v60 = vld [vmem:[#allocation25_spill] sm:$0xff] }
 0x3e1   : >> { %6689 = vmatpush1.bf16.msra.mxu1 %v8524_v43  ;;  %v8535_v43 = vld [vmem:[%s11393_s4 + $0xf0] sm:$0xff]   ;;  %v4735_v31 = vrot.slane %v8647_v20, 1 }
 0x3e2   : >> { %6690 = vmatprep.subr.bf16.mxu1 %v11527_v63 }
 0x3e4   : >> { %5860 = vmatmul.mubr.bf16.gmra.mrb[4].mxu1 %v4765_v3  ;;  %v11589_v3 = vld [vmem:[#allocation20_spill] sm:$0xff] }
 0x3e5   : >> { %7685 = vmatprep.mubr.msk.bf16.mxu1 %vm1494_vm11, %v4721_v39  ;;  %6691 = vmatpush1.bf16.msra.mxu1 %v8526_v24  ;;  %v4728_v24 = vrot.slane %v7560_v22, 1  ;;  %v4774_v21 = vsel %vm1494_vm11, %v11589_v3, %v4642_v5  ;;  %v4303_v39 = vld [vmem:[#allocation3 + $0x48] sm:$0xe]  ;;  %v11592_v5 = vld [vmem:[#allocation12_spill] sm:$0xff] }
 0x3e6   : >> { %6692 = vmatprep.subr.bf16.mxu1 %v11527_v63  ;;  %v7561_v4 = vcombine.low %v4303_v39, %v8644_v53  ;;  %v8650_v39 = vld [vmem:[#allocation3 + $0x7c] sm:$0xf]  ;;  %v4652_v53 = vpop.permute.xlu1 %4651 }
 0x3e7   : >> { %v4730_v61 = vsel %vm1445_vm10, %v4728_v24, %v4729_v34  ;;  %v4783_v24 = vsel %vm1494_vm11, %v11592_v5, %v4648_v10 }
 0x3e8   : >> { %v4731_v18 = vrot.slane %v7561_v4, 1 }
 0x3e9   : >> { %6693 = vmatpush1.bf16.msra.mxu1 %v8528_v62  ;;  %v8542_v62 = vld [vmem:[%s11393_s4 + $0x108] sm:$0xff]  }
 0x3ea   : >> { %6694 = vmatprep.subr.bf16.mxu1 %v11527_v63  ;;  %v4733_v6 = vsel %vm1445_vm10, %v4731_v18, %v4732_v40  ;;  %v11594_v18 = vld [vmem:[#allocation29_spill] sm:$0xff] }
 0x3eb   : >> { %v4789_v1 = vsel %vm1494_vm11, %v11594_v18, %v4652_v53  ;;  %v8657_v53 = vld [vmem:[#allocation3 + $0x20] ss:$0 sps:$4 sm:$0x11]  }
 0x3ec   : >> { %5868 = vmatmul.mubr.bf16.gmra.mrb[8].mxu1 %v4768_v49  ;;  %v4304_v49 = vld [vmem:[#allocation3 + $0x54] sm:$0xe] }
 0x3ed   : >> { %7686 = vmatprep.mubr.msk.bf16.mxu1 %vm1494_vm11, %v4724_v29  ;;  %6695 = vmatpush1.bf16.msra.mxu1 %v8531_v45  ;;  %v11590_v45 = vld [vmem:[#allocation28_spill] sm:$0xff]  ;;  %v8646_v29 = vld [vmem:[#allocation3 + $0x58] sm:$0xf] }
 0x3ee   : >> { %6696 = vmatprep.subr.bf16.mxu1 %v11527_v63  ;;  %v4777_v55 = vsel %vm1494_vm11, %v11590_v45, %v4644_v47  ;;  %v7562_v16 = vcombine.low %v4304_v49, %v8646_v29  ;;  %v11595_v45 = vld [vmem:[#allocation15_spill] sm:$0xff]  ;;  %v4309_v49 = vld [vmem:[#allocation3 + $0x90] sm:$0xe]  ;;  %v4656_v29 = vpop.permute.xlu1 %4655 }
 0x3f0   : >> { %v4734_v13 = vrot.slane %v7562_v16, 1 }
 0x3f1   : >> { %6697 = vmatpush1.bf16.msra.mxu1 %v8533_v42  ;;  %v4646_v42 = vpop.permute.xlu0 %4645 }
 0x3f2   : >> { %6698 = vmatprep.subr.bf16.mxu1 %v11527_v63 }
 0x3f4   : >> { %5876 = vmatmul.mubr.bf16.gmra.mrb[12].mxu1 %v4771_v36  ;;  %v4736_v36 = vsel %vm1445_vm10, %v4734_v13, %v4735_v31  ;;  %v11596_v13 = vld [vmem:[#allocation31_spill] sm:$0xff] }
 0x3f5   : >> { %7687 = vmatprep.mubr.msk.bf16.mxu1 %vm1494_vm11, %v4727_v8  ;;  %6699 = vmatpush1.bf16.msra.mxu1 %v8535_v43  ;;  %v4780_v43 = vsel %vm1494_vm11, %v11591_v60, %v4646_v42  ;;  %v7563_v8 = vcombine.low %v4305_v56, %v8648_v44  ;;  %v4650_v34 = vpop.permute.xlu0 %4649  ;;  %v4795_v20 = vsel %vm1494_vm11, %v11596_v13, %v4656_v29  ;;  %v8654_v44 = vld [vmem:[#allocation3 + $0xac] sm:$0xf] }
 0x3f6   : >> { %6700 = vmatprep.subr.bf16.mxu1 %v11527_v63 }
 0x3f7   : >> { %v4737_v22 = vrot.slane %v7563_v8, 1  ;;  %v4660_v8 = vpop.permute.xlu1 %4659 }
 0x3f9   : >> { %6701 = vmatpush1.bf16.msra.mxu1 %v8538_v0  ;;  %v8649_v0 = vld [vmem:[#allocation3 + $0x68] ss:$0 sps:$4 sm:$0x11]  }
 0x3fa   : >> { %6702 = vmatprep.subr.bf16.mxu1 %v11527_v63 }
 0x3fc   : >> { %5884 = vmatmul.mubr.bf16.gmra.mrb[16].mxu1 %v4774_v21  ;;  %v4307_v21 = vld [vmem:[#allocation3 + $0x78] sm:$0xe] }
 0x3fd   : >> { %7688 = vmatprep.mubr.msk.bf16.mxu1 %vm1494_vm11, %v4730_v61  ;;  %6703 = vmatpush1.bf16.msra.mxu1 %v8540_v50  ;;  %v11593_v50 = vld [vmem:[#allocation27_spill] sm:$0xff]  ;;  %v7565_v61 = vcombine.low %v4307_v21, %v8650_v39  ;;  %v4664_v39 = vpop.permute.xlu1 %4663 }
 0x3fe   : >> { %6704 = vmatprep.subr.bf16.mxu1 %v11527_v63  ;;  %v4786_v3 = vsel %vm1494_vm11, %v11593_v50, %v4650_v34  ;;  %v11599_v34 = vld [vmem:[#allocation30_spill] sm:$0xff]  ;;  %v8656_v21 = vld [vmem:[#allocation3 + $0x1c] sm:$0xf] }
 0x3ff   : >> { %v4743_v4 = vrot.slane %v7565_v61, 1 }
 0x401   : >> { %6705 = vmatpush1.bf16.msra.mxu1 %v8542_v62  ;;  %v8651_v62 = vld [vmem:[#allocation3 + $0x80] ss:$0 sps:$4 sm:$0x11]  }
 0x402   : >> { %6706 = vmatprep.subr.bf16.mxu1 %v11527_v63  ;;  %v4744_v47 = vrot.slane %v8651_v62, 1  ;;  %v11600_v62 = vld [vmem:[#allocation35_spill] sm:$0xff] }
 0x404   : >> { %5892 = vmatmul.mubr.bf16.gmra.mrb[20].mxu1 %v4777_v55  ;;  %v4745_v40 = vsel %vm1445_vm10, %v4743_v4, %v4744_v47  ;;  %v6446_v4 = vrot.slane %v8657_v53, 1  ;;  %v4807_v47 = vsel %vm1494_vm11, %v11600_v62, %v4664_v39 }
 0x405   : >> { %7689 = vmatprep.mubr.msk.bf16.mxu1 %vm1494_vm11, %v4733_v6  ;;  %6707 = vmatpush1.bf16.msra.mxu1 %v8545_v9  ;;  %v4654_v9 = vpop.permute.xlu0 %4653  ;;  %v8652_v6 = vld [vmem:[#allocation3 + $0x94] sm:$0xf] }
 0x406   : >> { %6708 = vmatprep.subr.bf16.mxu1 %v11527_v63  ;;  %v4738_v63 = vrot.slane %v8649_v0, 1  ;;  %v4792_v55 = vsel %vm1494_vm11, %v11595_v45, %v4654_v9  ;;  %v11602_v45 = vld [vmem:[#allocation37_spill] sm:$0xff] }
 0x408   : >> { %v4739_v48 = vsel %vm1445_vm10, %v4737_v22, %v4738_v63  ;;  %v8655_v22 = vld [vmem:[#allocation3 + $0xb0] ss:$0 sps:$4 sm:$0x11]   ;;  %v11598_v63 = vld [vmem:[#allocation33_spill] sm:$0xff] }
 0x409   : >> { %6709 = vmatpush1.bf16.msra.mxu1 %v8547_v38  ;;  %v8653_v38 = vld [vmem:[#allocation3 + $0x98] ss:$0 sps:$4 sm:$0x11]   ;;  %v4658_v60 = vpop.permute.xlu0 %4657  ;;  %v4756_v0 = vrot.slane %v8655_v22, 1  ;;  %v4801_v5 = vsel %vm1494_vm11, %v11598_v63, %v4660_v8 }
 0x40a   : >> { %v4750_v42 = vrot.slane %v8653_v38, 1 }
 0x40c   : >> { %5900 = vmatmul.mubr.bf16.gmra.mrb[24].mxu1 %v4780_v43  ;;  %v11597_v43 = vld [vmem:[#allocation13_spill] sm:$0xff] }
 0x40d   : >> { %7690 = vmatprep.mubr.msk.bf16.mxu1 %vm1494_vm11, %v4736_v36  ;;  %v4798_v56 = vsel %vm1494_vm11, %v11597_v43, %v4658_v60  ;;  %v4311_v36 = vld [vmem:[#allocation3 + $0xa8] sm:$0xe]  ;;  %v11607_v60 = vld [vmem:[#allocation38_spill] sm:$0xff] }
 0x414   : >> { %5908 = vmatmul.mubr.bf16.gmra.mrb[28].mxu1 %v4783_v24 }
 0x415   : >> { %7691 = vmatprep.mubr.msk.bf16.mxu1 %vm1494_vm11, %v4739_v48  ;;  %v4662_v48 = vpop.permute.xlu0 %4661 }
 0x416   : >> { %v4804_v50 = vsel %vm1494_vm11, %v11599_v34, %v4662_v48 }
 0x41c   : >> { %5916 = vmatmul.mubr.bf16.gmra.mrb[32].mxu1 %v4786_v3  ;;  %v6029_v3 = vld [vmem:[#allocation3 + $0x18] sm:$0xe] }
 0x41d   : >> { %7692 = vmatprep.mubr.msk.bf16.mxu1 %vm1494_vm11, %v10874_v57  ;;  %v7567_v57 = vcombine.low %v4309_v49, %v8652_v6  ;;  %v11603_v6 = vld [vmem:[#allocation34_spill] sm:$0xff] }
 0x41f   : >> { %v4749_v16 = vrot.slane %v7567_v57, 1 }
 0x421   : >> { %v4751_v31 = vsel %vm1445_vm10, %v4749_v16, %v4750_v42  ;;  %v11604_v16 = vld [vmem:[#allocation39_spill] sm:$0xff]  ;;  %v11605_v42 = vld [vmem:[#allocation36_spill] sm:$0xff] }
 0x424   : >> { %5924 = vmatmul.mubr.bf16.gmra.mrb[36].mxu1 %v4789_v1  ;;  %v6366_v1 = vpop.permute.xlu0 %6365 }
 0x425   : >> { %7693 = vmatprep.mubr.msk.bf16.mxu1 %vm1494_vm11, %v4745_v40  ;;  %v11601_v40 = vld [vmem:[#allocation32_spill] sm:$0xff] }
 0x426   : >> { %v6494_v9 = vsel %vm1494_vm11, %v11601_v40, %v6366_v1 }
 0x428   : >> { %v6370_v49 = vpop.permute.xlu0 %6369 }
 0x429   : >> { %v6500_v57 = vsel %vm1494_vm11, %v11603_v6, %v6370_v49 }
 0x42c   : >> { %5932 = vmatmul.mubr.bf16.gmra.mrb[40].mxu1 %v4792_v55  ;;  %v6374_v38 = vpop.permute.xlu0 %6373 }
 0x42d   : >> { %7694 = vmatprep.mubr.msk.bf16.mxu1 %vm1494_vm11, %v10881_v7  ;;  %v7569_v7 = vcombine.low %v4311_v36, %v8654_v44  ;;  %v11609_v44 = vld [vmem:[#allocation41_spill] sm:$0xff] }
 0x42f   : >> { %v4755_v10 = vrot.slane %v7569_v7, 1 }
 0x431   : >> { %v4757_v24 = vsel %vm1445_vm10, %v4755_v10, %v4756_v0  ;;  %v11610_v10 = vld [vmem:[#allocation46_spill] sm:$0xff]  ;;  %v6044_v0 = vld [vmem:[#allocation3 + $0xcc] sm:$0xe] }
 0x434   : >> { %5940 = vmatmul.mubr.bf16.gmra.mrb[44].mxu1 %v4795_v20  ;;  %v11606_v20 = vld [vmem:[#allocation43_spill] sm:$0xff] }
 0x435   : >> { %7695 = vmatprep.mubr.msk.bf16.mxu1 %vm1494_vm11, %v4751_v31  ;;  %v6378_v31 = vpop.permute.xlu0 %6377 }
 0x439   : >> { %v6382_v36 = vpop.permute.xlu0 %6381 }
 0x43c   : >> { %5948 = vmatmul.mubr.bf16.gmra.mrb[48].mxu1 %v4798_v56  ;;  %v11608_v56 = vld [vmem:[#allocation48_spill] sm:$0xff] }
 0x43d   : >> { %7696 = vmatprep.mubr.msk.bf16.mxu1 %vm1494_vm11, %v10888_v11  ;;  %v7731_v11 = vcombine.low %v6029_v3, %v8656_v21  ;;  %v6386_v8 = vpop.permute.xlu0 %6385 }
 0x43f   : >> { %v6445_v61 = vrot.slane %v7731_v11, 1  ;;  %v11612_v11 = vld [vmem:[#allocation10_spill] sm:$0xff] }
 0x441   : >> { %v6447_v18 = vsel %vm1445_vm10, %v6445_v61, %v6446_v4 }
 0x444   : >> { %5956 = vmatmul.mubr.bf16.gmra.mrb[52].mxu1 %v4801_v5  ;;  %v6491_v5 = vrot.slane %v11013_v51, 1  ;;  %v11611_v51 = vld [vmem:[#allocation9_spill] sm:$0xff] }
 0x445   : >> { %7697 = vmatprep.mubr.msk.bf16.mxu1 %vm1494_vm11, %v4757_v24 }
 0x44c   : >> { %5964 = vmatmul.mubr.bf16.gmra.mrb[56].mxu1 %v4804_v50 }
 0x44d   : >> { %7698 = vmatprep.mubr.msk.bf16.mxu1 %vm1494_vm11, %v10897_v15  ;;  %v6368_v15 = vpop.permute.xlu1 %6367 }
 0x44e   : >> { %v6497_v55 = vsel %vm1494_vm11, %v11602_v45, %v6368_v15 }
 0x451   : >> { %v6372_v29 = vpop.permute.xlu1 %6371 }
 0x454   : >> { %5972 = vmatmul.mubr.bf16.gmra.mrb[60].mxu1 %v4807_v47 }
 0x455   : >> { %7783 = vmatprep.mubr.msk.bf16.mxu1 %vm1494_vm11, %v6447_v18  ;;  %v6376_v13 = vpop.permute.xlu1 %6375 }
 0x459   : >> { %v6380_v43 = vpop.permute.xlu1 %6379 }
 0x45c   : >> { %6719 = vmatmul.mubr.bf16.vlgmr.msra.gmra.mrb[0].mxu1 %v6494_v9 }
 0x45d   : >> { %7784 = vmatprep.mubr.msk.bf16.mxu1 %vm1494_vm11, %v10910_v17  ;;  %v6503_v17 = vsel %vm1494_vm11, %v11604_v16, %v6372_v29  ;;  %v6384_v7 = vpop.permute.xlu1 %6383 }
 0x461   : >> { %v6388_v22 = vpop.permute.xlu1 %6387 }
 0x464   : >> { %6727 = vmatmul.mubr.bf16.gmra.mrb[4].mxu1 %v6497_v55 }
 0x465   : >> { %7785 = vmatprep.mubr.msk.bf16.mxu1 %vm1494_vm11, %v10915_v30  ;;  %v6506_v30 = vsel %vm1494_vm11, %v11605_v42, %v6374_v38  ;;  %v6392_v63 = vpop.permute.xlu1 %6391  ;;  %v7909_v38 = vld [vmem:[%s9026_s22 + $0x10] sm:$0xff]  }
 0x46c   : >> { %6735 = vmatmul.mubr.bf16.gmra.mrb[8].mxu1 %v6500_v57 }
 0x46d   : >> { %7786 = vmatprep.mubr.msk.bf16.mxu1 %vm1494_vm11, %v10920_v19  ;;  %v6509_v19 = vsel %vm1494_vm11, %v11606_v20, %v6376_v13 }
 0x474   : >> { %6743 = vmatmul.mubr.bf16.gmra.mrb[12].mxu1 %v6503_v17 }
 0x475   : >> { %7787 = vmatprep.mubr.msk.bf16.mxu1 %vm1494_vm11, %v10925_v26  ;;  %v6512_v26 = vsel %vm1494_vm11, %v11607_v60, %v6378_v31  ;;  %v7854_v31 = vunpack.c.l.bf16 %v7909_v38 }
 0x47c   : >> { %6751 = vmatmul.mubr.bf16.gmra.mrb[16].mxu1 %v6506_v30 }
 0x47d   : >> { %7788 = vmatprep.mubr.msk.bf16.mxu1 %vm1494_vm11, %v10930_v58  ;;  %v6515_v58 = vsel %vm1494_vm11, %v11608_v56, %v6380_v43 }
 0x484   : >> { %6759 = vmatmul.mubr.bf16.gmra.mrb[20].mxu1 %v6509_v19 }
 0x485   : >> { %7789 = vmatprep.mubr.msk.bf16.mxu1 %vm1494_vm11, %v10935_v33  ;;  %v6518_v33 = vsel %vm1494_vm11, %v11609_v44, %v6382_v36 }
 0x48c   : >> { %6767 = vmatmul.mubr.bf16.gmra.mrb[24].mxu1 %v6512_v26 }
 0x48d   : >> { %7790 = vmatprep.mubr.msk.bf16.mxu1 %vm1494_vm11, %v10942_v37  ;;  %v6521_v37 = vsel %vm1494_vm11, %v10773_v54, %v6384_v7  ;;  %v6390_v54 = vpop.permute.xlu0 %6389  ;;  %v7910_v7 = vld [vmem:[%s9026_s22 + $0x18] sm:$0xff]  }
 0x494   : >> { %6775 = vmatmul.mubr.bf16.gmra.mrb[28].mxu1 %v6515_v58  ;;  %v7855_v58 = vunpack.c.h.bf16 %v7909_v38 }
 0x495   : >> { %7791 = vmatprep.mubr.msk.bf16.mxu1 %vm1494_vm11, %v10946_v25  ;;  %v6524_v25 = vsel %vm1494_vm11, %v11610_v10, %v6386_v8 }
 0x49c   : >> { %6783 = vmatmul.mubr.bf16.gmra.mrb[32].mxu1 %v6518_v33 }
 0x49d   : >> { %7792 = vmatprep.mubr.msk.bf16.mxu1 %vm1494_vm11, %v10952_v28  ;;  %v6527_v28 = vsel %vm1494_vm11, %v10801_v35, %v6388_v22  ;;  %v6533_v35 = vsel %vm1494_vm11, %v10822_v52, %v6392_v63 }
 0x4a4   : >> { %6791 = vmatmul.mubr.bf16.gmra.mrb[36].mxu1 %v6521_v37 }
 0x4a5   : >> { %7793 = vmatprep.mubr.msk.bf16.mxu1 %vm1494_vm11, %v10957_v46  ;;  %v6530_v46 = vsel %vm1494_vm11, %v10757_v41, %v6390_v54  ;;  %v6394_v41 = vpop.permute.xlu0 %6393 }
 0x4ac   : >> { %6799 = vmatmul.mubr.bf16.gmra.mrb[40].mxu1 %v6524_v25 }
 0x4ad   : >> { %7794 = vmatprep.mubr.msk.bf16.mxu1 %vm1494_vm11, %v10962_v23  ;;  %v7746_v23 = vcombine.low %v6044_v0, %v11007_v12  ;;  %v6396_v12 = vpop.permute.xlu1 %6395 }
 0x4ae   : >> { %v6539_v52 = vsel %vm1494_vm11, %v11011_v27, %v6396_v12  ;;  %v7908_v27 = vld [vmem:[%s9026_s22 + $0x8] sm:$0xff]  }
 0x4af   : >> { %v7850_v15 = vunpack.c.l.bf16 %v7908_v27  ;;  %v7851_v57 = vunpack.c.h.bf16 %v7908_v27 }
 0x4b4   : >> { %6807 = vmatmul.mubr.bf16.gmra.mrb[44].mxu1 %v6527_v28  ;;  %v7858_v28 = vunpack.c.l.bf16 %v7910_v7 }
 0x4b5   : >> { %7795 = vmatprep.mubr.msk.bf16.mxu1 %vm1494_vm11, %v10969_v32  ;;  %v6490_v32 = vrot.slane %v7746_v23, 1  ;;  %v7859_v23 = vunpack.c.h.bf16 %v7910_v7 }
 0x4b7   : >> { %v6492_v24 = vsel %vm1445_vm10, %v6490_v32, %v6491_v5 }
 0x4bc   : >> { %6815 = vmatmul.mubr.bf16.gmra.mrb[48].mxu1 %v6530_v46 }
 0x4bd   : >> { %7796 = vmatprep.mubr.msk.bf16.mxu1 %vm1494_vm11, %v10972_v59  ;;  %v6536_v59 = vsel %vm1494_vm11, %v10790_v14, %v6394_v41  ;;  %v7911_v41 = vld [vmem:[%s9026_s22 + $0x20] sm:$0xff]  }
 0x4c4   : >> { %6823 = vmatmul.mubr.bf16.gmra.mrb[52].mxu1 %v6533_v35 }
 0x4c5   : >> { %7797 = vmatprep.mubr.msk.bf16.mxu1 %vm1494_vm11, %v10975_v2  ;;  %v7845_v2 = vld [vmem:[%s9026_s22] sm:$0xff]  }
 0x4c6   : >> { %v7846_v50 = vunpack.c.l.bf16 %v7845_v2  ;;  %v7847_v61 = vunpack.c.h.bf16 %v7845_v2 }
 0x4cc   : >> { %6831 = vmatmul.mubr.bf16.gmra.mrb[56].mxu1 %v6536_v59 }
 0x4cd   : >> { %7798 = vmatprep.mubr.msk.bf16.mxu1 %vm1494_vm11, %v6492_v24 }
 0x4d4   : >> { %6839 = vmatmul.mubr.bf16.gmra.mrb[60].mxu1 %v6539_v52 }
 0x52f   : >> { %v6720_v48 = vpop.f32.mrb[0].mxu1 }
 0x530   : >> { %v6885_v34 = vmul.f32 %v11611_v51, %v6720_v48  ;;  %v6722_v3 = vpop.f32.mrb[1].mxu1  ;;  %v7862_v48 = vunpack.c.l.bf16 %v7911_v41 }
 0x531   : >> { %v6723_v21 = vpop.f32.mrb[2].mxu1 }
 0x532   : >> { %v6923_v39 = vadd.f32 %v11612_v11, %v6885_v34  ;;  %v6886_v14 = vmul.f32 %v11611_v51, %v6723_v21  ;;  %v6725_v53 = vpop.f32.mrb[3].mxu1 }
 0x534   : >> { %v7019_v4 = vadd.f32 %v7846_v50, %v6923_v39  ;;  %v6924_v62 = vadd.f32 %v11612_v11, %v6886_v14  ;;  %v7863_v39 = vunpack.c.h.bf16 %v7911_v41 }
 0x536   : >> { %v7051_v47 = vmax.f32 %v7019_v4, 0.0  ;;  %v7020_v18 = vadd.f32 %v7847_v61, %v6924_v62  ;;  %v7912_v4 = vld [vmem:[%s9026_s22 + $0x28] sm:$0xff]  }
 0x537   : >> { %v6728_v1 = vpop.f32.mrb[4].mxu1 }
 0x538   : >> { %7085 = vst.msk [vmem:[%s11192_s23] sm:$0xff] %vm1494_vm11, %v7051_v47  ;;  %v7052_v40 = vmax.f32 %v7020_v18, 0.0  ;;  %v6887_v9 = vmul.f32 %v11611_v51, %v6728_v1  ;;  %v6730_v45 = vpop.f32.mrb[5].mxu1 }
 0x539   : >> { %v6731_v55 = vpop.f32.mrb[6].mxu1 }
 0x53a   : >> { %7086 = vst.msk [vmem:[%s11192_s23 + $0x8] sm:$0xff] %vm1494_vm11, %v7052_v40  ;;  %v6925_v49 = vadd.f32 %v11612_v11, %v6887_v9  ;;  %v6888_v6 = vmul.f32 %v11611_v51, %v6731_v55  ;;  %v6733_v29 = vpop.f32.mrb[7].mxu1  ;;  %v7866_v40 = vunpack.c.l.bf16 %v7912_v4 }
 0x53c   : >> { %v7021_v16 = vadd.f32 %v7850_v15, %v6925_v49  ;;  %v6926_v17 = vadd.f32 %v11612_v11, %v6888_v6  ;;  %v7867_v49 = vunpack.c.h.bf16 %v7912_v4 }
 0x53e   : >> { %v7053_v42 = vmax.f32 %v7021_v16, 0.0  ;;  %v7022_v30 = vadd.f32 %v7851_v57, %v6926_v17  ;;  %v7913_v16 = vld [vmem:[%s9026_s22 + $0x30] sm:$0xff]  }
 0x53f   : >> { %v6736_v13 = vpop.f32.mrb[8].mxu1 }
 0x540   : >> { %7087 = vst.msk [vmem:[%s11192_s23 + $0x10] sm:$0xff] %vm1494_vm11, %v7053_v42  ;;  %v7054_v20 = vmax.f32 %v7022_v30, 0.0  ;;  %v6889_v19 = vmul.f32 %v11611_v51, %v6736_v13  ;;  %v6738_v60 = vpop.f32.mrb[9].mxu1 }
 0x541   : >> { %v6739_v26 = vpop.f32.mrb[10].mxu1 }
 0x542   : >> { %7088 = vst.msk [vmem:[%s11192_s23 + $0x18] sm:$0xff] %vm1494_vm11, %v7054_v20  ;;  %v6927_v43 = vadd.f32 %v11612_v11, %v6889_v19  ;;  %v6890_v56 = vmul.f32 %v11611_v51, %v6739_v26  ;;  %v6741_v36 = vpop.f32.mrb[11].mxu1  ;;  %v7870_v20 = vunpack.c.l.bf16 %v7913_v16 }
 0x544   : >> { %v7023_v44 = vadd.f32 %v7854_v31, %v6927_v43  ;;  %v6928_v33 = vadd.f32 %v11612_v11, %v6890_v56  ;;  %v7871_v43 = vunpack.c.h.bf16 %v7913_v16 }
 0x546   : >> { %v7055_v37 = vmax.f32 %v7023_v44, 0.0  ;;  %v7024_v8 = vadd.f32 %v7855_v58, %v6928_v33  ;;  %v7914_v44 = vld [vmem:[%s9026_s22 + $0x38] sm:$0xff]  }
 0x547   : >> { %v6744_v10 = vpop.f32.mrb[12].mxu1 }
 0x548   : >> { %7089 = vst.msk [vmem:[%s11192_s23 + $0x20] sm:$0xff] %vm1494_vm11, %v7055_v37  ;;  %v7056_v25 = vmax.f32 %v7024_v8, 0.0  ;;  %v6891_v22 = vmul.f32 %v11611_v51, %v6744_v10  ;;  %v6746_v54 = vpop.f32.mrb[13].mxu1 }
 0x549   : >> { %v6747_v46 = vpop.f32.mrb[14].mxu1 }
 0x54a   : >> { %7090 = vst.msk [vmem:[%s11192_s23 + $0x28] sm:$0xff] %vm1494_vm11, %v7056_v25  ;;  %v6929_v0 = vadd.f32 %v11612_v11, %v6891_v22  ;;  %v6892_v63 = vmul.f32 %v11611_v51, %v6747_v46  ;;  %v6749_v35 = vpop.f32.mrb[15].mxu1  ;;  %v7874_v25 = vunpack.c.l.bf16 %v7914_v44 }
 0x54c   : >> { %v7025_v32 = vadd.f32 %v7858_v28, %v6929_v0  ;;  %v6930_v5 = vadd.f32 %v11612_v11, %v6892_v63  ;;  %v7875_v0 = vunpack.c.h.bf16 %v7914_v44 }
 0x54e   : >> { %v7057_v24 = vmax.f32 %v7025_v32, 0.0  ;;  %v7026_v59 = vadd.f32 %v7859_v23, %v6930_v5  ;;  %v7915_v32 = vld [vmem:[%s9026_s22 + $0x40] sm:$0xff]  }
 0x54f   : >> { %v6752_v12 = vpop.f32.mrb[16].mxu1 }
 0x550   : >> { %7091 = vst.msk [vmem:[%s11192_s23 + $0x30] sm:$0xff] %vm1494_vm11, %v7057_v24  ;;  %v7058_v52 = vmax.f32 %v7026_v59, 0.0  ;;  %v6893_v2 = vmul.f32 %v11611_v51, %v6752_v12  ;;  %v6754_v34 = vpop.f32.mrb[17].mxu1 }
 0x551   : >> { %v6755_v50 = vpop.f32.mrb[18].mxu1 }
 0x552   : >> { %7092 = vst.msk [vmem:[%s11192_s23 + $0x38] sm:$0xff] %vm1494_vm11, %v7058_v52  ;;  %v6931_v3 = vadd.f32 %v11612_v11, %v6893_v2  ;;  %v6894_v21 = vmul.f32 %v11611_v51, %v6755_v50  ;;  %v6757_v14 = vpop.f32.mrb[19].mxu1  ;;  %v7878_v52 = vunpack.c.l.bf16 %v7915_v32 }
 0x554   : >> { %v7027_v61 = vadd.f32 %v7862_v48, %v6931_v3  ;;  %v6932_v53 = vadd.f32 %v11612_v11, %v6894_v21  ;;  %v7879_v3 = vunpack.c.h.bf16 %v7915_v32 }
 0x556   : >> { %v7059_v62 = vmax.f32 %v7027_v61, 0.0  ;;  %v7028_v27 = vadd.f32 %v7863_v39, %v6932_v53  ;;  %v7916_v61 = vld [vmem:[%s9026_s22 + $0x48] sm:$0xff]  }
 0x557   : >> { %v6760_v47 = vpop.f32.mrb[20].mxu1 }
 0x558   : >> { %7093 = vst.msk [vmem:[%s11192_s23 + $0x40] sm:$0xff] %vm1494_vm11, %v7059_v62  ;;  %v7060_v18 = vmax.f32 %v7028_v27, 0.0  ;;  %v6895_v1 = vmul.f32 %v11611_v51, %v6760_v47  ;;  %v6762_v9 = vpop.f32.mrb[21].mxu1 }
 0x559   : >> { %v6763_v15 = vpop.f32.mrb[22].mxu1 }
 0x55a   : >> { %7094 = vst.msk [vmem:[%s11192_s23 + $0x48] sm:$0xff] %vm1494_vm11, %v7060_v18  ;;  %v6933_v45 = vadd.f32 %v11612_v11, %v6895_v1  ;;  %v6896_v55 = vmul.f32 %v11611_v51, %v6763_v15  ;;  %v6765_v6 = vpop.f32.mrb[23].mxu1  ;;  %v7882_v18 = vunpack.c.l.bf16 %v7916_v61 }
 0x55c   : >> { %v7029_v57 = vadd.f32 %v7866_v40, %v6933_v45  ;;  %v6934_v29 = vadd.f32 %v11612_v11, %v6896_v55  ;;  %v7883_v45 = vunpack.c.h.bf16 %v7916_v61 }
 0x55e   : >> { %v7061_v17 = vmax.f32 %v7029_v57, 0.0  ;;  %v7030_v38 = vadd.f32 %v7867_v49, %v6934_v29  ;;  %v7917_v57 = vld [vmem:[%s9026_s22 + $0x50] sm:$0xff]  }
 0x55f   : >> { %v6768_v42 = vpop.f32.mrb[24].mxu1 }
 0x560   : >> { %7095 = vst.msk [vmem:[%s11192_s23 + $0x50] sm:$0xff] %vm1494_vm11, %v7061_v17  ;;  %v7062_v30 = vmax.f32 %v7030_v38, 0.0  ;;  %v6897_v13 = vmul.f32 %v11611_v51, %v6768_v42  ;;  %v6770_v19 = vpop.f32.mrb[25].mxu1 }
 0x561   : >> { %v6771_v31 = vpop.f32.mrb[26].mxu1 }
 0x562   : >> { %7096 = vst.msk [vmem:[%s11192_s23 + $0x58] sm:$0xff] %vm1494_vm11, %v7062_v30  ;;  %v6935_v60 = vadd.f32 %v11612_v11, %v6897_v13  ;;  %v6898_v26 = vmul.f32 %v11611_v51, %v6771_v31  ;;  %v6773_v56 = vpop.f32.mrb[27].mxu1  ;;  %v7886_v30 = vunpack.c.l.bf16 %v7917_v57 }
 0x564   : >> { %v7031_v58 = vadd.f32 %v7870_v20, %v6935_v60  ;;  %v6936_v36 = vadd.f32 %v11612_v11, %v6898_v26  ;;  %v7887_v60 = vunpack.c.h.bf16 %v7917_v57 }
 0x566   : >> { %v7063_v33 = vmax.f32 %v7031_v58, 0.0  ;;  %v7032_v7 = vadd.f32 %v7871_v43, %v6936_v36  ;;  %v7918_v58 = vld [vmem:[%s9026_s22 + $0x58] sm:$0xff]  }
 0x567   : >> { %v6776_v37 = vpop.f32.mrb[28].mxu1 }
 0x568   : >> { %7097 = vst.msk [vmem:[%s11192_s23 + $0x60] sm:$0xff] %vm1494_vm11, %v7063_v33  ;;  %v7064_v8 = vmax.f32 %v7032_v7, 0.0  ;;  %v6899_v10 = vmul.f32 %v11611_v51, %v6776_v37  ;;  %v6778_v22 = vpop.f32.mrb[29].mxu1 }
 0x569   : >> { %v6779_v28 = vpop.f32.mrb[30].mxu1 }
 0x56a   : >> { %7098 = vst.msk [vmem:[%s11192_s23 + $0x68] sm:$0xff] %vm1494_vm11, %v7064_v8  ;;  %v6937_v54 = vadd.f32 %v11612_v11, %v6899_v10  ;;  %v6900_v46 = vmul.f32 %v11611_v51, %v6779_v28  ;;  %v6781_v63 = vpop.f32.mrb[31].mxu1  ;;  %v7890_v8 = vunpack.c.l.bf16 %v7918_v58 }
 0x56c   : >> { %v7033_v23 = vadd.f32 %v7874_v25, %v6937_v54  ;;  %v6938_v35 = vadd.f32 %v11612_v11, %v6900_v46  ;;  %v7891_v54 = vunpack.c.h.bf16 %v7918_v58 }
 0x56e   : >> { %v7065_v5 = vmax.f32 %v7033_v23, 0.0  ;;  %v7034_v41 = vadd.f32 %v7875_v0, %v6938_v35  ;;  %v7919_v23 = vld [vmem:[%s9026_s22 + $0x60] sm:$0xff]  }
 0x56f   : >> { %v6784_v24 = vpop.f32.mrb[32].mxu1 }
 0x570   : >> { %7099 = vst.msk [vmem:[%s11192_s23 + $0x70] sm:$0xff] %vm1494_vm11, %v7065_v5  ;;  %v7066_v59 = vmax.f32 %v7034_v41, 0.0  ;;  %v6901_v12 = vmul.f32 %v11611_v51, %v6784_v24  ;;  %v6786_v2 = vpop.f32.mrb[33].mxu1 }
 0x571   : >> { %v6787_v48 = vpop.f32.mrb[34].mxu1 }
 0x572   : >> { %7100 = vst.msk [vmem:[%s11192_s23 + $0x78] sm:$0xff] %vm1494_vm11, %v7066_v59  ;;  %v6939_v34 = vadd.f32 %v11612_v11, %v6901_v12  ;;  %v6902_v50 = vmul.f32 %v11611_v51, %v6787_v48  ;;  %v6789_v21 = vpop.f32.mrb[35].mxu1  ;;  %v7894_v59 = vunpack.c.l.bf16 %v7919_v23 }
 0x574   : >> { %v7035_v39 = vadd.f32 %v7878_v52, %v6939_v34  ;;  %v6940_v14 = vadd.f32 %v11612_v11, %v6902_v50  ;;  %v7895_v34 = vunpack.c.h.bf16 %v7919_v23 }
 0x576   : >> { %v7067_v53 = vmax.f32 %v7035_v39, 0.0  ;;  %v7036_v4 = vadd.f32 %v7879_v3, %v6940_v14  ;;  %v7920_v39 = vld [vmem:[%s9026_s22 + $0x68] sm:$0xff]  }
 0x577   : >> { %v6792_v62 = vpop.f32.mrb[36].mxu1 }
 0x578   : >> { %7101 = vst.msk [vmem:[%s11192_s23 + $0x80] sm:$0xff] %vm1494_vm11, %v7067_v53  ;;  %v7068_v27 = vmax.f32 %v7036_v4, 0.0  ;;  %v6903_v47 = vmul.f32 %v11611_v51, %v6792_v62  ;;  %v6794_v1 = vpop.f32.mrb[37].mxu1 }
 0x579   : >> { %v6795_v40 = vpop.f32.mrb[38].mxu1 }
 0x57a   : >> { %7102 = vst.msk [vmem:[%s11192_s23 + $0x88] sm:$0xff] %vm1494_vm11, %v7068_v27  ;;  %v6941_v9 = vadd.f32 %v11612_v11, %v6903_v47  ;;  %v6904_v15 = vmul.f32 %v11611_v51, %v6795_v40  ;;  %v6797_v55 = vpop.f32.mrb[39].mxu1  ;;  %v7898_v27 = vunpack.c.l.bf16 %v7920_v39 }
 0x57c   : >> { %v7037_v49 = vadd.f32 %v7882_v18, %v6941_v9  ;;  %v6942_v6 = vadd.f32 %v11612_v11, %v6904_v15  ;;  %v7899_v9 = vunpack.c.h.bf16 %v7920_v39 }
 0x57e   : >> { %v7069_v29 = vmax.f32 %v7037_v49, 0.0  ;;  %v7038_v16 = vadd.f32 %v7883_v45, %v6942_v6  ;;  %v7921_v49 = vld [vmem:[%s9026_s22 + $0x70] sm:$0xff]  }
 0x57f   : >> { %v6800_v17 = vpop.f32.mrb[40].mxu1 }
 0x580   : >> { %7103 = vst.msk [vmem:[%s11192_s23 + $0x90] sm:$0xff] %vm1494_vm11, %v7069_v29  ;;  %v7070_v38 = vmax.f32 %v7038_v16, 0.0  ;;  %v6905_v42 = vmul.f32 %v11611_v51, %v6800_v17  ;;  %v6802_v13 = vpop.f32.mrb[41].mxu1 }
 0x581   : >> { %v6803_v20 = vpop.f32.mrb[42].mxu1 }
 0x582   : >> { %7104 = vst.msk [vmem:[%s11192_s23 + $0x98] sm:$0xff] %vm1494_vm11, %v7070_v38  ;;  %v6943_v19 = vadd.f32 %v11612_v11, %v6905_v42  ;;  %v6906_v31 = vmul.f32 %v11611_v51, %v6803_v20  ;;  %v6805_v26 = vpop.f32.mrb[43].mxu1  ;;  %v7902_v38 = vunpack.c.l.bf16 %v7921_v49 }
 0x584   : >> { %v7039_v43 = vadd.f32 %v7886_v30, %v6943_v19  ;;  %v6944_v56 = vadd.f32 %v11612_v11, %v6906_v31  ;;  %v7903_v19 = vunpack.c.h.bf16 %v7921_v49 }
 0x586   : >> { %v7071_v36 = vmax.f32 %v7039_v43, 0.0  ;;  %v7040_v44 = vadd.f32 %v7887_v60, %v6944_v56  ;;  %v7922_v43 = vld [vmem:[%s9026_s22 + $0x78] sm:$0xff]   ;;  %s7843_s22 = sshll.u32 (%p505_p11), %s8797_s28, 14  ;;  %s8733_s28 = smov (%p505_p11), [#allocation4]  }
 0x587   : >> { %v6808_v33 = vpop.f32.mrb[44].mxu1  ;;  %s11340_s8 = scalar_lea.hbm (%p505_p11), %s11396_s7, %s7843_s22  ;;  %s8662_s19 = sshll.u32 (%p505_p11), %s8733_s28, 4  ;;  %s8663_s19 = int_to_ptr.vmem [resolvable:$false] %s8662_s19 }
 0x588   : >> { %7105 = vst.msk [vmem:[%s11192_s23 + $0xa0] sm:$0xff] %vm1494_vm11, %v7071_v36  ;;  %v7072_v7 = vmax.f32 %v7040_v44, 0.0  ;;  %v6907_v37 = vmul.f32 %v11611_v51, %v6808_v33  ;;  %v6810_v10 = vpop.f32.mrb[45].mxu1  ;;  %s8664_s20 = scalar_lea.vmem (%p505_p11), %s8663_s19, 32768  ;;  %p8665_p1 = scmp.lt.s32.totalorder (%p505_p11), %s11344_s9, %s8663_s19 }
 0x589   : >> { %v6811_v25 = vpop.f32.mrb[46].mxu1  ;;  %p8666_p2 = scmp.lt.s32.totalorder (%p505_p11), %s8664_s20, %s8658_s16 }
 0x58a   : >> { %7106 = vst.msk [vmem:[%s11192_s23 + $0xa8] sm:$0xff] %vm1494_vm11, %v7072_v7  ;;  %v6945_v22 = vadd.f32 %v11612_v11, %v6907_v37  ;;  %v6908_v28 = vmul.f32 %v11611_v51, %v6811_v25  ;;  %v6813_v46 = vpop.f32.mrb[47].mxu1  ;;  %v7906_v7 = vunpack.c.l.bf16 %v7922_v43 }
 0x58b   : > { %p8667_p3 = por (%p505_p11), %p8666_p2, %p8665_p1 }
 0x58c   : >> { %v7041_v0 = vadd.f32 %v7890_v8, %v6945_v22  ;;  %v6946_v63 = vadd.f32 %v11612_v11, %v6908_v28  ;;  %v7907_v22 = vunpack.c.h.bf16 %v7922_v43 }
 0x58d   : > { %p8668_p4 = pnand (%p505_p11), %p8667_p3, %p8661_p0 }
 0x58e   : >> { %v7073_v35 = vmax.f32 %v7041_v0, 0.0  ;;  %v7042_v32 = vadd.f32 %v7891_v54, %v6946_v63 }
 0x58f   : >> { %v6816_v5 = vpop.f32.mrb[48].mxu1 }
 0x590   : >> { %7107 = vst.msk [vmem:[%s11192_s23 + $0xb0] sm:$0xff] %vm1494_vm11, %v7073_v35  ;;  %v7074_v41 = vmax.f32 %v7042_v32, 0.0  ;;  %v6909_v24 = vmul.f32 %v11611_v51, %v6816_v5  ;;  %v6818_v12 = vpop.f32.mrb[49].mxu1 }
 0x591   : >> { %v6819_v52 = vpop.f32.mrb[50].mxu1 }
 0x592   : >> { %7108 = vst.msk [vmem:[%s11192_s23 + $0xb8] sm:$0xff] %vm1494_vm11, %v7074_v41  ;;  %v6947_v2 = vadd.f32 %v11612_v11, %v6909_v24  ;;  %v6910_v48 = vmul.f32 %v11611_v51, %v6819_v52  ;;  %v6821_v50 = vpop.f32.mrb[51].mxu1 }
 0x594   : >> { %v7043_v3 = vadd.f32 %v7894_v59, %v6947_v2  ;;  %v6948_v21 = vadd.f32 %v11612_v11, %v6910_v48 }
 0x596   : >> { %v7075_v14 = vmax.f32 %v7043_v3, 0.0  ;;  %v7044_v61 = vadd.f32 %v7895_v34, %v6948_v21 }
 0x597   : >> { %v6824_v53 = vpop.f32.mrb[52].mxu1 }
 0x598   : >> { %7109 = vst.msk [vmem:[%s11192_s23 + $0xc0] sm:$0xff] %vm1494_vm11, %v7075_v14  ;;  %v7076_v4 = vmax.f32 %v7044_v61, 0.0  ;;  %v6911_v62 = vmul.f32 %v11611_v51, %v6824_v53  ;;  %v6826_v47 = vpop.f32.mrb[53].mxu1 }
 0x599   : >> { %v6827_v18 = vpop.f32.mrb[54].mxu1 }
 0x59a   : >> { %7110 = vst.msk [vmem:[%s11192_s23 + $0xc8] sm:$0xff] %vm1494_vm11, %v7076_v4  ;;  %v6949_v1 = vadd.f32 %v11612_v11, %v6911_v62  ;;  %v6912_v40 = vmul.f32 %v11611_v51, %v6827_v18  ;;  %v6829_v15 = vpop.f32.mrb[55].mxu1 }
 0x59c   : >> { %v7045_v45 = vadd.f32 %v7898_v27, %v6949_v1  ;;  %v6950_v55 = vadd.f32 %v11612_v11, %v6912_v40 }
 0x59e   : >> { %v7077_v6 = vmax.f32 %v7045_v45, 0.0  ;;  %v7046_v57 = vadd.f32 %v7899_v9, %v6950_v55 }
 0x59f   : >> { %v6832_v29 = vpop.f32.mrb[56].mxu1 }
 0x5a0   : >> { %7111 = vst.msk [vmem:[%s11192_s23 + $0xd0] sm:$0xff] %vm1494_vm11, %v7077_v6  ;;  %v7078_v16 = vmax.f32 %v7046_v57, 0.0  ;;  %v6913_v17 = vmul.f32 %v11611_v51, %v6832_v29  ;;  %v6834_v42 = vpop.f32.mrb[57].mxu1 }
 0x5a1   : >> { %v6835_v30 = vpop.f32.mrb[58].mxu1 }
 0x5a2   : >> { %7112 = vst.msk [vmem:[%s11192_s23 + $0xd8] sm:$0xff] %vm1494_vm11, %v7078_v16  ;;  %v6951_v13 = vadd.f32 %v11612_v11, %v6913_v17  ;;  %v6914_v20 = vmul.f32 %v11611_v51, %v6835_v30  ;;  %v6837_v31 = vpop.f32.mrb[59].mxu1 }
 0x5a4   : >> { %v7047_v60 = vadd.f32 %v7902_v38, %v6951_v13  ;;  %v6952_v26 = vadd.f32 %v11612_v11, %v6914_v20 }
 0x5a6   : >> { %v7079_v56 = vmax.f32 %v7047_v60, 0.0  ;;  %v7048_v58 = vadd.f32 %v7903_v19, %v6952_v26 }
 0x5a7   : >> { %v6840_v36 = vpop.f32.mrb[60].mxu1 }
 0x5a8   : >> { %7113 = vst.msk [vmem:[%s11192_s23 + $0xe0] sm:$0xff] %vm1494_vm11, %v7079_v56  ;;  %v7080_v44 = vmax.f32 %v7048_v58, 0.0  ;;  %v6915_v33 = vmul.f32 %v11611_v51, %v6840_v36  ;;  %v6842_v37 = vpop.f32.mrb[61].mxu1 }
 0x5a9   : >> { %v6843_v8 = vpop.f32.mrb[62].mxu1 }
 0x5aa   : >> { %7114 = vst.msk [vmem:[%s11192_s23 + $0xe8] sm:$0xff] %vm1494_vm11, %v7080_v44  ;;  %v6953_v10 = vadd.f32 %v11612_v11, %v6915_v33  ;;  %v6916_v25 = vmul.f32 %v11611_v51, %v6843_v8  ;;  %v6845_v28 = vpop.f32.mrb[63].mxu1 }
 0x5ac   : >> { %v7049_v54 = vadd.f32 %v7906_v7, %v6953_v10  ;;  %v6954_v46 = vadd.f32 %v11612_v11, %v6916_v25  ;;  %507 = sbr.rel (!%p505_p11) target bundleno = 84 (0x54), region = 102 }
 0x5ae   : >> { %v7081_v0 = vmax.f32 %v7049_v54, 0.0  ;;  %v7050_v63 = vadd.f32 %v7907_v22, %v6954_v46 }
 0x5b0   : >> { %7115 = vst.msk [vmem:[%s11192_s23 + $0xf0] sm:$0xff] %vm1494_vm11, %v7081_v0  ;;  %v7082_v23 = vmax.f32 %v7050_v63, 0.0 }
 0x5b2   : >> { %7116 = vst.msk [vmem:[%s11192_s23 + $0xf8] sm:$0xff] %vm1494_vm11, %v7082_v23 }
 0x5b3   : > { %8671 = shalt.err (!%p8668_p4)
}
 0x5b4   : > { %s8672_s13 = scalar_lea.hbm %s11340_s8, 16384  ;;  %s8676_s21 = scalar_lea.hbm %s11396_s7, 32768 }
 0x5b5   : > { %p8673_p7 = scmp.ne.s32.totalorder %s11340_s8, %s8672_s13  ;;  %p8677_p10 = scmp.lt.u32.totalorder %s11340_s8, %s11396_s7 }
 0x5b6   : > { %p8678_p11 = scmp.lt.u32.totalorder %s8676_s21, %s8672_s13  ;;  %p8680_p13 = scmp.lt.u32.totalorder %s8672_s13, %s11340_s8 }
 0x5b7   : > { %p8674_p8 = pnand %p8673_p7, %p8814_p5 }
 0x5b8   : > { %p8679_p12 = por %p8678_p11, %p8677_p10 }
 0x5b9   : > { %p8675_p9 = pneg %p8674_p8 }
 0x5ba   : > { %p8681_p0 = por %p8680_p13, %p8679_p12 }
 0x5bc   : > { %p8682_p1 = pnand %p8681_p0, %p8675_p9 }
 0x5be   : > { %8685 = shalt.err (!%p8682_p1)
}
 0x5bf   : > { %s8734_s15 = smov 128   ;;  %s8735_s29 = smov 8  }
 0x5c0   : > { %8179 = dma.vmem_to_hbm [thread:$0]  (%p8814_p5), %s11344_s9, 16384, %s11340_s8, %s11348_s18, %s8734_s15, %s8734_s15, %s8735_s29  }
 0x5c1 PF: > { %p8185_p2 = scmp.ge.s32.totalorder %s8724_s27, 2  ;;  %s7147_s16 = sand.u32 1, %s8712_s24  }
 0x5c2   : > { %s7148_s28 = scalar_lea.sflag [#allocation5], %s7147_s16 }
 0x5c3   : > { %p8182_p3 = pnand %p8185_p2, %p8818_p6 }
 0x5c5   : > { %8707 = dma.done.wait (!%p8182_p3), %s7148_s28, 16384  }
 0x5c6   : > { %8709 = vsyncadd (!%p8182_p3), %s7148_s28, 4294950912  ;;  %p17_p4 = scmp.ge.s32.totalorder %s8801_s30, 4   ;;  %s11613_s24 = smov %s8716_s25 }
 0x5c7   : > { %s11614_s25 = smov %s8720_s26  ;;  %s11615_s26 = smov %s8812_s10 }
 0x5c8   : > { %s11616_s27 = smov %s8801_s30  ;;  %19 = sbr.rel (!%p17_p4) target bundleno = 3 (0x3), region = 113 }
 0x5cf   :  { %7153 = vsyncpa [#allocation5], 1 }
 0x5d0   :  { %7155 = vsyncpa [#allocation5 + $0x1], 1 }

</bundles_post_ra>
